<compile_context>
chip_gen: v5e
topology: v5e:2x2
jax: 0.10.0
libtpu: 0.0.40
codegen_flags: <defaults>
</compile_context>

<pallas_src>
import jax
import jax.numpy as jnp
from jax import lax
from jax.experimental import pallas as pl
from jax.experimental.pallas import tpu as pltpu

LN_EPS = 1e-5
NEG_SLOPE = 0.2

# (in_features, out_features) for linear0..linear7
LAYER_DIMS = [(784, 784), (784, 784), (784, 256), (256, 128),
              (128, 64), (64, 32), (32, 16), (16, 1)]
NUM_LN = 6            # layers 0..5 are followed by a LayerNorm
VEC_WIDTH = 784       # width of the packed bias/gamma/beta table
# Packed-table rows: layer i in [0,6): rows 3i, 3i+1, 3i+2 = bias, gamma, beta.
_B6_ROW, _W7_ROW, _B7_ROW = 18, 19, 20
VEC_ROWS = 21

_TOTAL_MACS = sum(fin * fout for fin, fout in LAYER_DIMS)
_WEIGHT_BYTES_BF16 = sum(fin * fout for fin, fout in LAYER_DIMS[:7]) * 2
_VEC_BYTES = VEC_ROWS * VEC_WIDTH * 4


def _leaky_relu(x):
    # Works for both f32 and bf16 operands (weak-typed Python constant).
    return jnp.where(x > 0, x, NEG_SLOPE * x)


# ----------------------------------------------------------------------------- kernel
def discriminator_kernel(x_ref, w0, w1, w2, w3, w4, w5, w6, vec_ref, out_ref):
    h = x_ref[...]                                   # (TM, 784) bf16

    def ln_block(h_bf16, w_ref, row0, fout):
        # Linear on the MXU: bf16 x bf16, f32 accumulation.
        y = jnp.dot(h_bf16, w_ref[...], preferred_element_type=jnp.float32)
        y = y + vec_ref[row0:row0 + 1, 0:fout]                       # bias (f32)
        # LayerNorm statistics in f32, single pass: var = E[y^2] - mu^2 (clamped >= 0).
        mu = jnp.mean(y, axis=-1, keepdims=True)
        var = jnp.mean(y * y, axis=-1, keepdims=True) - mu * mu
        var = jnp.maximum(var, 0.0)
        inv_std = lax.rsqrt(var + LN_EPS)                            # (TM, 1) f32, EUP
        # Normalize in f32, then run the affine + LeakyReLU at bf16 width; the result is
        # already in the dtype the next matmul consumes (no extra cast pass).
        y_norm = ((y - mu) * inv_std).astype(jnp.bfloat16)           # (TM, fout) bf16
        gamma = vec_ref[row0 + 1:row0 + 2, 0:fout].astype(jnp.bfloat16)
        beta = vec_ref[row0 + 2:row0 + 3, 0:fout].astype(jnp.bfloat16)
        return _leaky_relu(y_norm * gamma + beta)                    # (TM, fout) bf16

    h = ln_block(h, w0, 0, 784)
    h = ln_block(h, w1, 3, 784)
    h = ln_block(h, w2, 6, 256)
    h = ln_block(h, w3, 9, 128)
    h = ln_block(h, w4, 12, 64)
    h = ln_block(h, w5, 15, 32)

    # linear6 + LeakyReLU (no LayerNorm); fout=16 is tiny so stay in f32.
    y = jnp.dot(h, w6[...], preferred_element_type=jnp.float32)
    y = y + vec_ref[_B6_ROW:_B6_ROW + 1, 0:16]
    h = _leaky_relu(y)                               # (TM, 16) f32

    # linear7 (16 -> 1): VPU multiply + lane reduce instead of an N=1 MXU pass.
    w7_row = vec_ref[_W7_ROW:_W7_ROW + 1, 0:16]
    out = jnp.sum(h * w7_row, axis=-1, keepdims=True) + vec_ref[_B7_ROW:_B7_ROW + 1, 0:1]
    out_ref[...] = out.astype(out_ref.dtype)


# ----------------------------------------------------------------------------- wrapper
def _pack_params(params):
    """-> (list of 7 bf16 weight matrices, packed (21, 784) f32 bias/gamma/beta/head table)."""
    weights = [params[i]["w"].astype(jnp.bfloat16) for i in range(7)]

    def pad_row(v):
        v = v.reshape(-1).astype(jnp.float32)
        return jnp.pad(v, (0, VEC_WIDTH - v.shape[0]))

    rows = []
    for i in range(NUM_LN):
        rows += [pad_row(params[i]["b"]), pad_row(params[i]["gamma"]),
                 pad_row(params[i]["beta"])]
    rows.append(pad_row(params[6]["b"]))            # row 18: bias of linear6
    rows.append(pad_row(params[7]["w"]))            # row 19: (16,1) head weights as a row
    rows.append(pad_row(params[7]["b"]))            # row 20: head bias (lane 0)
    vec = jnp.stack(rows, axis=0)                   # (21, 784) f32
    return weights, vec


@jax.jit
def discriminator_forward(x, params):
    """x: (B, 1, 28, 28) float32; params: list of 8 per-layer dicts (f32)."""
    b = x.shape[0]
    x2d = x.reshape(b, 784).astype(jnp.bfloat16)    # bf16 streaming halves input HBM traffic

    # Pad the batch to a multiple of 16 (bf16 sublane packing) and pick the batch tile:
    # as large as possible (<=512) to amortize per-grid-step overhead, but at least two grid
    # tiles once b_pad >= 32 so v7x's two TensorCores both get work on the "parallel" axis.
    b_pad = ((b + 15) // 16) * 16
    tm = next(t for t in (512, 256, 128, 64, 32, 16)
              if b_pad % t == 0 and (b_pad // t >= 2 or b_pad < 32))
    if b_pad != b:
        x2d = jnp.pad(x2d, ((0, b_pad - b), (0, 0)))
    grid = (b_pad // tm,)

    weights, vec = _pack_params(params)

    # Activations/outputs stream with the grid index; weights + packed table use constant
    # block indices so they are DMA'd once and stay resident in VMEM for all batch tiles.
    in_specs = [pl.BlockSpec((tm, 784), lambda i: (i, 0))]                  # bf16 activations
    in_specs += [pl.BlockSpec(w.shape, lambda i: (0, 0)) for w in weights]  # resident weights
    in_specs += [pl.BlockSpec(vec.shape, lambda i: (0, 0))]                 # packed table
    out_specs = pl.BlockSpec((tm, 1), lambda i: (i, 0))

    cost = pl.CostEstimate(
        flops=2 * b_pad * _TOTAL_MACS,
        transcendentals=NUM_LN * b_pad,
        bytes_accessed=_WEIGHT_BYTES_BF16 + _VEC_BYTES + b_pad * 784 * 2 + b_pad * 4,
    )

    out = pl.pallas_call(
        discriminator_kernel,
        out_shape=jax.ShapeDtypeStruct((b_pad, 1), jnp.float32),
        grid=grid,
        in_specs=in_specs,
        out_specs=out_specs,
        compiler_params=pltpu.CompilerParams(
            dimension_semantics=("parallel",),
            vmem_limit_bytes=32 << 20,       # fits v7x's 64 MiB physical VMEM
        ),
        cost_estimate=cost,
    )(x2d, *weights, vec)
    return out[:b]


# ----------------------------------------------------------------------------- params / refs
def init_params(key):
    """Deterministic synthetic init matching the PyTorch module's parameter shapes (f32)."""
    params = []
    keys = jax.random.split(key, 2 * len(LAYER_DIMS))
    for idx, (fin, fout) in enumerate(LAYER_DIMS):
        wk, bk = keys[2 * idx], keys[2 * idx + 1]
        bound = 1.0 / (fin ** 0.5)
        layer = {
            "w": jax.random.uniform(wk, (fin, fout), jnp.float32, -bound, bound),
            "b": jax.random.uniform(bk, (fout,), jnp.float32, -bound, bound),
        }
        if idx < NUM_LN:                      # nn.LayerNorm default: weight=1, bias=0
            layer["gamma"] = jnp.ones((fout,), jnp.float32)
            layer["beta"] = jnp.zeros((fout,), jnp.float32)
        params.append(layer)
    return params


def reference_forward_f32(x, params):
    """Pure-f32 JAX reference matching the PyTorch module exactly (logits, no sigmoid)."""
    h = x.reshape(x.shape[0], 784).astype(jnp.float32)
    for idx, p in enumerate(params):
        h = h @ p["w"] + p["b"]
        if idx < NUM_LN:
            mu = jnp.mean(h, axis=-1, keepdims=True)
            var = jnp.mean((h - mu) ** 2, axis=-1, keepdims=True)
            h = (h - mu) * lax.rsqrt(var + LN_EPS) * p["gamma"] + p["beta"]
        if idx < len(params) - 1:
            h = _leaky_relu(h)
    return h


def reference_forward_matched(x, params):
    """Mirrors the kernel math (bf16 matmuls / f32 stats, bf16 LN affine + LeakyReLU)."""
    h = x.reshape(x.shape[0], 784).astype(jnp.bfloat16)
    for idx in range(NUM_LN):
        p = params[idx]
        y = jnp.dot(h, p["w"].astype(jnp.bfloat16),
                    preferred_element_type=jnp.float32) + p["b"]
        mu = jnp.mean(y, axis=-1, keepdims=True)
        var = jnp.maximum(jnp.mean(y * y, axis=-1, keepdims=True) - mu * mu, 0.0)
        y_norm = ((y - mu) * lax.rsqrt(var + LN_EPS)).astype(jnp.bfloat16)
        h = _leaky_relu(y_norm * p["gamma"].astype(jnp.bfloat16)
                        + p["beta"].astype(jnp.bfloat16))
    p = params[6]
    y = jnp.dot(h, p["w"].astype(jnp.bfloat16),
                preferred_element_type=jnp.float32) + p["b"]
    h = _leaky_relu(y)
    p = params[7]
    return jnp.sum(h * p["w"].reshape(1, -1), axis=-1, keepdims=True) + p["b"]


# ----------------------------------------------------------------------------- demo / checks
if __name__ == "__main__":
    key = jax.random.PRNGKey(0)
    pk, xk, xk2 = jax.random.split(key, 3)
    params = init_params(pk)

    # Main check (small): batch 32 -> b_pad=32, TM=16, grid=(2,) so the "parallel" batch axis
    # exercises the multi-tile path (both v7x TensorCores on real hardware).
    x = jax.random.normal(xk, (32, 1, 28, 28), jnp.float32)
    out = jax.block_until_ready(discriminator_forward(x, params))
    assert out.shape == (32, 1)
    ref_matched = reference_forward_matched(x, params)
    ref_f32 = reference_forward_f32(x, params)
    assert jnp.allclose(out, ref_matched, atol=2e-2, rtol=2e-2), "mismatch vs matched (bf16) reference"
    assert jnp.allclose(out, ref_f32, atol=2e-1, rtol=2e-1), "mismatch vs f32 module reference"

    # Padding path: batch not a multiple of 16 (b_pad=16, single tile).
    x_small = jax.random.normal(xk2, (5, 1, 28, 28), jnp.float32)
    out_small = jax.block_until_ready(discriminator_forward(x_small, params))
    assert out_small.shape == (5, 1)
    assert jnp.allclose(out_small, reference_forward_matched(x_small, params),
                        atol=2e-2, rtol=2e-2), "mismatch on padded small batch"

    print("KERNEL_OK")
</pallas_src>

<mosaic_0001>
module attributes {stable_mosaic.version = 11 : i64} {
  func.func @discriminator_kernel(%arg0: i32, %arg1: memref<16x784xbf16, #tpu.memory_space<vmem>>, %arg2: memref<784x784xbf16, #tpu.memory_space<vmem>>, %arg3: memref<784x784xbf16, #tpu.memory_space<vmem>>, %arg4: memref<784x256xbf16, #tpu.memory_space<vmem>>, %arg5: memref<256x128xbf16, #tpu.memory_space<vmem>>, %arg6: memref<128x64xbf16, #tpu.memory_space<vmem>>, %arg7: memref<64x32xbf16, #tpu.memory_space<vmem>>, %arg8: memref<32x16xbf16, #tpu.memory_space<vmem>>, %arg9: memref<21x784xf32, #tpu.memory_space<vmem>>, %arg10: memref<16x1xf32, #tpu.memory_space<vmem>>) attributes {dimension_semantics = [#tpu.dimension_semantics<parallel>], iteration_bounds = array<i64: 2>, scalar_prefetch = 0 : i64, scratch_operands = 0 : i64, tpu.core_type = #tpu.core_type<tc>, window_params = [{transform_indices = @transform_0, window_bounds = array<i64: 16, 784>}, {pipeline_mode = #tpu.pipeline_mode<synchronous>, transform_indices = @transform_1, window_bounds = array<i64: 784, 784>}, {pipeline_mode = #tpu.pipeline_mode<synchronous>, transform_indices = @transform_2, window_bounds = array<i64: 784, 784>}, {pipeline_mode = #tpu.pipeline_mode<synchronous>, transform_indices = @transform_3, window_bounds = array<i64: 784, 256>}, {pipeline_mode = #tpu.pipeline_mode<synchronous>, transform_indices = @transform_4, window_bounds = array<i64: 256, 128>}, {pipeline_mode = #tpu.pipeline_mode<synchronous>, transform_indices = @transform_5, window_bounds = array<i64: 128, 64>}, {pipeline_mode = #tpu.pipeline_mode<synchronous>, transform_indices = @transform_6, window_bounds = array<i64: 64, 32>}, {pipeline_mode = #tpu.pipeline_mode<synchronous>, transform_indices = @transform_7, window_bounds = array<i64: 32, 16>}, {pipeline_mode = #tpu.pipeline_mode<synchronous>, transform_indices = @transform_8, window_bounds = array<i64: 21, 784>}, {transform_indices = @transform_9, window_bounds = array<i64: 16, 1>}]} {
    %c0 = arith.constant 0 : index
    %c0_0 = arith.constant 0 : index
    %0 = vector.load %arg1[%c0, %c0_0] : memref<16x784xbf16, #tpu.memory_space<vmem>>, vector<16x784xbf16>
    %c0_1 = arith.constant 0 : index
    %c0_2 = arith.constant 0 : index
    %1 = vector.load %arg2[%c0_1, %c0_2] : memref<784x784xbf16, #tpu.memory_space<vmem>>, vector<784x784xbf16>
    %cst = arith.constant dense<0.000000e+00> : vector<16x784xf32>
    %2 = tpu.matmul %0, %1, %cst {dimension_numbers = #tpu.dot_dimension_numbers<[1], [0], [0], [1], [0, 0, 1, 1], [], []>} : vector<16x784xbf16>, vector<784x784xbf16>, vector<16x784xf32> -> vector<16x784xf32>
    %c0_3 = arith.constant 0 : index
    %c0_4 = arith.constant 0 : index
    %3 = vector.load %arg9[%c0_3, %c0_4] : memref<21x784xf32, #tpu.memory_space<vmem>>, vector<1x784xf32>
    %4 = vector.broadcast %3 : vector<1x784xf32> to vector<16x784xf32>
    %5 = arith.addf %2, %4 : vector<16x784xf32>
    %cst_5 = arith.constant dense<0.000000e+00> : vector<16xf32>
    %6 = vector.multi_reduction <add>, %5, %cst_5 [1] : vector<16x784xf32> to vector<16xf32>
    %7 = vector.shape_cast %6 : vector<16xf32> to vector<16x1xf32>
    %cst_6 = arith.constant 7.840000e+02 : f32
    %8 = vector.broadcast %cst_6 : f32 to vector<16x1xf32>
    %9 = arith.divf %7, %8 : vector<16x1xf32>
    %10 = arith.mulf %5, %5 : vector<16x784xf32>
    %cst_7 = arith.constant dense<0.000000e+00> : vector<16xf32>
    %11 = vector.multi_reduction <add>, %10, %cst_7 [1] : vector<16x784xf32> to vector<16xf32>
    %12 = vector.shape_cast %11 : vector<16xf32> to vector<16x1xf32>
    %cst_8 = arith.constant 7.840000e+02 : f32
    %13 = vector.broadcast %cst_8 : f32 to vector<16x1xf32>
    %14 = arith.divf %12, %13 : vector<16x1xf32>
    %15 = arith.mulf %9, %9 : vector<16x1xf32>
    %16 = arith.subf %14, %15 : vector<16x1xf32>
    %cst_9 = arith.constant 0.000000e+00 : f32
    %17 = vector.broadcast %cst_9 : f32 to vector<16x1xf32>
    %18 = arith.maximumf %16, %17 : vector<16x1xf32>
    %cst_10 = arith.constant 9.99999974E-6 : f32
    %19 = vector.broadcast %cst_10 : f32 to vector<16x1xf32>
    %20 = arith.addf %18, %19 : vector<16x1xf32>
    %21 = math.rsqrt %20 : vector<16x1xf32>
    %22 = vector.broadcast %9 : vector<16x1xf32> to vector<16x784xf32>
    %23 = arith.subf %5, %22 : vector<16x784xf32>
    %24 = vector.broadcast %21 : vector<16x1xf32> to vector<16x784xf32>
    %25 = arith.mulf %23, %24 : vector<16x784xf32>
    %26 = arith.truncf %25 : vector<16x784xf32> to vector<16x784xbf16>
    %c1 = arith.constant 1 : index
    %c0_11 = arith.constant 0 : index
    %27 = vector.load %arg9[%c1, %c0_11] : memref<21x784xf32, #tpu.memory_space<vmem>>, vector<1x784xf32>
    %28 = arith.truncf %27 : vector<1x784xf32> to vector<1x784xbf16>
    %c2 = arith.constant 2 : index
    %c0_12 = arith.constant 0 : index
    %29 = vector.load %arg9[%c2, %c0_12] : memref<21x784xf32, #tpu.memory_space<vmem>>, vector<1x784xf32>
    %30 = arith.truncf %29 : vector<1x784xf32> to vector<1x784xbf16>
    %31 = vector.broadcast %28 : vector<1x784xbf16> to vector<16x784xbf16>
    %32 = arith.mulf %26, %31 : vector<16x784xbf16>
    %33 = vector.broadcast %30 : vector<1x784xbf16> to vector<16x784xbf16>
    %34 = arith.addf %32, %33 : vector<16x784xbf16>
    %cst_13 = arith.constant 0.000000e+00 : bf16
    %35 = vector.broadcast %cst_13 : bf16 to vector<16x784xbf16>
    %36 = arith.cmpf ogt, %34, %35 : vector<16x784xbf16>
    %cst_14 = arith.constant 2.001950e-01 : bf16
    %37 = vector.broadcast %cst_14 : bf16 to vector<16x784xbf16>
    %38 = arith.mulf %37, %34 : vector<16x784xbf16>
    %39 = arith.select %36, %34, %38 : vector<16x784xi1>, vector<16x784xbf16>
    %c0_15 = arith.constant 0 : index
    %c0_16 = arith.constant 0 : index
    %40 = vector.load %arg3[%c0_15, %c0_16] : memref<784x784xbf16, #tpu.memory_space<vmem>>, vector<784x784xbf16>
    %cst_17 = arith.constant dense<0.000000e+00> : vector<16x784xf32>
    %41 = tpu.matmul %39, %40, %cst_17 {dimension_numbers = #tpu.dot_dimension_numbers<[1], [0], [0], [1], [0, 0, 1, 1], [], []>} : vector<16x784xbf16>, vector<784x784xbf16>, vector<16x784xf32> -> vector<16x784xf32>
    %c3 = arith.constant 3 : index
    %c0_18 = arith.constant 0 : index
    %42 = vector.load %arg9[%c3, %c0_18] : memref<21x784xf32, #tpu.memory_space<vmem>>, vector<1x784xf32>
    %43 = vector.broadcast %42 : vector<1x784xf32> to vector<16x784xf32>
    %44 = arith.addf %41, %43 : vector<16x784xf32>
    %cst_19 = arith.constant dense<0.000000e+00> : vector<16xf32>
    %45 = vector.multi_reduction <add>, %44, %cst_19 [1] : vector<16x784xf32> to vector<16xf32>
    %46 = vector.shape_cast %45 : vector<16xf32> to vector<16x1xf32>
    %cst_20 = arith.constant 7.840000e+02 : f32
    %47 = vector.broadcast %cst_20 : f32 to vector<16x1xf32>
    %48 = arith.divf %46, %47 : vector<16x1xf32>
    %49 = arith.mulf %44, %44 : vector<16x784xf32>
    %cst_21 = arith.constant dense<0.000000e+00> : vector<16xf32>
    %50 = vector.multi_reduction <add>, %49, %cst_21 [1] : vector<16x784xf32> to vector<16xf32>
    %51 = vector.shape_cast %50 : vector<16xf32> to vector<16x1xf32>
    %cst_22 = arith.constant 7.840000e+02 : f32
    %52 = vector.broadcast %cst_22 : f32 to vector<16x1xf32>
    %53 = arith.divf %51, %52 : vector<16x1xf32>
    %54 = arith.mulf %48, %48 : vector<16x1xf32>
    %55 = arith.subf %53, %54 : vector<16x1xf32>
    %cst_23 = arith.constant 0.000000e+00 : f32
    %56 = vector.broadcast %cst_23 : f32 to vector<16x1xf32>
    %57 = arith.maximumf %55, %56 : vector<16x1xf32>
    %cst_24 = arith.constant 9.99999974E-6 : f32
    %58 = vector.broadcast %cst_24 : f32 to vector<16x1xf32>
    %59 = arith.addf %57, %58 : vector<16x1xf32>
    %60 = math.rsqrt %59 : vector<16x1xf32>
    %61 = vector.broadcast %48 : vector<16x1xf32> to vector<16x784xf32>
    %62 = arith.subf %44, %61 : vector<16x784xf32>
    %63 = vector.broadcast %60 : vector<16x1xf32> to vector<16x784xf32>
    %64 = arith.mulf %62, %63 : vector<16x784xf32>
    %65 = arith.truncf %64 : vector<16x784xf32> to vector<16x784xbf16>
    %c4 = arith.constant 4 : index
    %c0_25 = arith.constant 0 : index
    %66 = vector.load %arg9[%c4, %c0_25] : memref<21x784xf32, #tpu.memory_space<vmem>>, vector<1x784xf32>
    %67 = arith.truncf %66 : vector<1x784xf32> to vector<1x784xbf16>
    %c5 = arith.constant 5 : index
    %c0_26 = arith.constant 0 : index
    %68 = vector.load %arg9[%c5, %c0_26] : memref<21x784xf32, #tpu.memory_space<vmem>>, vector<1x784xf32>
    %69 = arith.truncf %68 : vector<1x784xf32> to vector<1x784xbf16>
    %70 = vector.broadcast %67 : vector<1x784xbf16> to vector<16x784xbf16>
    %71 = arith.mulf %65, %70 : vector<16x784xbf16>
    %72 = vector.broadcast %69 : vector<1x784xbf16> to vector<16x784xbf16>
    %73 = arith.addf %71, %72 : vector<16x784xbf16>
    %cst_27 = arith.constant 0.000000e+00 : bf16
    %74 = vector.broadcast %cst_27 : bf16 to vector<16x784xbf16>
    %75 = arith.cmpf ogt, %73, %74 : vector<16x784xbf16>
    %cst_28 = arith.constant 2.001950e-01 : bf16
    %76 = vector.broadcast %cst_28 : bf16 to vector<16x784xbf16>
    %77 = arith.mulf %76, %73 : vector<16x784xbf16>
    %78 = arith.select %75, %73, %77 : vector<16x784xi1>, vector<16x784xbf16>
    %c0_29 = arith.constant 0 : index
    %c0_30 = arith.constant 0 : index
    %79 = vector.load %arg4[%c0_29, %c0_30] : memref<784x256xbf16, #tpu.memory_space<vmem>>, vector<784x256xbf16>
    %cst_31 = arith.constant dense<0.000000e+00> : vector<16x256xf32>
    %80 = tpu.matmul %78, %79, %cst_31 {dimension_numbers = #tpu.dot_dimension_numbers<[1], [0], [0], [1], [0, 0, 1, 1], [], []>} : vector<16x784xbf16>, vector<784x256xbf16>, vector<16x256xf32> -> vector<16x256xf32>
    %c6 = arith.constant 6 : index
    %c0_32 = arith.constant 0 : index
    %81 = vector.load %arg9[%c6, %c0_32] : memref<21x784xf32, #tpu.memory_space<vmem>>, vector<1x256xf32>
    %82 = vector.broadcast %81 : vector<1x256xf32> to vector<16x256xf32>
    %83 = arith.addf %80, %82 : vector<16x256xf32>
    %cst_33 = arith.constant dense<0.000000e+00> : vector<16xf32>
    %84 = vector.multi_reduction <add>, %83, %cst_33 [1] : vector<16x256xf32> to vector<16xf32>
    %85 = vector.shape_cast %84 : vector<16xf32> to vector<16x1xf32>
    %cst_34 = arith.constant 2.560000e+02 : f32
    %86 = vector.broadcast %cst_34 : f32 to vector<16x1xf32>
    %87 = arith.divf %85, %86 : vector<16x1xf32>
    %88 = arith.mulf %83, %83 : vector<16x256xf32>
    %cst_35 = arith.constant dense<0.000000e+00> : vector<16xf32>
    %89 = vector.multi_reduction <add>, %88, %cst_35 [1] : vector<16x256xf32> to vector<16xf32>
    %90 = vector.shape_cast %89 : vector<16xf32> to vector<16x1xf32>
    %cst_36 = arith.constant 2.560000e+02 : f32
    %91 = vector.broadcast %cst_36 : f32 to vector<16x1xf32>
    %92 = arith.divf %90, %91 : vector<16x1xf32>
    %93 = arith.mulf %87, %87 : vector<16x1xf32>
    %94 = arith.subf %92, %93 : vector<16x1xf32>
    %cst_37 = arith.constant 0.000000e+00 : f32
    %95 = vector.broadcast %cst_37 : f32 to vector<16x1xf32>
    %96 = arith.maximumf %94, %95 : vector<16x1xf32>
    %cst_38 = arith.constant 9.99999974E-6 : f32
    %97 = vector.broadcast %cst_38 : f32 to vector<16x1xf32>
    %98 = arith.addf %96, %97 : vector<16x1xf32>
    %99 = math.rsqrt %98 : vector<16x1xf32>
    %100 = vector.broadcast %87 : vector<16x1xf32> to vector<16x256xf32>
    %101 = arith.subf %83, %100 : vector<16x256xf32>
    %102 = vector.broadcast %99 : vector<16x1xf32> to vector<16x256xf32>
    %103 = arith.mulf %101, %102 : vector<16x256xf32>
    %104 = arith.truncf %103 : vector<16x256xf32> to vector<16x256xbf16>
    %c7 = arith.constant 7 : index
    %c0_39 = arith.constant 0 : index
    %105 = vector.load %arg9[%c7, %c0_39] : memref<21x784xf32, #tpu.memory_space<vmem>>, vector<1x256xf32>
    %106 = arith.truncf %105 : vector<1x256xf32> to vector<1x256xbf16>
    %c8 = arith.constant 8 : index
    %c0_40 = arith.constant 0 : index
    %107 = vector.load %arg9[%c8, %c0_40] : memref<21x784xf32, #tpu.memory_space<vmem>>, vector<1x256xf32>
    %108 = arith.truncf %107 : vector<1x256xf32> to vector<1x256xbf16>
    %109 = vector.broadcast %106 : vector<1x256xbf16> to vector<16x256xbf16>
    %110 = arith.mulf %104, %109 : vector<16x256xbf16>
    %111 = vector.broadcast %108 : vector<1x256xbf16> to vector<16x256xbf16>
    %112 = arith.addf %110, %111 : vector<16x256xbf16>
    %cst_41 = arith.constant 0.000000e+00 : bf16
    %113 = vector.broadcast %cst_41 : bf16 to vector<16x256xbf16>
    %114 = arith.cmpf ogt, %112, %113 : vector<16x256xbf16>
    %cst_42 = arith.constant 2.001950e-01 : bf16
    %115 = vector.broadcast %cst_42 : bf16 to vector<16x256xbf16>
    %116 = arith.mulf %115, %112 : vector<16x256xbf16>
    %117 = arith.select %114, %112, %116 : vector<16x256xi1>, vector<16x256xbf16>
    %c0_43 = arith.constant 0 : index
    %c0_44 = arith.constant 0 : index
    %118 = vector.load %arg5[%c0_43, %c0_44] : memref<256x128xbf16, #tpu.memory_space<vmem>>, vector<256x128xbf16>
    %cst_45 = arith.constant dense<0.000000e+00> : vector<16x128xf32>
    %119 = tpu.matmul %117, %118, %cst_45 {dimension_numbers = #tpu.dot_dimension_numbers<[1], [0], [0], [1], [0, 0, 1, 1], [], []>} : vector<16x256xbf16>, vector<256x128xbf16>, vector<16x128xf32> -> vector<16x128xf32>
    %c9 = arith.constant 9 : index
    %c0_46 = arith.constant 0 : index
    %120 = vector.load %arg9[%c9, %c0_46] : memref<21x784xf32, #tpu.memory_space<vmem>>, vector<1x128xf32>
    %121 = vector.broadcast %120 : vector<1x128xf32> to vector<16x128xf32>
    %122 = arith.addf %119, %121 : vector<16x128xf32>
    %cst_47 = arith.constant dense<0.000000e+00> : vector<16xf32>
    %123 = vector.multi_reduction <add>, %122, %cst_47 [1] : vector<16x128xf32> to vector<16xf32>
    %124 = vector.shape_cast %123 : vector<16xf32> to vector<16x1xf32>
    %cst_48 = arith.constant 1.280000e+02 : f32
    %125 = vector.broadcast %cst_48 : f32 to vector<16x1xf32>
    %126 = arith.divf %124, %125 : vector<16x1xf32>
    %127 = arith.mulf %122, %122 : vector<16x128xf32>
    %cst_49 = arith.constant dense<0.000000e+00> : vector<16xf32>
    %128 = vector.multi_reduction <add>, %127, %cst_49 [1] : vector<16x128xf32> to vector<16xf32>
    %129 = vector.shape_cast %128 : vector<16xf32> to vector<16x1xf32>
    %cst_50 = arith.constant 1.280000e+02 : f32
    %130 = vector.broadcast %cst_50 : f32 to vector<16x1xf32>
    %131 = arith.divf %129, %130 : vector<16x1xf32>
    %132 = arith.mulf %126, %126 : vector<16x1xf32>
    %133 = arith.subf %131, %132 : vector<16x1xf32>
    %cst_51 = arith.constant 0.000000e+00 : f32
    %134 = vector.broadcast %cst_51 : f32 to vector<16x1xf32>
    %135 = arith.maximumf %133, %134 : vector<16x1xf32>
    %cst_52 = arith.constant 9.99999974E-6 : f32
    %136 = vector.broadcast %cst_52 : f32 to vector<16x1xf32>
    %137 = arith.addf %135, %136 : vector<16x1xf32>
    %138 = math.rsqrt %137 : vector<16x1xf32>
    %139 = vector.broadcast %126 : vector<16x1xf32> to vector<16x128xf32>
    %140 = arith.subf %122, %139 : vector<16x128xf32>
    %141 = vector.broadcast %138 : vector<16x1xf32> to vector<16x128xf32>
    %142 = arith.mulf %140, %141 : vector<16x128xf32>
    %143 = arith.truncf %142 : vector<16x128xf32> to vector<16x128xbf16>
    %c10 = arith.constant 10 : index
    %c0_53 = arith.constant 0 : index
    %144 = vector.load %arg9[%c10, %c0_53] : memref<21x784xf32, #tpu.memory_space<vmem>>, vector<1x128xf32>
    %145 = arith.truncf %144 : vector<1x128xf32> to vector<1x128xbf16>
    %c11 = arith.constant 11 : index
    %c0_54 = arith.constant 0 : index
    %146 = vector.load %arg9[%c11, %c0_54] : memref<21x784xf32, #tpu.memory_space<vmem>>, vector<1x128xf32>
    %147 = arith.truncf %146 : vector<1x128xf32> to vector<1x128xbf16>
    %148 = vector.broadcast %145 : vector<1x128xbf16> to vector<16x128xbf16>
    %149 = arith.mulf %143, %148 : vector<16x128xbf16>
    %150 = vector.broadcast %147 : vector<1x128xbf16> to vector<16x128xbf16>
    %151 = arith.addf %149, %150 : vector<16x128xbf16>
    %cst_55 = arith.constant 0.000000e+00 : bf16
    %152 = vector.broadcast %cst_55 : bf16 to vector<16x128xbf16>
    %153 = arith.cmpf ogt, %151, %152 : vector<16x128xbf16>
    %cst_56 = arith.constant 2.001950e-01 : bf16
    %154 = vector.broadcast %cst_56 : bf16 to vector<16x128xbf16>
    %155 = arith.mulf %154, %151 : vector<16x128xbf16>
    %156 = arith.select %153, %151, %155 : vector<16x128xi1>, vector<16x128xbf16>
    %c0_57 = arith.constant 0 : index
    %c0_58 = arith.constant 0 : index
    %157 = vector.load %arg6[%c0_57, %c0_58] : memref<128x64xbf16, #tpu.memory_space<vmem>>, vector<128x64xbf16>
    %cst_59 = arith.constant dense<0.000000e+00> : vector<16x64xf32>
    %158 = tpu.matmul %156, %157, %cst_59 {dimension_numbers = #tpu.dot_dimension_numbers<[1], [0], [0], [1], [0, 0, 1, 1], [], []>} : vector<16x128xbf16>, vector<128x64xbf16>, vector<16x64xf32> -> vector<16x64xf32>
    %c12 = arith.constant 12 : index
    %c0_60 = arith.constant 0 : index
    %159 = vector.load %arg9[%c12, %c0_60] : memref<21x784xf32, #tpu.memory_space<vmem>>, vector<1x64xf32>
    %160 = vector.broadcast %159 : vector<1x64xf32> to vector<16x64xf32>
    %161 = arith.addf %158, %160 : vector<16x64xf32>
    %cst_61 = arith.constant dense<0.000000e+00> : vector<16xf32>
    %162 = vector.multi_reduction <add>, %161, %cst_61 [1] : vector<16x64xf32> to vector<16xf32>
    %163 = vector.shape_cast %162 : vector<16xf32> to vector<16x1xf32>
    %cst_62 = arith.constant 6.400000e+01 : f32
    %164 = vector.broadcast %cst_62 : f32 to vector<16x1xf32>
    %165 = arith.divf %163, %164 : vector<16x1xf32>
    %166 = arith.mulf %161, %161 : vector<16x64xf32>
    %cst_63 = arith.constant dense<0.000000e+00> : vector<16xf32>
    %167 = vector.multi_reduction <add>, %166, %cst_63 [1] : vector<16x64xf32> to vector<16xf32>
    %168 = vector.shape_cast %167 : vector<16xf32> to vector<16x1xf32>
    %cst_64 = arith.constant 6.400000e+01 : f32
    %169 = vector.broadcast %cst_64 : f32 to vector<16x1xf32>
    %170 = arith.divf %168, %169 : vector<16x1xf32>
    %171 = arith.mulf %165, %165 : vector<16x1xf32>
    %172 = arith.subf %170, %171 : vector<16x1xf32>
    %cst_65 = arith.constant 0.000000e+00 : f32
    %173 = vector.broadcast %cst_65 : f32 to vector<16x1xf32>
    %174 = arith.maximumf %172, %173 : vector<16x1xf32>
    %cst_66 = arith.constant 9.99999974E-6 : f32
    %175 = vector.broadcast %cst_66 : f32 to vector<16x1xf32>
    %176 = arith.addf %174, %175 : vector<16x1xf32>
    %177 = math.rsqrt %176 : vector<16x1xf32>
    %178 = vector.broadcast %165 : vector<16x1xf32> to vector<16x64xf32>
    %179 = arith.subf %161, %178 : vector<16x64xf32>
    %180 = vector.broadcast %177 : vector<16x1xf32> to vector<16x64xf32>
    %181 = arith.mulf %179, %180 : vector<16x64xf32>
    %182 = arith.truncf %181 : vector<16x64xf32> to vector<16x64xbf16>
    %c13 = arith.constant 13 : index
    %c0_67 = arith.constant 0 : index
    %183 = vector.load %arg9[%c13, %c0_67] : memref<21x784xf32, #tpu.memory_space<vmem>>, vector<1x64xf32>
    %184 = arith.truncf %183 : vector<1x64xf32> to vector<1x64xbf16>
    %c14 = arith.constant 14 : index
    %c0_68 = arith.constant 0 : index
    %185 = vector.load %arg9[%c14, %c0_68] : memref<21x784xf32, #tpu.memory_space<vmem>>, vector<1x64xf32>
    %186 = arith.truncf %185 : vector<1x64xf32> to vector<1x64xbf16>
    %187 = vector.broadcast %184 : vector<1x64xbf16> to vector<16x64xbf16>
    %188 = arith.mulf %182, %187 : vector<16x64xbf16>
    %189 = vector.broadcast %186 : vector<1x64xbf16> to vector<16x64xbf16>
    %190 = arith.addf %188, %189 : vector<16x64xbf16>
    %cst_69 = arith.constant 0.000000e+00 : bf16
    %191 = vector.broadcast %cst_69 : bf16 to vector<16x64xbf16>
    %192 = arith.cmpf ogt, %190, %191 : vector<16x64xbf16>
    %cst_70 = arith.constant 2.001950e-01 : bf16
    %193 = vector.broadcast %cst_70 : bf16 to vector<16x64xbf16>
    %194 = arith.mulf %193, %190 : vector<16x64xbf16>
    %195 = arith.select %192, %190, %194 : vector<16x64xi1>, vector<16x64xbf16>
    %c0_71 = arith.constant 0 : index
    %c0_72 = arith.constant 0 : index
    %196 = vector.load %arg7[%c0_71, %c0_72] : memref<64x32xbf16, #tpu.memory_space<vmem>>, vector<64x32xbf16>
    %cst_73 = arith.constant dense<0.000000e+00> : vector<16x32xf32>
    %197 = tpu.matmul %195, %196, %cst_73 {dimension_numbers = #tpu.dot_dimension_numbers<[1], [0], [0], [1], [0, 0, 1, 1], [], []>} : vector<16x64xbf16>, vector<64x32xbf16>, vector<16x32xf32> -> vector<16x32xf32>
    %c15 = arith.constant 15 : index
    %c0_74 = arith.constant 0 : index
    %198 = vector.load %arg9[%c15, %c0_74] : memref<21x784xf32, #tpu.memory_space<vmem>>, vector<1x32xf32>
    %199 = vector.broadcast %198 : vector<1x32xf32> to vector<16x32xf32>
    %200 = arith.addf %197, %199 : vector<16x32xf32>
    %cst_75 = arith.constant dense<0.000000e+00> : vector<16xf32>
    %201 = vector.multi_reduction <add>, %200, %cst_75 [1] : vector<16x32xf32> to vector<16xf32>
    %202 = vector.shape_cast %201 : vector<16xf32> to vector<16x1xf32>
    %cst_76 = arith.constant 3.200000e+01 : f32
    %203 = vector.broadcast %cst_76 : f32 to vector<16x1xf32>
    %204 = arith.divf %202, %203 : vector<16x1xf32>
    %205 = arith.mulf %200, %200 : vector<16x32xf32>
    %cst_77 = arith.constant dense<0.000000e+00> : vector<16xf32>
    %206 = vector.multi_reduction <add>, %205, %cst_77 [1] : vector<16x32xf32> to vector<16xf32>
    %207 = vector.shape_cast %206 : vector<16xf32> to vector<16x1xf32>
    %cst_78 = arith.constant 3.200000e+01 : f32
    %208 = vector.broadcast %cst_78 : f32 to vector<16x1xf32>
    %209 = arith.divf %207, %208 : vector<16x1xf32>
    %210 = arith.mulf %204, %204 : vector<16x1xf32>
    %211 = arith.subf %209, %210 : vector<16x1xf32>
    %cst_79 = arith.constant 0.000000e+00 : f32
    %212 = vector.broadcast %cst_79 : f32 to vector<16x1xf32>
    %213 = arith.maximumf %211, %212 : vector<16x1xf32>
    %cst_80 = arith.constant 9.99999974E-6 : f32
    %214 = vector.broadcast %cst_80 : f32 to vector<16x1xf32>
    %215 = arith.addf %213, %214 : vector<16x1xf32>
    %216 = math.rsqrt %215 : vector<16x1xf32>
    %217 = vector.broadcast %204 : vector<16x1xf32> to vector<16x32xf32>
    %218 = arith.subf %200, %217 : vector<16x32xf32>
    %219 = vector.broadcast %216 : vector<16x1xf32> to vector<16x32xf32>
    %220 = arith.mulf %218, %219 : vector<16x32xf32>
    %221 = arith.truncf %220 : vector<16x32xf32> to vector<16x32xbf16>
    %c16 = arith.constant 16 : index
    %c0_81 = arith.constant 0 : index
    %222 = vector.load %arg9[%c16, %c0_81] : memref<21x784xf32, #tpu.memory_space<vmem>>, vector<1x32xf32>
    %223 = arith.truncf %222 : vector<1x32xf32> to vector<1x32xbf16>
    %c17 = arith.constant 17 : index
    %c0_82 = arith.constant 0 : index
    %224 = vector.load %arg9[%c17, %c0_82] : memref<21x784xf32, #tpu.memory_space<vmem>>, vector<1x32xf32>
    %225 = arith.truncf %224 : vector<1x32xf32> to vector<1x32xbf16>
    %226 = vector.broadcast %223 : vector<1x32xbf16> to vector<16x32xbf16>
    %227 = arith.mulf %221, %226 : vector<16x32xbf16>
    %228 = vector.broadcast %225 : vector<1x32xbf16> to vector<16x32xbf16>
    %229 = arith.addf %227, %228 : vector<16x32xbf16>
    %cst_83 = arith.constant 0.000000e+00 : bf16
    %230 = vector.broadcast %cst_83 : bf16 to vector<16x32xbf16>
    %231 = arith.cmpf ogt, %229, %230 : vector<16x32xbf16>
    %cst_84 = arith.constant 2.001950e-01 : bf16
    %232 = vector.broadcast %cst_84 : bf16 to vector<16x32xbf16>
    %233 = arith.mulf %232, %229 : vector<16x32xbf16>
    %234 = arith.select %231, %229, %233 : vector<16x32xi1>, vector<16x32xbf16>
    %c0_85 = arith.constant 0 : index
    %c0_86 = arith.constant 0 : index
    %235 = vector.load %arg8[%c0_85, %c0_86] : memref<32x16xbf16, #tpu.memory_space<vmem>>, vector<32x16xbf16>
    %cst_87 = arith.constant dense<0.000000e+00> : vector<16x16xf32>
    %236 = tpu.matmul %234, %235, %cst_87 {dimension_numbers = #tpu.dot_dimension_numbers<[1], [0], [0], [1], [0, 0, 1, 1], [], []>} : vector<16x32xbf16>, vector<32x16xbf16>, vector<16x16xf32> -> vector<16x16xf32>
    %c18 = arith.constant 18 : index
    %c0_88 = arith.constant 0 : index
    %237 = vector.load %arg9[%c18, %c0_88] : memref<21x784xf32, #tpu.memory_space<vmem>>, vector<1x16xf32>
    %238 = vector.broadcast %237 : vector<1x16xf32> to vector<16x16xf32>
    %239 = arith.addf %236, %238 : vector<16x16xf32>
    %cst_89 = arith.constant 0.000000e+00 : f32
    %240 = vector.broadcast %cst_89 : f32 to vector<16x16xf32>
    %241 = arith.cmpf ogt, %239, %240 : vector<16x16xf32>
    %cst_90 = arith.constant 2.000000e-01 : f32
    %242 = vector.broadcast %cst_90 : f32 to vector<16x16xf32>
    %243 = arith.mulf %242, %239 : vector<16x16xf32>
    %244 = arith.select %241, %239, %243 : vector<16x16xi1>, vector<16x16xf32>
    %c19 = arith.constant 19 : index
    %c0_91 = arith.constant 0 : index
    %245 = vector.load %arg9[%c19, %c0_91] : memref<21x784xf32, #tpu.memory_space<vmem>>, vector<1x16xf32>
    %246 = vector.broadcast %245 : vector<1x16xf32> to vector<16x16xf32>
    %247 = arith.mulf %244, %246 : vector<16x16xf32>
    %cst_92 = arith.constant dense<0.000000e+00> : vector<16xf32>
    %248 = vector.multi_reduction <add>, %247, %cst_92 [1] : vector<16x16xf32> to vector<16xf32>
    %249 = vector.shape_cast %248 : vector<16xf32> to vector<16x1xf32>
    %c20 = arith.constant 20 : index
    %c0_93 = arith.constant 0 : index
    %250 = vector.load %arg9[%c20, %c0_93] : memref<21x784xf32, #tpu.memory_space<vmem>>, vector<1x1xf32>
    %251 = vector.broadcast %250 : vector<1x1xf32> to vector<16x1xf32>
    %252 = arith.addf %249, %251 : vector<16x1xf32>
    %c0_94 = arith.constant 0 : index
    %c0_95 = arith.constant 0 : index
    %253 = vector.load %arg10[%c0_94, %c0_95] : memref<16x1xf32, #tpu.memory_space<vmem>>, vector<16x1xf32>
    tpu.vector_store %arg10[%c0_94, %c0_95], %252 {strides = array<i32>} : memref<16x1xf32, #tpu.memory_space<vmem>>, vector<16x1xf32>,
    return
  }
  func.func @transform_0(%arg0: i32) -> (i32, i32) {
    %c0_i32 = arith.constant 0 : i32
    %c0_i32_0 = arith.constant 0 : i32
    return %arg0, %c0_i32 : i32, i32
  }
  func.func @transform_1(%arg0: i32) -> (i32, i32) {
    %c0_i32 = arith.constant 0 : i32
    %c0_i32_0 = arith.constant 0 : i32
    %c0_i32_1 = arith.constant 0 : i32
    return %c0_i32, %c0_i32_0 : i32, i32
  }
  func.func @transform_2(%arg0: i32) -> (i32, i32) {
    %c0_i32 = arith.constant 0 : i32
    %c0_i32_0 = arith.constant 0 : i32
    %c0_i32_1 = arith.constant 0 : i32
    return %c0_i32, %c0_i32_0 : i32, i32
  }
  func.func @transform_3(%arg0: i32) -> (i32, i32) {
    %c0_i32 = arith.constant 0 : i32
    %c0_i32_0 = arith.constant 0 : i32
    %c0_i32_1 = arith.constant 0 : i32
    return %c0_i32, %c0_i32_0 : i32, i32
  }
  func.func @transform_4(%arg0: i32) -> (i32, i32) {
    %c0_i32 = arith.constant 0 : i32
    %c0_i32_0 = arith.constant 0 : i32
    %c0_i32_1 = arith.constant 0 : i32
    return %c0_i32, %c0_i32_0 : i32, i32
  }
  func.func @transform_5(%arg0: i32) -> (i32, i32) {
    %c0_i32 = arith.constant 0 : i32
    %c0_i32_0 = arith.constant 0 : i32
    %c0_i32_1 = arith.constant 0 : i32
    return %c0_i32, %c0_i32_0 : i32, i32
  }
  func.func @transform_6(%arg0: i32) -> (i32, i32) {
    %c0_i32 = arith.constant 0 : i32
    %c0_i32_0 = arith.constant 0 : i32
    %c0_i32_1 = arith.constant 0 : i32
    return %c0_i32, %c0_i32_0 : i32, i32
  }
  func.func @transform_7(%arg0: i32) -> (i32, i32) {
    %c0_i32 = arith.constant 0 : i32
    %c0_i32_0 = arith.constant 0 : i32
    %c0_i32_1 = arith.constant 0 : i32
    return %c0_i32, %c0_i32_0 : i32, i32
  }
  func.func @transform_8(%arg0: i32) -> (i32, i32) {
    %c0_i32 = arith.constant 0 : i32
    %c0_i32_0 = arith.constant 0 : i32
    %c0_i32_1 = arith.constant 0 : i32
    return %c0_i32, %c0_i32_0 : i32, i32
  }
  func.func @transform_9(%arg0: i32) -> (i32, i32) {
    %c0_i32 = arith.constant 0 : i32
    %c0_i32_0 = arith.constant 0 : i32
    return %arg0, %c0_i32 : i32, i32
  }
}

</mosaic_0001>

<bundles_post_ra>
// kernel: discriminator_forward.1
= control target key start
LH: loop header
LB: loop body
LE: loop exit
PB: predicated region body
PF: predicated region fallthrough
CT: control target
= control target key end

     0   :  { %s12893_s30 = smov 0   ;;  %s19317_s0 = inlined_call_operand.vmem [shape: bf16[32,784], index: 0, kind: input, shape index: {}]   ;;  %s19318_s1 = inlined_call_operand.vmem [shape: bf16[784,784], index: 1, kind: input, shape index: {}]   ;;  %s19319_s2 = inlined_call_operand.vmem [shape: bf16[784,784], index: 2, kind: input, shape index: {}]   ;;  %s19320_s3 = inlined_call_operand.vmem [shape: bf16[784,256], index: 3, kind: input, shape index: {}]   ;;  %s19321_s4 = inlined_call_operand.vmem [shape: bf16[256,128], index: 4, kind: input, shape index: {}]   ;;  %s19322_s5 = inlined_call_operand.vmem [shape: bf16[128,64], index: 5, kind: input, shape index: {}]   ;;  %s19323_s6 = inlined_call_operand.vmem [shape: bf16[64,32], index: 6, kind: input, shape index: {}]   ;;  %s19324_s7 = inlined_call_operand.vmem [shape: bf16[32,16], index: 7, kind: input, shape index: {}]   ;;  %s19325_s8 = inlined_call_operand.vmem [shape: f32[21,784], index: 8, kind: input, shape index: {}]   ;;  %s19326_s9 = inlined_call_operand.vmem [shape: f32[32,1], index: 9, kind: output, shape index: {}]  }
   0x1 LB: > { %s8635_s10 = sadd.s32 4294967295, %s12836_s30   ;;  %p8639_p0 = scmp.ge.s32.totalorder %s12836_s30, 1  ;;  %s12836_s30 = sphi %s12893_s30, %s19_s30  }
   0x2   : > { %p289_p1 = scmp.lt.s32.totalorder %s12836_s30, 3 }
   0x4   : > { %p290_p2 = pnand %p8639_p0, %p289_p1 }
   0x6   : > { %293 = sbr.rel (%p290_p2) target bundleno = 2917 (0xb65), region = 56 }
   0xb   : > { %v8870_v0 = vld [vmem:[%s19318_s1 + $0x188] sm:$0xf]  ;;  %v12020_v1 = vld [vmem:[%s19318_s1 + $0x1a0] sm:$0xf0]  ;;  %v8842_v11 = vld [vmem:[%s19318_s1 + $0x150] sm:$0xf] }
   0xc   : > { %v9094_v2 = vld [vmem:[%s19318_s1 + $0x348] sm:$0xf]  ;;  %v8871_v3 = vor.u32 %v12020_v1, %v8870_v0  ;;  %v12076_v4 = vld [vmem:[%s19318_s1 + $0x360] sm:$0xf0]  ;;  %v12013_v13 = vld [vmem:[%s19318_s1 + $0x168] sm:$0xf0] }
   0xd   : > { %v9318_v5 = vld [vmem:[%s19318_s1 + $0x508] sm:$0xf]  ;;  %v12132_v6 = vld [vmem:[%s19318_s1 + $0x520] sm:$0xf0]  ;;  %v9095_v7 = vor.u32 %v12076_v4, %v9094_v2  ;;  %v9066_v14 = vld [vmem:[%s19318_s1 + $0x310] sm:$0xf]  ;;  %v8843_v16 = vor.u32 %v12013_v13, %v8842_v11 }
   0xe   : > { %v9319_v8 = vor.u32 %v12132_v6, %v9318_v5  ;;  %v9542_v9 = vld [vmem:[%s19318_s1 + $0x6c8] sm:$0xf]  ;;  %v12188_v10 = vld [vmem:[%s19318_s1 + $0x6e0] sm:$0xf0]  ;;  %2561 = vmatpush.bf16.msra.mxu0 %v8871_v3  ;;  %v12069_v15 = vld [vmem:[%s19318_s1 + $0x328] sm:$0xf0] }
   0xf   : > { %v9543_v12 = vor.u32 %v12188_v10, %v9542_v9  ;;  %2575 = vmatpush.bf16.msra.mxu1 %v9095_v7  ;;  %v9067_v17 = vor.u32 %v12069_v15, %v9066_v14  ;;  %v9290_v18 = vld [vmem:[%s19318_s1 + $0x4d0] sm:$0xf]  ;;  %v12125_v19 = vld [vmem:[%s19318_s1 + $0x4e8] sm:$0xf0]  ;;  %v8814_v23 = vld [vmem:[%s19318_s1 + $0x118] sm:$0xf] }
  0x10   : > { %2589 = vmatpush.bf16.msra.mxu2 %v9319_v8  ;;  %v9514_v20 = vld [vmem:[%s19318_s1 + $0x690] sm:$0xf]  ;;  %v9291_v21 = vor.u32 %v12125_v19, %v9290_v18  ;;  %v12181_v22 = vld [vmem:[%s19318_s1 + $0x6a8] sm:$0xf0]  ;;  %v12006_v24 = vld [vmem:[%s19318_s1 + $0x130] sm:$0xf0] }
  0x11   : > { %2603 = vmatpush.bf16.msra.mxu3 %v9543_v12  ;;  %v9515_v25 = vor.u32 %v12181_v22, %v9514_v20  ;;  %v9038_v26 = vld [vmem:[%s19318_s1 + $0x2d8] sm:$0xf]  ;;  %v12062_v27 = vld [vmem:[%s19318_s1 + $0x2f0] sm:$0xf0]  ;;  %v8815_v29 = vor.u32 %v12006_v24, %v8814_v23  ;;  %v8786_v35 = vld [vmem:[%s19318_s1 + $0xe0] sm:$0xf] }
  0x12   : > { %v9262_v28 = vld [vmem:[%s19318_s1 + $0x498] sm:$0xf]  ;;  %2562 = vmatpush.bf16.msra.mxu0 %v8843_v16  ;;  %v12118_v30 = vld [vmem:[%s19318_s1 + $0x4b0] sm:$0xf0]  ;;  %v9039_v33 = vor.u32 %v12062_v27, %v9038_v26  ;;  %v11999_v36 = vld [vmem:[%s19318_s1 + $0xf8] sm:$0xf0] }
  0x13   : > { %v9486_v31 = vld [vmem:[%s19318_s1 + $0x658] sm:$0xf]  ;;  %v12174_v32 = vld [vmem:[%s19318_s1 + $0x670] sm:$0xf0]  ;;  %2576 = vmatpush.bf16.msra.mxu1 %v9067_v17  ;;  %v9263_v34 = vor.u32 %v12118_v30, %v9262_v28  ;;  %v9010_v37 = vld [vmem:[%s19318_s1 + $0x2a0] sm:$0xf]  ;;  %v8787_v44 = vor.u32 %v11999_v36, %v8786_v35 }
  0x14   : > { %2590 = vmatpush.bf16.msra.mxu2 %v9291_v21  ;;  %v9487_v38 = vor.u32 %v12174_v32, %v9486_v31  ;;  %v12055_v39 = vld [vmem:[%s19318_s1 + $0x2b8] sm:$0xf0]  ;;  %v9234_v40 = vld [vmem:[%s19318_s1 + $0x460] sm:$0xf]  ;;  %v8758_v47 = vld [vmem:[%s19318_s1 + $0xa8] sm:$0xf] }
  0x15   : > { %2604 = vmatpush.bf16.msra.mxu3 %v9515_v25  ;;  %v12111_v41 = vld [vmem:[%s19318_s1 + $0x478] sm:$0xf0]  ;;  %v9458_v42 = vld [vmem:[%s19318_s1 + $0x620] sm:$0xf]  ;;  %v9011_v45 = vor.u32 %v12055_v39, %v9010_v37  ;;  %v11992_v48 = vld [vmem:[%s19318_s1 + $0xc0] sm:$0xf0] }
  0x16   : > { %v12167_v43 = vld [vmem:[%s19318_s1 + $0x638] sm:$0xf0]  ;;  %2563 = vmatpush.bf16.msra.mxu0 %v8815_v29  ;;  %v9235_v46 = vor.u32 %v12111_v41, %v9234_v40  ;;  %v8982_v49 = vld [vmem:[%s19318_s1 + $0x268] sm:$0xf]  ;;  %v12048_v51 = vld [vmem:[%s19318_s1 + $0x280] sm:$0xf0]  ;;  %v8759_v56 = vor.u32 %v11992_v48, %v8758_v47 }
  0x17   : > { %2577 = vmatpush.bf16.msra.mxu1 %v9039_v33  ;;  %v9459_v50 = vor.u32 %v12167_v43, %v9458_v42  ;;  %v9206_v52 = vld [vmem:[%s19318_s1 + $0x428] sm:$0xf]  ;;  %v12104_v53 = vld [vmem:[%s19318_s1 + $0x440] sm:$0xf0]  ;;  %v8983_v57 = vor.u32 %v12048_v51, %v8982_v49  ;;  %v8730_v59 = vld [vmem:[%s19318_s1 + $0x70] sm:$0xf] }
  0x18   : > { %2591 = vmatpush.bf16.msra.mxu2 %v9263_v34  ;;  %v9430_v54 = vld [vmem:[%s19318_s1 + $0x5e8] sm:$0xf]  ;;  %v12160_v55 = vld [vmem:[%s19318_s1 + $0x600] sm:$0xf0]  ;;  %v9207_v58 = vor.u32 %v12104_v53, %v9206_v52  ;;  %v11985_v60 = vld [vmem:[%s19318_s1 + $0x88] sm:$0xf0] }
  0x19   : > { %2605 = vmatpush.bf16.msra.mxu3 %v9487_v38  ;;  %v8954_v61 = vld [vmem:[%s19318_s1 + $0x230] sm:$0xf]  ;;  %v9431_v62 = vor.u32 %v12160_v55, %v9430_v54  ;;  %v12041_v63 = vld [vmem:[%s19318_s1 + $0x248] sm:$0xf0]  ;;  %v8731_v4 = vor.u32 %v11985_v60, %v8730_v59  ;;  %v8702_v5 = vld [vmem:[%s19318_s1 + $0x38] sm:$0xf] }
  0x1a   : > { %2564 = vmatpush.bf16.msra.mxu0 %v8787_v44  ;;  %v9178_v0 = vld [vmem:[%s19318_s1 + $0x3f0] sm:$0xf]  ;;  %v12097_v1 = vld [vmem:[%s19318_s1 + $0x408] sm:$0xf0]  ;;  %v8955_v6 = vor.u32 %v12041_v63, %v8954_v61  ;;  %v11978_v8 = vld [vmem:[%s19318_s1 + $0x50] sm:$0xf0] }
  0x1b   : > { %2578 = vmatpush.bf16.msra.mxu1 %v9011_v45  ;;  %v9402_v2 = vld [vmem:[%s19318_s1 + $0x5b0] sm:$0xf]  ;;  %v12153_v3 = vld [vmem:[%s19318_s1 + $0x5c8] sm:$0xf0]  ;;  %v9179_v7 = vor.u32 %v12097_v1, %v9178_v0  ;;  %v8926_v9 = vld [vmem:[%s19318_s1 + $0x1f8] sm:$0xf]  ;;  %v8703_v18 = vor.u32 %v11978_v8, %v8702_v5 }
  0x1c   : > { %2592 = vmatpush.bf16.msra.mxu2 %v9235_v46  ;;  %v12034_v10 = vld [vmem:[%s19318_s1 + $0x210] sm:$0xf0]  ;;  %v9403_v11 = vor.u32 %v12153_v3, %v9402_v2  ;;  %v9150_v12 = vld [vmem:[%s19318_s1 + $0x3b8] sm:$0xf]  ;;  %v8674_v16 = vld [vmem:[%s19318_s1] sm:$0xf] }
  0x1d   : > { %2606 = vmatpush.bf16.msra.mxu3 %v9459_v50  ;;  %v12090_v13 = vld [vmem:[%s19318_s1 + $0x3d0] sm:$0xf0]  ;;  %v9374_v14 = vld [vmem:[%s19318_s1 + $0x578] sm:$0xf]  ;;  %v11971_v17 = vld [vmem:[%s19318_s1 + $0x18] sm:$0xf0]  ;;  %v8927_v22 = vor.u32 %v12034_v10, %v8926_v9 }
  0x1e   : > { %2565 = vmatpush.bf16.msra.mxu0 %v8759_v56  ;;  %v12146_v15 = vld [vmem:[%s19318_s1 + $0x590] sm:$0xf0]  ;;  %v8898_v19 = vld [vmem:[%s19318_s1 + $0x1c0] sm:$0xf]  ;;  %v12027_v20 = vld [vmem:[%s19318_s1 + $0x1d8] sm:$0xf0]  ;;  %v9151_v23 = vor.u32 %v12090_v13, %v9150_v12  ;;  %v8675_v32 = vor.u32 %v11971_v17, %v8674_v16 }
  0x1f   : > { %2579 = vmatpush.bf16.msra.mxu1 %v8983_v57  ;;  %v9122_v21 = vld [vmem:[%s19318_s1 + $0x380] sm:$0xf]  ;;  %v12083_v24 = vld [vmem:[%s19318_s1 + $0x398] sm:$0xf0]  ;;  %s8640_s23 = sshll.u32 %s8635_s10, 1  ;;  %v9375_v26 = vor.u32 %v12146_v15, %v9374_v14  ;;  %v8899_v35 = vor.u32 %v12027_v20, %v8898_v19  ;;  %vm2557_vm0 = vcmask 130048  }
  0x20   : > { %2593 = vmatpush.bf16.msra.mxu2 %v9207_v58  ;;  %v9346_v25 = vld [vmem:[%s19318_s1 + $0x540] sm:$0xf]  ;;  %v12139_v27 = vld [vmem:[%s19318_s1 + $0x558] sm:$0xf0]  ;;  %v9766_v28 = vld [vmem:[%s19318_s1 + $0x888] sm:$0xf]  ;;  %v9123_v36 = vor.u32 %v12083_v24, %v9122_v21 }
  0x21   : > { %2607 = vmatpush.bf16.msra.mxu3 %v9431_v62  ;;  %p327_p3 = scmp.lt.s32.totalorder %s8640_s23, 3  ;;  %v12244_v29 = vld [vmem:[%s19318_s1 + $0x8a0] sm:$0xf0]  ;;  %v9990_v30 = vld [vmem:[%s19318_s1 + $0xa48] sm:$0xf]  ;;  %v9347_v39 = vor.u32 %v12139_v27, %v9346_v25 }
  0x22   : > { %2566 = vmatpush.bf16.msra.mxu0 %v8731_v4  ;;  %v12300_v31 = vld [vmem:[%s19318_s1 + $0xa60] sm:$0xf0]  ;;  %v12017_v33 = vld [vmem:[%s19318_s1 + $0x18c] sm:$0xf]  ;;  %v8872_v34 = vld [vmem:[%s19318_s1 + $0x1a4] sm:$0xf0]  ;;  %v9767_v40 = vor.u32 %v12244_v29, %v9766_v28 }
  0x23   : > { %2580 = vmatpush.bf16.msra.mxu1 %v8955_v6  ;;  %s19437_s23 = smov (!%p327_p3, %s8640_s23), 3  ;;  %v10018_v37 = vld [vmem:[%s19318_s1 + $0xa80] sm:$0xf]  ;;  %v12307_v38 = vld [vmem:[%s19318_s1 + $0xa98] sm:$0xf0]  ;;  %v9991_v43 = vor.u32 %v12300_v31, %v9990_v30  ;;  %v8875_v44 = vor.u32 %v12017_v33, %v8872_v34 }
  0x24   : > { %2594 = vmatpush.bf16.msra.mxu2 %v9179_v7  ;;  %s12782_s22 = smul.u32 28, %s19437_s23  ;;  %v12073_v41 = vld [vmem:[%s19318_s1 + $0x34c] sm:$0xf]  ;;  %v9096_v42 = vld [vmem:[%s19318_s1 + $0x364] sm:$0xf0]  ;;  %v10019_v48 = vor.u32 %v12307_v38, %v10018_v37  ;;  %s8643_s20 = sshll.u32 %s19437_s23, 3 }
  0x25   : > { %2608 = vmatpush.bf16.msra.mxu3 %v9403_v11  ;;  %v9738_v45 = vld [vmem:[%s19318_s1 + $0x850] sm:$0xf]  ;;  %v12237_v46 = vld [vmem:[%s19318_s1 + $0x868] sm:$0xf0]  ;;  %v12010_v50 = vld [vmem:[%s19318_s1 + $0x154] sm:$0xf]  ;;  %v9099_v56 = vor.u32 %v12073_v41, %v9096_v42  ;;  %s337_s26 = scalar_lea.vmem %s19326_s9, %s8643_s20 }
  0x26   : > { %2567 = vmatpush.bf16.msra.mxu0 %v8703_v18  ;;  %v9962_v47 = vld [vmem:[%s19318_s1 + $0xa10] sm:$0xf]  ;;  %s13140_s16 = scalar_lea.vmem %s19317_s0, %s12782_s22  ;;  %v12293_v49 = vld [vmem:[%s19318_s1 + $0xa28] sm:$0xf0]  ;;  %v12066_v54 = vld [vmem:[%s19318_s1 + $0x314] sm:$0xf]  ;;  %v9739_v57 = vor.u32 %v12237_v46, %v9738_v45 }
  0x27   : > { %2581 = vmatpush.bf16.msra.mxu1 %v8927_v22  ;;  %v8844_v51 = vld [vmem:[%s19318_s1 + $0x16c] sm:$0xf0]  ;;  %v8654_v52 = vld [vmem:[%s13140_s16 + $0x8] sm:$0xf]  ;;  %v11965_v53 = vld [vmem:[%s13140_s16 + $0x20] sm:$0xf0]  ;;  %v9963_v61 = vor.u32 %v12293_v49, %v9962_v47 }
  0x28   : > { %2595 = vmatpush.bf16.msra.mxu2 %v9151_v23  ;;  %v13156_v55 = vor.u32 %v11965_v53, %v8654_v52  ;;  %v9068_v58 = vld [vmem:[%s19318_s1 + $0x32c] sm:$0xf0]  ;;  %v9710_v59 = vld [vmem:[%s19318_s1 + $0x818] sm:$0xf]  ;;  %v12230_v60 = vld [vmem:[%s19318_s1 + $0x830] sm:$0xf0]  ;;  %v8847_v62 = vor.u32 %v12010_v50, %v8844_v51 }
  0x29   : > { %2609 = vmatpush.bf16.msra.mxu3 %v9375_v26  ;;  %v9934_v63 = vld [vmem:[%s19318_s1 + $0x9d8] sm:$0xf]  ;;  %v8646_v0 = vld [vmem:[%s13140_s16] sm:$0xf]  ;;  %v11964_v1 = vld [vmem:[%s13140_s16 + $0x18] sm:$0xf0]  ;;  %v9071_v9 = vor.u32 %v12066_v54, %v9068_v58  ;;  %v9711_v10 = vor.u32 %v12230_v60, %v9710_v59 }
  0x2a   : > { %2568 = vmatpush.bf16.msra.mxu0 %v8675_v32  ;;  %v12286_v2 = vld [vmem:[%s19318_s1 + $0x9f0] sm:$0xf0]  ;;  %v12003_v3 = vld [vmem:[%s19318_s1 + $0x11c] sm:$0xf]  ;;  %v8816_v4 = vld [vmem:[%s19318_s1 + $0x134] sm:$0xf0]  ;;  %v13181_v5 = vor.u32 %v11964_v1, %v8646_v0 }
  0x2b   : > { %2582 = vmatpush.bf16.msra.mxu1 %v8899_v35  ;;  %v12059_v6 = vld [vmem:[%s19318_s1 + $0x2dc] sm:$0xf]  ;;  %v9040_v7 = vld [vmem:[%s19318_s1 + $0x2f4] sm:$0xf0]  ;;  %v9682_v8 = vld [vmem:[%s19318_s1 + $0x7e0] sm:$0xf]  ;;  %v9935_v14 = vor.u32 %v12286_v2, %v9934_v63  ;;  %v8819_v15 = vor.u32 %v12003_v3, %v8816_v4 }
  0x2c   : > { %2596 = vmatpush.bf16.msra.mxu2 %v9123_v36  ;;  %v12223_v11 = vld [vmem:[%s19318_s1 + $0x7f8] sm:$0xf0]  ;;  %v11961_v12 = vld [vmem:[%s13140_s16 + $0x4] sm:$0xf]  ;;  %v8648_v13 = vld [vmem:[%s13140_s16 + $0x1c] sm:$0xf0]  ;;  %v9043_v24 = vor.u32 %v12059_v6, %v9040_v7 }
  0x2d   : > { %2610 = vmatpush.bf16.msra.mxu3 %v9347_v39  ;;  %v9906_v16 = vld [vmem:[%s19318_s1 + $0x9a0] sm:$0xf]  ;;  %v13201_v17 = vor.u32 %v11961_v12, %v8648_v13  ;;  %v11962_v18 = vld [vmem:[%s13140_s16 + $0xc] sm:$0xf]  ;;  %v8656_v19 = vld [vmem:[%s13140_s16 + $0x24] sm:$0xf0]  ;;  %2569 = vmatmul.bf16.vlgmr.msra.gmra.mxu0 %v13181_v5  ;;  %v9683_v25 = vor.u32 %v12223_v11, %v9682_v8 }
  0x2e   : > { %2617 = vmatpush.bf16.msrb.mxu0 %v9767_v40  ;;  %v12279_v20 = vld [vmem:[%s19318_s1 + $0x9b8] sm:$0xf0]  ;;  %v11996_v21 = vld [vmem:[%s19318_s1 + $0xe4] sm:$0xf]  ;;  %v8788_v22 = vld [vmem:[%s19318_s1 + $0xfc] sm:$0xf0]  ;;  %v13215_v23 = vor.u32 %v11962_v18, %v8656_v19 }
  0x2f   : > { %2631 = vmatpush.bf16.msrb.mxu1 %v9991_v43  ;;  %2597 = vmatmul.bf16.vlgmr.msra.gmra.mxu2 %v13156_v55  ;;  %v12052_v26 = vld [vmem:[%s19318_s1 + $0x2a4] sm:$0xf]  ;;  %v9012_v27 = vld [vmem:[%s19318_s1 + $0x2bc] sm:$0xf0]  ;;  %v9907_v28 = vor.u32 %v12279_v20, %v9906_v16  ;;  %v8791_v29 = vor.u32 %v11996_v21, %v8788_v22  ;;  %v9654_v30 = vld [vmem:[%s19318_s1 + $0x7a8] sm:$0xf] }
  0x30   : > { %2652 = vmatpush.bf16.msrb.mxu2 %v10019_v48  ;;  %2583 = vmatmul.bf16.vlgmr.msra.gmra.mxu1 %v13201_v17  ;;  %v12216_v31 = vld [vmem:[%s19318_s1 + $0x7c0] sm:$0xf0]  ;;  %v9878_v32 = vld [vmem:[%s19318_s1 + $0x968] sm:$0xf]  ;;  %v11989_v34 = vld [vmem:[%s19318_s1 + $0xac] sm:$0xf]  ;;  %v9015_v37 = vor.u32 %v12052_v26, %v9012_v27 }
  0x31   : > { %2659 = vmatpush.bf16.msrb.mxu3 %v8875_v44  ;;  %v12272_v33 = vld [vmem:[%s19318_s1 + $0x980] sm:$0xf0]  ;;  %v8760_v35 = vld [vmem:[%s19318_s1 + $0xc4] sm:$0xf0]  ;;  %v12045_v36 = vld [vmem:[%s19318_s1 + $0x26c] sm:$0xf]  ;;  %v9655_v38 = vor.u32 %v12216_v31, %v9654_v30 }
  0x32   : > { %2618 = vmatpush.bf16.msrb.mxu0 %v9739_v57  ;;  %2611 = vmatmul.bf16.vlgmr.msra.gmra.mxu3 %v13215_v23  ;;  %v8984_v39 = vld [vmem:[%s19318_s1 + $0x284] sm:$0xf0]  ;;  %v9626_v40 = vld [vmem:[%s19318_s1 + $0x770] sm:$0xf]  ;;  %v12209_v41 = vld [vmem:[%s19318_s1 + $0x788] sm:$0xf0]  ;;  %v9879_v42 = vor.u32 %v12272_v33, %v9878_v32  ;;  %v8763_v43 = vor.u32 %v11989_v34, %v8760_v35 }
  0x33   : > { %2632 = vmatpush.bf16.msrb.mxu1 %v9963_v61  ;;  %v9850_v44 = vld [vmem:[%s19318_s1 + $0x930] sm:$0xf]  ;;  %v12265_v45 = vld [vmem:[%s19318_s1 + $0x948] sm:$0xf0]  ;;  %v8670_v46 = vld [vmem:[%s13140_s16 + $0x18] sm:$0xf]  ;;  %v8987_v51 = vor.u32 %v12045_v36, %v8984_v39  ;;  %v9627_v52 = vor.u32 %v12209_v41, %v9626_v40 }
  0x34   : > { %2673 = vmatpush.bf16.msra.mxu2 %v9099_v56  ;;  %v11982_v47 = vld [vmem:[%s19318_s1 + $0x74] sm:$0xf]  ;;  %v8732_v48 = vld [vmem:[%s19318_s1 + $0x8c] sm:$0xf0]  ;;  %v9851_v56 = vor.u32 %v12265_v45, %v9850_v44  ;;  %v9598_v58 = vld [vmem:[%s19318_s1 + $0x738] sm:$0xf] }
  0x35   : > { %2660 = vmatpush.bf16.msrb.mxu3 %v8847_v62  ;;  %v11967_v49 = vld [vmem:[%s13140_s16 + $0x30] sm:$0xf0]  ;;  %v8956_v54 = vld [vmem:[%s19318_s1 + $0x24c] sm:$0xf0]  ;;  %v8735_v57 = vor.u32 %v11982_v47, %v8732_v48  ;;  %v9822_v60 = vld [vmem:[%s19318_s1 + $0x8f8] sm:$0xf] }
  0x36   : > { %2619 = vmatpush.bf16.msrb.mxu0 %v9711_v10  ;;  %v13269_v50 = vor.u32 %v11967_v49, %v8670_v46  ;;  %v12038_v53 = vld [vmem:[%s19318_s1 + $0x234] sm:$0xf]  ;;  %v11975_v62 = vld [vmem:[%s19318_s1 + $0x3c] sm:$0xf]  ;;  %v8704_v63 = vld [vmem:[%s19318_s1 + $0x54] sm:$0xf0] }
  0x37   : > { %2633 = vmatpush.bf16.msrb.mxu1 %v9935_v14  ;;  %v12202_v59 = vld [vmem:[%s19318_s1 + $0x750] sm:$0xf0]  ;;  %v12031_v0 = vld [vmem:[%s19318_s1 + $0x1fc] sm:$0xf]  ;;  %v8928_v1 = vld [vmem:[%s19318_s1 + $0x214] sm:$0xf0]  ;;  %v8959_v2 = vor.u32 %v12038_v53, %v8956_v54 }
  0x38   : > { %2674 = vmatpush.bf16.msra.mxu2 %v9071_v9  ;;  %v12258_v61 = vld [vmem:[%s19318_s1 + $0x910] sm:$0xf0]  ;;  %v9599_v3 = vor.u32 %v12202_v59, %v9598_v58  ;;  %v9570_v4 = vld [vmem:[%s19318_s1 + $0x700] sm:$0xf]  ;;  %v12195_v6 = vld [vmem:[%s19318_s1 + $0x718] sm:$0xf0]  ;;  %v8707_v9 = vor.u32 %v11975_v62, %v8704_v63  ;;  %v8931_v20 = vor.u32 %v12031_v0, %v8928_v1 }
  0x39   : > { %2661 = vmatpush.bf16.msrb.mxu3 %v8819_v15  ;;  %v9794_v7 = vld [vmem:[%s19318_s1 + $0x8c0] sm:$0xf]  ;;  %v9823_v8 = vor.u32 %v12258_v61, %v9822_v60  ;;  %v12251_v10 = vld [vmem:[%s19318_s1 + $0x8d8] sm:$0xf0]  ;;  %v11968_v11 = vld [vmem:[%s19318_s1 + $0x4] sm:$0xf]  ;;  %v9571_v21 = vor.u32 %v12195_v6, %v9570_v4 }
  0x3a   : > { %2620 = vmatpush.bf16.msrb.mxu0 %v9683_v25  ;;  %v8676_v12 = vld [vmem:[%s19318_s1 + $0x1c] sm:$0xf0]  ;;  %v12129_v13 = vld [vmem:[%s19318_s1 + $0x50c] sm:$0xf]  ;;  %v9320_v14 = vld [vmem:[%s19318_s1 + $0x524] sm:$0xf0]  ;;  %v9795_v26 = vor.u32 %v12251_v10, %v9794_v7 }
  0x3b   : > { %2634 = vmatpush.bf16.msrb.mxu1 %v9907_v28  ;;  %v12185_v15 = vld [vmem:[%s19318_s1 + $0x6cc] sm:$0xf]  ;;  %v9544_v16 = vld [vmem:[%s19318_s1 + $0x6e4] sm:$0xf0]  ;;  %v8662_v22 = vld [vmem:[%s13140_s16 + $0x10] sm:$0xf]  ;;  %v8679_v27 = vor.u32 %v11968_v11, %v8676_v12  ;;  %v9323_v31 = vor.u32 %v12129_v13, %v9320_v14 }
  0x3c   : > { %2675 = vmatpush.bf16.msra.mxu2 %v9043_v24  ;;  %v12241_v18 = vld [vmem:[%s19318_s1 + $0x88c] sm:$0xf]  ;;  %v9768_v19 = vld [vmem:[%s19318_s1 + $0x8a4] sm:$0xf0]  ;;  %v12024_v25 = vld [vmem:[%s19318_s1 + $0x1c4] sm:$0xf]  ;;  %v9547_v32 = vor.u32 %v12185_v15, %v9544_v16 }
  0x3d   : > { %2662 = vmatpush.bf16.msrb.mxu3 %v8791_v29  ;;  %v11966_v24 = vld [vmem:[%s13140_s16 + $0x28] sm:$0xf0]  ;;  %v8900_v28 = vld [vmem:[%s19318_s1 + $0x1dc] sm:$0xf0]  ;;  %v11963_v29 = vld [vmem:[%s13140_s16 + $0x14] sm:$0xf]  ;;  %v9771_v36 = vor.u32 %v12241_v18, %v9768_v19 }
  0x3e   : > { %2621 = vmatpush.bf16.msrb.mxu0 %v9655_v38  ;;  %v8664_v30 = vld [vmem:[%s13140_s16 + $0x2c] sm:$0xf0]  ;;  %v12297_v33 = vld [vmem:[%s19318_s1 + $0xa4c] sm:$0xf]  ;;  %v9992_v34 = vld [vmem:[%s19318_s1 + $0xa64] sm:$0xf0]  ;;  %v8903_v41 = vor.u32 %v12024_v25, %v8900_v28 }
  0x3f   : > { %2635 = vmatpush.bf16.msrb.mxu1 %v9879_v42  ;;  %10044 = vmatmul.msk.bf16.vlgmr.msrb.gmra.mxu2 %vm2557_vm0, %v13269_v50  ;;  %v12122_v35 = vld [vmem:[%s19318_s1 + $0x4d4] sm:$0xf]  ;;  %v9292_v38 = vld [vmem:[%s19318_s1 + $0x4ec] sm:$0xf0]  ;;  %v13369_v42 = vor.u32 %v11963_v29, %v8664_v30  ;;  %v9995_v45 = vor.u32 %v12297_v33, %v9992_v34  ;;  %v9264_v53 = vld [vmem:[%s19318_s1 + $0x4b4] sm:$0xf0] }
  0x40   : > { %2676 = vmatpush.bf16.msra.mxu2 %v9015_v37  ;;  %v13358_v37 = vor.u32 %v11966_v24, %v8662_v22  ;;  %v12178_v39 = vld [vmem:[%s19318_s1 + $0x694] sm:$0xf]  ;;  %v9516_v40 = vld [vmem:[%s19318_s1 + $0x6ac] sm:$0xf0]  ;;  %v9295_v46 = vor.u32 %v12122_v35, %v9292_v38  ;;  %v12171_v54 = vld [vmem:[%s19318_s1 + $0x65c] sm:$0xf] }
  0x41   : > { %2663 = vmatpush.bf16.msrb.mxu3 %v8763_v43  ;;  %v12234_v43 = vld [vmem:[%s19318_s1 + $0x854] sm:$0xf]  ;;  %v9740_v44 = vld [vmem:[%s19318_s1 + $0x86c] sm:$0xf0]  ;;  %v9519_v47 = vor.u32 %v12178_v39, %v9516_v40  ;;  %v9712_v58 = vld [vmem:[%s19318_s1 + $0x834] sm:$0xf0] }
  0x42   : > { %2622 = vmatpush.bf16.msrb.mxu0 %v9627_v52  ;;  %v12290_v48 = vld [vmem:[%s19318_s1 + $0xa14] sm:$0xf]  ;;  %v9964_v49 = vld [vmem:[%s19318_s1 + $0xa2c] sm:$0xf0]  ;;  %v9743_v52 = vor.u32 %v12234_v43, %v9740_v44  ;;  %v12283_v62 = vld [vmem:[%s19318_s1 + $0x9dc] sm:$0xf] }
  0x43   : > { %2636 = vmatpush.bf16.msrb.mxu1 %v9851_v56  ;;  %v9488_v56 = vld [vmem:[%s19318_s1 + $0x674] sm:$0xf0]  ;;  %v9967_v59 = vor.u32 %v12290_v48, %v9964_v49  ;;  %v12108_v0 = vld [vmem:[%s19318_s1 + $0x464] sm:$0xf]  ;;  %v9460_v4 = vld [vmem:[%s19318_s1 + $0x63c] sm:$0xf0] }
  0x44   : > { %2677 = vmatpush.bf16.msra.mxu2 %v8987_v51  ;;  %v12115_v51 = vld [vmem:[%s19318_s1 + $0x49c] sm:$0xf]  ;;  %v9491_v61 = vor.u32 %v12171_v54, %v9488_v56  ;;  %v9936_v63 = vld [vmem:[%s19318_s1 + $0x9f4] sm:$0xf0]  ;;  %v12220_v6 = vld [vmem:[%s19318_s1 + $0x7e4] sm:$0xf] }
  0x45   : > { %2664 = vmatpush.bf16.msrb.mxu3 %v8735_v57  ;;  %v12227_v57 = vld [vmem:[%s19318_s1 + $0x81c] sm:$0xf]  ;;  %v9267_v60 = vor.u32 %v12115_v51, %v9264_v53  ;;  %v9684_v7 = vld [vmem:[%s19318_s1 + $0x7fc] sm:$0xf0]  ;;  %v12276_v11 = vld [vmem:[%s19318_s1 + $0x9a4] sm:$0xf] }
  0x46   : > { %2623 = vmatpush.bf16.msrb.mxu0 %v9599_v3  ;;  %v9715_v1 = vor.u32 %v12227_v57, %v9712_v58  ;;  %v12164_v3 = vld [vmem:[%s19318_s1 + $0x624] sm:$0xf]  ;;  %v9908_v12 = vld [vmem:[%s19318_s1 + $0x9bc] sm:$0xf0]  ;;  %v12101_v13 = vld [vmem:[%s19318_s1 + $0x42c] sm:$0xf]  ;;  %v9687_v14 = vor.u32 %v12220_v6, %v9684_v7 }
  0x47   : > { %2637 = vmatpush.bf16.msrb.mxu1 %v9823_v8  ;;  %v9939_v8 = vor.u32 %v12283_v62, %v9936_v63  ;;  %v9463_v10 = vor.u32 %v12164_v3, %v9460_v4  ;;  %v9208_v15 = vld [vmem:[%s19318_s1 + $0x444] sm:$0xf0]  ;;  %v12157_v16 = vld [vmem:[%s19318_s1 + $0x5ec] sm:$0xf]  ;;  %v9180_v29 = vld [vmem:[%s19318_s1 + $0x40c] sm:$0xf0] }
  0x48   : > { %2678 = vmatpush.bf16.msra.mxu2 %v8959_v2  ;;  %v9236_v2 = vld [vmem:[%s19318_s1 + $0x47c] sm:$0xf0]  ;;  %v9432_v18 = vld [vmem:[%s19318_s1 + $0x604] sm:$0xf0]  ;;  %v12213_v19 = vld [vmem:[%s19318_s1 + $0x7ac] sm:$0xf]  ;;  %v9211_v22 = vor.u32 %v12101_v13, %v9208_v15 }
  0x49   : > { %2665 = vmatpush.bf16.msrb.mxu3 %v8707_v9  ;;  %v9239_v9 = vor.u32 %v12108_v0, %v9236_v2  ;;  %v9435_v24 = vor.u32 %v12157_v16, %v9432_v18  ;;  %v12269_v25 = vld [vmem:[%s19318_s1 + $0x96c] sm:$0xf]  ;;  %v12150_v30 = vld [vmem:[%s19318_s1 + $0x5b4] sm:$0xf]  ;;  %v9628_v33 = vld [vmem:[%s19318_s1 + $0x78c] sm:$0xf0] }
  0x4a   : > { %2624 = vmatpush.bf16.msrb.mxu0 %v9571_v21  ;;  %v9911_v21 = vor.u32 %v12276_v11, %v9908_v12  ;;  %v12262_v38 = vld [vmem:[%s19318_s1 + $0x934] sm:$0xf]  ;;  %v9852_v39 = vld [vmem:[%s19318_s1 + $0x94c] sm:$0xf0]  ;;  %v12087_v40 = vld [vmem:[%s19318_s1 + $0x3bc] sm:$0xf] }
  0x4b   : > { %2638 = vmatpush.bf16.msrb.mxu1 %v9795_v26  ;;  %v9880_v26 = vld [vmem:[%s19318_s1 + $0x984] sm:$0xf0]  ;;  %v9152_v43 = vld [vmem:[%s19318_s1 + $0x3d4] sm:$0xf0]  ;;  %v12143_v44 = vld [vmem:[%s19318_s1 + $0x57c] sm:$0xf]  ;;  %v9855_v48 = vor.u32 %v12262_v38, %v9852_v39 }
  0x4c   : > { %2679 = vmatpush.bf16.msra.mxu2 %v8931_v20  ;;  %v9656_v20 = vld [vmem:[%s19318_s1 + $0x7c4] sm:$0xf0]  ;;  %v9883_v34 = vor.u32 %v12269_v25, %v9880_v26  ;;  %v12255_v49 = vld [vmem:[%s19318_s1 + $0x8fc] sm:$0xf]  ;;  %v9824_v51 = vld [vmem:[%s19318_s1 + $0x914] sm:$0xf0] }
  0x4d   : > { %2666 = vmatpush.bf16.msrb.mxu3 %v8679_v27  ;;  %2625 = vmatmul.bf16.vlgmr.msrb.gmra.mxu0 %v13358_v37  ;;  %v12094_v27 = vld [vmem:[%s19318_s1 + $0x3f4] sm:$0xf]  ;;  %v9659_v28 = vor.u32 %v12213_v19, %v9656_v20  ;;  %v12080_v54 = vld [vmem:[%s19318_s1 + $0x384] sm:$0xf]  ;;  %v9124_v56 = vld [vmem:[%s19318_s1 + $0x39c] sm:$0xf0] }
  0x4e   : > { %2687 = vmatpush.bf16.msra.mxu0 %v9323_v31  ;;  %2639 = vmatmul.bf16.vlgmr.msrb.gmra.mxu1 %v13369_v42  ;;  %v9404_v31 = vld [vmem:[%s19318_s1 + $0x5cc] sm:$0xf0]  ;;  %v9183_v35 = vor.u32 %v12094_v27, %v9180_v29  ;;  %v12136_v57 = vld [vmem:[%s19318_s1 + $0x544] sm:$0xf]  ;;  %v12021_v63 = vld [vmem:[%s19318_s1 + $0x1a8] sm:$0xf0]  ;;  %v9127_v6 = vor.u32 %v12080_v54, %v9124_v56 }
  0x4f   : > { %2701 = vmatpush.bf16.msra.mxu1 %v9547_v32  ;;  %v12206_v32 = vld [vmem:[%s19318_s1 + $0x774] sm:$0xf]  ;;  %v8878_v62 = vld [vmem:[%s19318_s1 + $0x190] sm:$0xf]  ;;  %v12077_v2 = vld [vmem:[%s19318_s1 + $0x368] sm:$0xf0] }
  0x50   : > { %2680 = vmatpush.bf16.msra.mxu2 %v8903_v41  ;;  %2667 = vmatmul.bf16.vlgmr.msrb.gmra.mxu3 %v13181_v5  ;;  %v9631_v41 = vor.u32 %v12206_v32, %v9628_v33  ;;  %v9102_v0 = vld [vmem:[%s19318_s1 + $0x350] sm:$0xf]  ;;  %v12304_v3 = vld [vmem:[%s19318_s1 + $0xa84] sm:$0xf]  ;;  %v10020_v4 = vld [vmem:[%s19318_s1 + $0xa9c] sm:$0xf0]  ;;  %v8879_v11 = vor.u32 %v12021_v63, %v8878_v62 }
  0x51   : > { %2715 = vmatpush.bf16.msra.mxu3 %v9771_v36  ;;  %v9407_v36 = vor.u32 %v12150_v30, %v9404_v31  ;;  %v9550_v12 = vld [vmem:[%s19318_s1 + $0x6d0] sm:$0xf]  ;;  %v12189_v13 = vld [vmem:[%s19318_s1 + $0x6e8] sm:$0xf0]  ;;  %v8850_v15 = vld [vmem:[%s19318_s1 + $0x158] sm:$0xf]  ;;  %v10023_v16 = vor.u32 %v12304_v3, %v10020_v4 }
  0x52   : > { %2688 = vmatpush.bf16.msra.mxu0 %v9295_v46  ;;  %v12199_v46 = vld [vmem:[%s19318_s1 + $0x73c] sm:$0xf]  ;;  %v9326_v18 = vld [vmem:[%s19318_s1 + $0x510] sm:$0xf]  ;;  %v12133_v19 = vld [vmem:[%s19318_s1 + $0x528] sm:$0xf0]  ;;  %v9551_v25 = vor.u32 %v12189_v13, %v9550_v12 }
  0x53   : > { %2702 = vmatpush.bf16.msra.mxu1 %v9519_v47  ;;  %2681 = vmatmul.bf16.vlgmr.msra.gmra.mxu2 %v13201_v17  ;;  %v9600_v47 = vld [vmem:[%s19318_s1 + $0x754] sm:$0xf0]  ;;  %v9327_v26 = vor.u32 %v12133_v19, %v9326_v18  ;;  %v8822_v31 = vld [vmem:[%s19318_s1 + $0x120] sm:$0xf]  ;;  %v12126_v33 = vld [vmem:[%s19318_s1 + $0x4f0] sm:$0xf0] }
  0x54   : > { %2729 = vmatpush.bf16.msrb.mxu2 %v9995_v45  ;;  %v9376_v45 = vld [vmem:[%s19318_s1 + $0x594] sm:$0xf0]  ;;  %v9603_v58 = vor.u32 %v12199_v46, %v9600_v47  ;;  %v9270_v46 = vld [vmem:[%s19318_s1 + $0x4a0] sm:$0xf]  ;;  %v12119_v47 = vld [vmem:[%s19318_s1 + $0x4b8] sm:$0xf0] }
  0x55   : > { %2716 = vmatpush.bf16.msra.mxu3 %v9743_v52  ;;  %v9155_v52 = vor.u32 %v12087_v40, %v9152_v43  ;;  %v9379_v53 = vor.u32 %v12143_v44, %v9376_v45  ;;  %v9522_v27 = vld [vmem:[%s19318_s1 + $0x698] sm:$0xf]  ;;  %v9494_v40 = vld [vmem:[%s19318_s1 + $0x660] sm:$0xf]  ;;  %v8794_v45 = vld [vmem:[%s19318_s1 + $0xe8] sm:$0xf] }
  0x56   : > { %2689 = vmatpush.bf16.msra.mxu0 %v9267_v60  ;;  %v12192_v60 = vld [vmem:[%s19318_s1 + $0x704] sm:$0xf]  ;;  %v9298_v32 = vld [vmem:[%s19318_s1 + $0x4d8] sm:$0xf]  ;;  %v9466_v54 = vld [vmem:[%s19318_s1 + $0x628] sm:$0xf] }
  0x57   : > { %2703 = vmatpush.bf16.msra.mxu1 %v9491_v61  ;;  %v9572_v61 = vld [vmem:[%s19318_s1 + $0x71c] sm:$0xf0]  ;;  %v9299_v39 = vor.u32 %v12126_v33, %v9298_v32  ;;  %v12168_v56 = vld [vmem:[%s19318_s1 + $0x640] sm:$0xf0]  ;;  %v11993_v62 = vld [vmem:[%s19318_s1 + $0xc8] sm:$0xf0] }
  0x58   : > { %2730 = vmatpush.bf16.msrb.mxu2 %v9967_v59  ;;  %v9348_v59 = vld [vmem:[%s19318_s1 + $0x55c] sm:$0xf0]  ;;  %v8990_v63 = vld [vmem:[%s19318_s1 + $0x270] sm:$0xf]  ;;  %v12161_v4 = vld [vmem:[%s19318_s1 + $0x608] sm:$0xf0] }
  0x59   : > { %2717 = vmatpush.bf16.msra.mxu3 %v9715_v1  ;;  %v9827_v1 = vor.u32 %v12255_v49, %v9824_v51  ;;  %v9351_v7 = vor.u32 %v12136_v57, %v9348_v59  ;;  %v9018_v49 = vld [vmem:[%s19318_s1 + $0x2a8] sm:$0xf]  ;;  %v12056_v51 = vld [vmem:[%s19318_s1 + $0x2c0] sm:$0xf0]  ;;  %v8766_v59 = vld [vmem:[%s19318_s1 + $0xb0] sm:$0xf] }
  0x5a   : > { %2690 = vmatpush.bf16.msra.mxu0 %v9239_v9  ;;  %v9796_v9 = vld [vmem:[%s19318_s1 + $0x8dc] sm:$0xf0]  ;;  %v9438_v3 = vld [vmem:[%s19318_s1 + $0x5f0] sm:$0xf]  ;;  %v8962_v12 = vld [vmem:[%s19318_s1 + $0x238] sm:$0xf] }
  0x5b   : > { %2704 = vmatpush.bf16.msra.mxu1 %v9463_v10  ;;  %v9575_v10 = vor.u32 %v12192_v60, %v9572_v61  ;;  %v9242_v60 = vld [vmem:[%s19318_s1 + $0x468] sm:$0xf]  ;;  %v12112_v61 = vld [vmem:[%s19318_s1 + $0x480] sm:$0xf0]  ;;  %v12042_v13 = vld [vmem:[%s19318_s1 + $0x250] sm:$0xf0] }
  0x5c   : > { %2731 = vmatpush.bf16.msrb.mxu2 %v9939_v8  ;;  %v12248_v8 = vld [vmem:[%s19318_s1 + $0x8c4] sm:$0xf]  ;;  %v12154_v18 = vld [vmem:[%s19318_s1 + $0x5d0] sm:$0xf0]  ;;  %v8682_v32 = vld [vmem:[%s19318_s1 + $0x8] sm:$0xf] }
  0x5d   : > { %2718 = vmatpush.bf16.msra.mxu3 %v9687_v14  ;;  %v9103_v14 = vor.u32 %v12077_v2, %v9102_v0  ;;  %v9799_v20 = vor.u32 %v12248_v8, %v9796_v9  ;;  %v12049_v0 = vld [vmem:[%s19318_s1 + $0x288] sm:$0xf0]  ;;  %v9243_v2 = vor.u32 %v12112_v61, %v9242_v60  ;;  %v8738_v8 = vld [vmem:[%s19318_s1 + $0x78] sm:$0xf]  ;;  %v9214_v9 = vld [vmem:[%s19318_s1 + $0x430] sm:$0xf] }
  0x5e   : > { %2691 = vmatpush.bf16.msra.mxu0 %v9211_v22  ;;  %v9074_v22 = vld [vmem:[%s19318_s1 + $0x318] sm:$0xf]  ;;  %v10026_v61 = vld [vmem:[%s19318_s1 + $0xa88] sm:$0xf] }
  0x5f   : > { %2705 = vmatpush.bf16.msra.mxu1 %v9435_v24  ;;  %v12070_v24 = vld [vmem:[%s19318_s1 + $0x330] sm:$0xf0]  ;;  %v9746_v60 = vld [vmem:[%s19318_s1 + $0x858] sm:$0xf] }
  0x60   : > { %2732 = vmatpush.bf16.msrb.mxu2 %v9911_v21  ;;  %v12014_v21 = vld [vmem:[%s19318_s1 + $0x170] sm:$0xf0]  ;;  %v9075_v30 = vor.u32 %v12070_v24, %v9074_v22  ;;  %v9186_v22 = vld [vmem:[%s19318_s1 + $0x3f8] sm:$0xf] }
  0x61   : > { %2719 = vmatpush.bf16.msra.mxu3 %v9659_v28  ;;  %v12182_v28 = vld [vmem:[%s19318_s1 + $0x6b0] sm:$0xf0]  ;;  %v8851_v29 = vor.u32 %v12014_v21, %v8850_v15  ;;  %v8710_v21 = vld [vmem:[%s19318_s1 + $0x40] sm:$0xf] }
  0x62   : > { %2692 = vmatpush.bf16.msra.mxu0 %v9183_v35  ;;  %v9046_v35 = vld [vmem:[%s19318_s1 + $0x2e0] sm:$0xf]  ;;  %v9523_v38 = vor.u32 %v12182_v28, %v9522_v27  ;;  %v12098_v24 = vld [vmem:[%s19318_s1 + $0x410] sm:$0xf0]  ;;  %v12035_v27 = vld [vmem:[%s19318_s1 + $0x218] sm:$0xf0] }
  0x63   : > { %2706 = vmatpush.bf16.msra.mxu1 %v9407_v36  ;;  %v12063_v36 = vld [vmem:[%s19318_s1 + $0x2f8] sm:$0xf0] }
  0x64   : > { %2733 = vmatpush.bf16.msrb.mxu2 %v9883_v34  ;;  %v12007_v34 = vld [vmem:[%s19318_s1 + $0x138] sm:$0xf0]  ;;  %v9047_v44 = vor.u32 %v12063_v36, %v9046_v35  ;;  %v11972_v35 = vld [vmem:[%s19318_s1 + $0x20] sm:$0xf0]  ;;  %v9158_v36 = vld [vmem:[%s19318_s1 + $0x3c0] sm:$0xf] }
  0x65   : > { %2720 = vmatpush.bf16.msra.mxu3 %v9631_v41  ;;  %v12175_v41 = vld [vmem:[%s19318_s1 + $0x678] sm:$0xf0]  ;;  %v8823_v43 = vor.u32 %v12007_v34, %v8822_v31 }
  0x66   : > { %2693 = vmatpush.bf16.msra.mxu0 %v9155_v52  ;;  %v9495_v52 = vor.u32 %v12175_v41, %v9494_v40  ;;  %v12147_v31 = vld [vmem:[%s19318_s1 + $0x598] sm:$0xf0]  ;;  %v12028_v40 = vld [vmem:[%s19318_s1 + $0x1e0] sm:$0xf0]  ;;  %v9774_v41 = vld [vmem:[%s19318_s1 + $0x890] sm:$0xf] }
  0x67   : > { %2707 = vmatpush.bf16.msra.mxu1 %v9379_v53  ;;  %v9271_v53 = vor.u32 %v12119_v47, %v9270_v46  ;;  %v12301_v46 = vld [vmem:[%s19318_s1 + $0xa68] sm:$0xf0] }
  0x68   : > { %2734 = vmatpush.bf16.msrb.mxu2 %v9855_v48  ;;  %v12000_v48 = vld [vmem:[%s19318_s1 + $0x100] sm:$0xf0] }
  0x69   : > { %2721 = vmatpush.bf16.msra.mxu3 %v9603_v58  ;;  %v8795_v57 = vor.u32 %v12000_v48, %v8794_v45  ;;  %v9019_v58 = vor.u32 %v12056_v51, %v9018_v49  ;;  %v9998_v45 = vld [vmem:[%s19318_s1 + $0xa50] sm:$0xf]  ;;  %v9354_v48 = vld [vmem:[%s19318_s1 + $0x548] sm:$0xf]  ;;  %v12140_v49 = vld [vmem:[%s19318_s1 + $0x560] sm:$0xf0] }
  0x6a   : > { %2694 = vmatpush.bf16.msra.mxu0 %v9127_v6  ;;  %v8767_v6 = vor.u32 %v11993_v62, %v8766_v59  ;;  %v12018_v51 = vld [vmem:[%s19318_s1 + $0x194] sm:$0xf]  ;;  %v9999_v59 = vor.u32 %v12301_v46, %v9998_v45  ;;  %v12308_v62 = vld [vmem:[%s19318_s1 + $0xaa0] sm:$0xf0] }
  0x6b   : > { %2708 = vmatpush.bf16.msra.mxu1 %v9351_v7  ;;  %v8991_v7 = vor.u32 %v12049_v0, %v8990_v63  ;;  %v9355_v63 = vor.u32 %v12140_v49, %v9354_v48  ;;  %v12238_v0 = vld [vmem:[%s19318_s1 + $0x870] sm:$0xf0]  ;;  %v8768_v48 = vld [vmem:[%s19318_s1 + $0xcc] sm:$0xf0]  ;;  %v12053_v49 = vld [vmem:[%s19318_s1 + $0x2ac] sm:$0xf] }
  0x6c   : > { %2735 = vmatpush.bf16.msrb.mxu2 %v9827_v1  ;;  %v9467_v1 = vor.u32 %v12168_v56, %v9466_v54  ;;  %v8880_v54 = vld [vmem:[%s19318_s1 + $0x1ac] sm:$0xf0]  ;;  %v9130_v56 = vld [vmem:[%s19318_s1 + $0x388] sm:$0xf] }
  0x6d   : > { %2722 = vmatpush.bf16.msra.mxu3 %v9575_v10  ;;  %2695 = vmatmul.bf16.vlgmr.msra.gmra.mxu0 %v13156_v55  ;;  %v12105_v10 = vld [vmem:[%s19318_s1 + $0x448] sm:$0xf0] }
  0x6e   : > { %2750 = vmatpush.bf16.msrb.mxu0 %v10023_v16  ;;  %2709 = vmatmul.bf16.vlgmr.msra.gmra.mxu1 %v13215_v23  ;;  %v9215_v15 = vor.u32 %v12105_v10, %v9214_v9  ;;  %v9410_v16 = vld [vmem:[%s19318_s1 + $0x5b8] sm:$0xf]  ;;  %v12074_v9 = vld [vmem:[%s19318_s1 + $0x354] sm:$0xf]  ;;  %v9104_v10 = vld [vmem:[%s19318_s1 + $0x36c] sm:$0xf0] }
  0x6f   : > { %2757 = vmatpush.bf16.msrb.mxu1 %v8879_v11  ;;  %v11986_v11 = vld [vmem:[%s19318_s1 + $0x90] sm:$0xf0]  ;;  %v9411_v28 = vor.u32 %v12154_v18, %v9410_v16  ;;  %v12287_v16 = vld [vmem:[%s19318_s1 + $0x9f8] sm:$0xf0] }
  0x70   : > { %2736 = vmatpush.bf16.msrb.mxu2 %v9799_v20  ;;  %2723 = vmatmul.bf16.vlgmr.msra.gmra.mxu3 %v13358_v37  ;;  %v8739_v19 = vor.u32 %v11986_v11, %v8738_v8  ;;  %v8963_v20 = vor.u32 %v12042_v13, %v8962_v12  ;;  %v10027_v8 = vor.u32 %v12308_v62, %v10026_v61  ;;  %v9718_v13 = vld [vmem:[%s19318_s1 + $0x820] sm:$0xf]  ;;  %v11983_v61 = vld [vmem:[%s19318_s1 + $0x7c] sm:$0xf]  ;;  %v8740_v62 = vld [vmem:[%s19318_s1 + $0x94] sm:$0xf0] }
  0x71   : > { %2771 = vmatpush.bf16.msrb.mxu3 %v9103_v14  ;;  %v9439_v14 = vor.u32 %v12161_v4, %v9438_v3  ;;  %v8883_v3 = vor.u32 %v12018_v51, %v8880_v54  ;;  %v9747_v11 = vor.u32 %v12238_v0, %v9746_v60  ;;  %v9020_v51 = vld [vmem:[%s19318_s1 + $0x2c4] sm:$0xf0]  ;;  %v9634_v54 = vld [vmem:[%s19318_s1 + $0x778] sm:$0xf]  ;;  %v8992_v0 = vld [vmem:[%s19318_s1 + $0x28c] sm:$0xf0] }
  0x72   : > { %2785 = vmatpush.bf16.msra.mxu0 %v9327_v26  ;;  %v8934_v26 = vld [vmem:[%s19318_s1 + $0x200] sm:$0xf]  ;;  %v9023_v60 = vor.u32 %v12053_v49, %v9020_v51  ;;  %v12298_v49 = vld [vmem:[%s19318_s1 + $0xa54] sm:$0xf]  ;;  %v10000_v51 = vld [vmem:[%s19318_s1 + $0xa6c] sm:$0xf0] }
  0x73   : > { %2758 = vmatpush.bf16.msrb.mxu1 %v8851_v29  ;;  %2737 = vmatmul.bf16.vlgmr.msrb.gmra.mxu2 %v13369_v42  ;;  %v9187_v29 = vor.u32 %v12098_v24, %v9186_v22  ;;  %v8935_v34 = vor.u32 %v12035_v27, %v8934_v26  ;;  %v12067_v22 = vld [vmem:[%s19318_s1 + $0x31c] sm:$0xf]  ;;  %v9076_v24 = vld [vmem:[%s19318_s1 + $0x334] sm:$0xf0]  ;;  %v9690_v27 = vld [vmem:[%s19318_s1 + $0x7e8] sm:$0xf] }
  0x74   : > { %2799 = vmatpush.bf16.msra.mxu2 %v9551_v25  ;;  %v11979_v25 = vld [vmem:[%s19318_s1 + $0x58] sm:$0xf0] }
  0x75   : > { %2772 = vmatpush.bf16.msrb.mxu3 %v9075_v30  ;;  %v9382_v30 = vld [vmem:[%s19318_s1 + $0x580] sm:$0xf]  ;;  %v8711_v33 = vor.u32 %v11979_v25, %v8710_v21 }
  0x76   : > { %2786 = vmatpush.bf16.msra.mxu0 %v9299_v39  ;;  %v8906_v39 = vld [vmem:[%s19318_s1 + $0x1c8] sm:$0xf]  ;;  %v8824_v21 = vld [vmem:[%s19318_s1 + $0x13c] sm:$0xf0] }
  0x77   : > { %2759 = vmatpush.bf16.msrb.mxu1 %v8823_v43  ;;  %v9383_v43 = vor.u32 %v12147_v31, %v9382_v30  ;;  %v12280_v30 = vld [vmem:[%s19318_s1 + $0x9c0] sm:$0xf0] }
  0x78   : > { %2800 = vmatpush.bf16.msra.mxu2 %v9523_v38  ;;  %v12091_v38 = vld [vmem:[%s19318_s1 + $0x3d8] sm:$0xf0] }
  0x79   : > { %2773 = vmatpush.bf16.msrb.mxu3 %v9047_v44  ;;  %v12245_v44 = vld [vmem:[%s19318_s1 + $0x8a8] sm:$0xf0]  ;;  %v9159_v47 = vor.u32 %v12091_v38, %v9158_v36  ;;  %v9048_v36 = vld [vmem:[%s19318_s1 + $0x2fc] sm:$0xf0] }
  0x7a   : > { %2787 = vmatpush.bf16.msra.mxu0 %v9271_v53  ;;  %v8907_v53 = vor.u32 %v12028_v40, %v8906_v39  ;;  %v9662_v40 = vld [vmem:[%s19318_s1 + $0x7b0] sm:$0xf] }
  0x7b   : > { %2760 = vmatpush.bf16.msrb.mxu1 %v8795_v57  ;;  %v12084_v57 = vld [vmem:[%s19318_s1 + $0x3a0] sm:$0xf0] }
  0x7c   : > { %2801 = vmatpush.bf16.msra.mxu2 %v9495_v52  ;;  %v8683_v52 = vor.u32 %v11972_v35, %v8682_v32  ;;  %v9131_v4 = vor.u32 %v12084_v57, %v9130_v56  ;;  %v9079_v32 = vor.u32 %v12067_v22, %v9076_v24  ;;  %v12060_v35 = vld [vmem:[%s19318_s1 + $0x2e4] sm:$0xf]  ;;  %v12210_v56 = vld [vmem:[%s19318_s1 + $0x790] sm:$0xf0]  ;;  %v9858_v57 = vld [vmem:[%s19318_s1 + $0x938] sm:$0xf] }
  0x7d   : > { %2774 = vmatpush.bf16.msrb.mxu3 %v9019_v58  ;;  %10045 = vmatmul.msk.bf16.vlgmr.msrb.gmra.mxu0 %vm2557_vm0, %v13269_v50  ;;  %v9775_v58 = vor.u32 %v12245_v44, %v9774_v41  ;;  %v12217_v41 = vld [vmem:[%s19318_s1 + $0x7c8] sm:$0xf0]  ;;  %v9051_v46 = vor.u32 %v12060_v35, %v9048_v36  ;;  %v9328_v22 = vld [vmem:[%s19318_s1 + $0x52c] sm:$0xf0]  ;;  %v12242_v36 = vld [vmem:[%s19318_s1 + $0x894] sm:$0xf] }
  0x7e   : > { %2788 = vmatpush.bf16.msra.mxu0 %v9243_v2  ;;  %v12294_v2 = vld [vmem:[%s19318_s1 + $0xa30] sm:$0xf0]  ;;  %v12273_v44 = vld [vmem:[%s19318_s1 + $0x988] sm:$0xf0] }
  0x7f   : > { %2761 = vmatpush.bf16.msrb.mxu1 %v8767_v6  ;;  %v12011_v6 = vld [vmem:[%s19318_s1 + $0x15c] sm:$0xf] }
  0x80   : > { %2802 = vmatpush.bf16.msra.mxu2 %v9467_v1  ;;  %v9970_v1 = vld [vmem:[%s19318_s1 + $0xa18] sm:$0xf] }
  0x81   : > { %2775 = vmatpush.bf16.msrb.mxu3 %v8991_v7  ;;  %v8852_v7 = vld [vmem:[%s19318_s1 + $0x174] sm:$0xf0]  ;;  %v9971_v12 = vor.u32 %v12294_v2, %v9970_v1  ;;  %v9635_v1 = vor.u32 %v12210_v56, %v9634_v54  ;;  %v12235_v54 = vld [vmem:[%s19318_s1 + $0x85c] sm:$0xf] }
  0x82   : > { %2789 = vmatpush.bf16.msra.mxu0 %v9215_v15  ;;  %v9942_v15 = vld [vmem:[%s19318_s1 + $0x9e0] sm:$0xf]  ;;  %v8855_v18 = vor.u32 %v12011_v6, %v8852_v7  ;;  %v12259_v7 = vld [vmem:[%s19318_s1 + $0x918] sm:$0xf0]  ;;  %v9748_v56 = vld [vmem:[%s19318_s1 + $0x874] sm:$0xf0] }
  0x83   : > { %2762 = vmatpush.bf16.msrb.mxu1 %v8739_v19  ;;  %v9107_v19 = vor.u32 %v12074_v9, %v9104_v10  ;;  %v9943_v26 = vor.u32 %v12287_v16, %v9942_v15  ;;  %v9830_v6 = vld [vmem:[%s19318_s1 + $0x900] sm:$0xf]  ;;  %v11976_v10 = vld [vmem:[%s19318_s1 + $0x44] sm:$0xf]  ;;  %v9578_v16 = vld [vmem:[%s19318_s1 + $0x708] sm:$0xf] }
  0x84   : > { %2803 = vmatpush.bf16.msra.mxu2 %v9439_v14  ;;  %v12231_v14 = vld [vmem:[%s19318_s1 + $0x838] sm:$0xf0]  ;;  %v9831_v15 = vor.u32 %v12259_v7, %v9830_v6  ;;  %v12228_v7 = vld [vmem:[%s19318_s1 + $0x824] sm:$0xf] }
  0x85   : > { %2776 = vmatpush.bf16.msrb.mxu3 %v8963_v20  ;;  %v12004_v20 = vld [vmem:[%s19318_s1 + $0x124] sm:$0xf]  ;;  %v9719_v25 = vor.u32 %v12231_v14, %v9718_v13  ;;  %v8964_v13 = vld [vmem:[%s19318_s1 + $0x254] sm:$0xf0] }
  0x86   : > { %2790 = vmatpush.bf16.msra.mxu0 %v9187_v29  ;;  %v9914_v29 = vld [vmem:[%s19318_s1 + $0x9a8] sm:$0xf]  ;;  %v8827_v31 = vor.u32 %v12004_v20, %v8824_v21  ;;  %v12252_v20 = vld [vmem:[%s19318_s1 + $0x8e0] sm:$0xf0]  ;;  %v12130_v21 = vld [vmem:[%s19318_s1 + $0x514] sm:$0xf] }
  0x87   : > { %2763 = vmatpush.bf16.msrb.mxu1 %v8711_v33  ;;  %v11997_v33 = vld [vmem:[%s19318_s1 + $0xec] sm:$0xf]  ;;  %v9915_v39 = vor.u32 %v12280_v30, %v9914_v29  ;;  %v8684_v29 = vld [vmem:[%s19318_s1 + $0x24] sm:$0xf0]  ;;  %v12032_v30 = vld [vmem:[%s19318_s1 + $0x204] sm:$0xf] }
  0x88   : > { %2804 = vmatpush.bf16.msra.mxu2 %v9411_v28  ;;  %v12224_v28 = vld [vmem:[%s19318_s1 + $0x800] sm:$0xf0] }
  0x89   : > { %2777 = vmatpush.bf16.msrb.mxu3 %v8935_v34  ;;  %v8796_v34 = vld [vmem:[%s19318_s1 + $0x104] sm:$0xf0]  ;;  %v9691_v38 = vor.u32 %v12224_v28, %v9690_v27  ;;  %v11969_v28 = vld [vmem:[%s19318_s1 + $0xc] sm:$0xf] }
  0x8a   : > { %2791 = vmatpush.bf16.msra.mxu0 %v9159_v47  ;;  %v8799_v45 = vor.u32 %v11997_v33, %v8796_v34  ;;  %v11990_v47 = vld [vmem:[%s19318_s1 + $0xb4] sm:$0xf]  ;;  %v9331_v34 = vor.u32 %v12130_v21, %v9328_v22  ;;  %v12221_v21 = vld [vmem:[%s19318_s1 + $0x7ec] sm:$0xf]  ;;  %v9692_v22 = vld [vmem:[%s19318_s1 + $0x804] sm:$0xf0] }
  0x8b   : > { %2764 = vmatpush.bf16.msrb.mxu1 %v8683_v52  ;;  %v9663_v52 = vor.u32 %v12217_v41, %v9662_v40  ;;  %v8687_v40 = vor.u32 %v11969_v28, %v8684_v29  ;;  %v9300_v41 = vld [vmem:[%s19318_s1 + $0x4f4] sm:$0xf0] }
  0x8c   : > { %2805 = vmatpush.bf16.msra.mxu2 %v9383_v43  ;;  %v9886_v43 = vld [vmem:[%s19318_s1 + $0x970] sm:$0xf] }
  0x8d   : > { %2778 = vmatpush.bf16.msrb.mxu3 %v8907_v53  ;;  %v9887_v53 = vor.u32 %v12273_v44, %v9886_v43  ;;  %v12179_v43 = vld [vmem:[%s19318_s1 + $0x69c] sm:$0xf]  ;;  %v9524_v44 = vld [vmem:[%s19318_s1 + $0x6b4] sm:$0xf0] }
  0x8e   : > { %2792 = vmatpush.bf16.msra.mxu0 %v9131_v4  ;;  %2765 = vmatmul.bf16.vlgmr.msrb.gmra.mxu1 %v13181_v5  ;;  %v12203_v4 = vld [vmem:[%s19318_s1 + $0x758] sm:$0xf0] }
  0x8f   : > { %2813 = vmatpush.bf16.msra.mxu1 %v9775_v58  ;;  %v12266_v58 = vld [vmem:[%s19318_s1 + $0x950] sm:$0xf0] }
  0x90   : > { %2806 = vmatpush.bf16.msra.mxu2 %v9355_v63  ;;  %2779 = vmatmul.bf16.vlgmr.msrb.gmra.mxu3 %v13201_v17  ;;  %v12046_v63 = vld [vmem:[%s19318_s1 + $0x274] sm:$0xf]  ;;  %v9859_v2 = vor.u32 %v12266_v58, %v9858_v57  ;;  %v12116_v57 = vld [vmem:[%s19318_s1 + $0x4a4] sm:$0xf]  ;;  %v9272_v58 = vld [vmem:[%s19318_s1 + $0x4bc] sm:$0xf0] }
  0x91   : > { %2827 = vmatpush.bf16.msra.mxu3 %v9999_v59  ;;  %2793 = vmatmul.bf16.vlgmr.msra.gmra.mxu0 %v13156_v55  ;;  %v8771_v59 = vor.u32 %v11990_v47, %v8768_v48  ;;  %v8995_v9 = vor.u32 %v12046_v63, %v8992_v0  ;;  %v8908_v47 = vld [vmem:[%s19318_s1 + $0x1e4] sm:$0xf0]  ;;  %v12291_v63 = vld [vmem:[%s19318_s1 + $0xa1c] sm:$0xf]  ;;  %v9972_v0 = vld [vmem:[%s19318_s1 + $0xa34] sm:$0xf0] }
  0x92   : > { %2848 = vmatpush.bf16.msrb.mxu0 %v10027_v8  ;;  %v8743_v8 = vor.u32 %v11983_v61, %v8740_v62  ;;  %v10003_v62 = vor.u32 %v12298_v49, %v10000_v51  ;;  %v9888_v49 = vld [vmem:[%s19318_s1 + $0x98c] sm:$0xf0] }
  0x93   : > { %2814 = vmatpush.bf16.msra.mxu1 %v9747_v11  ;;  %2807 = vmatmul.bf16.vlgmr.msra.gmra.mxu2 %v13215_v23  ;;  %v8712_v11 = vld [vmem:[%s19318_s1 + $0x5c] sm:$0xf0] }
  0x94   : > { %2855 = vmatpush.bf16.msrb.mxu2 %v8883_v3  ;;  %v9606_v3 = vld [vmem:[%s19318_s1 + $0x740] sm:$0xf]  ;;  %v8715_v24 = vor.u32 %v11976_v10, %v8712_v11  ;;  %v9244_v10 = vld [vmem:[%s19318_s1 + $0x484] sm:$0xf0]  ;;  %v12165_v11 = vld [vmem:[%s19318_s1 + $0x62c] sm:$0xf] }
  0x95   : > { %2828 = vmatpush.bf16.msra.mxu3 %v9971_v12  ;;  %v12039_v12 = vld [vmem:[%s19318_s1 + $0x23c] sm:$0xf]  ;;  %v9607_v14 = vor.u32 %v12203_v4, %v9606_v3  ;;  %v741_v3 = vld [vmem:[%s19325_s8] ss:$8 sm:$0x70]  ;;  %v9275_v4 = vor.u32 %v12116_v57, %v9272_v58 }
  0x96   : > { %2869 = vmatpush.bf16.msra.mxu0 %v9107_v19  ;;  %v9802_v19 = vld [vmem:[%s19318_s1 + $0x8c8] sm:$0xf]  ;;  %v8967_v27 = vor.u32 %v12039_v12, %v8964_v13  ;;  %v9975_v13 = vor.u32 %v12291_v63, %v9972_v0 }
  0x97   : > { %2815 = vmatpush.bf16.msra.mxu1 %v9719_v25  ;;  %v12186_v25 = vld [vmem:[%s19318_s1 + $0x6d4] sm:$0xf]  ;;  %v9803_v33 = vor.u32 %v12252_v20, %v9802_v19  ;;  %v9468_v12 = vld [vmem:[%s19318_s1 + $0x644] sm:$0xf0] }
  0x98   : > { %2856 = vmatpush.bf16.msrb.mxu2 %v8855_v18  ;;  %v12196_v18 = vld [vmem:[%s19318_s1 + $0x720] sm:$0xf0]  ;;  %v9471_v20 = vor.u32 %v12165_v11, %v9468_v12  ;;  %v9356_v11 = vld [vmem:[%s19318_s1 + $0x564] sm:$0xf0]  ;;  %v8886_v12 = vld [vmem:[%s19318_s1 + $0x198] sm:$0xf] }
  0x99   : > { %2829 = vmatpush.bf16.msra.mxu3 %v9943_v26  ;;  %v9552_v26 = vld [vmem:[%s19318_s1 + $0x6ec] sm:$0xf0] }
  0x9a   : > { %2870 = vmatpush.bf16.msra.mxu0 %v9079_v32  ;;  %v9579_v32 = vor.u32 %v12196_v18, %v9578_v16  ;;  %v9555_v35 = vor.u32 %v12186_v25, %v9552_v26  ;;  %v12284_v16 = vld [vmem:[%s19318_s1 + $0x9e4] sm:$0xf]  ;;  %v9944_v18 = vld [vmem:[%s19318_s1 + $0x9fc] sm:$0xf0]  ;;  %v9216_v25 = vld [vmem:[%s19318_s1 + $0x44c] sm:$0xf0] }
  0x9b   : > { %2816 = vmatpush.bf16.msra.mxu1 %v9691_v38  ;;  %v9776_v38 = vld [vmem:[%s19318_s1 + $0x8ac] sm:$0xf0]  ;;  %v12158_v26 = vld [vmem:[%s19318_s1 + $0x5f4] sm:$0xf]  ;;  %v9947_v28 = vor.u32 %v12284_v16, %v9944_v18  ;;  %v12305_v16 = vld [vmem:[%s19318_s1 + $0xa8c] sm:$0xf] }
  0x9c   : > { %2857 = vmatpush.bf16.msrb.mxu2 %v8827_v31  ;;  %v8936_v31 = vld [vmem:[%s19318_s1 + $0x21c] sm:$0xf0]  ;;  %v9779_v48 = vor.u32 %v12242_v36, %v9776_v38  ;;  %v9664_v36 = vld [vmem:[%s19318_s1 + $0x7cc] sm:$0xf0]  ;;  %v12095_v38 = vld [vmem:[%s19318_s1 + $0x3fc] sm:$0xf] }
  0x9d   : > { %2830 = vmatpush.bf16.msra.mxu3 %v9915_v39  ;;  %v12123_v39 = vld [vmem:[%s19318_s1 + $0x4dc] sm:$0xf]  ;;  %v10028_v18 = vld [vmem:[%s19318_s1 + $0xaa4] sm:$0xf0] }
  0x9e   : > { %2871 = vmatpush.bf16.msra.mxu0 %v9051_v46  ;;  %v12025_v46 = vld [vmem:[%s19318_s1 + $0x1cc] sm:$0xf] }
  0x9f   : > { %2817 = vmatpush.bf16.msra.mxu1 %v9663_v52  ;;  %v9303_v52 = vor.u32 %v12123_v39, %v9300_v41  ;;  %v8911_v61 = vor.u32 %v12025_v46, %v8908_v47  ;;  %v9188_v39 = vld [vmem:[%s19318_s1 + $0x414] sm:$0xf0] }
  0xa0   : > { %2858 = vmatpush.bf16.msrb.mxu2 %v8799_v45  ;;  %v8939_v45 = vor.u32 %v12032_v30, %v8936_v31  ;;  %v9695_v30 = vor.u32 %v12221_v21, %v9692_v22  ;;  %v12277_v31 = vld [vmem:[%s19318_s1 + $0x9ac] sm:$0xf]  ;;  %v9412_v41 = vld [vmem:[%s19318_s1 + $0x5d4] sm:$0xf0]  ;;  %v9191_v51 = vor.u32 %v12095_v38, %v9188_v39  ;;  %v12256_v21 = vld [vmem:[%s19318_s1 + $0x904] sm:$0xf] }
  0xa1   : > { %2831 = vmatpush.bf16.msra.mxu3 %v9887_v53  ;;  %10046 = vmatmul.msk.bf16.vlgmr.msrb.gmra.mxu0 %vm2557_vm0, %v13269_v50  ;;  %v9527_v53 = vor.u32 %v12179_v43, %v9524_v44  ;;  %v9832_v22 = vld [vmem:[%s19318_s1 + $0x91c] sm:$0xf0]  ;;  %v12015_v39 = vld [vmem:[%s19318_s1 + $0x178] sm:$0xf0] }
  0xa2   : > { %2872 = vmatpush.bf16.msra.mxu0 %v9023_v60  ;;  %v9496_v60 = vld [vmem:[%s19318_s1 + $0x67c] sm:$0xf0] }
  0xa3   : > { %2818 = vmatpush.bf16.msra.mxu1 %v9635_v1  ;;  %v9751_v1 = vor.u32 %v12235_v54, %v9748_v56  ;;  %v9636_v54 = vld [vmem:[%s19318_s1 + $0x794] sm:$0xf0]  ;;  %v12088_v56 = vld [vmem:[%s19318_s1 + $0x3c4] sm:$0xf]  ;;  %v8858_v38 = vld [vmem:[%s19318_s1 + $0x160] sm:$0xf] }
  0xa4   : > { %2859 = vmatpush.bf16.msrb.mxu2 %v8771_v59  ;;  %v12172_v59 = vld [vmem:[%s19318_s1 + $0x664] sm:$0xf] }
  0xa5   : > { %2832 = vmatpush.bf16.msra.mxu3 %v9859_v2  ;;  %v740_v2 = vld [vmem:[%s19325_s8] ss:$8 sm:$0xf]  ;;  %v9499_v6 = vor.u32 %v12172_v59, %v9496_v60  ;;  %v12144_v60 = vld [vmem:[%s19318_s1 + $0x584] sm:$0xf] }
  0xa6   : > { %2873 = vmatpush.bf16.msra.mxu0 %v8995_v9  ;;  %v12109_v9 = vld [vmem:[%s19318_s1 + $0x46c] sm:$0xf]  ;;  %v9160_v59 = vld [vmem:[%s19318_s1 + $0x3dc] sm:$0xf0] }
  0xa7   : > { %2819 = vmatpush.bf16.msra.mxu1 %v9607_v14  ;;  %v14026_v14 = vor.u32 %v741_v3, %v740_v2  ;;  %v9247_v19 = vor.u32 %v12109_v9, %v9244_v10  ;;  %v12263_v2 = vld [vmem:[%s19318_s1 + $0x93c] sm:$0xf]  ;;  %v9860_v3 = vld [vmem:[%s19318_s1 + $0x954] sm:$0xf0]  ;;  %v9132_v9 = vld [vmem:[%s19318_s1 + $0x3a4] sm:$0xf0] }
  0xa8   : > { %2860 = vmatpush.bf16.msrb.mxu2 %v8743_v8  ;;  %v9720_v8 = vld [vmem:[%s19318_s1 + $0x83c] sm:$0xf0]  ;;  %v12137_v10 = vld [vmem:[%s19318_s1 + $0x54c] sm:$0xf] }
  0xa9   : > { %2833 = vmatpush.bf16.msra.mxu3 %v9831_v15  ;;  %v9723_v15 = vor.u32 %v12228_v7, %v9720_v8  ;;  %v744_v29 = vperm.slane %v14026_v14, 0  ;;  %v9608_v7 = vld [vmem:[%s19318_s1 + $0x75c] sm:$0xf0]  ;;  %v12081_v8 = vld [vmem:[%s19318_s1 + $0x38c] sm:$0xf] }
  0xaa   : > { %2874 = vmatpush.bf16.msra.mxu0 %v8967_v27  ;;  %v9440_v27 = vld [vmem:[%s19318_s1 + $0x60c] sm:$0xf0]  ;;  %v2570_v43 = vpop.f32.mrf.mxu0 }
  0xab   : > { %2820 = vmatpush.bf16.msra.mxu1 %v9579_v32  ;;  %v9916_v32 = vld [vmem:[%s19318_s1 + $0x9c4] sm:$0xf0] }
  0xac   : > { %2861 = vmatpush.bf16.msrb.mxu2 %v8715_v24  ;;  %v12102_v24 = vld [vmem:[%s19318_s1 + $0x434] sm:$0xf]  ;;  %v9919_v44 = vor.u32 %v12277_v31, %v9916_v32  ;;  %v10031_v32 = vor.u32 %v12305_v16, %v10028_v18 }
  0xad   : > { %2834 = vmatpush.bf16.msra.mxu3 %v9803_v33  ;;  %v9219_v33 = vor.u32 %v12102_v24, %v9216_v25  ;;  %v2584_v47 = vpop.f32.mrf.mxu1  ;;  %v9135_v24 = vor.u32 %v12081_v8, %v9132_v9  ;;  %v9359_v25 = vor.u32 %v12137_v10, %v9356_v11  ;;  %v12120_v8 = vld [vmem:[%s19318_s1 + $0x4c0] sm:$0xf0]  ;;  %v8802_v9 = vld [vmem:[%s19318_s1 + $0xf0] sm:$0xf]  ;;  %v12001_v10 = vld [vmem:[%s19318_s1 + $0x108] sm:$0xf0] }
  0xae   : > { %2875 = vmatpush.bf16.msra.mxu0 %v8939_v45  ;;  %2821 = vmatmul.bf16.vlgmr.msra.gmra.mxu1 %v13358_v37  ;;  %v2571_v45 = vadd.f32 %v2570_v43, %v744_v29  ;;  %v9804_v43 = vld [vmem:[%s19318_s1 + $0x8e4] sm:$0xf0]  ;;  %v8803_v18 = vor.u32 %v12001_v10, %v8802_v9 }
  0xaf   : > { %2883 = vmatpush.bf16.msrb.mxu1 %v9331_v34  ;;  %v9443_v34 = vor.u32 %v12158_v26, %v9440_v27  ;;  %v12193_v26 = vld [vmem:[%s19318_s1 + $0x70c] sm:$0xf]  ;;  %v9580_v27 = vld [vmem:[%s19318_s1 + $0x724] sm:$0xf0] }
  0xb0   : > { %2862 = vmatpush.bf16.msrb.mxu2 %v8687_v40  ;;  %2835 = vmatmul.bf16.vlgmr.msra.gmra.mxu3 %v13369_v42  ;;  %v12151_v40 = vld [vmem:[%s19318_s1 + $0x5bc] sm:$0xf]  ;;  %v2585_v57 = vadd.f32 %v2584_v47, %v2571_v45  ;;  %v9558_v47 = vld [vmem:[%s19318_s1 + $0x6d8] sm:$0xf] }
  0xb1   : > { %2897 = vmatpush.bf16.msrb.mxu3 %v9555_v35  ;;  %v12214_v35 = vld [vmem:[%s19318_s1 + $0x7b4] sm:$0xf] }
  0xb2   : > { %2876 = vmatpush.bf16.msra.mxu0 %v8911_v61  ;;  %v9667_v46 = vor.u32 %v12214_v35, %v9664_v36  ;;  %v2598_v58 = vpop.f32.mrf.mxu2  ;;  %v9384_v61 = vld [vmem:[%s19318_s1 + $0x59c] sm:$0xf0]  ;;  %v9334_v35 = vld [vmem:[%s19318_s1 + $0x518] sm:$0xf]  ;;  %v12134_v36 = vld [vmem:[%s19318_s1 + $0x530] sm:$0xf0]  ;;  %v14180_v45 = vpop.f32.mrf.mxu0 }
  0xb3   : > { %2884 = vmatpush.bf16.msrb.mxu1 %v9303_v52  ;;  %2863 = vmatmul.bf16.vlgmr.msrb.gmra.mxu2 %v13181_v5  ;;  %v9415_v52 = vor.u32 %v12151_v40, %v9412_v41  ;;  %v2599_v63 = vadd.f32 %v2598_v58, %v2585_v57  ;;  %v9835_v40 = vor.u32 %v12256_v21, %v9832_v22  ;;  %v12249_v41 = vld [vmem:[%s19318_s1 + $0x8cc] sm:$0xf]  ;;  %v12127_v57 = vld [vmem:[%s19318_s1 + $0x4f8] sm:$0xf0]  ;;  %v8830_v58 = vld [vmem:[%s19318_s1 + $0x128] sm:$0xf] }
  0xb4   : > { %2911 = vmatpush.bf16.msra.mxu2 %v9779_v48  ;;  %v12270_v48 = vld [vmem:[%s19318_s1 + $0x974] sm:$0xf]  ;;  %v9250_v21 = vld [vmem:[%s19318_s1 + $0x470] sm:$0xf] }
  0xb5   : > { %2898 = vmatpush.bf16.msrb.mxu3 %v9527_v53  ;;  %2877 = vmatmul.bf16.vlgmr.msra.gmra.mxu0 %v13201_v17  ;;  %v12207_v53 = vld [vmem:[%s19318_s1 + $0x77c] sm:$0xf] }
  0xb6   : > { %2925 = vmatpush.bf16.msrb.mxu0 %v10003_v62  ;;  %v9891_v62 = vor.u32 %v12270_v48, %v9888_v49  ;;  %v9639_v0 = vor.u32 %v12207_v53, %v9636_v54  ;;  %v12190_v48 = vld [vmem:[%s19318_s1 + $0x6f0] sm:$0xf0]  ;;  %v9335_v49 = vor.u32 %v12134_v36, %v9334_v35  ;;  %v12071_v53 = vld [vmem:[%s19318_s1 + $0x338] sm:$0xf0]  ;;  %v9306_v54 = vld [vmem:[%s19318_s1 + $0x4e0] sm:$0xf] }
  0xb7   : > { %2885 = vmatpush.bf16.msrb.mxu1 %v9275_v4  ;;  %v9163_v4 = vor.u32 %v12088_v56, %v9160_v59  ;;  %v14197_v56 = vpop.f32.mrf.mxu1  ;;  %v12008_v59 = vld [vmem:[%s19318_s1 + $0x140] sm:$0xf0]  ;;  %v9474_v35 = vld [vmem:[%s19318_s1 + $0x630] sm:$0xf]  ;;  %v12169_v36 = vld [vmem:[%s19318_s1 + $0x648] sm:$0xf0] }
  0xb8   : > { %2912 = vmatpush.bf16.msra.mxu2 %v9751_v1  ;;  %v12200_v1 = vld [vmem:[%s19318_s1 + $0x744] sm:$0xf] }
  0xb9   : > { %2899 = vmatpush.bf16.msrb.mxu3 %v9499_v6  ;;  %v9387_v6 = vor.u32 %v12144_v60, %v9384_v61  ;;  %v9807_v60 = vor.u32 %v12249_v41, %v9804_v43  ;;  %v9559_v61 = vor.u32 %v12190_v48, %v9558_v47  ;;  %v8998_v41 = vld [vmem:[%s19318_s1 + $0x278] sm:$0xf]  ;;  %v12050_v43 = vld [vmem:[%s19318_s1 + $0x290] sm:$0xf0]  ;;  %v8746_v47 = vld [vmem:[%s19318_s1 + $0x80] sm:$0xf] }
  0xba   : > { %2926 = vmatpush.bf16.msrb.mxu0 %v9975_v13  ;;  %v12022_v13 = vld [vmem:[%s19318_s1 + $0x1b0] sm:$0xf0]  ;;  %v11987_v48 = vld [vmem:[%s19318_s1 + $0x98] sm:$0xf0] }
  0xbb   : > { %2886 = vmatpush.bf16.msrb.mxu1 %v9247_v19  ;;  %v9611_v19 = vor.u32 %v12200_v1, %v9608_v7  ;;  %v8887_v31 = vor.u32 %v12022_v13, %v8886_v12  ;;  %v9278_v7 = vld [vmem:[%s19318_s1 + $0x4a8] sm:$0xf] }
  0xbc   : > { %2913 = vmatpush.bf16.msra.mxu2 %v9723_v15  ;;  %v9863_v15 = vor.u32 %v12263_v2, %v9860_v3  ;;  %v9307_v2 = vor.u32 %v12127_v57, %v9306_v54  ;;  %v8831_v3 = vor.u32 %v12008_v59, %v8830_v58  ;;  %v9502_v13 = vld [vmem:[%s19318_s1 + $0x668] sm:$0xf]  ;;  %v9279_v16 = vor.u32 %v12120_v8, %v9278_v7  ;;  %v9446_v54 = vld [vmem:[%s19318_s1 + $0x5f8] sm:$0xf]  ;;  %v12162_v57 = vld [vmem:[%s19318_s1 + $0x610] sm:$0xf0] }
  0xbd   : > { %2900 = vmatpush.bf16.msrb.mxu3 %v9471_v20  ;;  %v2612_v20 = vpop.f32.mrf.mxu3  ;;  %v8747_v59 = vor.u32 %v11987_v48, %v8746_v47  ;;  %v9418_v7 = vld [vmem:[%s19318_s1 + $0x5c0] sm:$0xf]  ;;  %v12155_v8 = vld [vmem:[%s19318_s1 + $0x5d8] sm:$0xf0]  ;;  %v10034_v47 = vld [vmem:[%s19318_s1 + $0xa90] sm:$0xf] }
  0xbe   : > { %2927 = vmatpush.bf16.msrb.mxu0 %v9947_v28  ;;  %v14152_v28 = vadd.f32 %v2612_v20, %v2599_v63  ;;  %v9530_v63 = vld [vmem:[%s19318_s1 + $0x6a0] sm:$0xf]  ;;  %v12057_v20 = vld [vmem:[%s19318_s1 + $0x2c8] sm:$0xf0] }
  0xbf   : > { %2887 = vmatpush.bf16.msrb.mxu1 %v9219_v33  ;;  %v9110_v33 = vld [vmem:[%s19318_s1 + $0x358] sm:$0xf]  ;;  %v12309_v48 = vld [vmem:[%s19318_s1 + $0xaa8] sm:$0xf0] }
  0xc0   : > { %2914 = vmatpush.bf16.msra.mxu2 %v9695_v30  ;;  %v14154_v30 = vpop.f32.mrf.mxu2 }
  0xc1   : > { %2901 = vmatpush.bf16.msrb.mxu3 %v9443_v34  ;;  %v12078_v34 = vld [vmem:[%s19318_s1 + $0x370] sm:$0xf0] }
  0xc2   : > { %2928 = vmatpush.bf16.msrb.mxu0 %v9919_v44  ;;  %v9583_v44 = vor.u32 %v12193_v26, %v9580_v27  ;;  %v8774_v26 = vld [vmem:[%s19318_s1 + $0xb8] sm:$0xf]  ;;  %v11994_v27 = vld [vmem:[%s19318_s1 + $0xd0] sm:$0xf0] }
  0xc3   : > { %2888 = vmatpush.bf16.msrb.mxu1 %v9191_v51  ;;  %v8859_v51 = vor.u32 %v12015_v39, %v8858_v38 }
  0xc4   : > { %2915 = vmatpush.bf16.msra.mxu2 %v9667_v46  ;;  %v9111_v46 = vor.u32 %v12078_v34, %v9110_v33 }
  0xc5   : > { %2902 = vmatpush.bf16.msrb.mxu3 %v9415_v52  ;;  %v9082_v52 = vld [vmem:[%s19318_s1 + $0x320] sm:$0xf] }
  0xc6   : > { %2929 = vmatpush.bf16.msrb.mxu0 %v9891_v62  ;;  %v9083_v62 = vor.u32 %v12071_v53, %v9082_v52  ;;  %v745_v52 = vperm.slane %v14026_v14, 1  ;;  %v8999_v53 = vor.u32 %v12050_v43, %v8998_v41  ;;  %v12302_v41 = vld [vmem:[%s19318_s1 + $0xa70] sm:$0xf0]  ;;  %v9754_v43 = vld [vmem:[%s19318_s1 + $0x860] sm:$0xf] }
  0xc7   : > { %2889 = vmatpush.bf16.msrb.mxu1 %v9163_v4  ;;  %v9054_v4 = vld [vmem:[%s19318_s1 + $0x2e8] sm:$0xf] }
  0xc8   : > { %2916 = vmatpush.bf16.msra.mxu2 %v9639_v0  ;;  %v12183_v0 = vld [vmem:[%s19318_s1 + $0x6b8] sm:$0xf0]  ;;  %v2654_v1 = vpop.f32.mrf.mxu2 }
  0xc9   : > { %2903 = vmatpush.bf16.msrb.mxu3 %v9387_v6  ;;  %v12064_v6 = vld [vmem:[%s19318_s1 + $0x300] sm:$0xf0]  ;;  %v9531_v11 = vor.u32 %v12183_v0, %v9530_v63  ;;  %v12099_v63 = vld [vmem:[%s19318_s1 + $0x418] sm:$0xf0]  ;;  %v8718_v0 = vld [vmem:[%s19318_s1 + $0x48] sm:$0xf] }
  0xca   : > { %2930 = vmatpush.bf16.msrb.mxu0 %v9863_v15  ;;  %v9055_v12 = vor.u32 %v12064_v6, %v9054_v4  ;;  %v12176_v15 = vld [vmem:[%s19318_s1 + $0x680] sm:$0xf0]  ;;  %v2626_v22 = vpop.f32.mrf.mxu0 }
  0xcb   : > { %2890 = vmatpush.bf16.msrb.mxu1 %v9135_v24  ;;  %v14250_v24 = vpop.f32.mrf.mxu3  ;;  %v2640_v33 = vpop.f32.mrf.mxu1 }
  0xcc   : > { %2917 = vmatpush.bf16.msra.mxu2 %v9611_v19  ;;  %v9026_v19 = vld [vmem:[%s19318_s1 + $0x2b0] sm:$0xf] }
  0xcd   : > { %2904 = vmatpush.bf16.msrb.mxu3 %v9359_v25  ;;  %v12113_v25 = vld [vmem:[%s19318_s1 + $0x488] sm:$0xf0]  ;;  %v9027_v34 = vor.u32 %v12057_v20, %v9026_v19  ;;  %v8690_v19 = vld [vmem:[%s19318_s1 + $0x10] sm:$0xf] }
  0xce   : > { %2931 = vmatpush.bf16.msrb.mxu0 %v9835_v40  ;;  %2891 = vmatmul.bf16.vlgmr.msrb.gmra.mxu1 %v13156_v55  ;;  %v9251_v40 = vor.u32 %v12113_v25, %v9250_v21  ;;  %v11973_v20 = vld [vmem:[%s19318_s1 + $0x28] sm:$0xf0]  ;;  %v9782_v21 = vld [vmem:[%s19318_s1 + $0x898] sm:$0xf]  ;;  %v9419_v25 = vor.u32 %v12155_v8, %v9418_v7 }
  0xcf   : > { %2946 = vmatpush.bf16.msra.mxu1 %v10031_v32  ;;  %v9503_v32 = vor.u32 %v12176_v15, %v9502_v13  ;;  %v12036_v13 = vld [vmem:[%s19318_s1 + $0x220] sm:$0xf0]  ;;  %v9166_v15 = vld [vmem:[%s19318_s1 + $0x3c8] sm:$0xf] }
  0xd0   : > { %2905 = vmatmul.bf16.vlgmr.msrb.gmra.mxu3 %v13215_v23  ;;  %2918 = vmatpush.bf16.msra.mxu2 %v9583_v44  ;;  %v14269_v38 = vpop.f32.mrf.mxu2  ;;  %v9222_v44 = vld [vmem:[%s19318_s1 + $0x438] sm:$0xf] }
  0xd1   : > { %2953 = vmatpush.bf16.msra.mxu3 %v8887_v31  ;;  %v2627_v31 = vadd.f32 %v2626_v22, %v14152_v28  ;;  %v8775_v28 = vor.u32 %v11994_v27, %v8774_v26  ;;  %v12246_v22 = vld [vmem:[%s19318_s1 + $0x8b0] sm:$0xf0]  ;;  %v8914_v27 = vld [vmem:[%s19318_s1 + $0x1d0] sm:$0xf] }
  0xd2   : > { %2932 = vmatpush.bf16.msrb.mxu0 %v9807_v60  ;;  %v8970_v60 = vld [vmem:[%s19318_s1 + $0x240] sm:$0xf]  ;;  %v14418_v7 = vpop.f32.mrf.mxu0 }
  0xd3   : > { %2967 = vmatpush.bf16.msrb.mxu1 %v9111_v46  ;;  %2919 = vmatmul.bf16.vlgmr.msra.gmra.mxu2 %v13358_v37  ;;  %v2641_v39 = vadd.f32 %v2640_v33, %v2627_v31  ;;  %v12106_v46 = vld [vmem:[%s19318_s1 + $0x450] sm:$0xf0]  ;;  %v9390_v31 = vld [vmem:[%s19318_s1 + $0x588] sm:$0xf] }
  0xd4   : > { %2981 = vmatpush.bf16.msrb.mxu2 %v9335_v49  ;;  %v9223_v58 = vor.u32 %v12106_v46, %v9222_v44  ;;  %v12239_v44 = vld [vmem:[%s19318_s1 + $0x878] sm:$0xf0] }
  0xd5   : > { %2954 = vmatpush.bf16.msra.mxu3 %v8859_v51  ;;  %2933 = vmatmul.bf16.vlgmr.msrb.gmra.mxu0 %v13369_v42  ;;  %v14289_v49 = vadd.f32 %v2654_v1, %v2641_v39  ;;  %v9475_v51 = vor.u32 %v12169_v36, %v9474_v35  ;;  %v11980_v1 = vld [vmem:[%s19318_s1 + $0x60] sm:$0xf0]  ;;  %v12029_v35 = vld [vmem:[%s19318_s1 + $0x1e8] sm:$0xf0]  ;;  %v9138_v36 = vld [vmem:[%s19318_s1 + $0x390] sm:$0xf] }
  0xd6   : > { %2995 = vmatpush.bf16.msra.mxu0 %v9559_v61  ;;  %v12043_v61 = vld [vmem:[%s19318_s1 + $0x258] sm:$0xf0]  ;;  %v12085_v39 = vld [vmem:[%s19318_s1 + $0x3a8] sm:$0xf0] }
  0xd7   : > { %2968 = vmatpush.bf16.msrb.mxu1 %v9083_v62  ;;  %v9194_v62 = vld [vmem:[%s19318_s1 + $0x400] sm:$0xf]  ;;  %v8971_v6 = vor.u32 %v12043_v61, %v8970_v60  ;;  %v12019_v60 = vld [vmem:[%s19318_s1 + $0x19c] sm:$0xf]  ;;  %v8888_v61 = vld [vmem:[%s19318_s1 + $0x1b4] sm:$0xf0] }
  0xd8   : > { %2982 = vmatpush.bf16.msrb.mxu2 %v9307_v2  ;;  %v2668_v2 = vpop.f32.mrf.mxu3  ;;  %v2682_v9 = vpop.f32.mrf.mxu2  ;;  %v9195_v10 = vor.u32 %v12099_v63, %v9194_v62  ;;  %v9755_v62 = vor.u32 %v12239_v44, %v9754_v43  ;;  %v10035_v63 = vor.u32 %v12309_v48, %v10034_v47  ;;  %v8891_v8 = vor.u32 %v12019_v60, %v8888_v61  ;;  %v12218_v43 = vld [vmem:[%s19318_s1 + $0x7d0] sm:$0xf0]  ;;  %v9894_v61 = vld [vmem:[%s19318_s1 + $0x978] sm:$0xf] }
  0xd9   : > { %2955 = vmatpush.bf16.msra.mxu3 %v8831_v3  ;;  %v9447_v3 = vor.u32 %v12162_v57, %v9446_v54  ;;  %v2669_v4 = vadd.f32 %v2668_v2, %v745_v52  ;;  %v12141_v54 = vld [vmem:[%s19318_s1 + $0x568] sm:$0xf0]  ;;  %v9139_v57 = vor.u32 %v12085_v39, %v9138_v36  ;;  %v12295_v2 = vld [vmem:[%s19318_s1 + $0xa38] sm:$0xf0]  ;;  %v9056_v39 = vld [vmem:[%s19318_s1 + $0x304] sm:$0xf0] }
  0xda   : > { %2996 = vmatpush.bf16.msra.mxu0 %v9531_v11  ;;  %v8719_v11 = vor.u32 %v11980_v1, %v8718_v0  ;;  %v9112_v0 = vld [vmem:[%s19318_s1 + $0x374] sm:$0xf0]  ;;  %v9978_v1 = vld [vmem:[%s19318_s1 + $0xa20] sm:$0xf] }
  0xdb   : > { %2969 = vmatpush.bf16.msrb.mxu1 %v9055_v12  ;;  %v8942_v12 = vld [vmem:[%s19318_s1 + $0x208] sm:$0xf] }
  0xdc   : > { %2983 = vmatpush.bf16.msrb.mxu2 %v9279_v16  ;;  %v14335_v16 = vadd.f32 %v2682_v9, %v2669_v4  ;;  %v8943_v26 = vor.u32 %v12036_v13, %v8942_v12  ;;  %v12232_v4 = vld [vmem:[%s19318_s1 + $0x840] sm:$0xf0]  ;;  %v8860_v13 = vld [vmem:[%s19318_s1 + $0x17c] sm:$0xf0] }
  0xdd   : > { %2956 = vmatpush.bf16.msra.mxu3 %v8803_v18  ;;  %v12092_v18 = vld [vmem:[%s19318_s1 + $0x3e0] sm:$0xf0] }
  0xde   : > { %2997 = vmatpush.bf16.msra.mxu0 %v9503_v32  ;;  %10047 = vmatmul.msk.bf16.vlgmr.msra.gmra.mxu1 %vm2557_vm0, %v13269_v50  ;;  %v12148_v32 = vld [vmem:[%s19318_s1 + $0x5a0] sm:$0xf0]  ;;  %v9167_v33 = vor.u32 %v12092_v18, %v9166_v15  ;;  %v14430_v15 = vpop.f32.mrf.mxu1 }
  0xdf   : > { %2970 = vmatpush.bf16.msrb.mxu1 %v9027_v34  ;;  %v8691_v34 = vor.u32 %v11973_v20, %v8690_v19  ;;  %v9391_v46 = vor.u32 %v12148_v32, %v9390_v31  ;;  %v12012_v12 = vld [vmem:[%s19318_s1 + $0x164] sm:$0xf]  ;;  %v9084_v19 = vld [vmem:[%s19318_s1 + $0x33c] sm:$0xf0]  ;;  %v9950_v20 = vld [vmem:[%s19318_s1 + $0x9e8] sm:$0xf] }
  0xe0   : > { %2984 = vmatpush.bf16.msrb.mxu2 %v9251_v40  ;;  %v9783_v40 = vor.u32 %v12246_v22, %v9782_v21  ;;  %v12288_v21 = vld [vmem:[%s19318_s1 + $0xa00] sm:$0xf0]  ;;  %v9698_v22 = vld [vmem:[%s19318_s1 + $0x7f0] sm:$0xf] }
  0xe1   : > { %2957 = vmatpush.bf16.msra.mxu3 %v8775_v28  ;;  %v10006_v28 = vld [vmem:[%s19318_s1 + $0xa58] sm:$0xf]  ;;  %v9951_v32 = vor.u32 %v12288_v21, %v9950_v20  ;;  %v12204_v20 = vld [vmem:[%s19318_s1 + $0x760] sm:$0xf0] }
  0xe2   : > { %2998 = vmatpush.bf16.msra.mxu0 %v9475_v51  ;;  %v8915_v51 = vor.u32 %v12029_v35, %v8914_v27  ;;  %v14449_v27 = vpop.f32.mrf.mxu3  ;;  %v8832_v35 = vld [vmem:[%s19318_s1 + $0x144] sm:$0xf0] }
  0xe3   : > { %2971 = vmatpush.bf16.msrb.mxu1 %v8999_v53  ;;  %v9362_v53 = vld [vmem:[%s19318_s1 + $0x550] sm:$0xf] }
  0xe4   : > { %2985 = vmatpush.bf16.msrb.mxu2 %v9223_v58  ;;  %v10007_v58 = vor.u32 %v12302_v41, %v10006_v28  ;;  %v12281_v28 = vld [vmem:[%s19318_s1 + $0x9c8] sm:$0xf0]  ;;  %v9670_v41 = vld [vmem:[%s19318_s1 + $0x7b8] sm:$0xf] }
  0xe5   : > { %2958 = vmatpush.bf16.msra.mxu3 %v8747_v59  ;;  %v12075_v59 = vld [vmem:[%s19318_s1 + $0x35c] sm:$0xf]  ;;  %v9671_v60 = vor.u32 %v12218_v43, %v9670_v41  ;;  %v9586_v43 = vld [vmem:[%s19318_s1 + $0x710] sm:$0xf] }
  0xe6   : > { %2999 = vmatpush.bf16.msra.mxu0 %v9447_v3  ;;  %v9726_v3 = vld [vmem:[%s19318_s1 + $0x828] sm:$0xf]  ;;  %v9115_v9 = vor.u32 %v12075_v59, %v9112_v0  ;;  %v9642_v0 = vld [vmem:[%s19318_s1 + $0x780] sm:$0xf] }
  0xe7   : > { %2972 = vmatpush.bf16.msrb.mxu1 %v8971_v6  ;;  %v9363_v6 = vor.u32 %v12141_v54, %v9362_v53  ;;  %v9727_v18 = vor.u32 %v12232_v4, %v9726_v3  ;;  %v12054_v54 = vld [vmem:[%s19318_s1 + $0x2b4] sm:$0xf] }
  0xe8   : > { %2986 = vmatpush.bf16.msrb.mxu2 %v9195_v10  ;;  %v9979_v10 = vor.u32 %v12295_v2, %v9978_v1  ;;  %v12211_v1 = vld [vmem:[%s19318_s1 + $0x798] sm:$0xf0] }
  0xe9   : > { %2959 = vmatpush.bf16.msra.mxu3 %v8719_v11  ;;  %v12068_v11 = vld [vmem:[%s19318_s1 + $0x324] sm:$0xf] }
  0xea   : > { %3000 = vmatpush.bf16.msra.mxu0 %v9419_v25  ;;  %v12225_v25 = vld [vmem:[%s19318_s1 + $0x808] sm:$0xf0]  ;;  %v9087_v31 = vor.u32 %v12068_v11, %v9084_v19  ;;  %v2696_v44 = vpop.f32.mrf.mxu0  ;;  %v9000_v11 = vld [vmem:[%s19318_s1 + $0x294] sm:$0xf0]  ;;  %v9614_v19 = vld [vmem:[%s19318_s1 + $0x748] sm:$0xf] }
  0xeb   : > { %2973 = vmatpush.bf16.msrb.mxu1 %v8943_v26  ;;  %v8863_v26 = vor.u32 %v12012_v12, %v8860_v13  ;;  %v9699_v36 = vor.u32 %v12225_v25, %v9698_v22  ;;  %v2697_v48 = vadd.f32 %v2696_v44, %v14335_v16  ;;  %v2710_v59 = vpop.f32.mrf.mxu1  ;;  %v9028_v16 = vld [vmem:[%s19318_s1 + $0x2cc] sm:$0xf0]  ;;  %v9866_v12 = vld [vmem:[%s19318_s1 + $0x940] sm:$0xf]  ;;  %v12267_v13 = vld [vmem:[%s19318_s1 + $0x958] sm:$0xf0] }
  0xec   : > { %2987 = vmatpush.bf16.msrb.mxu2 %v9167_v33  ;;  %v12061_v33 = vld [vmem:[%s19318_s1 + $0x2ec] sm:$0xf]  ;;  %v9031_v3 = vor.u32 %v12054_v54, %v9028_v16  ;;  %v8944_v16 = vld [vmem:[%s19318_s1 + $0x224] sm:$0xf0] }
  0xed   : > { %2960 = vmatpush.bf16.msra.mxu3 %v8691_v34  ;;  %v12005_v34 = vld [vmem:[%s19318_s1 + $0x12c] sm:$0xf] }
  0xee   : > { %3001 = vmatpush.bf16.msra.mxu0 %v9391_v46  ;;  %v14476_v46 = vpop.f32.mrf.mxu2  ;;  %v8835_v47 = vor.u32 %v12005_v34, %v8832_v35  ;;  %v8748_v34 = vld [vmem:[%s19318_s1 + $0x9c] sm:$0xf0]  ;;  %v12197_v44 = vld [vmem:[%s19318_s1 + $0x728] sm:$0xf0] }
  0xef   : > { %2974 = vmatpush.bf16.msrb.mxu1 %v8915_v51  ;;  %v9059_v51 = vor.u32 %v12061_v33, %v9056_v39  ;;  %v11984_v33 = vld [vmem:[%s19318_s1 + $0x84] sm:$0xf]  ;;  %v8972_v39 = vld [vmem:[%s19318_s1 + $0x25c] sm:$0xf0] }
  0xf0   : > { %2961 = vmatmul.bf16.vlgmr.msra.gmra.mxu3 %v13181_v5  ;;  %2988 = vmatpush.bf16.msrb.mxu2 %v9139_v57  ;;  %v11998_v57 = vld [vmem:[%s19318_s1 + $0xf4] sm:$0xf] }
  0xf1   : > { %3009 = vmatpush.bf16.msrb.mxu3 %v9783_v40  ;;  %v9922_v40 = vld [vmem:[%s19318_s1 + $0x9b0] sm:$0xf] }
  0xf2   : > { %3002 = vmatpush.bf16.msra.mxu0 %v9363_v6  ;;  %2975 = vmatmul.bf16.vlgmr.msrb.gmra.mxu1 %v13201_v17  ;;  %v9923_v53 = vor.u32 %v12281_v28, %v9922_v40  ;;  %v12047_v6 = vld [vmem:[%s19318_s1 + $0x27c] sm:$0xf]  ;;  %v14527_v22 = vpop.f32.mrf.mxu0  ;;  %v9838_v40 = vld [vmem:[%s19318_s1 + $0x908] sm:$0xf]  ;;  %v12260_v28 = vld [vmem:[%s19318_s1 + $0x920] sm:$0xf0] }
  0xf3   : > { %3023 = vmatpush.bf16.msra.mxu1 %v10007_v58  ;;  %2989 = vmatmul.bf16.vlgmr.msrb.gmra.mxu2 %v13156_v55  ;;  %v8804_v58 = vld [vmem:[%s19318_s1 + $0x10c] sm:$0xf0]  ;;  %v9839_v54 = vor.u32 %v12260_v28, %v9838_v40 }
  0xf4   : > { %3044 = vmatpush.bf16.msra.mxu2 %v10035_v63  ;;  %v2711_v63 = vadd.f32 %v2710_v59, %v2697_v48  ;;  %v8807_v2 = vor.u32 %v11998_v57, %v8804_v58  ;;  %v9336_v48 = vld [vmem:[%s19318_s1 + $0x534] sm:$0xf0]  ;;  %v11977_v57 = vld [vmem:[%s19318_s1 + $0x4c] sm:$0xf]  ;;  %v8720_v58 = vld [vmem:[%s19318_s1 + $0x64] sm:$0xf0]  ;;  %v9587_v59 = vor.u32 %v12197_v44, %v9586_v43 }
  0xf5   : > { %3010 = vmatpush.bf16.msrb.mxu3 %v9755_v62  ;;  %3003 = vmatmul.bf16.vlgmr.msra.gmra.mxu0 %v13215_v23  ;;  %v12274_v62 = vld [vmem:[%s19318_s1 + $0x990] sm:$0xf0]  ;;  %v9980_v43 = vld [vmem:[%s19318_s1 + $0xa3c] sm:$0xf0] }
  0xf6   : > { %3051 = vmatpush.bf16.msrb.mxu0 %v8891_v8  ;;  %v9895_v4 = vor.u32 %v12274_v62, %v9894_v61  ;;  %v11991_v8 = vld [vmem:[%s19318_s1 + $0xbc] sm:$0xf]  ;;  %v2738_v35 = vpop.f32.mrf.mxu2  ;;  %v9810_v62 = vld [vmem:[%s19318_s1 + $0x8d0] sm:$0xf] }
  0xf7   : > { %3024 = vmatpush.bf16.msra.mxu1 %v9979_v10  ;;  %v9643_v10 = vor.u32 %v12211_v1, %v9642_v0  ;;  %v12187_v0 = vld [vmem:[%s19318_s1 + $0x6dc] sm:$0xf] }
  0xf8   : > { %3065 = vmatpush.bf16.msrb.mxu2 %v9115_v9  ;;  %v8776_v9 = vld [vmem:[%s19318_s1 + $0xd4] sm:$0xf0] }
  0xf9   : > { %3011 = vmatpush.bf16.msrb.mxu3 %v9727_v18  ;;  %v2724_v18 = vpop.f32.mrf.mxu3  ;;  %v8779_v25 = vor.u32 %v11991_v8, %v8776_v9 }
  0xfa   : > { %3052 = vmatpush.bf16.msrb.mxu0 %v8863_v26  ;;  %v2725_v21 = vadd.f32 %v2724_v18, %v2711_v63  ;;  %v9003_v26 = vor.u32 %v12047_v6, %v9000_v11  ;;  %v12253_v63 = vld [vmem:[%s19318_s1 + $0x8e8] sm:$0xf0]  ;;  %v2752_v1 = vpop.f32.mrf.mxu0  ;;  %v8723_v6 = vor.u32 %v11977_v57, %v8720_v58  ;;  %v11970_v11 = vld [vmem:[%s19318_s1 + $0x14] sm:$0xf]  ;;  %v8916_v18 = vld [vmem:[%s19318_s1 + $0x1ec] sm:$0xf0] }
  0xfb   : > { %3025 = vmatpush.bf16.msra.mxu1 %v9951_v32  ;;  %v12040_v32 = vld [vmem:[%s19318_s1 + $0x244] sm:$0xf]  ;;  %v12110_v57 = vld [vmem:[%s19318_s1 + $0x474] sm:$0xf]  ;;  %v9252_v58 = vld [vmem:[%s19318_s1 + $0x48c] sm:$0xf0] }
  0xfc   : > { %3066 = vmatpush.bf16.msrb.mxu2 %v9087_v31  ;;  %v9867_v31 = vor.u32 %v12267_v13, %v9866_v12  ;;  %v2739_v41 = vadd.f32 %v2738_v35, %v2725_v21  ;;  %v8692_v12 = vld [vmem:[%s19318_s1 + $0x2c] sm:$0xf0]  ;;  %v9811_v13 = vor.u32 %v12253_v63, %v9810_v62  ;;  %v9280_v35 = vld [vmem:[%s19318_s1 + $0x4c4] sm:$0xf0]  ;;  %v12285_v62 = vld [vmem:[%s19318_s1 + $0x9ec] sm:$0xf] }
  0xfd   : > { %3012 = vmatpush.bf16.msrb.mxu3 %v9699_v36  ;;  %v9615_v36 = vor.u32 %v12204_v20, %v9614_v19  ;;  %v12299_v19 = vld [vmem:[%s19318_s1 + $0xa5c] sm:$0xf]  ;;  %v10008_v20 = vld [vmem:[%s19318_s1 + $0xa74] sm:$0xf0]  ;;  %v9952_v63 = vld [vmem:[%s19318_s1 + $0xa04] sm:$0xf0] }
  0xfe   : > { %3053 = vmatpush.bf16.msrb.mxu0 %v8835_v47  ;;  %v12131_v47 = vld [vmem:[%s19318_s1 + $0x51c] sm:$0xf]  ;;  %v14591_v8 = vadd.f32 %v2752_v1, %v2739_v41  ;;  %v10011_v40 = vor.u32 %v12299_v19, %v10008_v20  ;;  %v12292_v41 = vld [vmem:[%s19318_s1 + $0xa24] sm:$0xf]  ;;  %v9255_v1 = vor.u32 %v12110_v57, %v9252_v58  ;;  %v9924_v19 = vld [vmem:[%s19318_s1 + $0x9cc] sm:$0xf0] }
  0xff   : > { %3026 = vmatpush.bf16.msra.mxu1 %v9923_v53  ;;  %v8975_v53 = vor.u32 %v12040_v32, %v8972_v39  ;;  %v9339_v61 = vor.u32 %v12131_v47, %v9336_v48  ;;  %v9784_v32 = vld [vmem:[%s19318_s1 + $0x8b4] sm:$0xf0]  ;;  %v12173_v48 = vld [vmem:[%s19318_s1 + $0x66c] sm:$0xf]  ;;  %v19328_v20 = vperm.slane %v14026_v14, 2 }
 0x100   : > { %3067 = vmatpush.bf16.msrb.mxu2 %v9059_v51  ;;  %v8751_v51 = vor.u32 %v11984_v33, %v8748_v34  ;;  %v9532_v33 = vld [vmem:[%s19318_s1 + $0x6bc] sm:$0xf0]  ;;  %v12117_v34 = vld [vmem:[%s19318_s1 + $0x4ac] sm:$0xf]  ;;  %v9672_v57 = vld [vmem:[%s19318_s1 + $0x7d4] sm:$0xf0] }
 0x101   : > { %3013 = vmatpush.bf16.msrb.mxu3 %v9671_v60  ;;  %v12033_v60 = vld [vmem:[%s19318_s1 + $0x20c] sm:$0xf]  ;;  %v9283_v47 = vor.u32 %v12117_v34, %v9280_v35  ;;  %v9448_v34 = vld [vmem:[%s19318_s1 + $0x614] sm:$0xf0]  ;;  %v12096_v35 = vld [vmem:[%s19318_s1 + $0x404] sm:$0xf] }
 0x102   : > { %3054 = vmatpush.bf16.msrb.mxu0 %v8807_v2  ;;  %v9560_v2 = vld [vmem:[%s19318_s1 + $0x6f4] sm:$0xf0]  ;;  %v8947_v9 = vor.u32 %v12033_v60, %v8944_v16  ;;  %v14656_v60 = vpop.f32.mrf.mxu0  ;;  %v9983_v16 = vor.u32 %v12292_v41, %v9980_v43  ;;  %v9420_v58 = vld [vmem:[%s19318_s1 + $0x5dc] sm:$0xf0] }
 0x103   : > { %3027 = vmatpush.bf16.msra.mxu1 %v9895_v4  ;;  %10048 = vmatmul.msk.bf16.vlgmr.msra.gmra.mxu2 %vm2557_vm0, %v13269_v50  ;;  %v9308_v4 = vld [vmem:[%s19318_s1 + $0x4fc] sm:$0xf0]  ;;  %v9563_v21 = vor.u32 %v12187_v0, %v9560_v2  ;;  %v12166_v2 = vld [vmem:[%s19318_s1 + $0x634] sm:$0xf] }
 0x104   : > { %3068 = vmatpush.bf16.msrb.mxu2 %v9031_v3  ;;  %v12124_v3 = vld [vmem:[%s19318_s1 + $0x4e4] sm:$0xf] }
 0x105   : > { %3014 = vmatpush.bf16.msrb.mxu3 %v9643_v10  ;;  %v12026_v10 = vld [vmem:[%s19318_s1 + $0x1d4] sm:$0xf] }
 0x106   : > { %3055 = vmatpush.bf16.msrb.mxu0 %v8779_v25  ;;  %v9311_v25 = vor.u32 %v12124_v3, %v9308_v4  ;;  %v8919_v39 = vor.u32 %v12026_v10, %v8916_v18  ;;  %v12229_v3 = vld [vmem:[%s19318_s1 + $0x82c] sm:$0xf]  ;;  %v9728_v4 = vld [vmem:[%s19318_s1 + $0x844] sm:$0xf0]  ;;  %v9224_v10 = vld [vmem:[%s19318_s1 + $0x454] sm:$0xf0] }
 0x107   : > { %3028 = vmatpush.bf16.msra.mxu1 %v9867_v31  ;;  %v12243_v31 = vld [vmem:[%s19318_s1 + $0x89c] sm:$0xf]  ;;  %v12278_v18 = vld [vmem:[%s19318_s1 + $0x9b4] sm:$0xf] }
 0x108   : > { %3069 = vmatpush.bf16.msrb.mxu2 %v9003_v26  ;;  %v12180_v26 = vld [vmem:[%s19318_s1 + $0x6a4] sm:$0xf]  ;;  %v9787_v28 = vor.u32 %v12243_v31, %v9784_v32  ;;  %v12222_v31 = vld [vmem:[%s19318_s1 + $0x7f4] sm:$0xf]  ;;  %v9700_v32 = vld [vmem:[%s19318_s1 + $0x80c] sm:$0xf0] }
 0x109   : > { %3015 = vmatpush.bf16.msrb.mxu3 %v9615_v36  ;;  %v8695_v36 = vor.u32 %v11970_v11, %v8692_v12  ;;  %v9535_v44 = vor.u32 %v12180_v26, %v9532_v33  ;;  %v14685_v11 = vpop.f32.mrf.mxu3  ;;  %v9955_v12 = vor.u32 %v12285_v62, %v9952_v63  ;;  %v12159_v26 = vld [vmem:[%s19318_s1 + $0x5fc] sm:$0xf]  ;;  %v14703_v33 = vpop.f32.mrf.mxu2  ;;  %v9703_v43 = vor.u32 %v12222_v31, %v9700_v32  ;;  %v10036_v31 = vld [vmem:[%s19318_s1 + $0xaac] sm:$0xf0] }
 0x10a   : > { %3056 = vmatpush.bf16.msrb.mxu0 %v8751_v51  ;;  %v12236_v51 = vld [vmem:[%s19318_s1 + $0x864] sm:$0xf] }
 0x10b   : > { %3029 = vmatpush.bf16.msra.mxu1 %v9839_v54  ;;  %v9504_v54 = vld [vmem:[%s19318_s1 + $0x684] sm:$0xf0] }
 0x10c   : > { %3070 = vmatpush.bf16.msrb.mxu2 %v8975_v53  ;;  %v9756_v53 = vld [vmem:[%s19318_s1 + $0x87c] sm:$0xf0]  ;;  %v9507_v0 = vor.u32 %v12173_v48, %v9504_v54  ;;  %v9451_v48 = vor.u32 %v12159_v26, %v9448_v34  ;;  %v12215_v54 = vld [vmem:[%s19318_s1 + $0x7bc] sm:$0xf]  ;;  %v12306_v26 = vld [vmem:[%s19318_s1 + $0xa94] sm:$0xf] }
 0x10d   : > { %3016 = vmatpush.bf16.msrb.mxu3 %v9587_v59  ;;  %v14654_v59 = vpop.f32.mrf.mxu1 }
 0x10e   : > { %3057 = vmatpush.bf16.msrb.mxu0 %v8723_v6  ;;  %v9476_v6 = vld [vmem:[%s19318_s1 + $0x64c] sm:$0xf0] }
 0x10f   : > { %3030 = vmatpush.bf16.msra.mxu1 %v9811_v13  ;;  %v9731_v13 = vor.u32 %v12229_v3, %v9728_v4  ;;  %v9868_v3 = vld [vmem:[%s19318_s1 + $0x95c] sm:$0xf0] }
 0x110   : > { %3071 = vmatpush.bf16.msrb.mxu2 %v8947_v9  ;;  %3017 = vmatmul.bf16.vlgmr.msrb.gmra.mxu3 %v13358_v37  ;;  %v12103_v9 = vld [vmem:[%s19318_s1 + $0x43c] sm:$0xf] }
 0x111   : > { %3079 = vmatpush.bf16.msra.mxu3 %v9339_v61  ;;  %v9759_v61 = vor.u32 %v12236_v51, %v9756_v53  ;;  %v12152_v53 = vld [vmem:[%s19318_s1 + $0x5c4] sm:$0xf] }
 0x112   : > { %3058 = vmatpush.bf16.msrb.mxu0 %v8695_v36  ;;  %3031 = vmatmul.bf16.vlgmr.msra.gmra.mxu1 %v13369_v42  ;;  %v9196_v36 = vld [vmem:[%s19318_s1 + $0x41c] sm:$0xf0]  ;;  %v9423_v4 = vor.u32 %v12152_v53, %v9420_v58  ;;  %v12079_v53 = vld [vmem:[%s19318_s1 + $0x378] sm:$0xf0]  ;;  %v9616_v58 = vld [vmem:[%s19318_s1 + $0x764] sm:$0xf0] }
 0x113   : > { %3093 = vmatpush.bf16.msrb.mxu1 %v9563_v21  ;;  %v9479_v21 = vor.u32 %v12166_v2, %v9476_v6  ;;  %v9199_v51 = vor.u32 %v12096_v35, %v9196_v36  ;;  %v2780_v62 = vpop.f32.mrf.mxu3  ;;  %v12264_v2 = vld [vmem:[%s19318_s1 + $0x944] sm:$0xf]  ;;  %v12257_v36 = vld [vmem:[%s19318_s1 + $0x90c] sm:$0xf] }
 0x114   : > { %3072 = vmatpush.bf16.msrb.mxu2 %v8919_v39  ;;  %v9871_v32 = vor.u32 %v12264_v2, %v9868_v3  ;;  %v9090_v2 = vld [vmem:[%s19318_s1 + $0x328] sm:$0xf] }
 0x115   : > { %3080 = vmatpush.bf16.msra.mxu3 %v9311_v25  ;;  %3059 = vmatmul.bf16.vlgmr.msrb.gmra.mxu0 %v13181_v5  ;;  %v9227_v25 = vor.u32 %v12103_v9, %v9224_v10  ;;  %v2766_v39 = vpop.f32.mrf.mxu1  ;;  %v12145_v9 = vld [vmem:[%s19318_s1 + $0x58c] sm:$0xf]  ;;  %v12208_v10 = vld [vmem:[%s19318_s1 + $0x784] sm:$0xf] }
 0x116   : > { %3107 = vmatpush.bf16.msra.mxu0 %v9787_v28  ;;  %v9927_v28 = vor.u32 %v12278_v18, %v9924_v19  ;;  %v2767_v41 = vadd.f32 %v2766_v39, %v19328_v20  ;;  %v9392_v18 = vld [vmem:[%s19318_s1 + $0x5a4] sm:$0xf0]  ;;  %v12082_v19 = vld [vmem:[%s19318_s1 + $0x394] sm:$0xf] }
 0x117   : > { %3094 = vmatpush.bf16.msrb.mxu1 %v9535_v44  ;;  %3073 = vmatmul.bf16.vlgmr.msrb.gmra.mxu2 %v13201_v17  ;;  %v12271_v44 = vld [vmem:[%s19318_s1 + $0x97c] sm:$0xf] }
 0x118   : > { %3121 = vmatpush.bf16.msra.mxu2 %v10011_v40  ;;  %v2794_v40 = vpop.f32.mrf.mxu0 }
 0x119   : > { %3081 = vmatpush.bf16.msra.mxu3 %v9283_v47  ;;  %v9896_v47 = vld [vmem:[%s19318_s1 + $0x994] sm:$0xf0] }
 0x11a   : > { %3108 = vmatpush.bf16.msra.mxu0 %v9759_v61  ;;  %v9168_v61 = vld [vmem:[%s19318_s1 + $0x3e4] sm:$0xf0]  ;;  %v9899_v63 = vor.u32 %v12271_v44, %v9896_v47  ;;  %v9364_v44 = vld [vmem:[%s19318_s1 + $0x56c] sm:$0xf0]  ;;  %v10039_v47 = vor.u32 %v12306_v26, %v10036_v31 }
 0x11b   : > { %3095 = vmatpush.bf16.msrb.mxu1 %v9507_v0  ;;  %v2781_v0 = vadd.f32 %v2780_v62, %v2767_v41  ;;  %v9840_v41 = vld [vmem:[%s19318_s1 + $0x924] sm:$0xf0] }
 0x11c   : > { %3122 = vmatpush.bf16.msra.mxu2 %v9983_v16  ;;  %v12089_v16 = vld [vmem:[%s19318_s1 + $0x3cc] sm:$0xf] }
 0x11d   : > { %3082 = vmatpush.bf16.msra.mxu3 %v9255_v1  ;;  %v9675_v1 = vor.u32 %v12215_v54, %v9672_v57  ;;  %v9171_v6 = vor.u32 %v12089_v16, %v9168_v61  ;;  %v12023_v54 = vld [vmem:[%s19318_s1 + $0x1b8] sm:$0xf0]  ;;  %v12201_v57 = vld [vmem:[%s19318_s1 + $0x74c] sm:$0xf]  ;;  %v9843_v16 = vor.u32 %v12257_v36, %v9840_v41  ;;  %v12250_v61 = vld [vmem:[%s19318_s1 + $0x8d4] sm:$0xf]  ;;  %v14843_v31 = vpop.f32.mrf.mxu1 }
 0x11e   : > { %3109 = vmatpush.bf16.msra.mxu0 %v9731_v13  ;;  %v2795_v13 = vadd.f32 %v2794_v40, %v2781_v0  ;;  %v9395_v40 = vor.u32 %v12145_v9, %v9392_v18  ;;  %v9812_v0 = vld [vmem:[%s19318_s1 + $0x8ec] sm:$0xf0]  ;;  %v9566_v9 = vld [vmem:[%s19318_s1 + $0x6e0] sm:$0xf] }
 0x11f   : > { %3096 = vmatpush.bf16.msrb.mxu1 %v9479_v21  ;;  %v9140_v21 = vld [vmem:[%s19318_s1 + $0x3ac] sm:$0xf0] }
 0x120   : > { %3123 = vmatpush.bf16.msra.mxu2 %v9955_v12  ;;  %v9644_v12 = vld [vmem:[%s19318_s1 + $0x79c] sm:$0xf0]  ;;  %v14775_v39 = vpop.f32.mrf.mxu0  ;;  %v9588_v18 = vld [vmem:[%s19318_s1 + $0x72c] sm:$0xf0] }
 0x121   : > { %3083 = vmatpush.bf16.msra.mxu3 %v9227_v25  ;;  %v2808_v25 = vpop.f32.mrf.mxu2  ;;  %v9647_v35 = vor.u32 %v12208_v10, %v9644_v12  ;;  %v12191_v10 = vld [vmem:[%s19318_s1 + $0x6f8] sm:$0xf0]  ;;  %v12016_v12 = vld [vmem:[%s19318_s1 + $0x180] sm:$0xf0]  ;;  %v9062_v41 = vld [vmem:[%s19318_s1 + $0x2f0] sm:$0xf] }
 0x122   : > { %3110 = vmatpush.bf16.msra.mxu0 %v9703_v43  ;;  %v14770_v34 = vadd.f32 %v2808_v25, %v2795_v13  ;;  %v12138_v43 = vld [vmem:[%s19318_s1 + $0x554] sm:$0xf]  ;;  %v12135_v25 = vld [vmem:[%s19318_s1 + $0x538] sm:$0xf0] }
 0x123   : > { %3097 = vmatpush.bf16.msrb.mxu1 %v9451_v48  ;;  %v8894_v48 = vld [vmem:[%s19318_s1 + $0x1a0] sm:$0xf]  ;;  %v9367_v62 = vor.u32 %v12138_v43, %v9364_v44  ;;  %v12194_v13 = vld [vmem:[%s19318_s1 + $0x714] sm:$0xf]  ;;  %v12065_v43 = vld [vmem:[%s19318_s1 + $0x308] sm:$0xf0] }
 0x124   : > { %3124 = vmatpush.bf16.msra.mxu2 %v9927_v28  ;;  %v9143_v28 = vor.u32 %v12082_v19, %v9140_v21  ;;  %v8895_v3 = vor.u32 %v12023_v54, %v8894_v48  ;;  %v9815_v19 = vor.u32 %v12250_v61, %v9812_v0  ;;  %v9342_v21 = vld [vmem:[%s19318_s1 + $0x520] sm:$0xf]  ;;  %v12009_v44 = vld [vmem:[%s19318_s1 + $0x148] sm:$0xf0]  ;;  %v9538_v48 = vld [vmem:[%s19318_s1 + $0x6a8] sm:$0xf]  ;;  %v14879_v0 = vpop.f32.mrf.mxu3 }
 0x125   : > { %3084 = vmatpush.bf16.msra.mxu3 %v9199_v51  ;;  %v9118_v51 = vld [vmem:[%s19318_s1 + $0x360] sm:$0xf]  ;;  %v12128_v54 = vld [vmem:[%s19318_s1 + $0x500] sm:$0xf0]  ;;  %v9034_v61 = vld [vmem:[%s19318_s1 + $0x2b8] sm:$0xf] }
 0x126   : > { %3111 = vmatpush.bf16.msra.mxu0 %v9675_v1  ;;  %v8866_v1 = vld [vmem:[%s19318_s1 + $0x168] sm:$0xf] }
 0x127   : > { %3098 = vmatpush.bf16.msrb.mxu1 %v9423_v4  ;;  %v9619_v4 = vor.u32 %v12201_v57, %v9616_v58  ;;  %v8867_v36 = vor.u32 %v12016_v12, %v8866_v1  ;;  %v9063_v57 = vor.u32 %v12065_v43, %v9062_v41  ;;  %v12002_v1 = vld [vmem:[%s19318_s1 + $0x110] sm:$0xf0]  ;;  %v9258_v43 = vld [vmem:[%s19318_s1 + $0x478] sm:$0xf] }
 0x128   : > { %3125 = vmatpush.bf16.msra.mxu2 %v9899_v63  ;;  %v9119_v63 = vor.u32 %v12079_v53, %v9118_v51  ;;  %v14841_v26 = vpop.f32.mrf.mxu0  ;;  %v12184_v51 = vld [vmem:[%s19318_s1 + $0x6c0] sm:$0xf0]  ;;  %v9314_v53 = vld [vmem:[%s19318_s1 + $0x4e8] sm:$0xf]  ;;  %v12170_v41 = vld [vmem:[%s19318_s1 + $0x650] sm:$0xf0] }
 0x129   : > { %3085 = vmatpush.bf16.msra.mxu3 %v9171_v6  ;;  %v12072_v6 = vld [vmem:[%s19318_s1 + $0x340] sm:$0xf0] }
 0x12a   : > { %3112 = vmatpush.bf16.msra.mxu0 %v9647_v35  ;;  %v9567_v35 = vor.u32 %v12191_v10, %v9566_v9  ;;  %v12121_v9 = vld [vmem:[%s19318_s1 + $0x4c8] sm:$0xf0] }
 0x12b   : > { %3099 = vmatpush.bf16.msrb.mxu1 %v9395_v40  ;;  %v9591_v40 = vor.u32 %v12194_v13, %v9588_v18  ;;  %v2822_v10 = vpop.f32.mrf.mxu1  ;;  %v14898_v13 = vpop.f32.mrf.mxu2 }
 0x12c   : > { %3126 = vmatpush.bf16.msra.mxu2 %v9871_v32  ;;  %v9091_v32 = vor.u32 %v12072_v6, %v9090_v2  ;;  %v9315_v2 = vor.u32 %v12128_v54, %v9314_v53  ;;  %v9286_v6 = vld [vmem:[%s19318_s1 + $0x4b0] sm:$0xf]  ;;  %v2823_v18 = vadd.f32 %v2822_v10, %v14770_v34  ;;  %v11995_v34 = vld [vmem:[%s19318_s1 + $0xd8] sm:$0xf0]  ;;  %v11988_v53 = vld [vmem:[%s19318_s1 + $0xa0] sm:$0xf0] }
 0x12d   : > { %3086 = vmatpush.bf16.msra.mxu3 %v9143_v28  ;;  %v8838_v28 = vld [vmem:[%s19318_s1 + $0x130] sm:$0xf]  ;;  %v8978_v54 = vld [vmem:[%s19318_s1 + $0x248] sm:$0xf] }
 0x12e   : > { %3113 = vmatpush.bf16.msra.mxu0 %v9619_v4  ;;  %v8839_v58 = vor.u32 %v12009_v44, %v8838_v28  ;;  %v12177_v4 = vld [vmem:[%s19318_s1 + $0x688] sm:$0xf0]  ;;  %v9482_v28 = vld [vmem:[%s19318_s1 + $0x638] sm:$0xf]  ;;  %v12114_v44 = vld [vmem:[%s19318_s1 + $0x490] sm:$0xf0] }
 0x12f   : > { %3100 = vmatpush.bf16.msrb.mxu1 %v9367_v62  ;;  %v12058_v62 = vld [vmem:[%s19318_s1 + $0x2d0] sm:$0xf0] }
 0x130   : > { %3127 = vmatpush.bf16.msra.mxu2 %v9843_v16  ;;  %3087 = vmatmul.bf16.vlgmr.msra.gmra.mxu3 %v13156_v55  ;;  %v8810_v16 = vld [vmem:[%s19318_s1 + $0xf8] sm:$0xf]  ;;  %v9035_v12 = vor.u32 %v12058_v62, %v9034_v61  ;;  %v9259_v61 = vor.u32 %v12114_v44, %v9258_v43  ;;  %v9454_v62 = vld [vmem:[%s19318_s1 + $0x600] sm:$0xf]  ;;  %v12100_v43 = vld [vmem:[%s19318_s1 + $0x420] sm:$0xf0] }
 0x131   : > { %3142 = vmatpush.bf16.msrb.mxu3 %v10039_v47  ;;  %v9343_v47 = vor.u32 %v12135_v25, %v9342_v21  ;;  %v8782_v21 = vld [vmem:[%s19318_s1 + $0xc0] sm:$0xf] }
 0x132   : > { %3101 = vmatmul.bf16.vlgmr.msrb.gmra.mxu1 %v13215_v23  ;;  %3114 = vmatpush.bf16.msra.mxu0 %v9591_v40  ;;  %v9006_v25 = vld [vmem:[%s19318_s1 + $0x280] sm:$0xf]  ;;  %v9287_v40 = vor.u32 %v12121_v9, %v9286_v6 }
 0x133   : > { %3149 = vmatpush.bf16.msra.mxu1 %v8895_v3  ;;  %v9510_v3 = vld [vmem:[%s19318_s1 + $0x670] sm:$0xf] }
 0x134   : > { %3128 = vmatpush.bf16.msra.mxu2 %v9815_v19  ;;  %v8811_v19 = vor.u32 %v12002_v1, %v8810_v16  ;;  %v2836_v16 = vpop.f32.mrf.mxu3  ;;  %v19327_v1 = vperm.slane %v14026_v14, 3 }
 0x135   : > { %3163 = vmatpush.bf16.msra.mxu3 %v9119_v63  ;;  %v9539_v63 = vor.u32 %v12184_v51, %v9538_v48  ;;  %3115 = vmatmul.bf16.vlgmr.msra.gmra.mxu0 %v13358_v37  ;;  %v8754_v48 = vld [vmem:[%s19318_s1 + $0x88] sm:$0xf]  ;;  %v8783_v51 = vor.u32 %v11995_v34, %v8782_v21  ;;  %v12156_v34 = vld [vmem:[%s19318_s1 + $0x5e0] sm:$0xf0] }
 0x136   : > { %3177 = vmatpush.bf16.msrb.mxu0 %v9343_v47  ;;  %v8755_v10 = vor.u32 %v11988_v53, %v8754_v48  ;;  %v11974_v53 = vld [vmem:[%s19318_s1 + $0x30] sm:$0xf0] }
 0x137   : > { %3150 = vmatpush.bf16.msra.mxu1 %v8867_v36  ;;  %3129 = vmatmul.bf16.vlgmr.msra.gmra.mxu2 %v13369_v42  ;;  %v14910_v36 = vpop.f32.mrf.mxu0 }
 0x138   : > { %3191 = vmatpush.bf16.msrb.mxu2 %v9567_v35  ;;  %v9511_v35 = vor.u32 %v12177_v4, %v9510_v3  ;;  %19334 = vst [vmem:[#allocation2_spill] sm:$0xff] %v14910_v36  ;;  %v9230_v3 = vld [vmem:[%s19318_s1 + $0x440] sm:$0xf]  ;;  %v12107_v4 = vld [vmem:[%s19318_s1 + $0x458] sm:$0xf0] }
 0x139   : > { %3164 = vmatpush.bf16.msra.mxu3 %v9091_v32  ;;  %v12051_v32 = vld [vmem:[%s19318_s1 + $0x298] sm:$0xf0] }
 0x13a   : > { %3178 = vmatpush.bf16.msrb.mxu0 %v9315_v2  ;;  %v9007_v47 = vor.u32 %v12051_v32, %v9006_v25  ;;  %v2837_v2 = vadd.f32 %v2836_v16, %v2823_v18  ;;  %v8950_v18 = vld [vmem:[%s19318_s1 + $0x210] sm:$0xf]  ;;  %v2864_v25 = vpop.f32.mrf.mxu2  ;;  %v9231_v32 = vor.u32 %v12107_v4, %v9230_v3  ;;  %v9790_v16 = vld [vmem:[%s19318_s1 + $0x8a0] sm:$0xf]  ;;  %v12149_v4 = vld [vmem:[%s19318_s1 + $0x5a8] sm:$0xf0] }
 0x13b   : > { %3151 = vmatpush.bf16.msra.mxu1 %v8839_v58  ;;  %v9483_v58 = vor.u32 %v12170_v41, %v9482_v28  ;;  %v9202_v41 = vld [vmem:[%s19318_s1 + $0x408] sm:$0xf]  ;;  %v9398_v3 = vld [vmem:[%s19318_s1 + $0x590] sm:$0xf] }
 0x13c   : > { %3192 = vmatpush.bf16.msrb.mxu2 %v9539_v63  ;;  %v12163_v63 = vld [vmem:[%s19318_s1 + $0x618] sm:$0xf0]  ;;  %v14955_v9 = vadd.f32 %v14841_v26, %v2837_v2  ;;  %v11981_v26 = vld [vmem:[%s19318_s1 + $0x68] sm:$0xf0] }
 0x13d   : > { %3165 = vmatpush.bf16.msra.mxu3 %v9063_v57  ;;  %v12044_v57 = vld [vmem:[%s19318_s1 + $0x260] sm:$0xf0]  ;;  %v9455_v21 = vor.u32 %v12163_v63, %v9454_v62  ;;  %v12303_v62 = vld [vmem:[%s19318_s1 + $0xa78] sm:$0xf0]  ;;  %v9203_v63 = vor.u32 %v12100_v43, %v9202_v41  ;;  %v12142_v41 = vld [vmem:[%s19318_s1 + $0x570] sm:$0xf0] }
 0x13e   : > { %3179 = vmatpush.bf16.msrb.mxu0 %v9287_v40  ;;  %v8979_v6 = vor.u32 %v12044_v57, %v8978_v54  ;;  %v2865_v40 = vadd.f32 %v2864_v25, %v19327_v1  ;;  %v8922_v54 = vld [vmem:[%s19318_s1 + $0x1d8] sm:$0xf]  ;;  %v12030_v57 = vld [vmem:[%s19318_s1 + $0x1f0] sm:$0xf0]  ;;  %v12247_v2 = vld [vmem:[%s19318_s1 + $0x8b8] sm:$0xf0]  ;;  %v9399_v25 = vor.u32 %v12149_v4, %v9398_v3 }
 0x13f   : > { %3152 = vmatpush.bf16.msra.mxu1 %v8811_v19  ;;  %v12037_v19 = vld [vmem:[%s19318_s1 + $0x228] sm:$0xf0]  ;;  %v2878_v28 = vpop.f32.mrf.mxu0  ;;  %v9146_v43 = vld [vmem:[%s19318_s1 + $0x398] sm:$0xf]  ;;  %v749_v1 = vperm.slane %v14026_v14, 5 }
 0x140   : > { %3193 = vmatpush.bf16.msrb.mxu2 %v9511_v35  ;;  %10049 = vmatmul.msk.bf16.vlgmr.msrb.gmra.mxu3 %vm2557_vm0, %v13269_v50  ;;  %v9426_v35 = vld [vmem:[%s19318_s1 + $0x5c8] sm:$0xf]  ;;  %v8951_v44 = vor.u32 %v12037_v19, %v8950_v18  ;;  %v14986_v48 = vadd.f32 %v2878_v28, %v2865_v40  ;;  %v9370_v28 = vld [vmem:[%s19318_s1 + $0x558] sm:$0xf] }
 0x141   : > { %3166 = vmatpush.bf16.msra.mxu3 %v9035_v12  ;;  %v8726_v12 = vld [vmem:[%s19318_s1 + $0x50] sm:$0xf] }
 0x142   : > { %3180 = vmatpush.bf16.msrb.mxu0 %v9259_v61  ;;  %v10014_v61 = vld [vmem:[%s19318_s1 + $0xa60] sm:$0xf] }
 0x143   : > { %3153 = vmatpush.bf16.msra.mxu1 %v8783_v51  ;;  %v8727_v51 = vor.u32 %v11981_v26, %v8726_v12  ;;  %v12093_v12 = vld [vmem:[%s19318_s1 + $0x3e8] sm:$0xf0]  ;;  %v10015_v19 = vor.u32 %v12303_v62, %v10014_v61  ;;  %v9762_v26 = vld [vmem:[%s19318_s1 + $0x868] sm:$0xf]  ;;  %v9734_v62 = vld [vmem:[%s19318_s1 + $0x830] sm:$0xf] }
 0x144   : > { %3194 = vmatpush.bf16.msrb.mxu2 %v9483_v58  ;;  %v9427_v58 = vor.u32 %v12156_v34, %v9426_v35  ;;  %v12296_v35 = vld [vmem:[%s19318_s1 + $0xa40] sm:$0xf0]  ;;  %v12289_v61 = vld [vmem:[%s19318_s1 + $0xa08] sm:$0xf0] }
 0x145   : > { %3167 = vmatpush.bf16.msra.mxu3 %v9007_v47  ;;  %v8698_v47 = vld [vmem:[%s19318_s1 + $0x18] sm:$0xf]  ;;  %v12240_v34 = vld [vmem:[%s19318_s1 + $0x880] sm:$0xf0] }
 0x146   : > { %3181 = vmatpush.bf16.msrb.mxu0 %v9231_v32  ;;  %v8699_v18 = vor.u32 %v11974_v53, %v8698_v47  ;;  %v9986_v32 = vld [vmem:[%s19318_s1 + $0xa28] sm:$0xf]  ;;  %v15045_v47 = vpop.f32.mrf.mxu1  ;;  %v10042_v53 = vld [vmem:[%s19318_s1 + $0xa98] sm:$0xf] }
 0x147   : > { %3154 = vmatpush.bf16.msra.mxu1 %v8755_v10  ;;  %v9174_v10 = vld [vmem:[%s19318_s1 + $0x3d0] sm:$0xf] }
 0x148   : > { %3195 = vmatpush.bf16.msrb.mxu2 %v9455_v21  ;;  %v9791_v21 = vor.u32 %v12247_v2, %v9790_v16  ;;  %v9175_v40 = vor.u32 %v12093_v12, %v9174_v10  ;;  %v9958_v16 = vld [vmem:[%s19318_s1 + $0x9f0] sm:$0xf]  ;;  %v12282_v10 = vld [vmem:[%s19318_s1 + $0x9d0] sm:$0xf0]  ;;  %v15073_v12 = vpop.f32.mrf.mxu3 }
 0x149   : > { %3168 = vmatpush.bf16.msra.mxu3 %v8979_v6  ;;  %v8923_v6 = vor.u32 %v12030_v57, %v8922_v54  ;;  %v12310_v54 = vld [vmem:[%s19318_s1 + $0xab0] sm:$0xf0]  ;;  %v9763_v57 = vor.u32 %v12240_v34, %v9762_v26  ;;  %v9959_v4 = vor.u32 %v12289_v61, %v9958_v16  ;;  %v9902_v34 = vld [vmem:[%s19318_s1 + $0x980] sm:$0xf]  ;;  %v9846_v61 = vld [vmem:[%s19318_s1 + $0x910] sm:$0xf] }
 0x14a   : > { %3182 = vmatpush.bf16.msrb.mxu0 %v9203_v63  ;;  %v12233_v63 = vld [vmem:[%s19318_s1 + $0x848] sm:$0xf0]  ;;  %v10043_v3 = vor.u32 %v12310_v54, %v10042_v53  ;;  %v12212_v53 = vld [vmem:[%s19318_s1 + $0x7a0] sm:$0xf0] }
 0x14b   : > { %3155 = vmatpush.bf16.msra.mxu1 %v8727_v51  ;;  %v9987_v51 = vor.u32 %v12296_v35, %v9986_v32 }
 0x14c   : > { %3196 = vmatpush.bf16.msrb.mxu2 %v9427_v58  ;;  %v9371_v58 = vor.u32 %v12142_v41, %v9370_v28  ;;  %v9678_v28 = vld [vmem:[%s19318_s1 + $0x7c0] sm:$0xf]  ;;  %v9874_v41 = vld [vmem:[%s19318_s1 + $0x948] sm:$0xf] }
 0x14d   : > { %3169 = vmatpush.bf16.msra.mxu3 %v8951_v44  ;;  %v12086_v44 = vld [vmem:[%s19318_s1 + $0x3b0] sm:$0xf0] }
 0x14e   : > { %3183 = vmatpush.bf16.msrb.mxu0 %v9175_v40  ;;  %v9147_v2 = vor.u32 %v12086_v44, %v9146_v43  ;;  %v12275_v40 = vld [vmem:[%s19318_s1 + $0x998] sm:$0xf0]  ;;  %v12268_v43 = vld [vmem:[%s19318_s1 + $0x960] sm:$0xf0] }
 0x14f   : > { %3156 = vmatpush.bf16.msra.mxu1 %v8699_v18  ;;  %v12226_v18 = vld [vmem:[%s19318_s1 + $0x810] sm:$0xf0] }
 0x150   : > { %3197 = vmatpush.bf16.msrb.mxu2 %v9399_v25  ;;  %v15083_v25 = vpop.f32.mrf.mxu2 }
 0x151   : > { %3170 = vmatpush.bf16.msra.mxu3 %v8923_v6  ;;  %v9735_v6 = vor.u32 %v12233_v63, %v9734_v62  ;;  %v12261_v62 = vld [vmem:[%s19318_s1 + $0x928] sm:$0xf0] }
 0x152   : > { %3157 = vmatmul.bf16.vlgmr.msra.gmra.mxu1 %v13181_v5  ;;  %3184 = vmatpush.bf16.msrb.mxu0 %v9147_v2  ;;  %v9706_v5 = vld [vmem:[%s19318_s1 + $0x7f8] sm:$0xf] }
 0x153   : > { %3205 = vmatpush.bf16.msrb.mxu1 %v9791_v21  ;;  %v2892_v21 = vpop.f32.mrf.mxu1  ;;  %v9707_v35 = vor.u32 %v12226_v18, %v9706_v5  ;;  %v2906_v44 = vpop.f32.mrf.mxu3  ;;  %v9818_v18 = vld [vmem:[%s19318_s1 + $0x8d8] sm:$0xf] }
 0x154   : > { %3171 = vmatmul.bf16.vlgmr.msra.gmra.mxu3 %v13201_v17  ;;  %3198 = vmatpush.bf16.msrb.mxu2 %v9371_v58  ;;  %v9930_v17 = vld [vmem:[%s19318_s1 + $0x9b8] sm:$0xf]  ;;  %v2893_v32 = vadd.f32 %v2892_v21, %v14986_v48  ;;  %v9903_v48 = vor.u32 %v12275_v40, %v9902_v34  ;;  %v9875_v58 = vor.u32 %v12268_v43, %v9874_v41  ;;  %v12254_v21 = vld [vmem:[%s19318_s1 + $0x8f0] sm:$0xf0] }
 0x155   : > { %3219 = vmatpush.bf16.msrb.mxu3 %v10015_v19  ;;  %v15081_v19 = vpop.f32.mrf.mxu0  ;;  %v9931_v26 = vor.u32 %v12282_v10, %v9930_v17  ;;  %3185 = vmatmul.bf16.vlgmr.msrb.gmra.mxu0 %v13156_v55  ;;  %v9847_v17 = vor.u32 %v12261_v62, %v9846_v61  ;;  %v9819_v34 = vor.u32 %v12254_v21, %v9818_v18 }
 0x156   : > { %3240 = vmatpush.bf16.msra.mxu0 %v10043_v3  ;;  %v2907_v54 = vadd.f32 %v2906_v44, %v2893_v32  ;;  %v9622_v3 = vld [vmem:[%s19318_s1 + $0x750] sm:$0xf]  ;;  %v12198_v32 = vld [vmem:[%s19318_s1 + $0x730] sm:$0xf0] }
 0x157   : > { %3206 = vmatpush.bf16.msrb.mxu1 %v9763_v57  ;;  %3199 = vmatmul.bf16.vlgmr.msrb.gmra.mxu2 %v13215_v23  ;;  %v12219_v23 = vld [vmem:[%s19318_s1 + $0x7d8] sm:$0xf0] }
 0x158   : > { %v9679_v55 = vor.u32 %v12219_v23, %v9678_v28  ;;  %v2920_v63 = vpop.f32.mrf.mxu2 }
 0x159   : > { %3220 = vmatpush.bf16.msrb.mxu3 %v9987_v51  ;;  %v9650_v51 = vld [vmem:[%s19318_s1 + $0x788] sm:$0xf] }
 0x15a   : > { %v9651_v16 = vor.u32 %v12212_v53, %v9650_v51 }
 0x15b   : > { %3207 = vmatpush.bf16.msrb.mxu1 %v9735_v6  ;;  %v15112_v57 = vpop.f32.mrf.mxu1  ;;  %v2921_v6 = vadd.f32 %v2920_v63, %v2907_v54  ;;  %v15144_v23 = vpop.f32.mrf.mxu3 }
 0x15d   : > { %3221 = vmatpush.bf16.msrb.mxu3 %v9959_v4  ;;  %v2934_v2 = vpop.f32.mrf.mxu0  ;;  %v12205_v4 = vld [vmem:[%s19318_s1 + $0x768] sm:$0xf0] }
 0x15e   : > { %v2935_v10 = vadd.f32 %v2934_v2, %v2921_v6  ;;  %v9623_v5 = vor.u32 %v12205_v4, %v9622_v3 }
 0x15f   : > { %3208 = vmatpush.bf16.msrb.mxu1 %v9707_v35 }
 0x161   : > { %3222 = vmatpush.bf16.msrb.mxu3 %v9931_v26  ;;  %v9594_v26 = vld [vmem:[%s19318_s1 + $0x718] sm:$0xf] }
 0x162   : > { %v9595_v28 = vor.u32 %v12198_v32, %v9594_v26  ;;  %v748_v32 = vperm.slane %v14026_v14, 4 }
 0x163   : > { %3209 = vmatpush.bf16.msrb.mxu1 %v9679_v55  ;;  %v2948_v35 = vpop.f32.mrf.mxu1 }
 0x164   : > { %v15138_v40 = vadd.f32 %v2948_v35, %v2935_v10 }
 0x165   : > { %3223 = vmatpush.bf16.msrb.mxu3 %v9903_v48  ;;  %10050 = vmatmul.msk.bf16.vlgmr.msra.gmra.mxu0 %vm2557_vm0, %v13269_v50  ;;  %v15146_v48 = vpop.f32.mrf.mxu2  ;;  %v15150_v44 = vpop.f32.mrf.mxu0 }
 0x166   : > { %19335 = vst [vmem:[#allocation3_spill] sm:$0xff] %v15138_v40 }
 0x167   : > { %3210 = vmatpush.bf16.msrb.mxu1 %v9651_v16  ;;  %19337 = vst [vmem:[#allocation5_spill] sm:$0xff] %v15150_v44 }
 0x169   : > { %3224 = vmatpush.bf16.msrb.mxu3 %v9875_v58 }
 0x16b   : > { %3211 = vmatpush.bf16.msrb.mxu1 %v9623_v5  ;;  %v15148_v41 = vpop.f32.mrf.mxu1 }
 0x16c   : > { %19336 = vst [vmem:[#allocation4_spill] sm:$0xff] %v15148_v41 }
 0x16d   : > { %3225 = vmatpush.bf16.msrb.mxu3 %v9847_v17 }
 0x16f   : > { %3212 = vmatpush.bf16.msrb.mxu1 %v9595_v28 }
 0x171   : > { %3226 = vmatpush.bf16.msrb.mxu3 %v9819_v34  ;;  %v2573_v34 = vadd.f32 %v14180_v45, %v744_v29  ;;  %v19345_v29 = vperm.slane %v14026_v14, 2 }
 0x172   : > { %3213 = vmatmul.bf16.vlgmr.msrb.gmra.mxu1 %v13358_v37  ;;  %v3004_v54 = vpop.f32.mrf.mxu0 }
 0x173   : > { %v2962_v55 = vpop.f32.mrf.mxu3  ;;  %v2976_v53 = vpop.f32.mrf.mxu1  ;;  %v2587_v44 = vadd.f32 %v14197_v56, %v2573_v34  ;;  %v2769_v45 = vadd.f32 %v14843_v31, %v19345_v29  ;;  %v750_v56 = vperm.slane %v14026_v14, 6 }
 0x174   : > { %3227 = vmatmul.bf16.vlgmr.msrb.gmra.mxu3 %v13369_v42  ;;  %v2963_v28 = vadd.f32 %v2962_v55, %v748_v32 }
 0x175   : > { %v2601_v55 = vadd.f32 %v14154_v30, %v2587_v44 }
 0x176   : > { %v2990_v43 = vpop.f32.mrf.mxu2  ;;  %v2977_v36 = vadd.f32 %v2976_v53, %v2963_v28 }
 0x17a   : > { %v15152_v61 = vpop.f32.mrf.mxu0 }
 0x17b   : > { %v2964_v51 = vpop.f32.mrf.mxu3  ;;  %v2978_v16 = vpop.f32.mrf.mxu1 }
 0x17e   : > { %v2992_v50 = vpop.f32.mrf.mxu2 }
 0x186   : > { %v15154_v42 = vpop.f32.mrf.mxu2 }
 0x187   : > { %19338 = vst [vmem:[#allocation6_spill] sm:$0xff] %v15154_v42 }
 0x18e   : > { %v15158_v2 = vpop.f32.mrf.mxu2 }
 0x18f   : > { %v3032_v62 = vpop.f32.mrf.mxu1  ;;  %19340 = vst [vmem:[#allocation8_spill] sm:$0xff] %v15158_v2  ;;  %v2671_v2 = vadd.f32 %v14449_v27, %v745_v52  ;;  %v19346_v52 = vperm.slane %v14026_v14, 3 }
 0x191   : > { %v2867_v27 = vadd.f32 %v15083_v25, %v19346_v52 }
 0x192   : > { %v3060_v63 = vpop.f32.mrf.mxu0 }
 0x193   : > { %v3018_v58 = vpop.f32.mrf.mxu3 }
 0x197   : > { %v15160_v4 = vpop.f32.mrf.mxu1 }
 0x198   : > { %19341 = vst [vmem:[#allocation9_spill] sm:$0xff] %v15160_v4 }
 0x19a   : > { %v3062_v6 = vpop.f32.mrf.mxu0  ;;  %v3074_v17 = vpop.f32.mrf.mxu2 }
 0x19b   : > { %v15156_v37 = vpop.f32.mrf.mxu3  ;;  %v3063_v28 = vadd.f32 %v3062_v6, %v749_v1 }
 0x19c   : > { %19339 = vst [vmem:[#allocation7_spill] sm:$0xff] %v15156_v37 }
 0x1a2   : > { %v3076_v21 = vpop.f32.mrf.mxu2 }
 0x1af   : > { %v3102_v5 = vpop.f32.mrf.mxu1 }
 0x1b2   : > { %v3116_v18 = vpop.f32.mrf.mxu0 }
 0x1b3   : > { %v3088_v3 = vpop.f32.mrf.mxu3 }
 0x1b7   : > { %v15165_v35 = vpop.f32.mrf.mxu1 }
 0x1b8   : > { %19343 = vst [vmem:[#allocation11_spill] sm:$0xff] %v15165_v35  ;;  %v2685_v35 = vadd.f32 %v14476_v46, %v2671_v2  ;;  %v2783_v46 = vadd.f32 %v14879_v0, %v2769_v45  ;;  %v2615_v2 = vadd.f32 %v14250_v24, %v2601_v55  ;;  %v3077_v24 = vadd.f32 %v3076_v21, %v3063_v28 }
 0x1ba   : > { %v15171_v20 = vpop.f32.mrf.mxu0  ;;  %v3130_v41 = vpop.f32.mrf.mxu2  ;;  %v2699_v53 = vadd.f32 %v14527_v22, %v2685_v35  ;;  %v2629_v25 = vadd.f32 %v14418_v7, %v2615_v2  ;;  %v2797_v22 = vadd.f32 %v14775_v39, %v2783_v46  ;;  %v19352_v2 = vld [vmem:[#allocation2_spill] sm:$0xff] }
 0x1bb   : > { %v3090_v10 = vpop.f32.mrf.mxu3  ;;  %19344 = vst [vmem:[#allocation12_spill] sm:$0xff] %v15171_v20  ;;  %v2991_v20 = vadd.f32 %v2990_v43, %v2977_v36  ;;  %v2881_v43 = vadd.f32 %v15081_v19, %v2867_v27 }
 0x1bc   : > { %v2713_v14 = vadd.f32 %v14654_v59, %v2699_v53  ;;  %v2811_v7 = vadd.f32 %v14898_v13, %v2797_v22  ;;  %v3091_v6 = vadd.f32 %v3090_v10, %v3077_v24  ;;  %v3276_v10 = vmul.f32 %v14955_v9, %v14955_v9 }
 0x1bd   : > { %v3005_v31 = vadd.f32 %v3004_v54, %v2991_v20 }
 0x1be   : > { %v2727_v0 = vadd.f32 %v14685_v11, %v2713_v14 }
 0x1bf   : > { %v19349_v45 = vld [vmem:[#allocation11_spill] sm:$0xff] }
 0x1c0   : > { %v3105_v55 = vadd.f32 %v19349_v45, %v3091_v6 }
 0x1c2   : > { %v15191_v36 = vpop.f32.mrf.mxu2 }
 0x1c3   : > { %v15162_v26 = vpop.f32.mrf.mxu3 }
 0x1c4   : > { %19342 = vst [vmem:[#allocation10_spill] sm:$0xff] %v15162_v26  ;;  %v3061_v26 = vadd.f32 %v3060_v63, %v749_v1  ;;  %v2965_v63 = vadd.f32 %v2964_v51, %v748_v32  ;;  %v2895_v1 = vadd.f32 %v15112_v57, %v2881_v43  ;;  %v2825_v57 = vadd.f32 %v15045_v47, %v2811_v7  ;;  %v19347_v32 = vld [vmem:[#allocation6_spill] sm:$0xff] }
 0x1c6   : > { %v3075_v37 = vadd.f32 %v3074_v17, %v3061_v26  ;;  %v2979_v17 = vadd.f32 %v2978_v16, %v2965_v63  ;;  %v3019_v26 = vadd.f32 %v3018_v58, %v3005_v31  ;;  %v2909_v59 = vadd.f32 %v15144_v23, %v2895_v1  ;;  %v19356_v1 = vld [vmem:[#allocation4_spill] sm:$0xff] }
 0x1c7   : > { %v2741_v16 = vadd.f32 %v14703_v33, %v2727_v0  ;;  %v2839_v47 = vadd.f32 %v15073_v12, %v2825_v57  ;;  %v19350_v12 = vld [vmem:[#allocation3_spill] sm:$0xff] }
 0x1c8   : > { %v3089_v30 = vadd.f32 %v3088_v3, %v3075_v37  ;;  %v2643_v37 = vadd.f32 %v14430_v15, %v2629_v25  ;;  %v2993_v19 = vadd.f32 %v2992_v50, %v2979_v17  ;;  %v3033_v39 = vadd.f32 %v3032_v62, %v3019_v26  ;;  %v19354_v25 = vld [vmem:[#allocation9_spill] sm:$0xff]  ;;  %v19355_v17 = vld [vmem:[#allocation12_spill] sm:$0xff] }
 0x1c9   : > { %v3274_v50 = vmul.f32 %v14289_v49, %v14289_v49  ;;  %v15212_v33 = vadd.f32 %v14656_v60, %v2741_v16  ;;  %v3247_v62 = vadd.f32 %v14591_v8, %v14289_v49  ;;  %v15235_v31 = vadd.f32 %v19352_v2, %v2839_v47 }
 0x1ca   : > { %v3103_v20 = vadd.f32 %v3102_v5, %v3089_v30  ;;  %v3275_v5 = vmul.f32 %v14591_v8, %v14591_v8  ;;  %v15209_v13 = vadd.f32 %v14269_v38, %v2643_v37  ;;  %v3007_v23 = vadd.f32 %v15152_v61, %v2993_v19  ;;  %v19348_v38 = vld [vmem:[#allocation7_spill] sm:$0xff]  ;;  %v19353_v30 = vld [vmem:[#allocation5_spill] sm:$0xff] }
 0x1cb   : > { %v15176_v4 = vpop.f32.mrf.mxu3  ;;  %v15222_v35 = vadd.f32 %v19347_v32, %v3033_v39  ;;  %v3248_v52 = vadd.f32 %v3247_v62, %v14955_v9  ;;  %v3282_v53 = vmul.f32 %v15212_v33, %v15212_v33  ;;  %v19351_v63 = vld [vmem:[#allocation10_spill] sm:$0xff]  ;;  %v3119_v22 = vadd.f32 %v19355_v17, %v3105_v55 }
 0x1cc   : > { %v3117_v3 = vadd.f32 %v3116_v18, %v3103_v20  ;;  %v3021_v29 = vadd.f32 %v19348_v38, %v3007_v23  ;;  %v3288_v61 = vadd.f32 %v3275_v5, %v3274_v50  ;;  %v3281_v26 = vmul.f32 %v15209_v13, %v15209_v13 }
 0x1cd   : > { %v3256_v16 = vadd.f32 %v15212_v33, %v15209_v13 }
 0x1ce   : > { %v3131_v60 = vadd.f32 %v3130_v41, %v3117_v3  ;;  %v3289_v46 = vadd.f32 %v3288_v61, %v3276_v10  ;;  %v3249_v41 = vadd.f32 %v3248_v52, %v19350_v12  ;;  %v3035_v14 = vadd.f32 %v19354_v25, %v3021_v29  ;;  %v10255_v25 = vld [vmem:[%s19319_s2 + $0x188] sm:$0xf] }
 0x1cf   : > { %v3158_v40 = vpop.f32.mrf.mxu1  ;;  %v3297_v39 = vadd.f32 %v3282_v53, %v3281_v26  ;;  %v3283_v3 = vmul.f32 %v15235_v31, %v15235_v31 }
 0x1d0   : > { %v3159_v44 = vadd.f32 %v3158_v40, %v750_v56  ;;  %v3250_v19 = vadd.f32 %v3249_v41, %v15222_v35 }
 0x1d1   : > { %v3298_v38 = vadd.f32 %v3297_v39, %v3283_v3  ;;  %v10451_v3 = vld [vmem:[%s19319_s2 + $0x310] sm:$0xf] }
 0x1d2   : > { %v3186_v42 = vpop.f32.mrf.mxu0 }
 0x1d7   : > { %v3172_v34 = vpop.f32.mrf.mxu3  ;;  %v3160_v51 = vpop.f32.mrf.mxu1 }
 0x1d8   : > { %v3173_v54 = vadd.f32 %v3172_v34, %v3159_v44  ;;  %v3161_v15 = vadd.f32 %v3160_v51, %v750_v56  ;;  %v15232_v34 = vadd.f32 %v19351_v63, %v3131_v60  ;;  %v3278_v44 = vmul.f32 %v15222_v35, %v15222_v35 }
 0x1da   : > { %v3188_v40 = vpop.f32.mrf.mxu0  ;;  %v3200_v11 = vpop.f32.mrf.mxu2  ;;  %v3187_v21 = vadd.f32 %v3186_v42, %v3173_v54  ;;  %v2923_v42 = vadd.f32 %v15146_v48, %v2909_v59  ;;  %v3277_v48 = vmul.f32 %v19350_v12, %v19350_v12  ;;  %v3279_v7 = vmul.f32 %v15232_v34, %v15232_v34 }
 0x1db   : > { %v3251_v57 = vadd.f32 %v3250_v19, %v15232_v34  ;;  %v12531_v19 = vld [vmem:[%s19319_s2 + $0x6e0] sm:$0xf0] }
 0x1dc   : > { %v3201_v27 = vadd.f32 %v3200_v11, %v3187_v21  ;;  %v2937_v43 = vadd.f32 %v19353_v30, %v2923_v42  ;;  %v3290_v59 = vadd.f32 %v3289_v46, %v3277_v48 }
 0x1de   : > { %v15246_v54 = vadd.f32 %v19356_v1, %v2937_v43  ;;  %v3291_v21 = vadd.f32 %v3290_v59, %v3278_v44  ;;  %v12838_v44 = vmov 784.0   ;;  %v12419_v1 = vld [vmem:[%s19319_s2 + $0x360] sm:$0xf0]  ;;  %v12356_v59 = vld [vmem:[%s19319_s2 + $0x168] sm:$0xf0] }
 0x1df   : > { %v3174_v58 = vpop.f32.mrf.mxu3  ;;  %12796 = vrcp.f32 %v12838_v44  ;;  %v10843_v44 = vld [vmem:[%s19319_s2 + $0x620] sm:$0xf] }
 0x1e0   : > { %v3175_v56 = vadd.f32 %v3174_v58, %v3161_v15  ;;  %v3133_v58 = vadd.f32 %v15191_v36, %v3119_v22  ;;  %v3257_v15 = vadd.f32 %v3256_v16, %v15235_v31  ;;  %v3284_v10 = vmul.f32 %v15246_v54, %v15246_v54 }
 0x1e1   : > { %v3292_v42 = vadd.f32 %v3291_v21, %v3279_v7  ;;  %v10227_v7 = vld [vmem:[%s19319_s2 + $0x150] sm:$0xf] }
 0x1e2   : > { %v3242_v51 = vpop.f32.mrf.mxu0  ;;  %v3189_v24 = vadd.f32 %v3188_v40, %v3175_v56  ;;  %v3202_v37 = vpop.f32.mrf.mxu2  ;;  %v19357_v40 = vld [vmem:[#allocation8_spill] sm:$0xff]  ;;  %v15270_v47 = vadd.f32 %v15176_v4, %v3133_v58  ;;  %v3258_v29 = vadd.f32 %v3257_v15, %v15246_v54  ;;  %v3299_v56 = vadd.f32 %v3298_v38, %v3284_v10 }
 0x1e3   : > { %v15258_v11 = vadd.f32 %v19357_v40, %v3035_v14  ;;  %v12363_v14 = vld [vmem:[%s19319_s2 + $0x1a0] sm:$0xf0]  ;;  %v12412_v40 = vld [vmem:[%s19319_s2 + $0x328] sm:$0xf0]  ;;  %v10899_v58 = vld [vmem:[%s19319_s2 + $0x690] sm:$0xf] }
 0x1e4   : > { %v3203_v50 = vadd.f32 %v3202_v37, %v3189_v24  ;;  %v10256_v17 = vor.u32 %v12363_v14, %v10255_v25  ;;  %v10927_v37 = vld [vmem:[%s19319_s2 + $0x6c8] sm:$0xf]  ;;  %v12510_v25 = vld [vmem:[%s19319_s2 + $0x638] sm:$0xf0] }
 0x1e5   : > { %v3285_v60 = vmul.f32 %v15258_v11, %v15258_v11  ;;  %v3259_v4 = vadd.f32 %v3258_v29, %v15258_v11  ;;  %v15293_v22 = vpop.eup %12796  ;;  %v10928_v15 = vor.u32 %v12531_v19, %v10927_v37  ;;  %v10053_v10 = vld [vmem:[%s19325_s8 + $0x2] ss:$8 sm:$0xf]  ;;  %v12405_v29 = vld [vmem:[%s19319_s2 + $0x2f0] sm:$0xf0] }
 0x1e6   : > { %5875 = vmatpush.bf16.msra.mxu2 %v10256_v17  ;;  %v3266_v26 = vmul.f32 784.0, %v15293_v22  ;;  %vm3270_vm1 = vweird.f32 %v15293_v22 }
 0x1e7   : > { %v3260_v48 = vadd.f32 %v3259_v4, %v15270_v47  ;;  %v3300_v63 = vadd.f32 %v3299_v56, %v3285_v60  ;;  %5917 = vmatpush.bf16.msra.mxu3 %v10928_v15  ;;  %v10871_v60 = vld [vmem:[%s19319_s2 + $0x658] sm:$0xf]  ;;  %v12342_v4 = vld [vmem:[%s19319_s2 + $0xf8] sm:$0xf0] }
 0x1e8   : > { %v3267_v16 = vsub.f32 1.0, %v3266_v26  ;;  %v12335_v26 = vld [vmem:[%s19319_s2 + $0xc0] sm:$0xf0] }
 0x1ea   : > { %v3244_v52 = vpop.f32.mrf.mxu0 }
 0x1ef   : > { %v3214_v18 = vpop.f32.mrf.mxu1 }
 0x1f0   : > { %v3215_v28 = vadd.f32 %v3214_v18, %v3201_v27  ;;  %v3286_v27 = vmul.f32 %v15270_v47, %v15270_v47 }
 0x1f7   : > { %v3228_v0 = vpop.f32.mrf.mxu3  ;;  %v3216_v5 = vpop.f32.mrf.mxu1 }
 0x1f8   : > { %v3229_v20 = vadd.f32 %v3228_v0, %v3215_v28  ;;  %v3217_v18 = vadd.f32 %v3216_v5, %v3203_v50  ;;  %v3301_v28 = vadd.f32 %v3300_v63, %v3286_v27  ;;  %v10052_v0 = vld [vmem:[%s19325_s8 + $0x1] ss:$8 sm:$0x70]  ;;  %v12524_v5 = vld [vmem:[%s19319_s2 + $0x6a8] sm:$0xf0]  ;;  %v10228_v50 = vor.u32 %v12356_v59, %v10227_v7 }
 0x1f9   : > { %v10367_v59 = vld [vmem:[%s19319_s2 + $0x268] sm:$0xf] }
 0x1fa   : > { %v15255_v6 = vadd.f32 %v3242_v51, %v3229_v20  ;;  %v10051_v51 = vld [vmem:[%s19325_s8 + $0x1] ss:$8 sm:$0xf]  ;;  %5876 = vmatpush.bf16.msra.mxu2 %v10228_v50 }
 0x1fb   : > { %v15302_v24 = vor.u32 %v10052_v0, %v10051_v51  ;;  %v10479_v20 = vld [vmem:[%s19319_s2 + $0x348] sm:$0xf] }
 0x1fc   : > { %v3252_v23 = vsel %vm2557_vm0, %v15255_v6, 0.0  ;;  %v3280_v62 = vmul.f32 %v15255_v6, %v15255_v6  ;;  %v10480_v21 = vor.u32 %v12419_v1, %v10479_v20  ;;  %v10143_v0 = vld [vmem:[%s19319_s2 + $0xa8] sm:$0xf] }
 0x1fd   : > { %v3253_v36 = vadd.f32 %v3252_v23, %v3251_v57  ;;  %v3377_v39 = vperm.slane %v15302_v24, 0  ;;  %v3378_v57 = vperm.slane %v15302_v24, 1  ;;  %v10199_v23 = vld [vmem:[%s19319_s2 + $0x118] sm:$0xf]  ;;  %v3379_v27 = vperm.slane %v15302_v24, 2 }
 0x1fe   : > { %v3293_v32 = vsel %vm2557_vm0, %v3280_v62, 0.0  ;;  %v12349_v62 = vld [vmem:[%s19319_s2 + $0x130] sm:$0xf0]  ;;  %5889 = vmatpush.bf16.msrb.mxu0 %v10480_v21  ;;  %v3380_v56 = vperm.slane %v15302_v24, 3  ;;  %v3381_v63 = vperm.slane %v15302_v24, 4  ;;  %v3383_v17 = vperm.slane %v15302_v24, 6 }
 0x1ff   : > { %v3230_v45 = vpop.f32.mrf.mxu3  ;;  %3254 = vadd.xlane.f32.xlu0 %v3253_v36  ;;  %v3294_v55 = vadd.f32 %v3293_v32, %v3292_v42  ;;  %v10054_v36 = vld [vmem:[%s19325_s8 + $0x2] ss:$8 sm:$0x70]  ;;  %v10452_v42 = vor.u32 %v12412_v40, %v10451_v3  ;;  %v10423_v32 = vld [vmem:[%s19319_s2 + $0x2d8] sm:$0xf]  ;;  %v10200_v38 = vor.u32 %v12349_v62, %v10199_v23  ;;  %v10144_v7 = vor.u32 %v12335_v26, %v10143_v0 }
 0x200   : > { %v3231_v61 = vadd.f32 %v3230_v45, %v3217_v18  ;;  %v10900_v18 = vor.u32 %v12524_v5, %v10899_v58  ;;  %v12517_v45 = vld [vmem:[%s19319_s2 + $0x670] sm:$0xf0]  ;;  %v3392_v20 = vpack.c.bf16 %v3380_v56, %v3379_v27  ;;  %v3394_v40 = vpack.c.bf16 %v3383_v17, %v3383_v17  ;;  %v12503_v5 = vld [vmem:[%s19319_s2 + $0x600] sm:$0xf0]  ;;  %v12328_v21 = vld [vmem:[%s19319_s2 + $0x88] sm:$0xf0] }
 0x201   : > { %3295 = vadd.xlane.f32.xlu1 %v3294_v55  ;;  %v3268_v55 = vmul.f32 %v15293_v22, %v3267_v16  ;;  %5877 = vmatpush.bf16.msra.mxu2 %v10200_v38  ;;  %v12391_v16 = vld [vmem:[%s19319_s2 + $0x280] sm:$0xf0]  ;;  %v12496_v56 = vld [vmem:[%s19319_s2 + $0x5c8] sm:$0xf0] }
 0x202   : > { %v15279_v53 = vadd.f32 %v3244_v52, %v3231_v61  ;;  %v15361_v61 = vpack.c.bf16 %v3378_v57, %v3377_v39  ;;  %v10171_v52 = vld [vmem:[%s19319_s2 + $0xe0] sm:$0xf]  ;;  %5890 = vmatpush.bf16.msrb.mxu0 %v10452_v42  ;;  %5918 = vmatpush.bf16.msra.mxu3 %v10900_v18  ;;  %v10815_v39 = vld [vmem:[%s19319_s2 + $0x5e8] sm:$0xf]  ;;  %v10115_v57 = vld [vmem:[%s19319_s2 + $0x70] sm:$0xf]  ;;  %v3425_v62 = vunpack.c.h.b16 %v3392_v20 }
 0x203   : > { %v3269_v14 = vadd.f32 %v15293_v22, %v3268_v55  ;;  %v10339_v42 = vld [vmem:[%s19319_s2 + $0x230] sm:$0xf]  ;;  %v12384_v18 = vld [vmem:[%s19319_s2 + $0x248] sm:$0xf0]  ;;  %v10816_v38 = vor.u32 %v12503_v5, %v10815_v39  ;;  %v12475_v55 = vld [vmem:[%s19319_s2 + $0x520] sm:$0xf0] }
 0x204   : > { %v3261_v46 = vsel %vm2557_vm0, %v15279_v53, 0.0  ;;  %v3287_v2 = vmul.f32 %v15279_v53, %v15279_v53  ;;  %v3422_v51 = vunpack.c.l.b16 %v15361_v61  ;;  %v3423_v50 = vunpack.c.h.b16 %v15361_v61  ;;  %v12314_v39 = vld [vmem:[%s19319_s2 + $0x18] sm:$0xf0] }
 0x205   : > { %v3262_v41 = vadd.f32 %v3261_v46, %v3260_v48  ;;  %v15371_v48 = vor.u32 %v10054_v36, %v10053_v10  ;;  %v3382_v46 = vperm.slane %v15302_v24, 5  ;;  %v10844_v24 = vor.u32 %v12510_v25, %v10843_v44 }
 0x206   : > { %v3302_v30 = vsel %vm2557_vm0, %v3287_v2, 0.0  ;;  %v10424_v2 = vor.u32 %v12405_v29, %v10423_v32  ;;  %v15408_v3 = vsel %vm3270_vm1, %v15293_v22, %v3269_v14  ;;  %v3429_v58 = vpack.c.b16 %v3422_v51, %v3422_v51  ;;  %v10311_v51 = vld [vmem:[%s19319_s2 + $0x1f8] sm:$0xf] }
 0x207   : > { %3263 = vadd.xlane.f32.xlu0 %v3262_v41  ;;  %v3303_v43 = vadd.f32 %v3302_v30, %v3301_v28  ;;  %v10872_v41 = vor.u32 %v12517_v45, %v10871_v60  ;;  %v10395_v28 = vld [vmem:[%s19319_s2 + $0x2a0] sm:$0xf]  ;;  %v10172_v30 = vor.u32 %v12342_v4, %v10171_v52  ;;  %v3406_v1 = vperm.slane %v15371_v48, 6  ;;  %19358 = vst [vmem:[#allocation6_spill] sm:$0xff] %v15408_v3  ;;  %v10787_v60 = vld [vmem:[%s19319_s2 + $0x5b0] sm:$0xf] }
 0x208   : > { %v3393_v37 = vpack.c.bf16 %v3382_v46, %v3381_v63  ;;  %5891 = vmatpush.bf16.msrb.mxu0 %v10424_v2  ;;  %v3424_v22 = vunpack.c.l.b16 %v3392_v20  ;;  %v10368_v36 = vor.u32 %v12391_v16, %v10367_v59  ;;  %v10116_v29 = vor.u32 %v12328_v21, %v10115_v57  ;;  %v10703_v45 = vld [vmem:[%s19319_s2 + $0x508] sm:$0xf]  ;;  %v10087_v63 = vld [vmem:[%s19319_s2 + $0x38] sm:$0xf]  ;;  %v12321_v46 = vld [vmem:[%s19319_s2 + $0x50] sm:$0xf0] }
 0x209   : > { %3304 = vadd.xlane.f32.xlu1 %v3303_v43  ;;  %v12398_v43 = vld [vmem:[%s19319_s2 + $0x2b8] sm:$0xf0]  ;;  %5919 = vmatpush.bf16.msra.mxu3 %v10872_v41  ;;  %v3417_v15 = vpack.c.bf16 %v3406_v1, %v3406_v1  ;;  %v3428_v52 = vunpack.c.l.b16 %v3394_v40  ;;  %v3437_v4 = vpack.i.b16 %v3429_v58, %v3429_v58  ;;  %v10704_v2 = vor.u32 %v12475_v55, %v10703_v45  ;;  %v12377_v1 = vld [vmem:[%s19319_s2 + $0x210] sm:$0xf0]  ;;  %v10059_v16 = vld [vmem:[%s19319_s2] sm:$0xf] }
 0x20a   : > { %v10396_v19 = vor.u32 %v12398_v43, %v10395_v28  ;;  %5878 = vmatpush.bf16.msra.mxu2 %v10172_v30  ;;  %v3426_v10 = vunpack.c.l.b16 %v3393_v37  ;;  %v3427_v61 = vunpack.c.h.b16 %v3393_v37  ;;  %v15447_v41 = vpack.c.b16 %v3423_v50, %v3423_v50  ;;  %v10759_v37 = vld [vmem:[%s19319_s2 + $0x578] sm:$0xf]  ;;  %v15486_v57 = vld [vmem:[%s19319_s2 + $0x1c0] sm:$0xf]  ;;  %v10675_v21 = vld [vmem:[%s19319_s2 + $0x4d0] sm:$0xf] }
 0x20b   : > { %v3517_v28 = vunpack.c.l.b16 %v3417_v15  ;;  %v3431_v44 = vpack.c.b16 %v3424_v22, %v3424_v22  ;;  %v15452_v25 = vpack.c.b16 %v3425_v62, %v3425_v62  ;;  %v10340_v17 = vor.u32 %v12384_v18, %v10339_v42  ;;  %5903 = vmatpush.bf16.msra.mxu1 %v10704_v2  ;;  %v12468_v15 = vld [vmem:[%s19319_s2 + $0x4e8] sm:$0xf0]  ;;  %v11151_v42 = vld [vmem:[%s19319_s2 + $0x888] sm:$0xf]  ;;  %v12587_v18 = vld [vmem:[%s19319_s2 + $0x8a0] sm:$0xf0] }
 0x20c   : > { %5892 = vmatpush.bf16.msrb.mxu0 %v10396_v19  ;;  %v15454_v14 = vpack.c.b16 %v3426_v10, %v3426_v10  ;;  %v10788_v26 = vor.u32 %v12496_v56, %v10787_v60  ;;  %v10088_v20 = vor.u32 %v12321_v46, %v10087_v63  ;;  %v12489_v19 = vld [vmem:[%s19319_s2 + $0x590] sm:$0xf0]  ;;  %v15472_v59 = vperm.slane %v3437_v4, 0  ;;  %v11375_v2 = vld [vmem:[%s19319_s2 + $0xa48] sm:$0xf] }
 0x20d   : > { %5920 = vmatpush.bf16.msra.mxu3 %v10844_v24  ;;  %v15468_v24 = vpack.c.b16 %v3427_v61, %v3427_v61  ;;  %v3400_v40 = vperm.slane %v15371_v48, 0  ;;  %v15481_v58 = vpack.c.b16 %v3517_v28, %v3517_v28  ;;  %v3401_v50 = vperm.slane %v15371_v48, 1  ;;  %v10731_v61 = vld [vmem:[%s19319_s2 + $0x540] sm:$0xf]  ;;  %v12360_v28 = vld [vmem:[%s19319_s2 + $0x18c] sm:$0xf] }
 0x20e   : > { %5879 = vmatpush.bf16.msra.mxu2 %v10144_v7  ;;  %v15470_v7 = vpack.c.b16 %v3428_v52, %v3428_v52  ;;  %v3445_v22 = vpack.i.b16 %v3431_v44, %v3431_v44  ;;  %v10312_v10 = vor.u32 %v12377_v1, %v10311_v51  ;;  %v10760_v55 = vor.u32 %v12489_v19, %v10759_v37  ;;  %v12482_v52 = vld [vmem:[%s19319_s2 + $0x558] sm:$0xf0]  ;;  %v11123_v1 = vld [vmem:[%s19319_s2 + $0x850] sm:$0xf]  ;;  %v12580_v37 = vld [vmem:[%s19319_s2 + $0x868] sm:$0xf0] }
 0x20f   : > { %v3453_v4 = vpack.i.b16 %v15454_v14, %v15454_v14  ;;  %v10060_v46 = vor.u32 %v12314_v39, %v10059_v16  ;;  %v11152_v44 = vor.u32 %v12587_v18, %v11151_v42  ;;  %v10647_v14 = vld [vmem:[%s19319_s2 + $0x498] sm:$0xf]  ;;  %v11347_v39 = vld [vmem:[%s19319_s2 + $0xa10] sm:$0xf]  ;;  %v15584_v42 = vpack.c.bf16 %v3401_v50, %v3400_v40 }
 0x210   : > { %5893 = vmatpush.bf16.msrb.mxu0 %v10368_v36  ;;  %v12370_v36 = vld [vmem:[%s19319_s2 + $0x1d8] sm:$0xf0]  ;;  %v3461_v56 = vpack.i.b16 %v15470_v7, %v15470_v7  ;;  %v10732_v7 = vor.u32 %v12482_v52, %v10731_v61  ;;  %v3478_v40 = vunpack.c.l.bf16 %v15472_v59 }
 0x211   : > { %5921 = vmatpush.bf16.msra.mxu3 %v10816_v38  ;;  %v10676_v38 = vor.u32 %v12468_v15, %v10675_v21  ;;  %v10619_v21 = vld [vmem:[%s19319_s2 + $0x460] sm:$0xf]  ;;  %v12454_v15 = vld [vmem:[%s19319_s2 + $0x478] sm:$0xf0] }
 0x212   : > { %5880 = vmatpush.bf16.msra.mxu2 %v10116_v29  ;;  %v3449_v29 = vpack.i.b16 %v15452_v25, %v15452_v25  ;;  %v10257_v25 = vld [vmem:[%s19319_s2 + $0x1a4] sm:$0xf0]  ;;  %v10620_v61 = vor.u32 %v12454_v15, %v10619_v21  ;;  %v12622_v21 = vld [vmem:[%s19319_s2 + $0x9b8] sm:$0xf0]  ;;  %v3512_v15 = vunpack.c.h.b16 %v15584_v42 }
 0x213   : > { %5904 = vmatpush.bf16.msra.mxu1 %v10676_v38  ;;  %v15588_v38 = vperm.slane %v3461_v56, 0  ;;  %v11319_v56 = vld [vmem:[%s19319_s2 + $0x9d8] sm:$0xf] }
 0x214   : > { %5894 = vmatpush.bf16.msrb.mxu0 %v10340_v17  ;;  %v12461_v17 = vld [vmem:[%s19319_s2 + $0x4b0] sm:$0xf0]  ;;  %v15560_v19 = vperm.slane %v3449_v29, 0  ;;  %v11095_v29 = vld [vmem:[%s19319_s2 + $0x818] sm:$0xf] }
 0x215   : > { %5922 = vmatpush.bf16.msra.mxu3 %v10788_v26  ;;  %v3550_v26 = vpack.i.b16 %v15481_v58, %v15481_v58  ;;  %v10260_v58 = vor.u32 %v12360_v28, %v10257_v25  ;;  %v12629_v28 = vld [vmem:[%s19319_s2 + $0x9f0] sm:$0xf0] }
 0x216   : > { %5881 = vmatpush.bf16.msra.mxu2 %v10088_v20  ;;  %v10284_v20 = vor.u32 %v12370_v36, %v15486_v57  ;;  %v10648_v57 = vor.u32 %v12461_v17, %v10647_v14  ;;  %v10229_v36 = vld [vmem:[%s19319_s2 + $0x16c] sm:$0xf0]  ;;  %v12346_v14 = vld [vmem:[%s19319_s2 + $0x11c] sm:$0xf]  ;;  %v10201_v17 = vld [vmem:[%s19319_s2 + $0x134] sm:$0xf0] }
 0x217   : > { %v15599_v50 = vperm.slane %v3550_v26, 0  ;;  %v3511_v26 = vunpack.c.l.b16 %v15584_v42 }
 0x218   : > { %5895 = vmatpush.bf16.msrb.mxu0 %v10312_v10  ;;  %v12353_v10 = vld [vmem:[%s19319_s2 + $0x154] sm:$0xf]  ;;  %5905 = vmatpush.bf16.msra.mxu1 %v10648_v57  ;;  %v11291_v57 = vld [vmem:[%s19319_s2 + $0x9a0] sm:$0xf] }
 0x219   : > { %5923 = vmatpush.bf16.msra.mxu3 %v10760_v55  ;;  %v12573_v55 = vld [vmem:[%s19319_s2 + $0x830] sm:$0xf0] }
 0x21a   : > { %5882 = vmatpush.bf16.msra.mxu2 %v10060_v46  ;;  %v11096_v25 = vor.u32 %v12573_v55, %v11095_v29  ;;  %v10173_v55 = vld [vmem:[%s19319_s2 + $0xfc] sm:$0xf0] }
 0x21c   : > { %5896 = vmatpush.bf16.msrb.mxu0 %v10284_v20  ;;  %5906 = vmatpush.bf16.msra.mxu1 %v10620_v61  ;;  %v11039_v61 = vld [vmem:[%s19319_s2 + $0x7a8] sm:$0xf] }
 0x21d   : > { %5924 = vmatpush.bf16.msra.mxu3 %v10732_v7  ;;  %v12566_v7 = vld [vmem:[%s19319_s2 + $0x7f8] sm:$0xf0] }
 0x21e   : > { %5931 = vmatpush.bf16.msrb.mxu2 %v11152_v44 }
 0x221   : > { %5973 = vmatpush.bf16.msrb.mxu3 %v10260_v58 }
 0x272   : > { %v3255_v23 = vpop.xlane.xlu0 %3254 }
 0x273   : > { %v15427_v32 = vmul.f32 %v15408_v3, %v3255_v23  ;;  %v3441_v23 = vpack.i.b16 %v15447_v41, %v15447_v41  ;;  %v12643_v41 = vld [vmem:[%s19319_s2 + $0xa60] sm:$0xf0] }
 0x274   : > { %v3296_v27 = vpop.xlane.xlu1 %3295  ;;  %v11376_v16 = vor.u32 %v12643_v41, %v11375_v2  ;;  %v10232_v41 = vor.u32 %v12353_v10, %v10229_v36  ;;  %v10563_v10 = vld [vmem:[%s19319_s2 + $0x3f0] sm:$0xf]  ;;  %v12440_v36 = vld [vmem:[%s19319_s2 + $0x408] sm:$0xf0] }
 0x275   : > { %v3306_v30 = vmul.f32 %v3296_v27, %v15408_v3  ;;  %v3308_v43 = vmul.f32 %v15427_v32, %v15427_v32  ;;  %v3457_v27 = vpack.i.b16 %v15468_v24, %v15468_v24  ;;  %v15547_v51 = vperm.slane %v3441_v23, 0 }
 0x276   : > { %v15574_v23 = vperm.slane %v3453_v4, 0  ;;  %5945 = vmatpush.bf16.msra.mxu0 %v11376_v16  ;;  %v3337_v58 = vsub.f32 %v14591_v8, %v15427_v32  ;;  %5974 = vmatpush.bf16.msrb.mxu3 %v10232_v41  ;;  %v10204_v8 = vor.u32 %v12346_v14, %v10201_v17  ;;  %v3340_v42 = vsub.f32 %v15222_v35, %v15427_v32  ;;  %v15680_v41 = vld [vmem:[%s19319_s2 + $0x968] sm:$0xf]  ;;  %v12615_v17 = vld [vmem:[%s19319_s2 + $0x980] sm:$0xf0] }
 0x277   : > { %v3310_v0 = vsub.f32 %v3306_v30, %v3308_v43  ;;  %v15586_v18 = vperm.slane %v3457_v27, 0  ;;  %v3341_v29 = vsub.f32 %v15232_v34, %v15427_v32  ;;  %v11292_v14 = vor.u32 %v12622_v21, %v11291_v57 }
 0x279   : > { %v3312_v5 = vmax.f32 %v3310_v0, 0.0  ;;  %v15549_v0 = vperm.slane %v3445_v22, 0 }
 0x27a   : > { %v3264_v62 = vpop.xlane.xlu0 %3263  ;;  %5975 = vmatpush.bf16.msrb.mxu3 %v10204_v8 }
 0x27b   : > { %v15508_v60 = vadd.f32 1e-05, %v3312_v5  ;;  %v15511_v45 = vmul.f32 %v15408_v3, %v3264_v62  ;;  %v12636_v5 = vld [vmem:[%s19319_s2 + $0xa28] sm:$0xf0]  ;;  %v11124_v62 = vor.u32 %v12580_v37, %v11123_v1  ;;  %v3480_v46 = vunpack.c.l.bf16 %v15549_v0 }
 0x27c   : > { %v3305_v63 = vpop.xlane.xlu1 %3304  ;;  %v11348_v27 = vor.u32 %v12636_v5, %v11347_v39  ;;  %v3484_v1 = vunpack.c.l.bf16 %v15588_v38  ;;  %v3336_v39 = vsub.f32 %v14289_v49, %v15427_v32  ;;  %v11320_v5 = vor.u32 %v12629_v28, %v11319_v56 }
 0x27d   : > { %12798 = vrsqrt.f32 %v15508_v60  ;;  %v3307_v30 = vmul.f32 %v3305_v63, %v15408_v3  ;;  %v3309_v43 = vmul.f32 %v15511_v45, %v15511_v45  ;;  %v3479_v63 = vunpack.c.l.bf16 %v15547_v51  ;;  %5932 = vmatpush.bf16.msrb.mxu2 %v11124_v62 }
 0x27e   : > { %5946 = vmatpush.bf16.msra.mxu0 %v11348_v27  ;;  %v3338_v62 = vsub.f32 %v14955_v9, %v15427_v32  ;;  %v3339_v49 = vsub.f32 %v19350_v12, %v15427_v32  ;;  %v12339_v12 = vld [vmem:[%s19319_s2 + $0xe4] sm:$0xf]  ;;  %v15671_v27 = vpack.c.b16 %v3511_v26, %v3511_v26  ;;  %v10564_v28 = vor.u32 %v12440_v36, %v10563_v10  ;;  %v10535_v26 = vld [vmem:[%s19319_s2 + $0x3b8] sm:$0xf] }
 0x27f   : > { %v3311_v24 = vsub.f32 %v3307_v30, %v3309_v43  ;;  %v10591_v30 = vld [vmem:[%s19319_s2 + $0x428] sm:$0xf]  ;;  %v12447_v43 = vld [vmem:[%s19319_s2 + $0x440] sm:$0xf0]  ;;  %vm3322_vm3 = vweird.f32 %v15508_v60  ;;  %v3345_v57 = vsub.f32 %v15235_v31, %v15511_v45 }
 0x280   : > { %v10592_v16 = vor.u32 %v12447_v43, %v10591_v30  ;;  %v3526_v8 = vpack.i.b16 %v15671_v27, %v15671_v27 }
 0x281   : > { %v3313_v22 = vmax.f32 %v3311_v24, 0.0  ;;  %v11067_v24 = vld [vmem:[%s19319_s2 + $0x7e0] sm:$0xf]  ;;  %5933 = vmatpush.bf16.msrb.mxu2 %v11096_v25  ;;  %v3342_v25 = vsub.f32 %v15255_v6, %v15427_v32 }
 0x282   : > { %v11068_v9 = vor.u32 %v12566_v7, %v11067_v24  ;;  %5907 = vmatpush.bf16.msra.mxu1 %v10592_v16  ;;  %5947 = vmatpush.bf16.msra.mxu0 %v11320_v5  ;;  %v3519_v24 = vpack.c.b16 %v3512_v15, %v3512_v15  ;;  %v3343_v7 = vsub.f32 %v15209_v13, %v15511_v45  ;;  %v12332_v15 = vld [vmem:[%s19319_s2 + $0xac] sm:$0xf]  ;;  %v11179_v13 = vld [vmem:[%s19319_s2 + $0x8c0] sm:$0xf] }
 0x283   : > { %v15596_v52 = vpop.eup %12798  ;;  %v15601_v4 = vadd.f32 1e-05, %v3313_v22  ;;  %v10176_v16 = vor.u32 %v12339_v12, %v10173_v55  ;;  %v3344_v5 = vsub.f32 %v15212_v33, %v15511_v45  ;;  %v11264_v12 = vor.u32 %v12615_v17, %v15680_v41  ;;  %v12552_v55 = vld [vmem:[%s19319_s2 + $0x788] sm:$0xf0]  ;;  %v10507_v41 = vld [vmem:[%s19319_s2 + $0x380] sm:$0xf] }
 0x284   : > { %v3317_v2 = vmul.f32 %v15596_v52, %v15508_v60  ;;  %vm3323_vm2 = vweird.f32 %v15596_v52  ;;  %v12594_v33 = vld [vmem:[%s19319_s2 + $0x8d8] sm:$0xf0] }
 0x285   : > { %12800 = vrsqrt.f32 %v15601_v4  ;;  %vm3324_vm4 = vmor %vm3322_vm3, %vm3323_vm2  ;;  %5934 = vmatpush.bf16.msrb.mxu2 %v11068_v9  ;;  %v11011_v9 = vld [vmem:[%s19319_s2 + $0x770] sm:$0xf]  ;;  %5976 = vmatpush.bf16.msrb.mxu3 %v10176_v16  ;;  %vm3332_vm5 = vweird.f32 %v15601_v4 }
 0x286   : > { %v3318_v37 = vmul.f32 %v15596_v52, %v3317_v2  ;;  %v12559_v2 = vld [vmem:[%s19319_s2 + $0x7c0] sm:$0xf0]  ;;  %5908 = vmatpush.bf16.msra.mxu1 %v10564_v28  ;;  %5948 = vmatpush.bf16.msra.mxu0 %v11292_v14  ;;  %v12426_v28 = vld [vmem:[%s19319_s2 + $0x398] sm:$0xf0] }
 0x287   : > { %v11040_v21 = vor.u32 %v12559_v2, %v11039_v61 }
 0x288   : > { %v3319_v22 = vmul.f32 0.5, %v3318_v37  ;;  %v12433_v37 = vld [vmem:[%s19319_s2 + $0x3d0] sm:$0xf0] }
 0x289   : > { %v10536_v61 = vor.u32 %v12433_v37, %v10535_v26  ;;  %v3346_v26 = vsub.f32 %v15246_v54, %v15511_v45  ;;  %5935 = vmatpush.bf16.msrb.mxu2 %v11040_v21  ;;  %v10117_v37 = vld [vmem:[%s19319_s2 + $0x8c] sm:$0xf0]  ;;  %v11207_v54 = vld [vmem:[%s19319_s2 + $0x8f8] sm:$0xf]  ;;  %v12601_v21 = vld [vmem:[%s19319_s2 + $0x910] sm:$0xf0] }
 0x28a   : > { %v3320_v56 = vsub.f32 1.5, %v3319_v22  ;;  %v10145_v22 = vld [vmem:[%s19319_s2 + $0xc4] sm:$0xf0]  ;;  %5949 = vmatpush.bf16.msra.mxu0 %v11264_v12  ;;  %v11208_v12 = vor.u32 %v12601_v21, %v11207_v54  ;;  %v11180_v21 = vor.u32 %v12594_v33, %v11179_v13 }
 0x28b   : > { %v15683_v43 = vpop.eup %12800  ;;  %5909 = vmatpush.bf16.msra.mxu1 %v10536_v61 }
 0x28c   : > { %v3321_v60 = vmul.f32 %v15596_v52, %v3320_v56  ;;  %v3327_v6 = vmul.f32 %v15683_v43, %v15601_v4  ;;  %vm3333_vm6 = vweird.f32 %v15683_v43 }
 0x28d   : > { %vm3334_vm7 = vmor %vm3332_vm5, %vm3333_vm6 }
 0x28e   : > { %v3325_v10 = vsel %vm3324_vm4, %v15596_v52, %v3321_v60  ;;  %v3328_v36 = vmul.f32 %v15683_v43, %v3327_v6  ;;  %v11235_v52 = vld [vmem:[%s19319_s2 + $0x930] sm:$0xf]  ;;  %v10983_v6 = vld [vmem:[%s19319_s2 + $0x738] sm:$0xf] }
 0x28f   : > { %v3350_v56 = vmul.f32 %v3336_v39, %v3325_v10  ;;  %v3351_v2 = vmul.f32 %v3337_v58, %v3325_v10  ;;  %v3352_v20 = vmul.f32 %v3338_v62, %v3325_v10  ;;  %v3353_v27 = vmul.f32 %v3339_v49, %v3325_v10  ;;  %v12608_v58 = vld [vmem:[%s19319_s2 + $0x948] sm:$0xf0]  ;;  %v12325_v62 = vld [vmem:[%s19319_s2 + $0x74] sm:$0xf] }
 0x290   : > { %v3356_v17 = vmul.f32 %v3342_v25, %v3325_v10  ;;  %v3329_v60 = vmul.f32 0.5, %v3328_v36  ;;  %v10148_v39 = vor.u32 %v12332_v15, %v10145_v22  ;;  %v3530_v49 = vpack.i.b16 %v3519_v24, %v3519_v24  ;;  %v12545_v24 = vld [vmem:[%s19319_s2 + $0x750] sm:$0xf0] }
 0x291   : > { %v3364_v14 = vpack.c.bf16 %v3351_v2, %v3350_v56  ;;  %v11012_v25 = vor.u32 %v12552_v55, %v11011_v9  ;;  %v10508_v22 = vor.u32 %v12426_v28, %v10507_v41  ;;  %v3365_v36 = vpack.c.bf16 %v3353_v27, %v3352_v20  ;;  %v10089_v27 = vld [vmem:[%s19319_s2 + $0x54] sm:$0xf0] }
 0x292   : > { %v3367_v16 = vpack.c.bf16 %v3356_v17, %v3356_v17  ;;  %v3330_v15 = vsub.f32 1.5, %v3329_v60  ;;  %v11236_v56 = vor.u32 %v12608_v58, %v11235_v52  ;;  %5977 = vmatpush.bf16.msrb.mxu3 %v10148_v39  ;;  %v10120_v17 = vor.u32 %v12325_v62, %v10117_v37  ;;  %v10955_v39 = vld [vmem:[%s19319_s2 + $0x700] sm:$0xf]  ;;  %v12538_v58 = vld [vmem:[%s19319_s2 + $0x718] sm:$0xf0] }
 0x293   : > { %v3464_v9 = vunpack.c.l.bf16 %v3364_v14  ;;  %v3465_v55 = vunpack.c.h.bf16 %v3364_v14  ;;  %v15760_v60 = vperm.slane %v3526_v8, 0  ;;  %v15762_v61 = vperm.slane %v3530_v49, 0  ;;  %5936 = vmatpush.bf16.msrb.mxu2 %v11012_v25  ;;  %v12318_v8 = vld [vmem:[%s19319_s2 + $0x3c] sm:$0xf]  ;;  %5910 = vmatpush.bf16.msra.mxu1 %v10508_v22 }
 0x294   : > { %v3331_v2 = vmul.f32 %v15683_v43, %v3330_v15  ;;  %v10984_v20 = vor.u32 %v12545_v24, %v10983_v6  ;;  %v3354_v52 = vmul.f32 %v3340_v42, %v3325_v10  ;;  %v3355_v4 = vmul.f32 %v3341_v29, %v3325_v10  ;;  %5950 = vmatpush.bf16.msra.mxu0 %v11236_v56 }
 0x295   : > { %v3485_v30 = vmul.f32 %v3478_v40, %v3464_v9  ;;  %v3486_v44 = vmul.f32 %v3479_v63, %v3465_v55  ;;  %v3470_v41 = vunpack.c.l.bf16 %v3367_v16  ;;  %v3466_v62 = vunpack.c.l.bf16 %v3365_v36 }
 0x296   : > { %v15785_v28 = vsel %vm3334_vm7, %v15683_v43, %v3331_v2  ;;  %v3349_v42 = vsub.f32 %v15279_v53, %v15511_v45  ;;  %5978 = vmatpush.bf16.msrb.mxu3 %v10120_v17  ;;  %v11403_v53 = vld [vmem:[%s19319_s2 + $0xa80] sm:$0xf]  ;;  %v3467_v43 = vunpack.c.h.bf16 %v3365_v36  ;;  %v10956_v31 = vor.u32 %v12538_v58, %v10955_v39 }
 0x297   : > { %v3499_v35 = vpack.c.bf16 %v3486_v44, %v3485_v30  ;;  %v3357_v34 = vmul.f32 %v3343_v7, %v15785_v28  ;;  %v3358_v32 = vmul.f32 %v3344_v5, %v15785_v28  ;;  %v3359_v29 = vmul.f32 %v3345_v57, %v15785_v28  ;;  %5937 = vmatpush.bf16.msrb.mxu2 %v10984_v20  ;;  %v12650_v7 = vld [vmem:[%s19319_s2 + $0xa98] sm:$0xf0]  ;;  %v12311_v5 = vld [vmem:[%s19319_s2 + $0x4] sm:$0xf]  ;;  %v10061_v57 = vld [vmem:[%s19319_s2 + $0x1c] sm:$0xf0] }
 0x298   : > { %v3360_v44 = vmul.f32 %v3346_v26, %v15785_v28  ;;  %v10092_v30 = vor.u32 %v12318_v8, %v10089_v27  ;;  %v3567_v10 = vunpack.c.l.bf16 %v15760_v60  ;;  %v3568_v49 = vunpack.c.l.bf16 %v15762_v61  ;;  %5951 = vmatpush.bf16.msra.mxu0 %v11208_v12 }
 0x299   : > { %v15828_v14 = vpack.c.bf16 %v3355_v4, %v3354_v52  ;;  %v3491_v26 = vmul.f32 %v3484_v1, %v3470_v41  ;;  %v3553_v25 = vunpack.c.l.bf16 %v3499_v35  ;;  %v3403_v37 = vperm.slane %v15371_v48, 3 }
 0x29a   : > { %v3487_v6 = vmul.f32 %v3480_v46, %v3466_v62  ;;  %v3363_v24 = vmul.f32 %v3349_v42, %v15785_v28  ;;  %v3368_v16 = vpack.c.bf16 %v3358_v32, %v3357_v34  ;;  %v3369_v15 = vpack.c.bf16 %v3360_v44, %v3359_v29  ;;  %5979 = vmatpush.bf16.msrb.mxu3 %v10092_v30 }
 0x29b   : > { %v3554_v54 = vunpack.c.h.bf16 %v3499_v35  ;;  %v11404_v22 = vor.u32 %v12650_v7, %v11403_v53  ;;  %v10064_v36 = vor.u32 %v12311_v5, %v10061_v57  ;;  %v19359_v9 = vunpack.c.l.bf16 %v15560_v19  ;;  %5938 = vmatpush.bf16.msrb.mxu2 %v10956_v31 }
 0x29c   : > { %v3371_v56 = vpack.c.bf16 %v3363_v24, %v3363_v24  ;;  %v3471_v2 = vunpack.c.l.bf16 %v3368_v16  ;;  %v3472_v17 = vunpack.c.h.bf16 %v3368_v16  ;;  %v3483_v60 = vunpack.c.l.bf16 %v15586_v18  ;;  %5952 = vmatpush.bf16.msra.mxu0 %v11180_v21 }
 0x29d   : > { %v3488_v55 = vmul.f32 %v19359_v9, %v3467_v43  ;;  %v3573_v61 = vunpack.c.l.bf16 %v15599_v50  ;;  %v3502_v20 = vpack.c.bf16 %v3491_v26, %v3491_v26  ;;  %5966 = vmatpush.bf16.msrb.mxu1 %v11404_v22  ;;  %v3574_v8 = vadd.f32 %v3567_v10, %v3553_v25 }
 0x29e   : > { %v3473_v12 = vunpack.c.l.bf16 %v3369_v15  ;;  %v3474_v27 = vunpack.c.h.bf16 %v3369_v15  ;;  %v3477_v52 = vunpack.c.l.bf16 %v3371_v56  ;;  %v3492_v4 = vmul.f32 %v3478_v40, %v3471_v2  ;;  %5980 = vmatpush.bf16.msrb.mxu3 %v10064_v36 }
 0x29f   : > { %v3347_v41 = vsub.f32 %v15258_v11, %v15511_v45  ;;  %v3348_v39 = vsub.f32 %v15270_v47, %v15511_v45  ;;  %v3493_v58 = vmul.f32 %v3479_v63, %v3472_v17  ;;  %v3575_v62 = vadd.f32 %v3568_v49, %v3554_v54  ;;  %v10817_v54 = vld [vmem:[%s19319_s2 + $0x604] sm:$0xf0] }
 0x2a0   : > { %v3468_v35 = vunpack.c.l.bf16 %v15828_v14  ;;  %v15849_v34 = vpack.c.bf16 %v3488_v55, %v3487_v6  ;;  %v3498_v59 = vmul.f32 %v3484_v1, %v3477_v52  ;;  %v19360_v40 = vperm.slane %v15371_v48, 2 }
 0x2a1   : > { %v3469_v11 = vunpack.c.h.bf16 %v15828_v14  ;;  %v3559_v42 = vunpack.c.l.bf16 %v3502_v20  ;;  %v3503_v29 = vpack.c.bf16 %v3493_v58, %v3492_v4  ;;  %v3588_v47 = vpack.c.bf16 %v3575_v62, %v3574_v8  ;;  %v12472_v58 = vld [vmem:[%s19319_s2 + $0x50c] sm:$0xf] }
 0x2a2   : > { %v3415_v32 = vpack.c.bf16 %v3403_v37, %v19360_v40  ;;  %v3494_v45 = vmul.f32 %v3480_v46, %v3473_v12  ;;  %v19361_v51 = vmov %v19359_v9  ;;  %v3361_v13 = vmul.f32 %v3347_v41, %v15785_v28  ;;  %v10705_v40 = vld [vmem:[%s19319_s2 + $0x524] sm:$0xf0] }
 0x2a3   : > { %v3495_v63 = vmul.f32 %v19361_v51, %v3474_v27  ;;  %v3362_v38 = vmul.f32 %v3348_v39, %v15785_v28  ;;  %v3560_v1 = vunpack.c.l.bf16 %v3503_v29  ;;  %v3561_v33 = vunpack.c.h.bf16 %v3503_v29 }
 0x2a4   : > { %v3513_v44 = vunpack.c.l.b16 %v3415_v32  ;;  %v3514_v30 = vunpack.c.h.b16 %v3415_v32  ;;  %v19362_v53 = vunpack.c.l.bf16 %v15574_v23  ;;  %v3555_v31 = vunpack.c.l.bf16 %v15849_v34  ;;  %v12528_v32 = vld [vmem:[%s19319_s2 + $0x6cc] sm:$0xf] }
 0x2a5   : > { %v3506_v7 = vpack.c.bf16 %v3498_v59, %v3498_v59  ;;  %v3596_v0 = vunpack.c.l.bf16 %v3588_v47  ;;  %v3581_v46 = vadd.f32 %v3567_v10, %v3560_v1  ;;  %v3582_v5 = vadd.f32 %v3568_v49, %v3561_v33 }
 0x2a6   : > { %v15864_v43 = vmul.f32 %v19362_v53, %v3468_v35  ;;  %v3597_v19 = vunpack.c.h.bf16 %v3588_v47  ;;  %v3520_v57 = vpack.c.b16 %v3513_v44, %v3513_v44  ;;  %v3580_v14 = vadd.f32 %v3573_v61, %v3559_v42  ;;  %v12521_v53 = vld [vmem:[%s19319_s2 + $0x694] sm:$0xf] }
 0x2a7   : > { %v3504_v26 = vpack.c.bf16 %v3495_v63, %v3494_v45  ;;  %v3624_v25 = vmul.f32 0.20019531, %v3596_v0  ;;  %v3521_v28 = vpack.c.b16 %v3514_v30, %v3514_v30  ;;  %v15869_v37 = vpack.c.bf16 %v3362_v38, %v3361_v13  ;;  %v10677_v45 = vld [vmem:[%s19319_s2 + $0x4ec] sm:$0xf0] }
 0x2a8   : > { %v3592_v6 = vpack.c.bf16 %v3582_v5, %v3581_v46  ;;  %v3625_v24 = vmul.f32 0.20019531, %v3597_v19  ;;  %v3534_v16 = vpack.i.b16 %v3520_v57, %v3520_v57  ;;  %v3566_v15 = vunpack.c.l.bf16 %v3506_v7 }
 0x2a9   : > { %vm15871_vm8 = vcmp.gt.f32.partialorder %v3596_v0, 0.0  ;;  %vm15875_vm9 = vcmp.gt.f32.partialorder %v3597_v19, 0.0  ;;  %v3538_v49 = vpack.i.b16 %v3521_v28, %v3521_v28  ;;  %v3556_v55 = vunpack.c.h.bf16 %v15849_v34 }
 0x2aa   : > { %v3603_v21 = vunpack.c.l.bf16 %v3592_v6  ;;  %v3604_v22 = vunpack.c.h.bf16 %v3592_v6  ;;  %v3638_v36 = vpack.c.bf16 %v3625_v24, %v3624_v25  ;;  %v3536_v9 = vperm.slane %v3534_v16, 0  ;;  %vm3646_vm12 = vmpackc.low %vm15875_vm9, %vm15871_vm8  ;;  %v10649_v24 = vld [vmem:[%s19319_s2 + $0x4b4] sm:$0xf0] }
 0x2ab   : > { %v3562_v56 = vunpack.c.l.bf16 %v3504_v26  ;;  %v3563_v2 = vunpack.c.h.bf16 %v3504_v26  ;;  %v3540_v17 = vperm.slane %v3538_v49, 0  ;;  %v3490_v52 = vmul.f32 %v3483_v60, %v3469_v11  ;;  %v10929_v11 = vld [vmem:[%s19319_s2 + $0x6e4] sm:$0xf0] }
 0x2ac   : > { %vm15880_vm10 = vcmp.gt.f32.partialorder %v3603_v21, 0.0  ;;  %vm15884_vm11 = vcmp.gt.f32.partialorder %v3604_v22, 0.0  ;;  %v3631_v12 = vmul.f32 0.20019531, %v3603_v21  ;;  %v3632_v27 = vmul.f32 0.20019531, %v3604_v22  ;;  %v12514_v21 = vld [vmem:[%s19319_s2 + $0x65c] sm:$0xf] }
 0x2ad   : > { %v3654_v4 = vsel %vm3646_vm12, %v3588_v47, %v3638_v36  ;;  %v3569_v41 = vunpack.c.l.bf16 %v3536_v9  ;;  %v3570_v39 = vunpack.c.l.bf16 %v3540_v17  ;;  %v15897_v62 = vpack.c.bf16 %v3580_v14, %v3580_v14  ;;  %vm3650_vm13 = vmpackc.low %vm15884_vm11, %vm15880_vm10  ;;  %v12465_v47 = vld [vmem:[%s19319_s2 + $0x4d4] sm:$0xf]  ;;  %v12402_v22 = vld [vmem:[%s19319_s2 + $0x2dc] sm:$0xf] }
 0x2ae   : > { %v3475_v35 = vunpack.c.l.bf16 %v15869_v37  ;;  %v3587_v34 = vadd.f32 %v3573_v61, %v3566_v15  ;;  %v3642_v59 = vpack.c.bf16 %v3632_v27, %v3631_v12  ;;  %v3476_v51 = vunpack.c.h.bf16 %v15869_v37  ;;  %v12500_v15 = vld [vmem:[%s19319_s2 + $0x5ec] sm:$0xf]  ;;  %v10425_v36 = vld [vmem:[%s19319_s2 + $0x2f4] sm:$0xf0] }
 0x2af   : > { %v3576_v50 = vadd.f32 %v3569_v41, %v3555_v31  ;;  %v3577_v61 = vadd.f32 %v3570_v39, %v3556_v55  ;;  %v3583_v42 = vadd.f32 %v3569_v41, %v3562_v56  ;;  %v3584_v29 = vadd.f32 %v3570_v39, %v3563_v2  ;;  %v10901_v31 = vld [vmem:[%s19319_s2 + $0x6ac] sm:$0xf0]  ;;  %v10873_v56 = vld [vmem:[%s19319_s2 + $0x674] sm:$0xf0] }
 0x2b0   : > { %v3658_v63 = vsel %vm3650_vm13, %v3592_v6, %v3642_v59  ;;  %v4081_v44 = vunpack.c.l.b16 %v3654_v4  ;;  %v4082_v30 = vunpack.c.h.b16 %v3654_v4  ;;  %v15928_v7 = vpack.c.bf16 %v3587_v34, %v3587_v34  ;;  %v12458_v6 = vld [vmem:[%s19319_s2 + $0x49c] sm:$0xf] }
 0x2b1   : > { %v4088_v13 = vunpack.c.l.b16 %v3658_v63  ;;  %v4089_v38 = vunpack.c.h.b16 %v3658_v63  ;;  %v3589_v1 = vpack.c.bf16 %v3577_v61, %v3576_v50  ;;  %v3593_v33 = vpack.c.bf16 %v3584_v29, %v3583_v42  ;;  %v10621_v61 = vld [vmem:[%s19319_s2 + $0x47c] sm:$0xf0]  ;;  %v12507_v42 = vld [vmem:[%s19319_s2 + $0x624] sm:$0xf] }
 0x2b2   : > { %v10708_v0 = vor.u32 %v12472_v58, %v10705_v40  ;;  %v10932_v46 = vor.u32 %v12528_v32, %v10929_v11  ;;  %v10680_v5 = vor.u32 %v12465_v47, %v10677_v45  ;;  %v10904_v37 = vor.u32 %v12521_v53, %v10901_v31  ;;  %v12451_v40 = vld [vmem:[%s19319_s2 + $0x464] sm:$0xf]  ;;  %v10845_v29 = vld [vmem:[%s19319_s2 + $0x63c] sm:$0xf0]  ;;  %v12577_v53 = vld [vmem:[%s19319_s2 + $0x854] sm:$0xf] }
 0x2b3   : > { %v15930_v19 = vpack.c.b16 %v4088_v13, %v4081_v44  ;;  %v15932_v57 = vpack.c.b16 %v4089_v38, %v4082_v30  ;;  %v3598_v14 = vunpack.c.l.bf16 %v3589_v1  ;;  %v3599_v26 = vunpack.c.h.bf16 %v3589_v1  ;;  %v12409_v30 = vld [vmem:[%s19319_s2 + $0x314] sm:$0xf]  ;;  %v11125_v31 = vld [vmem:[%s19319_s2 + $0x86c] sm:$0xf0] }
 0x2b4   : > { %v3605_v25 = vunpack.c.l.bf16 %v3593_v33  ;;  %v3606_v28 = vunpack.c.h.bf16 %v3593_v33  ;;  %v3404_v16 = vperm.slane %v15371_v48, 4  ;;  %v15966_v2 = vpack.c.bf16 %v3490_v52, %v15864_v43  ;;  %v12416_v43 = vld [vmem:[%s19319_s2 + $0x34c] sm:$0xf]  ;;  %v11153_v52 = vld [vmem:[%s19319_s2 + $0x8a4] sm:$0xf0] }
 0x2b5   : > { %5883 = vmatmul.bf16.vlgmr.msra.gmra.mxu2 %v15930_v19  ;;  %5897 = vmatmul.bf16.vlgmr.msrb.gmra.mxu0 %v15932_v57  ;;  %vm15943_vm14 = vcmp.gt.f32.partialorder %v3598_v14, 0.0  ;;  %vm15947_vm15 = vcmp.gt.f32.partialorder %v3599_v26, 0.0  ;;  %v3626_v10 = vmul.f32 0.20019531, %v3598_v14  ;;  %v3627_v49 = vmul.f32 0.20019531, %v3599_v26 }
 0x2b6   : > { %vm15954_vm1 = vcmp.gt.f32.partialorder %v3605_v25, 0.0  ;;  %vm15958_vm2 = vcmp.gt.f32.partialorder %v3606_v28, 0.0  ;;  %v3633_v9 = vmul.f32 0.20019531, %v3605_v25  ;;  %v3634_v55 = vmul.f32 0.20019531, %v3606_v28  ;;  %6001 = vmatpush.bf16.msra.mxu2 %v10708_v0  ;;  %6015 = vmatpush.bf16.msrb.mxu0 %v10932_v46  ;;  %vm3647_vm3 = vmpackc.low %vm15947_vm15, %vm15943_vm14  ;;  %v12444_v25 = vld [vmem:[%s19319_s2 + $0x42c] sm:$0xf] }
 0x2b7   : > { %v3639_v17 = vpack.c.bf16 %v3627_v49, %v3626_v10  ;;  %v3405_v20 = vperm.slane %v15371_v48, 5  ;;  %v19379_v8 = vunpack.c.l.bf16 %v15574_v23  ;;  %v3497_v27 = vmul.f32 %v3483_v60, %v3476_v51  ;;  %v10481_v48 = vld [vmem:[%s19319_s2 + $0x364] sm:$0xf0]  ;;  %vm3651_vm4 = vmpackc.low %vm15958_vm2, %vm15954_vm1  ;;  %v12584_v60 = vld [vmem:[%s19319_s2 + $0x88c] sm:$0xf] }
 0x2b8   : > { %v3643_v4 = vpack.c.bf16 %v3634_v55, %v3633_v9  ;;  %v3609_v23 = vunpack.c.l.bf16 %v15928_v7  ;;  %v10652_v41 = vor.u32 %v12458_v6, %v10649_v24  ;;  %v10876_v39 = vor.u32 %v12514_v21, %v10873_v56  ;;  %v10593_v28 = vld [vmem:[%s19319_s2 + $0x444] sm:$0xf0] }
 0x2b9   : > { %v3496_v12 = vmul.f32 %v19379_v8, %v3475_v35  ;;  %v3655_v18 = vsel %vm3647_vm3, %v3589_v1, %v3639_v17  ;;  %v3416_v58 = vpack.c.bf16 %v3405_v20, %v3404_v16  ;;  %v3602_v32 = vunpack.c.l.bf16 %v15897_v62  ;;  %v11097_v17 = vld [vmem:[%s19319_s2 + $0x834] sm:$0xf0] }
 0x2ba   : > { %v3659_v35 = vsel %vm3651_vm4, %v3593_v33, %v3643_v4  ;;  %v4083_v34 = vunpack.c.l.b16 %v3655_v18  ;;  %v4084_v59 = vunpack.c.h.b16 %v3655_v18  ;;  %6002 = vmatpush.bf16.msra.mxu2 %v10680_v5  ;;  %6016 = vmatpush.bf16.msrb.mxu0 %v10904_v37  ;;  %v10484_v63 = vor.u32 %v12416_v43, %v10481_v48  ;;  %v10453_v33 = vld [vmem:[%s19319_s2 + $0x32c] sm:$0xf0]  ;;  %v12437_v43 = vld [vmem:[%s19319_s2 + $0x3f4] sm:$0xf]  ;;  %v12395_v48 = vld [vmem:[%s19319_s2 + $0x2a4] sm:$0xf] }
 0x2bb   : > { %v4090_v11 = vunpack.c.l.b16 %v3659_v35  ;;  %v4091_v50 = vunpack.c.h.b16 %v3659_v35  ;;  %v3515_v47 = vunpack.c.l.b16 %v3416_v58  ;;  %v3516_v45 = vunpack.c.h.b16 %v3416_v58 }
 0x2bc   : > { %v16007_v51 = vpack.c.bf16 %v3497_v27, %v3496_v12  ;;  %v11156_v44 = vor.u32 %v12584_v60, %v11153_v52  ;;  %v3637_v13 = vmul.f32 0.20019531, %v3609_v23  ;;  %v3557_v5 = vunpack.c.l.bf16 %v15966_v2  ;;  %v10565_v52 = vld [vmem:[%s19319_s2 + $0x40c] sm:$0xf0] }
 0x2bd   : > { %v16012_v38 = vpack.c.b16 %v4090_v11, %v4083_v34  ;;  %v16014_v1 = vpack.c.b16 %v4091_v50, %v4084_v59  ;;  %v3522_v0 = vpack.c.b16 %v3515_v47, %v3515_v47  ;;  %v3523_v46 = vpack.c.b16 %v3516_v45, %v3516_v45  ;;  %v10397_v34 = vld [vmem:[%s19319_s2 + $0x2bc] sm:$0xf0]  ;;  %v12563_v59 = vld [vmem:[%s19319_s2 + $0x7e4] sm:$0xf]  ;;  %v16104_v47 = vld [vmem:[%s19319_s2 + $0x284] sm:$0xf0] }
 0x2be   : > { %6003 = vmatpush.bf16.msra.mxu2 %v10652_v41  ;;  %6017 = vmatpush.bf16.msrb.mxu0 %v10876_v39  ;;  %v10624_v14 = vor.u32 %v12451_v40, %v10621_v61  ;;  %v10848_v26 = vor.u32 %v12507_v42, %v10845_v29  ;;  %vm16034_vm5 = vcmp.gt.f32.partialorder %v3609_v23, 0.0  ;;  %v3630_v16 = vmul.f32 0.20019531, %v3602_v32  ;;  %v12493_v41 = vld [vmem:[%s19319_s2 + $0x5b4] sm:$0xf]  ;;  %v10789_v39 = vld [vmem:[%s19319_s2 + $0x5cc] sm:$0xf0] }
 0x2bf   : > { %5911 = vmatmul.bf16.vlgmr.msra.gmra.mxu1 %v16012_v38  ;;  %5925 = vmatmul.bf16.vlgmr.msra.gmra.mxu3 %v16014_v1  ;;  %v3542_v37 = vpack.i.b16 %v3522_v0, %v3522_v0  ;;  %v3546_v6 = vpack.i.b16 %v3523_v46, %v3523_v46  ;;  %v3558_v10 = vunpack.c.h.bf16 %v15966_v2  ;;  %v10456_v49 = vor.u32 %v12409_v30, %v10453_v33  ;;  %v12570_v2 = vld [vmem:[%s19319_s2 + $0x81c] sm:$0xf]  ;;  %vm3653_vm7 = vmpackc.low %vm16034_vm5, %vm16034_vm5  ;;  %v11069_v40 = vld [vmem:[%s19319_s2 + $0x7fc] sm:$0xf0] }
 0x2c0   : > { %5987 = vmatpush.bf16.msra.mxu1 %v10484_v63  ;;  %6029 = vmatpush.bf16.msra.mxu3 %v11156_v44  ;;  %v11128_v21 = vor.u32 %v12577_v53, %v11125_v31  ;;  %v3645_v9 = vpack.c.bf16 %v3637_v13, %v3637_v13  ;;  %v3564_v55 = vunpack.c.l.bf16 %v16007_v51  ;;  %v3565_v56 = vunpack.c.h.bf16 %v16007_v51  ;;  %v16099_v29 = vld [vmem:[%s19319_s2 + $0x26c] sm:$0xf]  ;;  %v12430_v44 = vld [vmem:[%s19319_s2 + $0x3bc] sm:$0xf]  ;;  %v10537_v53 = vld [vmem:[%s19319_s2 + $0x3d4] sm:$0xf0] }
 0x2c1   : > { %v3544_v20 = vperm.slane %v3542_v37, 0  ;;  %v3548_v8 = vperm.slane %v3546_v6, 0  ;;  %vm16059_vm6 = vcmp.gt.f32.partialorder %v3602_v32, 0.0  ;;  %v10596_v27 = vor.u32 %v12444_v25, %v10593_v28  ;;  %v16109_v45 = vld [vmem:[%s19319_s2 + $0x7ac] sm:$0xf] }
 0x2c2   : > { %6004 = vmatpush.bf16.msra.mxu2 %v10624_v14  ;;  %6018 = vmatpush.bf16.msrb.mxu0 %v10848_v26  ;;  %v10820_v4 = vor.u32 %v12500_v15, %v10817_v54  ;;  %v3641_v60 = vpack.c.bf16 %v3630_v16, %v3630_v16  ;;  %v10428_v58 = vor.u32 %v12402_v22, %v10425_v36  ;;  %vm3649_vm8 = vmpackc.low %vm16059_vm6, %vm16059_vm6  ;;  %v12486_v31 = vld [vmem:[%s19319_s2 + $0x57c] sm:$0xf]  ;;  %v10761_v0 = vld [vmem:[%s19319_s2 + $0x594] sm:$0xf0] }
 0x2c3   : > { %v3571_v23 = vunpack.c.l.bf16 %v3544_v20  ;;  %v3572_v18 = vunpack.c.l.bf16 %v3548_v8  ;;  %v11100_v35 = vor.u32 %v12570_v2, %v11097_v17  ;;  %v3661_v32 = vsel %vm3653_vm7, %v15928_v7, %v3645_v9  ;;  %v16117_v7 = vld [vmem:[%s19319_s2 + $0x7c4] sm:$0xf0]  ;;  %v12381_v16 = vld [vmem:[%s19319_s2 + $0x234] sm:$0xf]  ;;  %v10341_v12 = vld [vmem:[%s19319_s2 + $0x24c] sm:$0xf0] }
 0x2c4   : > { %5988 = vmatpush.bf16.msra.mxu1 %v10456_v49  ;;  %6030 = vmatpush.bf16.msra.mxu3 %v11128_v21  ;;  %v10568_v51 = vor.u32 %v12437_v43, %v10565_v52  ;;  %v10792_v63 = vor.u32 %v12493_v41, %v10789_v39  ;;  %v3657_v33 = vsel %vm3649_vm8, %v15897_v62, %v3641_v60  ;;  %v4094_v14 = vunpack.c.l.b16 %v3661_v32  ;;  %v10509_v49 = vld [vmem:[%s19319_s2 + $0x39c] sm:$0xf0]  ;;  %v12479_v21 = vld [vmem:[%s19319_s2 + $0x544] sm:$0xf]  ;;  %v11013_v43 = vld [vmem:[%s19319_s2 + $0x78c] sm:$0xf0] }
 0x2c5   : > { %v3578_v11 = vadd.f32 %v3571_v23, %v3557_v5  ;;  %v3579_v50 = vadd.f32 %v3572_v18, %v3558_v10  ;;  %v3585_v61 = vadd.f32 %v3571_v23, %v3564_v55  ;;  %v3586_v42 = vadd.f32 %v3572_v18, %v3565_v56  ;;  %v12423_v10 = vld [vmem:[%s19319_s2 + $0x384] sm:$0xf]  ;;  %v10733_v56 = vld [vmem:[%s19319_s2 + $0x55c] sm:$0xf0]  ;;  %v10263_v52 = vld [vmem:[%s19319_s2 + $0x190] sm:$0xf] }
 0x2c6   : > { %6005 = vmatpush.bf16.msra.mxu2 %v10596_v27  ;;  %6019 = vmatpush.bf16.msrb.mxu0 %v10820_v4  ;;  %v10400_v46 = vor.u32 %v12395_v48, %v10397_v34  ;;  %v11072_v5 = vor.u32 %v12563_v59, %v11069_v40  ;;  %v10372_v62 = vor.u32 %v16099_v29, %v16104_v47  ;;  %v4087_v6 = vunpack.c.l.b16 %v3657_v33  ;;  %v12549_v4 = vld [vmem:[%s19319_s2 + $0x774] sm:$0xf]  ;;  %v12364_v41 = vld [vmem:[%s19319_s2 + $0x1a8] sm:$0xf0]  ;;  %v12374_v32 = vld [vmem:[%s19319_s2 + $0x1fc] sm:$0xf] }
 0x2c7   : > { %v3590_v30 = vpack.c.bf16 %v3579_v50, %v3578_v11  ;;  %v3594_v13 = vpack.c.bf16 %v3586_v42, %v3585_v61  ;;  %v11044_v24 = vor.u32 %v16109_v45, %v16117_v7  ;;  %v10540_v15 = vor.u32 %v12430_v44, %v10537_v53  ;;  %v10313_v29 = vld [vmem:[%s19319_s2 + $0x214] sm:$0xf0]  ;;  %v12542_v47 = vld [vmem:[%s19319_s2 + $0x73c] sm:$0xf]  ;;  %v12469_v22 = vld [vmem:[%s19319_s2 + $0x4f0] sm:$0xf0] }
 0x2c8   : > { %5989 = vmatpush.bf16.msra.mxu1 %v10428_v58  ;;  %6031 = vmatpush.bf16.msra.mxu3 %v11100_v35  ;;  %v10764_v54 = vor.u32 %v12486_v31, %v10761_v0  ;;  %v16170_v27 = vpack.c.b16 %v4094_v14, %v4087_v6  ;;  %v10512_v48 = vor.u32 %v12423_v10, %v10509_v49  ;;  %v12647_v58 = vld [vmem:[%s19319_s2 + $0xa84] sm:$0xf]  ;;  %v11405_v35 = vld [vmem:[%s19319_s2 + $0xa9c] sm:$0xf0]  ;;  %v10985_v45 = vld [vmem:[%s19319_s2 + $0x754] sm:$0xf0] }
 0x2c9   : > { %v3600_v26 = vunpack.c.l.bf16 %v3590_v30  ;;  %v3601_v25 = vunpack.c.h.bf16 %v3590_v30  ;;  %v3607_v28 = vunpack.c.l.bf16 %v3594_v13  ;;  %v3608_v37 = vunpack.c.h.bf16 %v3594_v13  ;;  %v12367_v31 = vld [vmem:[%s19319_s2 + $0x1c4] sm:$0xf]  ;;  %v10285_v0 = vld [vmem:[%s19319_s2 + $0x1dc] sm:$0xf0]  ;;  %v12640_v14 = vld [vmem:[%s19319_s2 + $0xa4c] sm:$0xf] }
 0x2ca   : > { %6006 = vmatpush.bf16.msra.mxu2 %v10568_v51  ;;  %6020 = vmatpush.bf16.msrb.mxu0 %v10792_v63  ;;  %v10736_v60 = vor.u32 %v12479_v21, %v10733_v56  ;;  %v10344_v39 = vor.u32 %v12381_v16, %v10341_v12  ;;  %v11016_v40 = vor.u32 %v12549_v4, %v11013_v43  ;;  %v12350_v6 = vld [vmem:[%s19319_s2 + $0x138] sm:$0xf0]  ;;  %v12633_v10 = vld [vmem:[%s19319_s2 + $0xa14] sm:$0xf]  ;;  %v11349_v49 = vld [vmem:[%s19319_s2 + $0xa2c] sm:$0xf0] }
 0x2cb   : > { %vm16148_vm9 = vcmp.gt.f32.partialorder %v3600_v26, 0.0  ;;  %vm16152_vm10 = vcmp.gt.f32.partialorder %v3601_v25, 0.0  ;;  %vm16156_vm11 = vcmp.gt.f32.partialorder %v3607_v28, 0.0  ;;  %vm16160_vm12 = vcmp.gt.f32.partialorder %v3608_v37, 0.0  ;;  %v10683_v21 = vld [vmem:[%s19319_s2 + $0x4d8] sm:$0xf] }
 0x2cc   : > { %5990 = vmatpush.bf16.msra.mxu1 %v10400_v46  ;;  %6032 = vmatpush.bf16.msra.mxu3 %v11072_v5  ;;  %v3628_v2 = vmul.f32 0.20019531, %v3600_v26  ;;  %v3629_v17 = vmul.f32 0.20019531, %v3601_v25  ;;  %v3635_v20 = vmul.f32 0.20019531, %v3607_v28  ;;  %v3636_v8 = vmul.f32 0.20019531, %v3608_v37  ;;  %vm3648_vm13 = vmpackc.low %vm16152_vm10, %vm16148_vm9  ;;  %v12535_v46 = vld [vmem:[%s19319_s2 + $0x704] sm:$0xf] }
 0x2cd   : > { %vm3652_vm14 = vmpackc.low %vm16160_vm12, %vm16156_vm11  ;;  %v10264_v7 = vor.u32 %v12364_v41, %v10263_v52  ;;  %v11408_v51 = vor.u32 %v12647_v58, %v11405_v35  ;;  %v10316_v33 = vor.u32 %v12374_v32, %v10313_v29  ;;  %v10988_v53 = vor.u32 %v12542_v47, %v10985_v45  ;;  %v10957_v5 = vld [vmem:[%s19319_s2 + $0x71c] sm:$0xf0]  ;;  %v10711_v26 = vld [vmem:[%s19319_s2 + $0x510] sm:$0xf] }
 0x2ce   : > { %v3640_v23 = vpack.c.bf16 %v3629_v17, %v3628_v2  ;;  %v3644_v18 = vpack.c.bf16 %v3636_v8, %v3635_v20  ;;  %6007 = vmatpush.bf16.msra.mxu2 %v10540_v15  ;;  %6021 = vmatpush.bf16.msrb.mxu0 %v10764_v54  ;;  %v12476_v25 = vld [vmem:[%s19319_s2 + $0x528] sm:$0xf0]  ;;  %v10207_v37 = vld [vmem:[%s19319_s2 + $0x120] sm:$0xf]  ;;  %v10960_v16 = vor.u32 %v12535_v46, %v10957_v5  ;;  %v10179_v9 = vld [vmem:[%s19319_s2 + $0xe8] sm:$0xf] }
 0x2cf   : > { %11429 = vmatmul.msk.bf16.vlgmr.msrb.gmra.mxu1 %vm2557_vm0, %v16170_v27  ;;  %5981 = vmatmul.bf16.vlgmr.msrb.gmra.mxu3 %v15930_v19  ;;  %v10712_v54 = vor.u32 %v12476_v25, %v10711_v26  ;;  %v10208_v36 = vor.u32 %v12350_v6, %v10207_v37  ;;  %v12343_v55 = vld [vmem:[%s19319_s2 + $0x100] sm:$0xf0]  ;;  %v11352_v56 = vor.u32 %v12633_v10, %v11349_v49  ;;  %v10487_v17 = vld [vmem:[%s19319_s2 + $0x350] sm:$0xf]  ;;  %v12420_v20 = vld [vmem:[%s19319_s2 + $0x368] sm:$0xf0] }
 0x2d0   : > { %v3656_v34 = vsel %vm3648_vm13, %v3590_v30, %v3640_v23  ;;  %v3660_v59 = vsel %vm3652_vm14, %v3594_v13, %v3644_v18  ;;  %5991 = vmatpush.bf16.msra.mxu1 %v10372_v62  ;;  %6033 = vmatpush.bf16.msra.mxu3 %v11044_v24  ;;  %v10235_v30 = vld [vmem:[%s19319_s2 + $0x158] sm:$0xf]  ;;  %v12357_v13 = vld [vmem:[%s19319_s2 + $0x170] sm:$0xf0]  ;;  %v11377_v62 = vld [vmem:[%s19319_s2 + $0xa64] sm:$0xf0]  ;;  %v10288_v24 = vor.u32 %v12367_v31, %v10285_v0 }
 0x2d1   : > { %v4085_v11 = vunpack.c.l.b16 %v3656_v34  ;;  %v4092_v50 = vunpack.c.l.b16 %v3660_v59  ;;  %v4086_v61 = vunpack.c.h.b16 %v3656_v34  ;;  %v4093_v42 = vunpack.c.h.b16 %v3660_v59  ;;  %v12626_v12 = vld [vmem:[%s19319_s2 + $0x9dc] sm:$0xf]  ;;  %v11321_v4 = vld [vmem:[%s19319_s2 + $0x9f4] sm:$0xf0]  ;;  %v10655_v43 = vld [vmem:[%s19319_s2 + $0x4a0] sm:$0xf] }
 0x2d2   : > { %6008 = vmatpush.bf16.msra.mxu2 %v10512_v48  ;;  %6022 = vmatpush.bf16.msrb.mxu0 %v10736_v60  ;;  %v10236_v28 = vor.u32 %v12357_v13, %v10235_v30  ;;  %v11380_v15 = vor.u32 %v12640_v14, %v11377_v62  ;;  %v10684_v2 = vor.u32 %v12469_v22, %v10683_v21  ;;  %v12462_v48 = vld [vmem:[%s19319_s2 + $0x4b8] sm:$0xf0]  ;;  %v10151_v23 = vld [vmem:[%s19319_s2 + $0xb0] sm:$0xf]  ;;  %v12336_v18 = vld [vmem:[%s19319_s2 + $0xc8] sm:$0xf0] }
 0x2d3   : > { %v16213_v63 = vpack.c.b16 %v4092_v50, %v4085_v11  ;;  %v16215_v44 = vpack.c.b16 %v4093_v42, %v4086_v61  ;;  %v10180_v8 = vor.u32 %v12343_v55, %v10179_v9  ;;  %v10488_v60 = vor.u32 %v12420_v20, %v10487_v17  ;;  %v10459_v52 = vld [vmem:[%s19319_s2 + $0x318] sm:$0xf]  ;;  %v12413_v41 = vld [vmem:[%s19319_s2 + $0x330] sm:$0xf0]  ;;  %v12619_v35 = vld [vmem:[%s19319_s2 + $0x9a4] sm:$0xf] }
 0x2d4   : > { %5992 = vmatpush.bf16.msra.mxu1 %v10344_v39  ;;  %6034 = vmatpush.bf16.msra.mxu3 %v11016_v40  ;;  %v11324_v39 = vor.u32 %v12626_v12, %v11321_v4  ;;  %v10656_v58 = vor.u32 %v12462_v48, %v10655_v43  ;;  %v11293_v34 = vld [vmem:[%s19319_s2 + $0x9bc] sm:$0xf0]  ;;  %v10627_v59 = vld [vmem:[%s19319_s2 + $0x468] sm:$0xf]  ;;  %v10152_v40 = vor.u32 %v12336_v18, %v10151_v23  ;;  %v12455_v32 = vld [vmem:[%s19319_s2 + $0x480] sm:$0xf0] }
 0x2d5   : > { %5939 = vmatmul.bf16.vlgmr.msrb.gmra.mxu2 %v16213_v63  ;;  %5953 = vmatmul.bf16.vlgmr.msra.gmra.mxu0 %v16215_v44  ;;  %v10123_v11 = vld [vmem:[%s19319_s2 + $0x78] sm:$0xf]  ;;  %v12329_v50 = vld [vmem:[%s19319_s2 + $0x90] sm:$0xf0]  ;;  %v10460_v61 = vor.u32 %v12413_v41, %v10459_v52  ;;  %v10431_v42 = vld [vmem:[%s19319_s2 + $0x2e0] sm:$0xf]  ;;  %v11296_v47 = vor.u32 %v12619_v35, %v11293_v34  ;;  %v10628_v45 = vor.u32 %v12455_v32, %v10627_v59 }
 0x2d6   : > { %6071 = vmatpush.bf16.msra.mxu0 %v10264_v7  ;;  %6064 = vmatpush.bf16.msrb.mxu2 %v11408_v51  ;;  %v12406_v29 = vld [vmem:[%s19319_s2 + $0x2f8] sm:$0xf0]  ;;  %v12612_v7 = vld [vmem:[%s19319_s2 + $0x96c] sm:$0xf]  ;;  %v11265_v51 = vld [vmem:[%s19319_s2 + $0x984] sm:$0xf0]  ;;  %v10124_v13 = vor.u32 %v12329_v50, %v10123_v11 }
 0x2d7   : > { %v10599_v30 = vld [vmem:[%s19319_s2 + $0x430] sm:$0xf]  ;;  %v12322_v31 = vld [vmem:[%s19319_s2 + $0x58] sm:$0xf0]  ;;  %v10432_v0 = vor.u32 %v12406_v29, %v10431_v42  ;;  %v10403_v46 = vld [vmem:[%s19319_s2 + $0x2a8] sm:$0xf]  ;;  %v11268_v14 = vor.u32 %v12612_v7, %v11265_v51 }
 0x2d8   : > { %5993 = vmatpush.bf16.msra.mxu1 %v10316_v33  ;;  %6035 = vmatpush.bf16.msra.mxu3 %v10988_v53  ;;  %v12448_v33 = vld [vmem:[%s19319_s2 + $0x448] sm:$0xf0]  ;;  %v10095_v53 = vld [vmem:[%s19319_s2 + $0x40] sm:$0xf]  ;;  %v12399_v5 = vld [vmem:[%s19319_s2 + $0x2c0] sm:$0xf0] }
 0x2d9   : > { %v10600_v62 = vor.u32 %v12448_v33, %v10599_v30  ;;  %v12605_v26 = vld [vmem:[%s19319_s2 + $0x934] sm:$0xf]  ;;  %v11237_v25 = vld [vmem:[%s19319_s2 + $0x94c] sm:$0xf0]  ;;  %v10096_v37 = vor.u32 %v12322_v31, %v10095_v53  ;;  %v10404_v10 = vor.u32 %v12399_v5, %v10403_v46  ;;  %v12392_v22 = vld [vmem:[%s19319_s2 + $0x288] sm:$0xf0] }
 0x2da   : > { %6072 = vmatpush.bf16.msra.mxu0 %v10236_v28  ;;  %v10571_v28 = vld [vmem:[%s19319_s2 + $0x3f8] sm:$0xf]  ;;  %v12441_v6 = vld [vmem:[%s19319_s2 + $0x410] sm:$0xf0]  ;;  %v10375_v49 = vld [vmem:[%s19319_s2 + $0x270] sm:$0xf]  ;;  %v11240_v21 = vor.u32 %v12605_v26, %v11237_v25 }
 0x2db   : > { %v12598_v9 = vld [vmem:[%s19319_s2 + $0x8fc] sm:$0xf]  ;;  %v11209_v55 = vld [vmem:[%s19319_s2 + $0x914] sm:$0xf0]  ;;  %v12581_v12 = vld [vmem:[%s19319_s2 + $0x870] sm:$0xf0]  ;;  %v10376_v4 = vor.u32 %v12392_v22, %v10375_v49 }
 0x2dc   : > { %5994 = vmatpush.bf16.msra.mxu1 %v10288_v24  ;;  %6036 = vmatpush.bf16.msra.mxu3 %v10960_v16  ;;  %v10067_v24 = vld [vmem:[%s19319_s2 + $0x8] sm:$0xf]  ;;  %v12315_v16 = vld [vmem:[%s19319_s2 + $0x20] sm:$0xf0]  ;;  %v12434_v17 = vld [vmem:[%s19319_s2 + $0x3d8] sm:$0xf0]  ;;  %v11212_v23 = vor.u32 %v12598_v9, %v11209_v55 }
 0x2dd   : > { %v10347_v43 = vld [vmem:[%s19319_s2 + $0x238] sm:$0xf]  ;;  %v12385_v48 = vld [vmem:[%s19319_s2 + $0x250] sm:$0xf0]  ;;  %v12591_v18 = vld [vmem:[%s19319_s2 + $0x8c4] sm:$0xf] }
 0x2de   : > { %6073 = vmatpush.bf16.msra.mxu0 %v10208_v36  ;;  %v10572_v36 = vor.u32 %v12441_v6, %v10571_v28  ;;  %v11181_v52 = vld [vmem:[%s19319_s2 + $0x8dc] sm:$0xf0]  ;;  %v10515_v41 = vld [vmem:[%s19319_s2 + $0x388] sm:$0xf]  ;;  %v12532_v35 = vld [vmem:[%s19319_s2 + $0x6e8] sm:$0xf0]  ;;  %v10348_v50 = vor.u32 %v12385_v48, %v10347_v43 }
 0x2df   : > { %5995 = vmatmul.bf16.vlgmr.msra.gmra.mxu1 %v15932_v57  ;;  %6037 = vmatmul.bf16.vlgmr.msra.gmra.mxu3 %v16213_v63  ;;  %v11411_v34 = vld [vmem:[%s19319_s2 + $0xa88] sm:$0xf]  ;;  %v11103_v32 = vld [vmem:[%s19319_s2 + $0x820] sm:$0xf]  ;;  %v12574_v11 = vld [vmem:[%s19319_s2 + $0x838] sm:$0xf0] }
 0x2e0   : > { %6043 = vmatpush.bf16.msrb.mxu1 %v11380_v15  ;;  %6099 = vmatpush.bf16.msrb.mxu3 %v10712_v54  ;;  %v11159_v15 = vld [vmem:[%s19319_s2 + $0x890] sm:$0xf]  ;;  %v12588_v54 = vld [vmem:[%s19319_s2 + $0x8a8] sm:$0xf0]  ;;  %v10319_v42 = vld [vmem:[%s19319_s2 + $0x200] sm:$0xf]  ;;  %v11104_v53 = vor.u32 %v12574_v11, %v11103_v32 }
 0x2e1   : > { %v11160_v20 = vor.u32 %v12588_v54, %v11159_v15  ;;  %v12378_v29 = vld [vmem:[%s19319_s2 + $0x218] sm:$0xf0]  ;;  %v12417_v7 = vld [vmem:[%s19319_s2 + $0x354] sm:$0xf]  ;;  %v10489_v30 = vld [vmem:[%s19319_s2 + $0x36c] sm:$0xf0] }
 0x2e2   : > { %6074 = vmatpush.bf16.msra.mxu0 %v10180_v8  ;;  %v11131_v8 = vld [vmem:[%s19319_s2 + $0x858] sm:$0xf]  ;;  %v12525_v33 = vld [vmem:[%s19319_s2 + $0x6b0] sm:$0xf0]  ;;  %v11075_v31 = vld [vmem:[%s19319_s2 + $0x7e8] sm:$0xf]  ;;  %v10320_v46 = vor.u32 %v12378_v29, %v10319_v42  ;;  %v10492_v25 = vor.u32 %v12417_v7, %v10489_v30 }
 0x2e3   : > { %v11132_v59 = vor.u32 %v12581_v12, %v11131_v8  ;;  %v10291_v5 = vld [vmem:[%s19319_s2 + $0x1c8] sm:$0xf]  ;;  %v12644_v26 = vld [vmem:[%s19319_s2 + $0xa68] sm:$0xf0]  ;;  %v10461_v6 = vld [vmem:[%s19319_s2 + $0x334] sm:$0xf0] }
 0x2e4   : > { %6044 = vmatpush.bf16.msrb.mxu1 %v11352_v56  ;;  %6100 = vmatpush.bf16.msrb.mxu3 %v10684_v2  ;;  %v10068_v56 = vor.u32 %v12315_v16, %v10067_v24  ;;  %v10543_v2 = vld [vmem:[%s19319_s2 + $0x3c0] sm:$0xf]  ;;  %v12518_v15 = vld [vmem:[%s19319_s2 + $0x678] sm:$0xf0]  ;;  %v11047_v54 = vld [vmem:[%s19319_s2 + $0x7b0] sm:$0xf] }
 0x2e5   : > { %6009 = vmatmul.bf16.vlgmr.msra.gmra.mxu2 %v16012_v38  ;;  %6023 = vmatmul.bf16.vlgmr.msrb.gmra.mxu0 %v16014_v1  ;;  %v10879_v24 = vld [vmem:[%s19319_s2 + $0x660] sm:$0xf]  ;;  %v11355_v22 = vld [vmem:[%s19319_s2 + $0xa18] sm:$0xf]  ;;  %v12511_v8 = vld [vmem:[%s19319_s2 + $0x640] sm:$0xf0] }
 0x2e6   : > { %6085 = vmatpush.bf16.msra.mxu2 %v10488_v60  ;;  %6075 = vmatpush.bf16.msra.mxu0 %v10152_v40  ;;  %v10544_v60 = vor.u32 %v12434_v17, %v10543_v2  ;;  %v12651_v40 = vld [vmem:[%s19319_s2 + $0xaa0] sm:$0xf0]  ;;  %v10880_v55 = vor.u32 %v12518_v15, %v10879_v24  ;;  %v10433_v2 = vld [vmem:[%s19319_s2 + $0x2fc] sm:$0xf0]  ;;  %v10851_v17 = vld [vmem:[%s19319_s2 + $0x628] sm:$0xf] }
 0x2e7   : > { %v11412_v51 = vor.u32 %v12651_v40, %v11411_v34  ;;  %v11019_v12 = vld [vmem:[%s19319_s2 + $0x778] sm:$0xf]  ;;  %v11327_v48 = vld [vmem:[%s19319_s2 + $0x9e0] sm:$0xf]  ;;  %v11299_v32 = vld [vmem:[%s19319_s2 + $0x9a8] sm:$0xf] }
 0x2e8   : > { %6045 = vmatpush.bf16.msrb.mxu1 %v11324_v39  ;;  %6101 = vmatpush.bf16.msrb.mxu3 %v10656_v58  ;;  %v12427_v39 = vld [vmem:[%s19319_s2 + $0x3a0] sm:$0xf0]  ;;  %v10935_v58 = vld [vmem:[%s19319_s2 + $0x6d0] sm:$0xf]  ;;  %v10991_v34 = vld [vmem:[%s19319_s2 + $0x740] sm:$0xf] }
 0x2e9   : > { %v12623_v11 = vld [vmem:[%s19319_s2 + $0x9c0] sm:$0xf0]  ;;  %v12389_v42 = vld [vmem:[%s19319_s2 + $0x274] sm:$0xf]  ;;  %v10377_v29 = vld [vmem:[%s19319_s2 + $0x28c] sm:$0xf0] }
 0x2ea   : > { %6086 = vmatpush.bf16.msra.mxu2 %v10460_v61  ;;  %6076 = vmatpush.bf16.msra.mxu0 %v10124_v13  ;;  %v11184_v61 = vor.u32 %v12591_v18, %v11181_v52  ;;  %v10907_v13 = vld [vmem:[%s19319_s2 + $0x698] sm:$0xf]  ;;  %v12396_v52 = vld [vmem:[%s19319_s2 + $0x2ac] sm:$0xf]  ;;  %v12497_v7 = vld [vmem:[%s19319_s2 + $0x5d0] sm:$0xf0] }
 0x2eb   : > { %v10908_v28 = vor.u32 %v12525_v33, %v10907_v13  ;;  %v12539_v30 = vld [vmem:[%s19319_s2 + $0x720] sm:$0xf0]  ;;  %v12473_v13 = vld [vmem:[%s19319_s2 + $0x514] sm:$0xf]  ;;  %v10713_v33 = vld [vmem:[%s19319_s2 + $0x52c] sm:$0xf0] }
 0x2ec   : > { %6046 = vmatpush.bf16.msrb.mxu1 %v11296_v47  ;;  %6102 = vmatpush.bf16.msrb.mxu3 %v10628_v45  ;;  %v10516_v47 = vor.u32 %v12427_v39, %v10515_v41  ;;  %v10936_v45 = vor.u32 %v12532_v35, %v10935_v58  ;;  %v10405_v41 = vld [vmem:[%s19319_s2 + $0x2c4] sm:$0xf0]  ;;  %v10823_v39 = vld [vmem:[%s19319_s2 + $0x5f0] sm:$0xf]  ;;  %v12504_v35 = vld [vmem:[%s19319_s2 + $0x608] sm:$0xf0] }
 0x2ed   : > { %v10685_v24 = vld [vmem:[%s19319_s2 + $0x4f4] sm:$0xf0] }
 0x2ee   : > { %6087 = vmatpush.bf16.msra.mxu2 %v10432_v0  ;;  %6077 = vmatpush.bf16.msra.mxu0 %v10096_v37  ;;  %v12567_v0 = vld [vmem:[%s19319_s2 + $0x800] sm:$0xf0]  ;;  %v12410_v37 = vld [vmem:[%s19319_s2 + $0x31c] sm:$0xf]  ;;  %v11243_v15 = vld [vmem:[%s19319_s2 + $0x938] sm:$0xf] }
 0x2ef   : > { %v11076_v16 = vor.u32 %v12567_v0, %v11075_v31  ;;  %v10464_v9 = vor.u32 %v12410_v37, %v10461_v6  ;;  %v11271_v31 = vld [vmem:[%s19319_s2 + $0x970] sm:$0xf]  ;;  %v10380_v0 = vor.u32 %v12389_v42, %v10377_v29  ;;  %v10716_v37 = vor.u32 %v12473_v13, %v10713_v33  ;;  %v12466_v6 = vld [vmem:[%s19319_s2 + $0x4dc] sm:$0xf] }
 0x2f0   : > { %6047 = vmatpush.bf16.msrb.mxu1 %v11268_v14  ;;  %6103 = vmatpush.bf16.msrb.mxu3 %v10600_v62  ;;  %v12371_v14 = vld [vmem:[%s19319_s2 + $0x1e0] sm:$0xf0]  ;;  %v11383_v62 = vld [vmem:[%s19319_s2 + $0xa50] sm:$0xf] }
 0x2f1   : > { %v10292_v49 = vor.u32 %v12371_v14, %v10291_v5  ;;  %v12382_v14 = vld [vmem:[%s19319_s2 + $0x23c] sm:$0xf]  ;;  %v10937_v42 = vld [vmem:[%s19319_s2 + $0x6ec] sm:$0xf0] }
 0x2f2   : > { %6088 = vmatpush.bf16.msra.mxu2 %v10404_v10  ;;  %6078 = vmatpush.bf16.msra.mxu0 %v10068_v56  ;;  %v12560_v10 = vld [vmem:[%s19319_s2 + $0x7c8] sm:$0xf0]  ;;  %v12403_v56 = vld [vmem:[%s19319_s2 + $0x2e4] sm:$0xf] }
 0x2f3   : > { %v10436_v18 = vor.u32 %v12403_v56, %v10433_v2  ;;  %v10688_v56 = vor.u32 %v12466_v6, %v10685_v24  ;;  %v10265_v2 = vld [vmem:[%s19319_s2 + $0x1ac] sm:$0xf0]  ;;  %v12438_v24 = vld [vmem:[%s19319_s2 + $0x3fc] sm:$0xf] }
 0x2f4   : > { %6048 = vmatpush.bf16.msrb.mxu1 %v11240_v21  ;;  %6104 = vmatpush.bf16.msrb.mxu3 %v10572_v36  ;;  %v11384_v21 = vor.u32 %v12644_v26, %v11383_v62  ;;  %v12637_v36 = vld [vmem:[%s19319_s2 + $0xa30] sm:$0xf0]  ;;  %v10349_v62 = vld [vmem:[%s19319_s2 + $0x254] sm:$0xf0] }
 0x2f5   : > { %11430 = vmatmul.msk.bf16.vlgmr.msrb.gmra.mxu2 %vm2557_vm0, %v16170_v27  ;;  %6079 = vmatmul.bf16.vlgmr.msra.gmra.mxu0 %v15930_v19  ;;  %v11356_v43 = vor.u32 %v12637_v36, %v11355_v22  ;;  %v10321_v22 = vld [vmem:[%s19319_s2 + $0x21c] sm:$0xf0]  ;;  %v10739_v36 = vld [vmem:[%s19319_s2 + $0x548] sm:$0xf] }
 0x2f6   : > { %6127 = vmatpush.bf16.msrb.mxu0 %v11160_v20  ;;  %6089 = vmatpush.bf16.msra.mxu2 %v10376_v4  ;;  %v11048_v20 = vor.u32 %v12560_v10, %v11047_v54  ;;  %v12553_v4 = vld [vmem:[%s19319_s2 + $0x790] sm:$0xf0]  ;;  %v10352_v54 = vor.u32 %v12382_v14, %v10349_v62 }
 0x2f7   : > { %v11020_v58 = vor.u32 %v12553_v4, %v11019_v12  ;;  %v12609_v10 = vld [vmem:[%s19319_s2 + $0x950] sm:$0xf0]  ;;  %v11215_v4 = vld [vmem:[%s19319_s2 + $0x900] sm:$0xf] }
 0x2f8   : > { %6049 = vmatpush.bf16.msrb.mxu1 %v11212_v23  ;;  %6105 = vmatpush.bf16.msrb.mxu3 %v10544_v60  ;;  %v12630_v23 = vld [vmem:[%s19319_s2 + $0x9f8] sm:$0xf0]  ;;  %v10852_v60 = vor.u32 %v12511_v8, %v10851_v17  ;;  %v12459_v17 = vld [vmem:[%s19319_s2 + $0x4a4] sm:$0xf]  ;;  %v11244_v8 = vor.u32 %v12609_v10, %v11243_v15  ;;  %v10881_v10 = vld [vmem:[%s19319_s2 + $0x67c] sm:$0xf0] }
 0x2f9   : > { %v11328_v40 = vor.u32 %v12630_v23, %v11327_v48 }
 0x2fa   : > { %6128 = vmatpush.bf16.msrb.mxu0 %v11132_v59  ;;  %6090 = vmatpush.bf16.msra.mxu2 %v10348_v50  ;;  %v12546_v59 = vld [vmem:[%s19319_s2 + $0x758] sm:$0xf0]  ;;  %v10408_v50 = vor.u32 %v12396_v52, %v10405_v41  ;;  %v12641_v52 = vld [vmem:[%s19319_s2 + $0xa54] sm:$0xf] }
 0x2fc   : > { %6050 = vmatpush.bf16.msrb.mxu1 %v11184_v61  ;;  %6106 = vmatpush.bf16.msrb.mxu3 %v10516_v47  ;;  %v10824_v61 = vor.u32 %v12504_v35, %v10823_v39  ;;  %v10795_v47 = vld [vmem:[%s19319_s2 + $0x5b8] sm:$0xf]  ;;  %v11385_v39 = vld [vmem:[%s19319_s2 + $0xa6c] sm:$0xf0] }
 0x2fd   : > { %v10796_v5 = vor.u32 %v12497_v7, %v10795_v47  ;;  %v10237_v35 = vld [vmem:[%s19319_s2 + $0x174] sm:$0xf0]  ;;  %v11388_v29 = vor.u32 %v12641_v52, %v11385_v39  ;;  %v10517_v39 = vld [vmem:[%s19319_s2 + $0x3a4] sm:$0xf0] }
 0x2fe   : > { %6129 = vmatpush.bf16.msrb.mxu0 %v11104_v53  ;;  %6091 = vmatpush.bf16.msra.mxu2 %v10320_v46  ;;  %v11300_v53 = vor.u32 %v12623_v11, %v11299_v32  ;;  %v12616_v46 = vld [vmem:[%s19319_s2 + $0x988] sm:$0xf0]  ;;  %v11187_v32 = vld [vmem:[%s19319_s2 + $0x8c8] sm:$0xf]  ;;  %v12595_v11 = vld [vmem:[%s19319_s2 + $0x8e0] sm:$0xf0] }
 0x2ff   : > { %6051 = vmatmul.bf16.vlgmr.msrb.gmra.mxu1 %v16215_v44  ;;  %6107 = vmatmul.bf16.vlgmr.msrb.gmra.mxu3 %v16012_v38  ;;  %v11357_v7 = vld [vmem:[%s19319_s2 + $0xa34] sm:$0xf0]  ;;  %v11188_v33 = vor.u32 %v12595_v11, %v11187_v32 }
 0x300   : > { %6113 = vmatpush.bf16.msra.mxu1 %v10936_v45  ;;  %6162 = vmatpush.bf16.msra.mxu3 %v11412_v51  ;;  %v10992_v45 = vor.u32 %v12546_v59, %v10991_v34  ;;  %v10963_v51 = vld [vmem:[%s19319_s2 + $0x708] sm:$0xf]  ;;  %v12452_v59 = vld [vmem:[%s19319_s2 + $0x46c] sm:$0xf] }
 0x301   : > { %v10964_v26 = vor.u32 %v12539_v30, %v10963_v51  ;;  %v12347_v51 = vld [vmem:[%s19319_s2 + $0x124] sm:$0xf]  ;;  %v10209_v30 = vld [vmem:[%s19319_s2 + $0x13c] sm:$0xf0] }
 0x302   : > { %6130 = vmatpush.bf16.msrb.mxu0 %v11076_v16  ;;  %6092 = vmatpush.bf16.msra.mxu2 %v10292_v49  ;;  %v11272_v16 = vor.u32 %v12616_v46, %v11271_v31  ;;  %v10601_v31 = vld [vmem:[%s19319_s2 + $0x44c] sm:$0xf0]  ;;  %v12522_v46 = vld [vmem:[%s19319_s2 + $0x69c] sm:$0xf]  ;;  %v10212_v62 = vor.u32 %v12347_v51, %v10209_v30 }
 0x304   : > { %6183 = vmatpush.bf16.msrb.mxu3 %v10492_v25  ;;  %6114 = vmatpush.bf16.msra.mxu1 %v10908_v28  ;;  %v10767_v25 = vld [vmem:[%s19319_s2 + $0x580] sm:$0xf]  ;;  %v12490_v28 = vld [vmem:[%s19319_s2 + $0x598] sm:$0xf0] }
 0x305   : > { %6093 = vmatmul.bf16.vlgmr.msra.gmra.mxu2 %v15932_v57  ;;  %v10768_v49 = vor.u32 %v12490_v28, %v10767_v25  ;;  %v11329_v25 = vld [vmem:[%s19319_s2 + $0x9fc] sm:$0xf0]  ;;  %v12340_v28 = vld [vmem:[%s19319_s2 + $0xec] sm:$0xf] }
 0x306   : > { %6141 = vmatpush.bf16.msrb.mxu2 %v11384_v21  ;;  %6131 = vmatpush.bf16.msrb.mxu0 %v11048_v20  ;;  %v12375_v21 = vld [vmem:[%s19319_s2 + $0x204] sm:$0xf]  ;;  %v10657_v20 = vld [vmem:[%s19319_s2 + $0x4bc] sm:$0xf0] }
 0x307   : > { %v10324_v12 = vor.u32 %v12375_v21, %v10321_v22  ;;  %v10660_v41 = vor.u32 %v12459_v17, %v10657_v20  ;;  %v12620_v22 = vld [vmem:[%s19319_s2 + $0x9ac] sm:$0xf]  ;;  %v10545_v17 = vld [vmem:[%s19319_s2 + $0x3dc] sm:$0xf0] }
 0x308   : > { %6184 = vmatpush.bf16.msrb.mxu3 %v10464_v9  ;;  %6115 = vmatpush.bf16.msra.mxu1 %v10880_v55  ;;  %v12483_v9 = vld [vmem:[%s19319_s2 + $0x560] sm:$0xf0]  ;;  %v12361_v55 = vld [vmem:[%s19319_s2 + $0x194] sm:$0xf] }
 0x309   : > { %v10740_v48 = vor.u32 %v12483_v9, %v10739_v36  ;;  %v10268_v23 = vor.u32 %v12361_v55, %v10265_v2  ;;  %v11301_v36 = vld [vmem:[%s19319_s2 + $0x9c4] sm:$0xf0]  ;;  %v12333_v9 = vld [vmem:[%s19319_s2 + $0xb4] sm:$0xf]  ;;  %v10153_v55 = vld [vmem:[%s19319_s2 + $0xcc] sm:$0xf0] }
 0x30a   : > { %6142 = vmatpush.bf16.msrb.mxu2 %v11356_v43  ;;  %6132 = vmatpush.bf16.msrb.mxu0 %v11020_v58  ;;  %v12602_v43 = vld [vmem:[%s19319_s2 + $0x918] sm:$0xf0]  ;;  %v12431_v2 = vld [vmem:[%s19319_s2 + $0x3c4] sm:$0xf] }
 0x30b   : > { %v12354_v58 = vld [vmem:[%s19319_s2 + $0x15c] sm:$0xf]  ;;  %v11216_v34 = vor.u32 %v12602_v43, %v11215_v4  ;;  %v11304_v4 = vor.u32 %v12620_v22, %v11301_v36  ;;  %v10156_v43 = vor.u32 %v12333_v9, %v10153_v55  ;;  %v10548_v52 = vor.u32 %v12431_v2, %v10545_v17  ;;  %v12592_v36 = vld [vmem:[%s19319_s2 + $0x8cc] sm:$0xf]  ;;  %v11189_v9 = vld [vmem:[%s19319_s2 + $0x8e4] sm:$0xf0] }
 0x30c   : > { %6185 = vmatpush.bf16.msrb.mxu3 %v10436_v18  ;;  %6116 = vmatpush.bf16.msra.mxu1 %v10852_v60  ;;  %v12368_v18 = vld [vmem:[%s19319_s2 + $0x1cc] sm:$0xf]  ;;  %v10293_v60 = vld [vmem:[%s19319_s2 + $0x1e4] sm:$0xf0]  ;;  %v10240_v47 = vor.u32 %v12354_v58, %v10237_v35  ;;  %v10943_v55 = vld [vmem:[%s19319_s2 + $0x6d8] sm:$0xf] }
 0x30d   : > { %v12648_v35 = vld [vmem:[%s19319_s2 + $0xa8c] sm:$0xf]  ;;  %v12578_v2 = vld [vmem:[%s19319_s2 + $0x85c] sm:$0xf]  ;;  %v11133_v17 = vld [vmem:[%s19319_s2 + $0x874] sm:$0xf0] }
 0x30e   : > { %6143 = vmatpush.bf16.msrb.mxu2 %v11328_v40  ;;  %6133 = vmatpush.bf16.msrb.mxu0 %v10992_v45  ;;  %v10629_v40 = vld [vmem:[%s19319_s2 + $0x484] sm:$0xf0]  ;;  %v12634_v45 = vld [vmem:[%s19319_s2 + $0xa1c] sm:$0xf] }
 0x30f   : > { %11431 = vmatmul.msk.bf16.vlgmr.msra.gmra.mxu3 %vm2557_vm0, %v16170_v27  ;;  %v10632_v13 = vor.u32 %v12452_v59, %v10629_v40  ;;  %v11360_v14 = vor.u32 %v12634_v45, %v11357_v7  ;;  %v12501_v59 = vld [vmem:[%s19319_s2 + $0x5f4] sm:$0xf]  ;;  %v10825_v40 = vld [vmem:[%s19319_s2 + $0x60c] sm:$0xf0]  ;;  %v12494_v45 = vld [vmem:[%s19319_s2 + $0x5bc] sm:$0xf] }
 0x310   : > { %6186 = vmatpush.bf16.msrb.mxu3 %v10408_v50  ;;  %6117 = vmatpush.bf16.msra.mxu1 %v10824_v61  ;;  %v10296_v50 = vor.u32 %v12368_v18, %v10293_v60  ;;  %v12529_v61 = vld [vmem:[%s19319_s2 + $0x6d4] sm:$0xf]  ;;  %v12326_v18 = vld [vmem:[%s19319_s2 + $0x7c] sm:$0xf]  ;;  %v10125_v60 = vld [vmem:[%s19319_s2 + $0x94] sm:$0xf0]  ;;  %v10828_v30 = vor.u32 %v12501_v59, %v10825_v40 }
 0x311   : > { %v10128_v11 = vor.u32 %v12326_v18, %v10125_v60  ;;  %v10797_v7 = vld [vmem:[%s19319_s2 + $0x5d4] sm:$0xf0]  ;;  %v11105_v59 = vld [vmem:[%s19319_s2 + $0x83c] sm:$0xf0] }
 0x312   : > { %6144 = vmatpush.bf16.msrb.mxu2 %v11300_v53  ;;  %6134 = vmatpush.bf16.msrb.mxu0 %v10964_v26  ;;  %v12445_v53 = vld [vmem:[%s19319_s2 + $0x434] sm:$0xf]  ;;  %v12627_v26 = vld [vmem:[%s19319_s2 + $0x9e4] sm:$0xf]  ;;  %v10271_v60 = vld [vmem:[%s19319_s2 + $0x198] sm:$0xf] }
 0x313   : > { %v10604_v6 = vor.u32 %v12445_v53, %v10601_v31  ;;  %v12421_v53 = vld [vmem:[%s19319_s2 + $0x370] sm:$0xf0] }
 0x314   : > { %6187 = vmatpush.bf16.msrb.mxu3 %v10380_v0  ;;  %6118 = vmatpush.bf16.msra.mxu1 %v10796_v5  ;;  %v10940_v0 = vor.u32 %v12529_v61, %v10937_v42  ;;  %v10909_v5 = vld [vmem:[%s19319_s2 + $0x6b4] sm:$0xf0]  ;;  %v12319_v42 = vld [vmem:[%s19319_s2 + $0x44] sm:$0xf] }
 0x315   : > { %6135 = vmatmul.bf16.vlgmr.msrb.gmra.mxu0 %v16213_v63  ;;  %v10912_v15 = vor.u32 %v12522_v46, %v10909_v5  ;;  %v11245_v61 = vld [vmem:[%s19319_s2 + $0x954] sm:$0xf0]  ;;  %v11217_v46 = vld [vmem:[%s19319_s2 + $0x91c] sm:$0xf0]  ;;  %v12312_v5 = vld [vmem:[%s19319_s2 + $0xc] sm:$0xf] }
 0x316   : > { %6197 = vmatpush.bf16.msra.mxu0 %v10716_v37  ;;  %6145 = vmatpush.bf16.msrb.mxu2 %v11272_v16  ;;  %v10181_v37 = vld [vmem:[%s19319_s2 + $0x104] sm:$0xf0]  ;;  %v10573_v16 = vld [vmem:[%s19319_s2 + $0x414] sm:$0xf0] }
 0x317   : > { %v10184_v21 = vor.u32 %v12340_v28, %v10181_v37  ;;  %v11161_v28 = vld [vmem:[%s19319_s2 + $0x8ac] sm:$0xf0] }
 0x318   : > { %6188 = vmatpush.bf16.msrb.mxu3 %v10352_v54  ;;  %6119 = vmatpush.bf16.msra.mxu1 %v10768_v49  ;;  %v12515_v54 = vld [vmem:[%s19319_s2 + $0x664] sm:$0xf]  ;;  %v11332_v49 = vor.u32 %v12627_v26, %v11329_v25  ;;  %v10056_v26 = vld [vmem:[%s19325_s8 + $0x3] ss:$8 sm:$0x70] }
 0x319   : > { %v10884_v20 = vor.u32 %v12515_v54, %v10881_v10  ;;  %v12585_v25 = vld [vmem:[%s19319_s2 + $0x894] sm:$0xf]  ;;  %v10769_v54 = vld [vmem:[%s19319_s2 + $0x59c] sm:$0xf0] }
 0x31a   : > { %6198 = vmatpush.bf16.msra.mxu0 %v10688_v56  ;;  %6146 = vmatpush.bf16.msrb.mxu2 %v11244_v8  ;;  %v10576_v56 = vor.u32 %v12438_v24, %v10573_v16  ;;  %v12508_v8 = vld [vmem:[%s19319_s2 + $0x62c] sm:$0xf]  ;;  %v10467_v24 = vld [vmem:[%s19319_s2 + $0x320] sm:$0xf]  ;;  %v12414_v16 = vld [vmem:[%s19319_s2 + $0x338] sm:$0xf0]  ;;  %v11164_v22 = vor.u32 %v12585_v25, %v11161_v28 }
 0x31b   : > { %v12393_v25 = vld [vmem:[%s19319_s2 + $0x290] sm:$0xf0]  ;;  %v10215_v28 = vld [vmem:[%s19319_s2 + $0x128] sm:$0xf] }
 0x31c   : > { %6189 = vmatpush.bf16.msrb.mxu3 %v10324_v12  ;;  %6120 = vmatpush.bf16.msra.mxu1 %v10740_v48  ;;  %v10853_v12 = vld [vmem:[%s19319_s2 + $0x644] sm:$0xf0]  ;;  %v12613_v48 = vld [vmem:[%s19319_s2 + $0x974] sm:$0xf] }
 0x31d   : > { %v10856_v58 = vor.u32 %v12508_v8, %v10853_v12  ;;  %v10439_v12 = vld [vmem:[%s19319_s2 + $0x2e8] sm:$0xf] }
 0x31e   : > { %6199 = vmatpush.bf16.msra.mxu0 %v10660_v41  ;;  %6147 = vmatpush.bf16.msrb.mxu2 %v11216_v34  ;;  %v12424_v41 = vld [vmem:[%s19319_s2 + $0x38c] sm:$0xf]  ;;  %v11413_v34 = vld [vmem:[%s19319_s2 + $0xaa4] sm:$0xf0] }
 0x31f   : > { %6121 = vmatmul.bf16.vlgmr.msra.gmra.mxu1 %v16014_v1  ;;  %v11416_v51 = vor.u32 %v12648_v35, %v11413_v34  ;;  %v12526_v35 = vld [vmem:[%s19319_s2 + $0x6b8] sm:$0xf0]  ;;  %v12571_v34 = vld [vmem:[%s19319_s2 + $0x824] sm:$0xf] }
 0x320   : > { %6169 = vmatpush.bf16.msrb.mxu1 %v10268_v23  ;;  %6190 = vmatpush.bf16.msrb.mxu3 %v10296_v50  ;;  %v11273_v23 = vld [vmem:[%s19319_s2 + $0x98c] sm:$0xf0]  ;;  %v12606_v50 = vld [vmem:[%s19319_s2 + $0x93c] sm:$0xf] }
 0x321   : > { %v11276_v32 = vor.u32 %v12613_v48, %v11273_v23  ;;  %v11248_v31 = vor.u32 %v12606_v50, %v11245_v61  ;;  %v10741_v48 = vld [vmem:[%s19319_s2 + $0x564] sm:$0xf0]  ;;  %v11192_v23 = vor.u32 %v12592_v36, %v11189_v9  ;;  %v10411_v50 = vld [vmem:[%s19319_s2 + $0x2b0] sm:$0xf]  ;;  %v12400_v61 = vld [vmem:[%s19319_s2 + $0x2c8] sm:$0xf0] }
 0x322   : > { %6200 = vmatpush.bf16.msra.mxu0 %v10632_v13  ;;  %6148 = vmatpush.bf16.msrb.mxu2 %v11188_v33  ;;  %v12599_v13 = vld [vmem:[%s19319_s2 + $0x904] sm:$0xf]  ;;  %v10495_v33 = vld [vmem:[%s19319_s2 + $0x358] sm:$0xf]  ;;  %v10355_v36 = vld [vmem:[%s19319_s2 + $0x240] sm:$0xf] }
 0x323   : > { %6191 = vmatmul.bf16.vlgmr.msrb.gmra.mxu3 %v15932_v57  ;;  %v10496_v37 = vor.u32 %v12421_v53, %v10495_v33  ;;  %v11220_v10 = vor.u32 %v12599_v13, %v11217_v46  ;;  %v10887_v13 = vld [vmem:[%s19319_s2 + $0x668] sm:$0xf]  ;;  %v12519_v33 = vld [vmem:[%s19319_s2 + $0x680] sm:$0xf0]  ;;  %v12564_v53 = vld [vmem:[%s19319_s2 + $0x7ec] sm:$0xf]  ;;  %v10412_v46 = vor.u32 %v12400_v61, %v10411_v50 }
 0x324   : > { %6239 = vmatpush.bf16.msra.mxu3 %v11388_v29  ;;  %6170 = vmatpush.bf16.msrb.mxu1 %v10240_v47  ;;  %v10097_v29 = vld [vmem:[%s19319_s2 + $0x5c] sm:$0xf0]  ;;  %v10520_v47 = vor.u32 %v12424_v41, %v10517_v39  ;;  %v11136_v39 = vor.u32 %v12578_v2, %v11133_v17  ;;  %v12386_v9 = vld [vmem:[%s19319_s2 + $0x258] sm:$0xf0]  ;;  %v12344_v2 = vld [vmem:[%s19319_s2 + $0x108] sm:$0xf0] }
 0x325   : > { %6149 = vmatmul.bf16.vlgmr.msrb.gmra.mxu2 %v16215_v44  ;;  %v10993_v50 = vld [vmem:[%s19319_s2 + $0x75c] sm:$0xf0] }
 0x326   : > { %6211 = vmatpush.bf16.msra.mxu2 %v10940_v0  ;;  %6201 = vmatpush.bf16.msra.mxu0 %v10604_v6  ;;  %v10100_v0 = vor.u32 %v12319_v42, %v10097_v29  ;;  %v10800_v6 = vor.u32 %v12494_v45, %v10797_v7  ;;  %v12358_v45 = vld [vmem:[%s19319_s2 + $0x178] sm:$0xf0]  ;;  %v10131_v61 = vld [vmem:[%s19319_s2 + $0x80] sm:$0xf] }
 0x328   : > { %6240 = vmatpush.bf16.msra.mxu3 %v11360_v14  ;;  %6171 = vmatpush.bf16.msrb.mxu1 %v10212_v62  ;;  %v10069_v14 = vld [vmem:[%s19319_s2 + $0x24] sm:$0xf0] }
 0x329   : > { %v10055_v62 = vld [vmem:[%s19325_s8 + $0x3] ss:$8 sm:$0xf] }
 0x32a   : > { %6212 = vmatpush.bf16.msra.mxu2 %v10912_v15  ;;  %6202 = vmatpush.bf16.msra.mxu0 %v10576_v56  ;;  %v12487_v15 = vld [vmem:[%s19319_s2 + $0x584] sm:$0xf]  ;;  %v12533_v56 = vld [vmem:[%s19319_s2 + $0x6f0] sm:$0xf0] }
 0x32b   : > { %v10772_v8 = vor.u32 %v12487_v15, %v10769_v54  ;;  %v10944_v41 = vor.u32 %v12533_v56, %v10943_v55  ;;  %v12512_v15 = vld [vmem:[%s19319_s2 + $0x648] sm:$0xf0]  ;;  %v12557_v54 = vld [vmem:[%s19319_s2 + $0x7b4] sm:$0xf]  ;;  %v10187_v56 = vld [vmem:[%s19319_s2 + $0xf0] sm:$0xf] }
 0x32c   : > { %6241 = vmatpush.bf16.msra.mxu3 %v11332_v49  ;;  %6172 = vmatpush.bf16.msrb.mxu1 %v10184_v21  ;;  %v10072_v49 = vor.u32 %v12312_v5, %v10069_v14  ;;  %v16841_v21 = vor.u32 %v10056_v26, %v10055_v62  ;;  %v10383_v26 = vld [vmem:[%s19319_s2 + $0x278] sm:$0xf] }
 0x32e   : > { %6213 = vmatpush.bf16.msra.mxu2 %v10884_v20  ;;  %6203 = vmatpush.bf16.msra.mxu0 %v10548_v52  ;;  %v10468_v20 = vor.u32 %v12414_v16, %v10467_v24  ;;  %v4059_v18 = vperm.slane %v16841_v21, 0  ;;  %v12365_v52 = vld [vmem:[%s19319_s2 + $0x1b0] sm:$0xf0]  ;;  %v10859_v16 = vld [vmem:[%s19319_s2 + $0x630] sm:$0xf] }
 0x32f   : > { %v10272_v42 = vor.u32 %v12365_v52, %v10271_v60  ;;  %v10860_v17 = vor.u32 %v12512_v15, %v10859_v16  ;;  %v10356_v60 = vor.u32 %v12386_v9, %v10355_v36  ;;  %v10188_v52 = vor.u32 %v12344_v2, %v10187_v56  ;;  %v12323_v15 = vld [vmem:[%s19319_s2 + $0x60] sm:$0xf0]  ;;  %v12362_v9 = vld [vmem:[%s19319_s2 + $0x19c] sm:$0xf]  ;;  %v10273_v2 = vld [vmem:[%s19319_s2 + $0x1b4] sm:$0xf0] }
 0x330   : > { %6242 = vmatpush.bf16.msra.mxu3 %v11304_v4  ;;  %6173 = vmatpush.bf16.msrb.mxu1 %v10156_v43  ;;  %v12407_v4 = vld [vmem:[%s19319_s2 + $0x300] sm:$0xf0]  ;;  %v12480_v43 = vld [vmem:[%s19319_s2 + $0x54c] sm:$0xf]  ;;  %v12638_v56 = vld [vmem:[%s19319_s2 + $0xa38] sm:$0xf0] }
 0x331   : > { %v10440_v40 = vor.u32 %v12407_v4, %v10439_v12  ;;  %v12505_v4 = vld [vmem:[%s19319_s2 + $0x610] sm:$0xf0] }
 0x332   : > { %6214 = vmatpush.bf16.msra.mxu2 %v10856_v58  ;;  %6204 = vmatpush.bf16.msra.mxu0 %v10520_v47  ;;  %v10915_v58 = vld [vmem:[%s19319_s2 + $0x6a0] sm:$0xf] }
 0x333   : > { %v10243_v47 = vld [vmem:[%s19319_s2 + $0x160] sm:$0xf]  ;;  %v10916_v7 = vor.u32 %v12526_v35, %v10915_v58  ;;  %v10159_v58 = vld [vmem:[%s19319_s2 + $0xb8] sm:$0xf]  ;;  %v12337_v35 = vld [vmem:[%s19319_s2 + $0xd0] sm:$0xf0] }
 0x334   : > { %6243 = vmatpush.bf16.msra.mxu3 %v11276_v32  ;;  %6174 = vmatpush.bf16.msrb.mxu1 %v10128_v11  ;;  %v10744_v32 = vor.u32 %v12480_v43, %v10741_v48  ;;  %v10244_v14 = vor.u32 %v12358_v45, %v10243_v47  ;;  %v12550_v43 = vld [vmem:[%s19319_s2 + $0x77c] sm:$0xf]  ;;  %v11021_v48 = vld [vmem:[%s19319_s2 + $0x794] sm:$0xf0]  ;;  %v10299_v45 = vld [vmem:[%s19319_s2 + $0x1d0] sm:$0xf] }
 0x335   : > { %6205 = vmatmul.bf16.vlgmr.msra.gmra.mxu0 %v16012_v38  ;;  %v12330_v47 = vld [vmem:[%s19319_s2 + $0x98] sm:$0xf0] }
 0x336   : > { %6260 = vmatpush.bf16.msrb.mxu0 %v11416_v51  ;;  %6215 = vmatpush.bf16.msra.mxu2 %v10828_v30  ;;  %v11108_v51 = vor.u32 %v12571_v34, %v11105_v59  ;;  %v5898_v30 = vpop.f32.mrf.mxu0  ;;  %v11024_v59 = vor.u32 %v12550_v43, %v11021_v48  ;;  %v12316_v43 = vld [vmem:[%s19319_s2 + $0x28] sm:$0xf0] }
 0x338   : > { %6244 = vmatpush.bf16.msra.mxu3 %v11248_v31  ;;  %6175 = vmatpush.bf16.msrb.mxu1 %v10100_v0  ;;  %v5884_v11 = vpop.f32.mrf.mxu2  ;;  %v11077_v31 = vld [vmem:[%s19319_s2 + $0x804] sm:$0xf0] }
 0x339   : > { %v5885_v29 = vadd.f32 %v5884_v11, %v4059_v18  ;;  %v11080_v24 = vor.u32 %v12564_v53, %v11077_v31  ;;  %v12543_v11 = vld [vmem:[%s19319_s2 + $0x744] sm:$0xf]  ;;  %v12645_v53 = vld [vmem:[%s19319_s2 + $0xa70] sm:$0xf0] }
 0x33a   : > { %6281 = vmatpush.bf16.msra.mxu0 %v10496_v37  ;;  %6216 = vmatpush.bf16.msra.mxu2 %v10800_v6  ;;  %v12351_v37 = vld [vmem:[%s19319_s2 + $0x140] sm:$0xf0]  ;;  %v10888_v6 = vor.u32 %v12519_v33, %v10887_v13  ;;  %v10775_v13 = vld [vmem:[%s19319_s2 + $0x588] sm:$0xf]  ;;  %v11391_v33 = vld [vmem:[%s19319_s2 + $0xa58] sm:$0xf] }
 0x33b   : > { %v5899_v0 = vadd.f32 %v5898_v30, %v5885_v29  ;;  %v10160_v29 = vor.u32 %v12337_v35, %v10159_v58  ;;  %v10996_v30 = vor.u32 %v12543_v11, %v10993_v50  ;;  %v12491_v31 = vld [vmem:[%s19319_s2 + $0x5a0] sm:$0xf0]  ;;  %v10663_v11 = vld [vmem:[%s19319_s2 + $0x4a8] sm:$0xf] }
 0x33c   : > { %6245 = vmatpush.bf16.msra.mxu3 %v11220_v10  ;;  %6176 = vmatpush.bf16.msrb.mxu1 %v10072_v49  ;;  %v5912_v5 = vpop.f32.mrf.mxu1  ;;  %v11049_v10 = vld [vmem:[%s19319_s2 + $0x7cc] sm:$0xf0]  ;;  %v10384_v49 = vor.u32 %v12393_v25, %v10383_v26  ;;  %v12477_v26 = vld [vmem:[%s19319_s2 + $0x530] sm:$0xf0]  ;;  %v12355_v35 = vld [vmem:[%s19319_s2 + $0x164] sm:$0xf] }
 0x33d   : > { %v5913_v62 = vadd.f32 %v5912_v5, %v5899_v0  ;;  %v12536_v0 = vld [vmem:[%s19319_s2 + $0x70c] sm:$0xf]  ;;  %v12463_v50 = vld [vmem:[%s19319_s2 + $0x4c0] sm:$0xf0] }
 0x33e   : > { %6282 = vmatpush.bf16.msra.mxu0 %v10468_v20  ;;  %6217 = vmatpush.bf16.msra.mxu2 %v10772_v8  ;;  %v11052_v20 = vor.u32 %v12557_v54, %v11049_v10  ;;  %v10831_v8 = vld [vmem:[%s19319_s2 + $0x5f8] sm:$0xf]  ;;  %v17030_v5 = vpop.f32.mrf.mxu0  ;;  %v10776_v54 = vor.u32 %v12491_v31, %v10775_v13  ;;  %v11307_v31 = vld [vmem:[%s19319_s2 + $0x9b0] sm:$0xf] }
 0x33f   : > { %6177 = vmatmul.bf16.vlgmr.msrb.gmra.mxu1 %v15930_v19  ;;  %v10832_v34 = vor.u32 %v12505_v4, %v10831_v8  ;;  %v10075_v4 = vld [vmem:[%s19319_s2 + $0x10] sm:$0xf] }
 0x340   : > { %6225 = vmatpush.bf16.msra.mxu1 %v11164_v22  ;;  %6246 = vmatpush.bf16.msra.mxu3 %v11192_v23  ;;  %v10216_v22 = vor.u32 %v12351_v37, %v10215_v28  ;;  %v10132_v28 = vor.u32 %v12330_v47, %v10131_v61  ;;  %v10103_v37 = vld [vmem:[%s19319_s2 + $0x48] sm:$0xf]  ;;  %v4060_v61 = vperm.slane %v16841_v21, 1 }
 0x341   : > { %v10104_v8 = vor.u32 %v12323_v15, %v10103_v37  ;;  %v12575_v15 = vld [vmem:[%s19319_s2 + $0x840] sm:$0xf0] }
 0x342   : > { %6283 = vmatpush.bf16.msra.mxu0 %v10440_v40  ;;  %6218 = vmatpush.bf16.msra.mxu2 %v10744_v32  ;;  %v5926_v55 = vpop.f32.mrf.mxu3  ;;  %v10803_v40 = vld [vmem:[%s19319_s2 + $0x5c0] sm:$0xf]  ;;  %v12498_v32 = vld [vmem:[%s19319_s2 + $0x5d8] sm:$0xf0] }
 0x343   : > { %6247 = vmatmul.bf16.vlgmr.msra.gmra.mxu3 %v16215_v44  ;;  %v16961_v12 = vadd.f32 %v5926_v55, %v5913_v62  ;;  %v10719_v62 = vld [vmem:[%s19319_s2 + $0x518] sm:$0xf]  ;;  %v11363_v55 = vld [vmem:[%s19319_s2 + $0xa20] sm:$0xf] }
 0x344   : > { %6309 = vmatpush.bf16.msrb.mxu3 %v10944_v41  ;;  %6226 = vmatpush.bf16.msra.mxu1 %v11136_v39  ;;  %v16974_v23 = vpop.f32.mrf.mxu1  ;;  %v10327_v41 = vld [vmem:[%s19319_s2 + $0x208] sm:$0xf]  ;;  %v12379_v39 = vld [vmem:[%s19319_s2 + $0x220] sm:$0xf0]  ;;  %v10720_v36 = vor.u32 %v12477_v26, %v10719_v62  ;;  %v10635_v26 = vld [vmem:[%s19319_s2 + $0x470] sm:$0xf] }
 0x345   : > { %6219 = vmatmul.bf16.vlgmr.msra.gmra.mxu2 %v16014_v1  ;;  %11432 = vmatmul.msk.bf16.vlgmr.msrb.gmra.mxu0 %vm2557_vm0, %v16170_v27 }
 0x346   : > { %6267 = vmatpush.bf16.msrb.mxu2 %v10272_v42  ;;  %6284 = vmatpush.bf16.msra.mxu0 %v10412_v46  ;;  %v10328_v42 = vor.u32 %v12379_v39, %v10327_v41  ;;  %v10965_v46 = vld [vmem:[%s19319_s2 + $0x724] sm:$0xf0]  ;;  %v11364_v41 = vor.u32 %v12638_v56, %v11363_v55  ;;  %v10276_v39 = vor.u32 %v12362_v9, %v10273_v2  ;;  %v11279_v9 = vld [vmem:[%s19319_s2 + $0x978] sm:$0xf]  ;;  %v12617_v55 = vld [vmem:[%s19319_s2 + $0x990] sm:$0xf0] }
 0x347   : > { %v10968_v10 = vor.u32 %v12536_v0, %v10965_v46  ;;  %v12624_v0 = vld [vmem:[%s19319_s2 + $0x9c8] sm:$0xf0]  ;;  %v10189_v2 = vld [vmem:[%s19319_s2 + $0x10c] sm:$0xf0] }
 0x348   : > { %6310 = vmatpush.bf16.msrb.mxu3 %v10916_v7  ;;  %6227 = vmatpush.bf16.msra.mxu1 %v11108_v51  ;;  %v12372_v7 = vld [vmem:[%s19319_s2 + $0x1e8] sm:$0xf0]  ;;  %v10804_v51 = vor.u32 %v12498_v32, %v10803_v40  ;;  %v10245_v32 = vld [vmem:[%s19319_s2 + $0x17c] sm:$0xf0] }
 0x349   : > { %v10300_v25 = vor.u32 %v12372_v7, %v10299_v45  ;;  %v11139_v45 = vld [vmem:[%s19319_s2 + $0x860] sm:$0xf]  ;;  %v12582_v7 = vld [vmem:[%s19319_s2 + $0x878] sm:$0xf0]  ;;  %v10248_v13 = vor.u32 %v12355_v35, %v10245_v32  ;;  %v10161_v32 = vld [vmem:[%s19319_s2 + $0xd4] sm:$0xf0] }
 0x34a   : > { %6268 = vmatpush.bf16.msrb.mxu2 %v10244_v14  ;;  %6285 = vmatpush.bf16.msra.mxu0 %v10384_v49  ;;  %v17045_v16 = vpop.f32.mrf.mxu3  ;;  %v10747_v49 = vld [vmem:[%s19319_s2 + $0x550] sm:$0xf]  ;;  %v11140_v37 = vor.u32 %v12582_v7, %v11139_v45  ;;  %v12610_v35 = vld [vmem:[%s19319_s2 + $0x958] sm:$0xf0]  ;;  %v12561_v45 = vld [vmem:[%s19319_s2 + $0x7d0] sm:$0xf0] }
 0x34c   : > { %6311 = vmatpush.bf16.msrb.mxu3 %v10888_v6  ;;  %6228 = vmatpush.bf16.msra.mxu1 %v11080_v24  ;;  %v17032_v14 = vpop.f32.mrf.mxu1  ;;  %v11392_v6 = vor.u32 %v12645_v53, %v11391_v33  ;;  %v17043_v24 = vpop.f32.mrf.mxu2  ;;  %v10664_v33 = vor.u32 %v12463_v50, %v10663_v11  ;;  %v10217_v53 = vld [vmem:[%s19319_s2 + $0x144] sm:$0xf0]  ;;  %v10579_v11 = vld [vmem:[%s19319_s2 + $0x400] sm:$0xf]  ;;  %v12442_v50 = vld [vmem:[%s19319_s2 + $0x418] sm:$0xf0] }
 0x34e   : > { %6269 = vmatpush.bf16.msrb.mxu2 %v10216_v22  ;;  %6286 = vmatpush.bf16.msra.mxu0 %v10356_v60  ;;  %v12484_v22 = vld [vmem:[%s19319_s2 + $0x568] sm:$0xf0]  ;;  %v11167_v60 = vld [vmem:[%s19319_s2 + $0x898] sm:$0xf] }
 0x34f   : > { %v10748_v48 = vor.u32 %v12484_v22, %v10747_v49 }
 0x350   : > { %6312 = vmatpush.bf16.msrb.mxu3 %v10860_v17  ;;  %6229 = vmatpush.bf16.msra.mxu1 %v11052_v20  ;;  %v10691_v17 = vld [vmem:[%s19319_s2 + $0x4e0] sm:$0xf]  ;;  %v12470_v20 = vld [vmem:[%s19319_s2 + $0x4f8] sm:$0xf0] }
 0x351   : > { %v10692_v58 = vor.u32 %v12470_v20, %v10691_v17  ;;  %v10607_v17 = vld [vmem:[%s19319_s2 + $0x438] sm:$0xf]  ;;  %v12449_v20 = vld [vmem:[%s19319_s2 + $0x450] sm:$0xf0] }
 0x352   : > { %6270 = vmatpush.bf16.msrb.mxu2 %v10188_v52  ;;  %6287 = vmatpush.bf16.msra.mxu0 %v10328_v42  ;;  %v12589_v52 = vld [vmem:[%s19319_s2 + $0x8b0] sm:$0xf0]  ;;  %v10076_v42 = vor.u32 %v12316_v43, %v10075_v4  ;;  %v5982_v62 = vpop.f32.mrf.mxu3 }
 0x353   : > { %v11168_v47 = vor.u32 %v12589_v52, %v11167_v60  ;;  %v12568_v60 = vld [vmem:[%s19319_s2 + $0x808] sm:$0xf0]  ;;  %v11280_v52 = vor.u32 %v12617_v55, %v11279_v9  ;;  %v11419_v9 = vld [vmem:[%s19319_s2 + $0xa90] sm:$0xf] }
 0x354   : > { %6313 = vmatpush.bf16.msrb.mxu3 %v10832_v34  ;;  %6230 = vmatpush.bf16.msra.mxu1 %v11024_v59  ;;  %v11335_v34 = vld [vmem:[%s19319_s2 + $0x9e8] sm:$0xf]  ;;  %v12631_v59 = vld [vmem:[%s19319_s2 + $0xa00] sm:$0xf0]  ;;  %v17096_v40 = vpop.f32.mrf.mxu1 }
 0x356   : > { %6271 = vmatpush.bf16.msrb.mxu2 %v10160_v29  ;;  %6288 = vmatpush.bf16.msra.mxu0 %v10300_v25  ;;  %v5954_v29 = vpop.f32.mrf.mxu0  ;;  %v12456_v25 = vld [vmem:[%s19319_s2 + $0x488] sm:$0xf0] }
 0x357   : > { %v10636_v22 = vor.u32 %v12456_v25, %v10635_v26  ;;  %v11027_v26 = vld [vmem:[%s19319_s2 + $0x780] sm:$0xf]  ;;  %v12554_v25 = vld [vmem:[%s19319_s2 + $0x798] sm:$0xf0] }
 0x358   : > { %6314 = vmatpush.bf16.msrb.mxu3 %v10804_v51  ;;  %6231 = vmatpush.bf16.msra.mxu1 %v10996_v30  ;;  %v11336_v51 = vor.u32 %v12631_v59, %v11335_v34  ;;  %v12348_v30 = vld [vmem:[%s19319_s2 + $0x12c] sm:$0xf]  ;;  %v5940_v46 = vpop.f32.mrf.mxu2 }
 0x359   : > { %6289 = vmatmul.bf16.vlgmr.msra.gmra.mxu0 %v15932_v57 }
 0x35a   : > { %6272 = vmatpush.bf16.msrb.mxu2 %v10132_v28  ;;  %6337 = vmatpush.bf16.msrb.mxu0 %v11392_v6  ;;  %v5941_v28 = vadd.f32 %v5940_v46, %v16961_v12  ;;  %v11111_v6 = vld [vmem:[%s19319_s2 + $0x828] sm:$0xf]  ;;  %v5983_v12 = vadd.f32 %v5982_v62, %v4060_v61  ;;  %v12435_v46 = vld [vmem:[%s19319_s2 + $0x3e0] sm:$0xf0] }
 0x35b   : > { %v11112_v43 = vor.u32 %v12575_v15, %v11111_v6 }
 0x35c   : > { %6315 = vmatpush.bf16.msrb.mxu3 %v10776_v54  ;;  %6232 = vmatpush.bf16.msra.mxu1 %v10968_v10  ;;  %v10220_v54 = vor.u32 %v12348_v30, %v10217_v53  ;;  %v11308_v10 = vor.u32 %v12624_v0, %v11307_v31  ;;  %v5955_v49 = vadd.f32 %v5954_v29, %v5941_v28  ;;  %v5996_v56 = vpop.f32.mrf.mxu1  ;;  %v12603_v53 = vld [vmem:[%s19319_s2 + $0x920] sm:$0xf0]  ;;  %v10133_v31 = vld [vmem:[%s19319_s2 + $0x9c] sm:$0xf0]  ;;  %v10551_v0 = vld [vmem:[%s19319_s2 + $0x3c8] sm:$0xf] }
 0x35d   : > { %v5997_v4 = vadd.f32 %v5996_v56, %v5983_v12  ;;  %v10580_v30 = vor.u32 %v12442_v50, %v10579_v11  ;;  %v10552_v15 = vor.u32 %v12435_v46, %v10551_v0  ;;  %v12652_v56 = vld [vmem:[%s19319_s2 + $0xaa8] sm:$0xf0]  ;;  %v12418_v11 = vld [vmem:[%s19319_s2 + $0x35c] sm:$0xf]  ;;  %v10497_v50 = vld [vmem:[%s19319_s2 + $0x374] sm:$0xf0] }
 0x35e   : > { %6273 = vmatpush.bf16.msrb.mxu2 %v10104_v8  ;;  %6338 = vmatpush.bf16.msrb.mxu0 %v11364_v41  ;;  %v17163_v8 = vadd.f32 %v17032_v14, %v5955_v49  ;;  %v12334_v14 = vld [vmem:[%s19319_s2 + $0xbc] sm:$0xf]  ;;  %v17180_v34 = vpop.f32.mrf.mxu0  ;;  %v12596_v49 = vld [vmem:[%s19319_s2 + $0x8e8] sm:$0xf0]  ;;  %v10500_v0 = vor.u32 %v12418_v11, %v10497_v50  ;;  %v12397_v11 = vld [vmem:[%s19319_s2 + $0x2b4] sm:$0xf] }
 0x35f   : > { %6233 = vmatmul.bf16.vlgmr.msra.gmra.mxu1 %v16213_v63  ;;  %v12474_v46 = vld [vmem:[%s19319_s2 + $0x51c] sm:$0xf]  ;;  %v10413_v50 = vld [vmem:[%s19319_s2 + $0x2cc] sm:$0xf0] }
 0x360   : > { %6295 = vmatpush.bf16.msrb.mxu1 %v10720_v36  ;;  %6316 = vmatpush.bf16.msrb.mxu3 %v10748_v48  ;;  %v12341_v36 = vld [vmem:[%s19319_s2 + $0xf4] sm:$0xf]  ;;  %v11083_v48 = vld [vmem:[%s19319_s2 + $0x7f0] sm:$0xf]  ;;  %v17182_v59 = vpop.f32.mrf.mxu2 }
 0x361   : > { %v10192_v41 = vor.u32 %v12341_v36, %v10189_v2  ;;  %v11084_v29 = vor.u32 %v12568_v60, %v11083_v48  ;;  %v12428_v36 = vld [vmem:[%s19319_s2 + $0x3a8] sm:$0xf0]  ;;  %v12530_v2 = vld [vmem:[%s19319_s2 + $0x6dc] sm:$0xf]  ;;  %v10999_v48 = vld [vmem:[%s19319_s2 + $0x748] sm:$0xf] }
 0x362   : > { %6274 = vmatpush.bf16.msrb.mxu2 %v10076_v42  ;;  %6339 = vmatpush.bf16.msrb.mxu0 %v11336_v51  ;;  %v17193_v42 = vpop.f32.mrf.mxu3  ;;  %v10164_v51 = vor.u32 %v12334_v14, %v10161_v32  ;;  %v12313_v14 = vld [vmem:[%s19319_s2 + $0x14] sm:$0xf]  ;;  %v11420_v32 = vor.u32 %v12652_v56, %v11419_v9  ;;  %v10693_v56 = vld [vmem:[%s19319_s2 + $0x4fc] sm:$0xf0] }
 0x363   : > { %6317 = vmatmul.bf16.vlgmr.msrb.gmra.mxu3 %v16014_v1 }
 0x364   : > { %6365 = vmatpush.bf16.msra.mxu3 %v10276_v39  ;;  %6296 = vmatpush.bf16.msrb.mxu1 %v10692_v58  ;;  %v10608_v39 = vor.u32 %v12449_v20, %v10607_v17  ;;  %v11251_v58 = vld [vmem:[%s19319_s2 + $0x940] sm:$0xf]  ;;  %v10945_v17 = vld [vmem:[%s19319_s2 + $0x6f4] sm:$0xf0] }
 0x365   : > { %6275 = vmatmul.bf16.vlgmr.msrb.gmra.mxu2 %v15930_v19  ;;  %v11252_v7 = vor.u32 %v12610_v35, %v11251_v58  ;;  %v10077_v58 = vld [vmem:[%s19319_s2 + $0x2c] sm:$0xf0] }
 0x366   : > { %6323 = vmatpush.bf16.msra.mxu2 %v11168_v47  ;;  %6340 = vmatpush.bf16.msrb.mxu0 %v11308_v10  ;;  %v11055_v47 = vld [vmem:[%s19319_s2 + $0x7b8] sm:$0xf]  ;;  %v11195_v10 = vld [vmem:[%s19319_s2 + $0x8d0] sm:$0xf]  ;;  %v6024_v20 = vpop.f32.mrf.mxu0 }
 0x367   : > { %v11056_v62 = vor.u32 %v12561_v45, %v11055_v47  ;;  %v12586_v47 = vld [vmem:[%s19319_s2 + $0x89c] sm:$0xf] }
 0x368   : > { %6366 = vmatpush.bf16.msra.mxu3 %v10248_v13  ;;  %6297 = vmatpush.bf16.msrb.mxu1 %v10664_v33  ;;  %v12327_v13 = vld [vmem:[%s19319_s2 + $0x84] sm:$0xf]  ;;  %v11223_v33 = vld [vmem:[%s19319_s2 + $0x908] sm:$0xf]  ;;  %v6010_v12 = vpop.f32.mrf.mxu2 }
 0x369   : > { %v11224_v28 = vor.u32 %v12603_v53, %v11223_v33  ;;  %v10136_v6 = vor.u32 %v12327_v13, %v10133_v31  ;;  %v6011_v55 = vadd.f32 %v6010_v12, %v5997_v4  ;;  %v11196_v4 = vor.u32 %v12596_v49, %v11195_v10  ;;  %v10971_v33 = vld [vmem:[%s19319_s2 + $0x710] sm:$0xf]  ;;  %v12540_v53 = vld [vmem:[%s19319_s2 + $0x728] sm:$0xf0]  ;;  %v10889_v49 = vld [vmem:[%s19319_s2 + $0x684] sm:$0xf0]  ;;  %v17320_v12 = vpop.f32.mrf.mxu1 }
 0x36a   : > { %6324 = vmatpush.bf16.msra.mxu2 %v11140_v37  ;;  %6341 = vmatpush.bf16.msrb.mxu0 %v11280_v52  ;;  %v12320_v37 = vld [vmem:[%s19319_s2 + $0x4c] sm:$0xf]  ;;  %v12547_v52 = vld [vmem:[%s19319_s2 + $0x760] sm:$0xf0]  ;;  %v6038_v35 = vpop.f32.mrf.mxu3  ;;  %v10080_v31 = vor.u32 %v12313_v14, %v10077_v58  ;;  %v10665_v58 = vld [vmem:[%s19319_s2 + $0x4c4] sm:$0xf0] }
 0x36b   : > { %v6025_v60 = vadd.f32 %v6024_v20, %v6011_v55  ;;  %v11000_v13 = vor.u32 %v12547_v52, %v10999_v48  ;;  %v12516_v10 = vld [vmem:[%s19319_s2 + $0x66c] sm:$0xf]  ;;  %v12467_v55 = vld [vmem:[%s19319_s2 + $0x4e4] sm:$0xf]  ;;  %v10441_v20 = vld [vmem:[%s19319_s2 + $0x304] sm:$0xf0] }
 0x36c   : > { %6367 = vmatpush.bf16.msra.mxu3 %v10220_v54  ;;  %6298 = vmatpush.bf16.msrb.mxu1 %v10636_v22  ;;  %v10105_v54 = vld [vmem:[%s19319_s2 + $0x64] sm:$0xf0]  ;;  %v10523_v22 = vld [vmem:[%s19319_s2 + $0x390] sm:$0xf]  ;;  %v12572_v48 = vld [vmem:[%s19319_s2 + $0x82c] sm:$0xf] }
 0x36d   : > { %v17276_v45 = vadd.f32 %v6038_v35, %v6025_v60  ;;  %v12509_v60 = vld [vmem:[%s19319_s2 + $0x634] sm:$0xf]  ;;  %v10861_v52 = vld [vmem:[%s19319_s2 + $0x64c] sm:$0xf0]  ;;  %v12460_v14 = vld [vmem:[%s19319_s2 + $0x4ac] sm:$0xf] }
 0x36e   : > { %6325 = vmatpush.bf16.msra.mxu2 %v11112_v43  ;;  %6342 = vmatpush.bf16.msrb.mxu0 %v11252_v7  ;;  %v11028_v43 = vor.u32 %v12554_v25, %v11027_v26  ;;  %v11169_v7 = vld [vmem:[%s19319_s2 + $0x8b4] sm:$0xf0] }
 0x36f   : > { %v11172_v25 = vor.u32 %v12586_v47, %v11169_v7  ;;  %v12565_v47 = vld [vmem:[%s19319_s2 + $0x7f4] sm:$0xf]  ;;  %v11085_v7 = vld [vmem:[%s19319_s2 + $0x80c] sm:$0xf0] }
 0x370   : > { %6368 = vmatpush.bf16.msra.mxu3 %v10192_v41  ;;  %6299 = vmatpush.bf16.msrb.mxu1 %v10608_v39  ;;  %v10108_v41 = vor.u32 %v12320_v37, %v10105_v54  ;;  %v10524_v39 = vor.u32 %v12428_v36, %v10523_v22  ;;  %v17299_v26 = vpop.f32.mrf.mxu2  ;;  %v10469_v37 = vld [vmem:[%s19319_s2 + $0x33c] sm:$0xf0]  ;;  %v10972_v22 = vor.u32 %v12540_v53, %v10971_v33 }
 0x371   : > { %v11141_v54 = vld [vmem:[%s19319_s2 + $0x87c] sm:$0xf0]  ;;  %v10668_v53 = vor.u32 %v12460_v14, %v10665_v58 }
 0x372   : > { %6326 = vmatpush.bf16.msra.mxu2 %v11084_v29  ;;  %6343 = vmatpush.bf16.msrb.mxu0 %v11224_v28  ;;  %v10948_v29 = vor.u32 %v12530_v2, %v10945_v17  ;;  %v12411_v28 = vld [vmem:[%s19319_s2 + $0x324] sm:$0xf]  ;;  %v12404_v17 = vld [vmem:[%s19319_s2 + $0x2ec] sm:$0xf] }
 0x373   : > { %v10472_v9 = vor.u32 %v12411_v28, %v10469_v37  ;;  %v10385_v28 = vld [vmem:[%s19319_s2 + $0x294] sm:$0xf0] }
 0x374   : > { %6369 = vmatpush.bf16.msra.mxu3 %v10164_v51  ;;  %6300 = vmatpush.bf16.msrb.mxu1 %v10580_v30  ;;  %v12523_v51 = vld [vmem:[%s19319_s2 + $0x6a4] sm:$0xf]  ;;  %v10917_v30 = vld [vmem:[%s19319_s2 + $0x6bc] sm:$0xf0] }
 0x376   : > { %6327 = vmatpush.bf16.msra.mxu2 %v11056_v62  ;;  %6344 = vmatpush.bf16.msrb.mxu0 %v11196_v4  ;;  %v10721_v62 = vld [vmem:[%s19319_s2 + $0x534] sm:$0xf0]  ;;  %v11113_v4 = vld [vmem:[%s19319_s2 + $0x844] sm:$0xf0] }
 0x377   : > { %v10724_v36 = vor.u32 %v12474_v46, %v10721_v62  ;;  %v10637_v46 = vld [vmem:[%s19319_s2 + $0x48c] sm:$0xf0]  ;;  %v17380_v62 = vpop.f32.mrf.mxu0 }
 0x378   : > { %6370 = vmatpush.bf16.msra.mxu3 %v10136_v6  ;;  %6301 = vmatpush.bf16.msrb.mxu1 %v10552_v15  ;;  %v10920_v6 = vor.u32 %v12523_v51, %v10917_v30  ;;  %v12579_v15 = vld [vmem:[%s19319_s2 + $0x864] sm:$0xf]  ;;  %v6066_v35 = vpop.f32.mrf.mxu2  ;;  %v12502_v51 = vld [vmem:[%s19319_s2 + $0x5fc] sm:$0xf]  ;;  %v10833_v30 = vld [vmem:[%s19319_s2 + $0x614] sm:$0xf0] }
 0x379   : > { %6345 = vmatmul.bf16.vlgmr.msrb.gmra.mxu0 %v16215_v44  ;;  %v11144_v2 = vor.u32 %v12579_v15, %v11141_v54  ;;  %v10836_v37 = vor.u32 %v12502_v51, %v10833_v30  ;;  %v11057_v54 = vld [vmem:[%s19319_s2 + $0x7d4] sm:$0xf0]  ;;  %v12544_v51 = vld [vmem:[%s19319_s2 + $0x74c] sm:$0xf]  ;;  %v11001_v30 = vld [vmem:[%s19319_s2 + $0x764] sm:$0xf0] }
 0x37a   : > { %6328 = vmatpush.bf16.msra.mxu2 %v11028_v43  ;;  %6407 = vmatpush.bf16.msra.mxu0 %v10948_v29  ;;  %v10892_v43 = vor.u32 %v12516_v10, %v10889_v49  ;;  %v10864_v29 = vor.u32 %v12509_v60, %v10861_v52  ;;  %v12495_v10 = vld [vmem:[%s19319_s2 + $0x5c4] sm:$0xf]  ;;  %v10805_v49 = vld [vmem:[%s19319_s2 + $0x5dc] sm:$0xf0]  ;;  %v12488_v60 = vld [vmem:[%s19319_s2 + $0x58c] sm:$0xf] }
 0x37b   : > { %v10777_v52 = vld [vmem:[%s19319_s2 + $0x5a4] sm:$0xf0] }
 0x37c   : > { %6371 = vmatpush.bf16.msra.mxu3 %v10108_v41  ;;  %6302 = vmatpush.bf16.msrb.mxu1 %v10524_v39  ;;  %v10696_v41 = vor.u32 %v12467_v55, %v10693_v56  ;;  %v10444_v39 = vor.u32 %v12404_v17, %v10441_v20  ;;  %v10609_v55 = vld [vmem:[%s19319_s2 + $0x454] sm:$0xf0]  ;;  %v12383_v17 = vld [vmem:[%s19319_s2 + $0x244] sm:$0xf]  ;;  %v10357_v20 = vld [vmem:[%s19319_s2 + $0x25c] sm:$0xf0] }
 0x37d   : > { %v10360_v58 = vor.u32 %v12383_v17, %v10357_v20 }
 0x37e   : > { %6329 = vmatpush.bf16.msra.mxu2 %v11000_v13  ;;  %6408 = vmatpush.bf16.msra.mxu0 %v10920_v6  ;;  %v6052_v13 = vpop.f32.mrf.mxu1  ;;  %v12558_v6 = vld [vmem:[%s19319_s2 + $0x7bc] sm:$0xf] }
 0x37f   : > { %6303 = vmatmul.bf16.vlgmr.msrb.gmra.mxu1 %v16012_v38  ;;  %v6053_v33 = vadd.f32 %v6052_v13, %v17276_v45  ;;  %v12390_v45 = vld [vmem:[%s19319_s2 + $0x27c] sm:$0xf]  ;;  %v12481_v13 = vld [vmem:[%s19319_s2 + $0x554] sm:$0xf] }
 0x380   : > { %6358 = vmatpush.bf16.msra.mxu1 %v11420_v32  ;;  %6372 = vmatpush.bf16.msra.mxu3 %v10080_v31  ;;  %v11116_v32 = vor.u32 %v12572_v48, %v11113_v4  ;;  %v10416_v31 = vor.u32 %v12397_v11, %v10413_v50  ;;  %v17408_v56 = vpop.f32.mrf.mxu2  ;;  %v12551_v48 = vld [vmem:[%s19319_s2 + $0x784] sm:$0xf]  ;;  %v11029_v4 = vld [vmem:[%s19319_s2 + $0x79c] sm:$0xf0]  ;;  %v6080_v11 = vpop.f32.mrf.mxu0 }
 0x381   : > { %v17391_v15 = vadd.f32 %v6066_v35, %v6053_v33  ;;  %v12439_v35 = vld [vmem:[%s19319_s2 + $0x404] sm:$0xf]  ;;  %v11032_v50 = vor.u32 %v12551_v48, %v11029_v4  ;;  %v10749_v33 = vld [vmem:[%s19319_s2 + $0x56c] sm:$0xf0]  ;;  %v12478_v48 = vld [vmem:[%s19319_s2 + $0x538] sm:$0xf0] }
 0x382   : > { %6330 = vmatpush.bf16.msra.mxu2 %v10972_v22  ;;  %6409 = vmatpush.bf16.msra.mxu0 %v10892_v43  ;;  %v10808_v43 = vor.u32 %v12495_v10, %v10805_v49  ;;  %v10301_v10 = vld [vmem:[%s19319_s2 + $0x1ec] sm:$0xf0]  ;;  %v10752_v49 = vor.u32 %v12481_v13, %v10749_v33  ;;  %v10699_v33 = vld [vmem:[%s19319_s2 + $0x4e8] sm:$0xf] }
 0x383   : > { %6373 = vmatmul.bf16.vlgmr.msra.gmra.mxu3 %v15930_v19 }
 0x384   : > { %6379 = vmatpush.bf16.msrb.mxu1 %v10500_v0  ;;  %6421 = vmatpush.bf16.msrb.mxu3 %v11172_v25  ;;  %v12453_v0 = vld [vmem:[%s19319_s2 + $0x474] sm:$0xf]  ;;  %v11088_v25 = vor.u32 %v12565_v47, %v11085_v7  ;;  %v10329_v47 = vld [vmem:[%s19319_s2 + $0x224] sm:$0xf0]  ;;  %v10780_v7 = vor.u32 %v12488_v60, %v10777_v52 }
 0x385   : > { %6331 = vmatmul.bf16.vlgmr.msra.gmra.mxu2 %v16213_v63  ;;  %v10640_v22 = vor.u32 %v12453_v0, %v10637_v46  ;;  %v10251_v52 = vld [vmem:[%s19319_s2 + $0x168] sm:$0xf] }
 0x386   : > { %6393 = vmatpush.bf16.msrb.mxu2 %v10724_v36  ;;  %6410 = vmatpush.bf16.msra.mxu0 %v10864_v29  ;;  %v10388_v36 = vor.u32 %v12390_v45, %v10385_v28  ;;  %v12376_v29 = vld [vmem:[%s19319_s2 + $0x20c] sm:$0xf]  ;;  %v10553_v28 = vld [vmem:[%s19319_s2 + $0x3e4] sm:$0xf0] }
 0x387   : > { %v12432_v45 = vld [vmem:[%s19319_s2 + $0x3cc] sm:$0xf] }
 0x388   : > { %6380 = vmatpush.bf16.msrb.mxu1 %v10472_v9  ;;  %6422 = vmatpush.bf16.msrb.mxu3 %v11144_v2  ;;  %v12446_v9 = vld [vmem:[%s19319_s2 + $0x43c] sm:$0xf]  ;;  %v11060_v2 = vor.u32 %v12558_v6, %v11057_v54  ;;  %v11004_v6 = vor.u32 %v12544_v51, %v11001_v30  ;;  %v12369_v54 = vld [vmem:[%s19319_s2 + $0x1d4] sm:$0xf]  ;;  %v10556_v4 = vor.u32 %v12432_v45, %v10553_v28  ;;  %v12635_v51 = vld [vmem:[%s19319_s2 + $0xa24] sm:$0xf] }
 0x389   : > { %v10612_v14 = vor.u32 %v12446_v9, %v10609_v55  ;;  %v10973_v9 = vld [vmem:[%s19319_s2 + $0x72c] sm:$0xf0]  ;;  %v12642_v55 = vld [vmem:[%s19319_s2 + $0xa5c] sm:$0xf]  ;;  %v10304_v60 = vor.u32 %v12369_v54, %v10301_v10  ;;  %v11365_v30 = vld [vmem:[%s19319_s2 + $0xa3c] sm:$0xf0] }
 0x38a   : > { %6394 = vmatpush.bf16.msrb.mxu2 %v10696_v41  ;;  %6411 = vmatpush.bf16.msra.mxu0 %v10836_v37  ;;  %v17428_v41 = vpop.f32.mrf.mxu3  ;;  %v6094_v37 = vpop.f32.mrf.mxu2  ;;  %v10503_v28 = vld [vmem:[%s19319_s2 + $0x360] sm:$0xf]  ;;  %v12628_v10 = vld [vmem:[%s19319_s2 + $0x9ec] sm:$0xf] }
 0x38c   : > { %6381 = vmatpush.bf16.msrb.mxu1 %v10444_v39  ;;  %6423 = vmatpush.bf16.msrb.mxu3 %v11116_v32  ;;  %v19330_v39 = vperm.slane %v16841_v21, 2  ;;  %v10581_v32 = vld [vmem:[%s19319_s2 + $0x41c] sm:$0xf0] }
 0x38d   : > { %v10584_v46 = vor.u32 %v12439_v35, %v10581_v32  ;;  %v12425_v35 = vld [vmem:[%s19319_s2 + $0x394] sm:$0xf]  ;;  %v10525_v32 = vld [vmem:[%s19319_s2 + $0x3ac] sm:$0xf0] }
 0x38e   : > { %6395 = vmatpush.bf16.msrb.mxu2 %v10668_v53  ;;  %6412 = vmatpush.bf16.msra.mxu0 %v10808_v43  ;;  %v10279_v53 = vld [vmem:[%s19319_s2 + $0x1a0] sm:$0xf]  ;;  %v6081_v0 = vadd.f32 %v6080_v11, %v19330_v39  ;;  %v5985_v39 = vadd.f32 %v17193_v42, %v4060_v61 }
 0x38f   : > { %11433 = vmatmul.msk.bf16.vlgmr.msra.gmra.mxu1 %vm2557_vm0, %v16170_v27  ;;  %v10727_v43 = vld [vmem:[%s19319_s2 + $0x520] sm:$0xf] }
 0x390   : > { %6382 = vmatpush.bf16.msrb.mxu1 %v10416_v31  ;;  %6424 = vmatpush.bf16.msrb.mxu3 %v11088_v25  ;;  %v12366_v31 = vld [vmem:[%s19319_s2 + $0x1b8] sm:$0xf0]  ;;  %v10332_v25 = vor.u32 %v12376_v29, %v10329_v47  ;;  %v12649_v29 = vld [vmem:[%s19319_s2 + $0xa94] sm:$0xf]  ;;  %v10728_v47 = vor.u32 %v12478_v48, %v10727_v43  ;;  %v10475_v43 = vld [vmem:[%s19319_s2 + $0x328] sm:$0xf] }
 0x391   : > { %v10280_v17 = vor.u32 %v12366_v31, %v10279_v53  ;;  %v12471_v53 = vld [vmem:[%s19319_s2 + $0x500] sm:$0xf0]  ;;  %v10528_v31 = vor.u32 %v12425_v35, %v10525_v32  ;;  %v10643_v32 = vld [vmem:[%s19319_s2 + $0x478] sm:$0xf] }
 0x392   : > { %6396 = vmatpush.bf16.msrb.mxu2 %v10640_v22  ;;  %6413 = vmatpush.bf16.msra.mxu0 %v10780_v7  ;;  %v12537_v22 = vld [vmem:[%s19319_s2 + $0x714] sm:$0xf]  ;;  %v6108_v20 = vpop.f32.mrf.mxu3  ;;  %v11421_v7 = vld [vmem:[%s19319_s2 + $0xaac] sm:$0xf0]  ;;  %v10700_v54 = vor.u32 %v12471_v53, %v10699_v33  ;;  %v12415_v48 = vld [vmem:[%s19319_s2 + $0x340] sm:$0xf0] }
 0x393   : > { %v10976_v11 = vor.u32 %v12537_v22, %v10973_v9  ;;  %v11424_v45 = vor.u32 %v12649_v29, %v11421_v7  ;;  %v17548_v22 = vpop.f32.mrf.mxu0  ;;  %v10671_v9 = vld [vmem:[%s19319_s2 + $0x4b0] sm:$0xf]  ;;  %v10476_v29 = vor.u32 %v12415_v48, %v10475_v43  ;;  %v12338_v7 = vld [vmem:[%s19319_s2 + $0xd8] sm:$0xf0]  ;;  %v11253_v43 = vld [vmem:[%s19319_s2 + $0x95c] sm:$0xf0] }
 0x394   : > { %6383 = vmatpush.bf16.msrb.mxu1 %v10388_v36  ;;  %6425 = vmatpush.bf16.msrb.mxu3 %v11060_v2  ;;  %v6095_v36 = vadd.f32 %v6094_v37, %v6081_v0  ;;  %v11393_v2 = vld [vmem:[%s19319_s2 + $0xa74] sm:$0xf0]  ;;  %v10223_v0 = vld [vmem:[%s19319_s2 + $0x130] sm:$0xf]  ;;  %v12422_v37 = vld [vmem:[%s19319_s2 + $0x378] sm:$0xf0] }
 0x396   : > { %6397 = vmatpush.bf16.msrb.mxu2 %v10612_v14  ;;  %v12359_v14 = vld [vmem:[%s19319_s2 + $0x180] sm:$0xf0]  ;;  %6414 = vmatpush.bf16.msra.mxu0 %v10752_v49  ;;  %v11337_v49 = vld [vmem:[%s19319_s2 + $0xa04] sm:$0xf0] }
 0x397   : > { %v10252_v13 = vor.u32 %v12359_v14, %v10251_v52  ;;  %v12621_v52 = vld [vmem:[%s19319_s2 + $0x9b4] sm:$0xf]  ;;  %v11309_v14 = vld [vmem:[%s19319_s2 + $0x9cc] sm:$0xf0] }
 0x398   : > { %6384 = vmatpush.bf16.msrb.mxu1 %v10360_v58  ;;  %6426 = vmatpush.bf16.msrb.mxu3 %v11032_v50  ;;  %v17501_v58 = vadd.f32 %v6108_v20, %v6095_v36  ;;  %v11396_v50 = vor.u32 %v12642_v55, %v11393_v2  ;;  %v12464_v55 = vld [vmem:[%s19319_s2 + $0x4c8] sm:$0xf0]  ;;  %v10504_v2 = vor.u32 %v12422_v37, %v10503_v28  ;;  %v12345_v20 = vld [vmem:[%s19319_s2 + $0x110] sm:$0xf0]  ;;  %v10615_v37 = vld [vmem:[%s19319_s2 + $0x440] sm:$0xf] }
 0x399   : > { %6415 = vmatmul.bf16.vlgmr.msra.gmra.mxu0 %v16014_v1  ;;  %v11312_v33 = vor.u32 %v12621_v52, %v11309_v14  ;;  %v10111_v14 = vld [vmem:[%s19319_s2 + $0x50] sm:$0xf] }
 0x39a   : > { %6398 = vmatpush.bf16.msrb.mxu2 %v10584_v46  ;;  %6463 = vmatpush.bf16.msrb.mxu0 %v10280_v17  ;;  %v12352_v46 = vld [vmem:[%s19319_s2 + $0x148] sm:$0xf0]  ;;  %v10195_v17 = vld [vmem:[%s19319_s2 + $0xf8] sm:$0xf] }
 0x39b   : > { %v10224_v36 = vor.u32 %v12352_v46, %v10223_v0  ;;  %v10196_v35 = vor.u32 %v12345_v20, %v10195_v17  ;;  %v12614_v0 = vld [vmem:[%s19319_s2 + $0x97c] sm:$0xf]  ;;  %v11281_v46 = vld [vmem:[%s19319_s2 + $0x994] sm:$0xf0]  ;;  %v12607_v20 = vld [vmem:[%s19319_s2 + $0x944] sm:$0xf] }
 0x39c   : > { %6385 = vmatpush.bf16.msrb.mxu1 %v10332_v25  ;;  %6427 = vmatpush.bf16.msrb.mxu3 %v11004_v6  ;;  %v17533_v25 = vpop.f32.mrf.mxu1  ;;  %v11368_v6 = vor.u32 %v12635_v51, %v11365_v30  ;;  %v10447_v30 = vld [vmem:[%s19319_s2 + $0x2f0] sm:$0xf] }
 0x39e   : > { %6399 = vmatpush.bf16.msrb.mxu2 %v10556_v4  ;;  %6464 = vmatpush.bf16.msrb.mxu0 %v10252_v13  ;;  %v11340_v4 = vor.u32 %v12628_v10, %v11337_v49  ;;  %v12408_v13 = vld [vmem:[%s19319_s2 + $0x308] sm:$0xf0]  ;;  %v10139_v10 = vld [vmem:[%s19319_s2 + $0x88] sm:$0xf]  ;;  %v12331_v49 = vld [vmem:[%s19319_s2 + $0xa0] sm:$0xf0] }
 0x39f   : > { %v10140_v48 = vor.u32 %v12331_v49, %v10139_v10 }
 0x3a0   : > { %6386 = vmatpush.bf16.msrb.mxu1 %v10304_v60  ;;  %6428 = vmatpush.bf16.msrb.mxu3 %v10976_v11  ;;  %v10672_v60 = vor.u32 %v12464_v55, %v10671_v9  ;;  %v12457_v11 = vld [vmem:[%s19319_s2 + $0x490] sm:$0xf0]  ;;  %v11284_v55 = vor.u32 %v12614_v0, %v11281_v46  ;;  %v10363_v0 = vld [vmem:[%s19319_s2 + $0x248] sm:$0xf]  ;;  %v10083_v46 = vld [vmem:[%s19319_s2 + $0x18] sm:$0xf] }
 0x3a1   : > { %v12401_v9 = vld [vmem:[%s19319_s2 + $0x2d0] sm:$0xf0] }
 0x3a2   : > { %6400 = vmatpush.bf16.msrb.mxu2 %v10528_v31  ;;  %6465 = vmatpush.bf16.msrb.mxu0 %v10224_v36  ;;  %v10644_v31 = vor.u32 %v12457_v11, %v10643_v32  ;;  %v10419_v36 = vld [vmem:[%s19319_s2 + $0x2b8] sm:$0xf]  ;;  %v10391_v32 = vld [vmem:[%s19319_s2 + $0x280] sm:$0xf]  ;;  %v12394_v11 = vld [vmem:[%s19319_s2 + $0x298] sm:$0xf0] }
 0x3a3   : > { %6387 = vmatmul.bf16.vlgmr.msrb.gmra.mxu1 %v15932_v57  ;;  %6429 = vmatmul.bf16.vlgmr.msrb.gmra.mxu3 %v16213_v63  ;;  %v10420_v52 = vor.u32 %v12401_v9, %v10419_v36  ;;  %v12593_v36 = vld [vmem:[%s19319_s2 + $0x8d4] sm:$0xf]  ;;  %v11197_v9 = vld [vmem:[%s19319_s2 + $0x8ec] sm:$0xf0] }
 0x3a4   : > { %6435 = vmatpush.bf16.msra.mxu1 %v11396_v50  ;;  %6491 = vmatpush.bf16.msra.mxu3 %v10728_v47  ;;  %v17583_v50 = vpop.f32.mrf.mxu3  ;;  %v10167_v47 = vld [vmem:[%s19319_s2 + $0xc0] sm:$0xf]  ;;  %v6122_v51 = vpop.f32.mrf.mxu1 }
 0x3a5   : > { %6401 = vmatmul.bf16.vlgmr.msrb.gmra.mxu2 %v16012_v38  ;;  %v6123_v53 = vadd.f32 %v6122_v51, %v17501_v58  ;;  %v10168_v28 = vor.u32 %v12338_v7, %v10167_v47  ;;  %v12450_v58 = vld [vmem:[%s19319_s2 + $0x458] sm:$0xf0]  ;;  %v12600_v51 = vld [vmem:[%s19319_s2 + $0x90c] sm:$0xf] }
 0x3a6   : > { %6456 = vmatpush.bf16.msra.mxu2 %v11424_v45  ;;  %v6136_v45 = vpop.f32.mrf.mxu0  ;;  %6466 = vmatpush.bf16.msrb.mxu0 %v10196_v35  ;;  %v10616_v17 = vor.u32 %v12450_v58, %v10615_v37  ;;  %v12324_v35 = vld [vmem:[%s19319_s2 + $0x68] sm:$0xf0]  ;;  %v11175_v58 = vld [vmem:[%s19319_s2 + $0x8a0] sm:$0xf] }
 0x3a8   : > { %6436 = vmatpush.bf16.msra.mxu1 %v11368_v6  ;;  %6492 = vmatpush.bf16.msra.mxu3 %v10700_v54  ;;  %v6137_v6 = vadd.f32 %v6136_v45, %v6123_v53  ;;  %v10448_v54 = vor.u32 %v12408_v13, %v10447_v30  ;;  %v11225_v30 = vld [vmem:[%s19319_s2 + $0x924] sm:$0xf0]  ;;  %v10112_v13 = vor.u32 %v12324_v35, %v10111_v14  ;;  %v12436_v53 = vld [vmem:[%s19319_s2 + $0x3e8] sm:$0xf0]  ;;  %v12317_v45 = vld [vmem:[%s19319_s2 + $0x30] sm:$0xf0] }
 0x3a9   : > { %v11228_v37 = vor.u32 %v12600_v51, %v11225_v30  ;;  %v12653_v14 = vld [vmem:[%s19319_s2 + $0xab0] sm:$0xf0]  ;;  %v11147_v30 = vld [vmem:[%s19319_s2 + $0x868] sm:$0xf] }
 0x3aa   : > { %6477 = vmatpush.bf16.msrb.mxu2 %v10504_v2  ;;  %v17622_v2 = vpop.f32.mrf.mxu2  ;;  %6467 = vmatpush.bf16.msrb.mxu0 %v10168_v28  ;;  %v12387_v28 = vld [vmem:[%s19319_s2 + $0x260] sm:$0xf0] }
 0x3ac   : > { %6437 = vmatpush.bf16.msra.mxu1 %v11340_v4  ;;  %6493 = vmatpush.bf16.msra.mxu3 %v10672_v60  ;;  %v10587_v4 = vld [vmem:[%s19319_s2 + $0x408] sm:$0xf]  ;;  %v12443_v60 = vld [vmem:[%s19319_s2 + $0x420] sm:$0xf0]  ;;  %v6164_v47 = vpop.f32.mrf.mxu3 }
 0x3ad   : > { %v10588_v7 = vor.u32 %v12443_v60, %v10587_v4  ;;  %v12534_v4 = vld [vmem:[%s19319_s2 + $0x6f8] sm:$0xf0]  ;;  %v10364_v60 = vor.u32 %v12387_v28, %v10363_v0  ;;  %v11399_v28 = vld [vmem:[%s19319_s2 + $0xa60] sm:$0xf] }
 0x3ae   : > { %6478 = vmatpush.bf16.msrb.mxu2 %v10476_v29  ;;  %v11256_v29 = vor.u32 %v12607_v20, %v11253_v43  ;;  %6468 = vmatpush.bf16.msrb.mxu0 %v10140_v48  ;;  %v10084_v20 = vor.u32 %v12317_v45, %v10083_v46  ;;  %v12429_v43 = vld [vmem:[%s19319_s2 + $0x3b0] sm:$0xf0]  ;;  %v10951_v48 = vld [vmem:[%s19319_s2 + $0x6e0] sm:$0xf]  ;;  %v10307_v46 = vld [vmem:[%s19319_s2 + $0x1d8] sm:$0xf] }
 0x3af   : > { %v10952_v51 = vor.u32 %v12534_v4, %v10951_v48  ;;  %v12373_v45 = vld [vmem:[%s19319_s2 + $0x1f0] sm:$0xf0]  ;;  %v12639_v4 = vld [vmem:[%s19319_s2 + $0xa40] sm:$0xf0] }
 0x3b0   : > { %6438 = vmatpush.bf16.msra.mxu1 %v11312_v33  ;;  %6494 = vmatpush.bf16.msra.mxu3 %v10644_v31  ;;  %v10559_v33 = vld [vmem:[%s19319_s2 + $0x3d0] sm:$0xf]  ;;  %v10392_v31 = vor.u32 %v12394_v11, %v10391_v32  ;;  %v12380_v11 = vld [vmem:[%s19319_s2 + $0x228] sm:$0xf0] }
 0x3b1   : > { %v10560_v49 = vor.u32 %v12436_v53, %v10559_v33  ;;  %v10335_v32 = vld [vmem:[%s19319_s2 + $0x210] sm:$0xf]  ;;  %v12527_v33 = vld [vmem:[%s19319_s2 + $0x6c0] sm:$0xf0] }
 0x3b2   : > { %6479 = vmatpush.bf16.msrb.mxu2 %v10448_v54  ;;  %v12590_v54 = vld [vmem:[%s19319_s2 + $0x8b8] sm:$0xf0]  ;;  %v6150_v10 = vpop.f32.mrf.mxu2  ;;  %6469 = vmatpush.bf16.msrb.mxu0 %v10112_v13  ;;  %v10923_v13 = vld [vmem:[%s19319_s2 + $0x6a8] sm:$0xf]  ;;  %v10336_v0 = vor.u32 %v12380_v11, %v10335_v32  ;;  %v12513_v32 = vld [vmem:[%s19319_s2 + $0x650] sm:$0xf0] }
 0x3b4   : > { %6439 = vmatpush.bf16.msra.mxu1 %v11284_v55  ;;  %6495 = vmatpush.bf16.msra.mxu3 %v10616_v17  ;;  %v10531_v55 = vld [vmem:[%s19319_s2 + $0x398] sm:$0xf]  ;;  %v6151_v17 = vadd.f32 %v6150_v10, %v6137_v6  ;;  %v11176_v6 = vor.u32 %v12590_v54, %v11175_v58  ;;  %v17735_v58 = vpop.f32.mrf.mxu1  ;;  %v12646_v54 = vld [vmem:[%s19319_s2 + $0xa78] sm:$0xf0]  ;;  %v10924_v10 = vor.u32 %v12527_v33, %v10923_v13  ;;  %v11063_v33 = vld [vmem:[%s19319_s2 + $0x7c0] sm:$0xf] }
 0x3b5   : > { %11434 = vmatmul.msk.bf16.vlgmr.msra.gmra.mxu2 %vm2557_vm0, %v16170_v27 }
 0x3b6   : > { %6480 = vmatpush.bf16.msrb.mxu2 %v10420_v52  ;;  %v11427_v52 = vld [vmem:[%s19319_s2 + $0xa98] sm:$0xf]  ;;  %v17704_v35 = vadd.f32 %v6164_v47, %v6151_v17  ;;  %v12583_v47 = vld [vmem:[%s19319_s2 + $0x880] sm:$0xf0]  ;;  %6470 = vmatpush.bf16.msrb.mxu0 %v10084_v20  ;;  %v17753_v17 = vpop.f32.mrf.mxu0  ;;  %v10308_v20 = vor.u32 %v12373_v45, %v10307_v46  ;;  %v10839_v46 = vld [vmem:[%s19319_s2 + $0x600] sm:$0xf] }
 0x3b7   : > { %v11428_v53 = vor.u32 %v12653_v14, %v11427_v52  ;;  %v4062_v52 = vperm.slane %v16841_v21, 3  ;;  %v10867_v14 = vld [vmem:[%s19319_s2 + $0x638] sm:$0xf]  ;;  %v12506_v45 = vld [vmem:[%s19319_s2 + $0x618] sm:$0xf0] }
 0x3b8   : > { %6440 = vmatpush.bf16.msra.mxu1 %v11256_v29  ;;  %6496 = vmatpush.bf16.msra.mxu3 %v10588_v7  ;;  %v11200_v29 = vor.u32 %v12593_v36, %v11197_v9  ;;  %v10532_v7 = vor.u32 %v12429_v43, %v10531_v55  ;;  %v12576_v36 = vld [vmem:[%s19319_s2 + $0x848] sm:$0xf0]  ;;  %v10895_v9 = vld [vmem:[%s19319_s2 + $0x670] sm:$0xf]  ;;  %v11400_v43 = vor.u32 %v12646_v54, %v11399_v28 }
 0x3b9   : > { %6471 = vmatmul.bf16.vlgmr.msrb.gmra.mxu0 %v15930_v19  ;;  %v12520_v55 = vld [vmem:[%s19319_s2 + $0x688] sm:$0xf0]  ;;  %v11371_v19 = vld [vmem:[%s19319_s2 + $0xa28] sm:$0xf]  ;;  %v10868_v13 = vor.u32 %v12513_v32, %v10867_v14 }
 0x3ba   : > { %6481 = vmatpush.bf16.msrb.mxu2 %v10392_v31  ;;  %v17724_v31 = vpop.f32.mrf.mxu3  ;;  %6519 = vmatpush.bf16.msra.mxu0 %v11176_v6  ;;  %v11091_v6 = vld [vmem:[%s19319_s2 + $0x7f8] sm:$0xf]  ;;  %v11372_v11 = vor.u32 %v12639_v4, %v11371_v19  ;;  %v11035_v19 = vld [vmem:[%s19319_s2 + $0x788] sm:$0xf] }
 0x3bb   : > { %19392 = vst [vmem:[#allocation7_spill] sm:$0xff] %v17724_v31 }
 0x3bc   : > { %6441 = vmatpush.bf16.msra.mxu1 %v11228_v37  ;;  %6497 = vmatpush.bf16.msra.mxu3 %v10560_v49  ;;  %v11148_v37 = vor.u32 %v12583_v47, %v11147_v30  ;;  %v11119_v49 = vld [vmem:[%s19319_s2 + $0x830] sm:$0xf]  ;;  %v6178_v30 = vpop.f32.mrf.mxu1  ;;  %v12632_v47 = vld [vmem:[%s19319_s2 + $0xa08] sm:$0xf0] }
 0x3bd   : > { %v11120_v48 = vor.u32 %v12576_v36, %v11119_v49  ;;  %v12625_v49 = vld [vmem:[%s19319_s2 + $0x9d0] sm:$0xf0]  ;;  %v10840_v36 = vor.u32 %v12506_v45, %v10839_v46 }
 0x3be   : > { %6482 = vmatpush.bf16.msrb.mxu2 %v10364_v60  ;;  %6520 = vmatpush.bf16.msra.mxu0 %v11148_v37  ;;  %v10896_v60 = vor.u32 %v12520_v55, %v10895_v9  ;;  %v6206_v28 = vpop.f32.mrf.mxu0  ;;  %v10811_v9 = vld [vmem:[%s19319_s2 + $0x5c8] sm:$0xf]  ;;  %v17804_v55 = vpop.f32.mrf.mxu2 }
 0x3c0   : > { %6442 = vmatpush.bf16.msra.mxu1 %v11200_v29  ;;  %6498 = vmatpush.bf16.msra.mxu3 %v10532_v7  ;;  %v11343_v29 = vld [vmem:[%s19319_s2 + $0x9f0] sm:$0xf] }
 0x3c1   : > { %v11344_v54 = vor.u32 %v12632_v47, %v11343_v29 }
 0x3c2   : > { %6483 = vmatpush.bf16.msrb.mxu2 %v10336_v0  ;;  %6521 = vmatpush.bf16.msra.mxu0 %v11120_v48  ;;  %v6179_v0 = vadd.f32 %v6178_v30, %v4062_v52  ;;  %v12555_v48 = vld [vmem:[%s19319_s2 + $0x7a0] sm:$0xf0]  ;;  %v12548_v30 = vld [vmem:[%s19319_s2 + $0x768] sm:$0xf0] }
 0x3c3   : > { %6443 = vmatmul.bf16.vlgmr.msra.gmra.mxu1 %v16215_v44  ;;  %6499 = vmatmul.bf16.vlgmr.msra.gmra.mxu3 %v16012_v38  ;;  %v12569_v38 = vld [vmem:[%s19319_s2 + $0x810] sm:$0xf0]  ;;  %v11036_v32 = vor.u32 %v12555_v48, %v11035_v19 }
 0x3c4   : > { %6505 = vmatpush.bf16.msrb.mxu1 %v10952_v51  ;;  %6554 = vmatpush.bf16.msrb.mxu3 %v11428_v53  ;;  %v11092_v7 = vor.u32 %v12569_v38, %v11091_v6  ;;  %v6192_v51 = vpop.f32.mrf.mxu3  ;;  %v12562_v53 = vld [vmem:[%s19319_s2 + $0x7d8] sm:$0xf0]  ;;  %v11287_v6 = vld [vmem:[%s19319_s2 + $0x980] sm:$0xf] }
 0x3c5   : > { %v6193_v37 = vadd.f32 %v6192_v51, %v6179_v0  ;;  %v12618_v38 = vld [vmem:[%s19319_s2 + $0x998] sm:$0xf0]  ;;  %v11007_v51 = vld [vmem:[%s19319_s2 + $0x750] sm:$0xf]  ;;  %v12611_v0 = vld [vmem:[%s19319_s2 + $0x960] sm:$0xf0] }
 0x3c6   : > { %6484 = vmatpush.bf16.msrb.mxu2 %v10308_v20  ;;  %6522 = vmatpush.bf16.msra.mxu0 %v11092_v7  ;;  %v12492_v7 = vld [vmem:[%s19319_s2 + $0x5a8] sm:$0xf0]  ;;  %v11008_v45 = vor.u32 %v12548_v30, %v11007_v51 }
 0x3c7   : > { %v6207_v20 = vadd.f32 %v6206_v28, %v6193_v37  ;;  %v10755_v28 = vld [vmem:[%s19319_s2 + $0x558] sm:$0xf] }
 0x3c8   : > { %6506 = vmatpush.bf16.msrb.mxu1 %v10924_v10  ;;  %v11064_v10 = vor.u32 %v12562_v53, %v11063_v33  ;;  %v11288_v33 = vor.u32 %v12618_v38, %v11287_v6  ;;  %v11259_v53 = vld [vmem:[%s19319_s2 + $0x948] sm:$0xf] }
 0x3c9   : > { %6485 = vmatmul.bf16.vlgmr.msrb.gmra.mxu2 %v15932_v57  ;;  %v11315_v57 = vld [vmem:[%s19319_s2 + $0x9b8] sm:$0xf] }
 0x3ca   : > { %6533 = vmatpush.bf16.msra.mxu2 %v11400_v43  ;;  %v12499_v43 = vld [vmem:[%s19319_s2 + $0x5e0] sm:$0xf0]  ;;  %v11316_v4 = vor.u32 %v12625_v49, %v11315_v57  ;;  %6523 = vmatpush.bf16.msra.mxu0 %v11064_v10  ;;  %v10979_v10 = vld [vmem:[%s19319_s2 + $0x718] sm:$0xf]  ;;  %v12541_v57 = vld [vmem:[%s19319_s2 + $0x730] sm:$0xf0] }
 0x3cb   : > { %v10812_v14 = vor.u32 %v12499_v43, %v10811_v9  ;;  %v11231_v9 = vld [vmem:[%s19319_s2 + $0x910] sm:$0xf]  ;;  %v12604_v43 = vld [vmem:[%s19319_s2 + $0x928] sm:$0xf0]  ;;  %v10980_v48 = vor.u32 %v12541_v57, %v10979_v10 }
 0x3cc   : > { %6507 = vmatpush.bf16.msrb.mxu1 %v10896_v60  ;;  %v6180_v60 = vpop.f32.mrf.mxu1  ;;  %v6194_v47 = vpop.f32.mrf.mxu3 }
 0x3cd   : > { %v6181_v29 = vadd.f32 %v6180_v60, %v4062_v52  ;;  %v6208_v52 = vpop.f32.mrf.mxu0  ;;  %v12597_v60 = vld [vmem:[%s19319_s2 + $0x8f0] sm:$0xf0] }
 0x3ce   : > { %6534 = vmatpush.bf16.msra.mxu2 %v11372_v11  ;;  %v10783_v11 = vld [vmem:[%s19319_s2 + $0x590] sm:$0xf]  ;;  %6524 = vmatpush.bf16.msra.mxu0 %v11036_v32 }
 0x3cf   : > { %v10784_v46 = vor.u32 %v12492_v7, %v10783_v11 }
 0x3d0   : > { %6508 = vmatpush.bf16.msrb.mxu1 %v10868_v13  ;;  %v6195_v13 = vadd.f32 %v6194_v47, %v6181_v29 }
 0x3d2   : > { %6535 = vmatpush.bf16.msra.mxu2 %v11344_v54  ;;  %v6209_v37 = vadd.f32 %v6208_v52, %v6195_v13  ;;  %v12485_v54 = vld [vmem:[%s19319_s2 + $0x570] sm:$0xf0]  ;;  %6525 = vmatpush.bf16.msra.mxu0 %v11008_v45 }
 0x3d3   : > { %11435 = vmatmul.msk.bf16.vlgmr.msrb.gmra.mxu3 %vm2557_vm0, %v16170_v27  ;;  %v6220_v27 = vpop.f32.mrf.mxu2  ;;  %v10756_v19 = vor.u32 %v12485_v54, %v10755_v28 }
 0x3d4   : > { %6509 = vmatpush.bf16.msrb.mxu1 %v10840_v36  ;;  %v6221_v49 = vadd.f32 %v6220_v27, %v6207_v20  ;;  %v11260_v36 = vor.u32 %v12611_v0, %v11259_v53  ;;  %v11203_v20 = vld [vmem:[%s19319_s2 + $0x8d8] sm:$0xf]  ;;  %v6248_v32 = vpop.f32.mrf.mxu3 }
 0x3d5   : > { %v6262_v7 = vpop.f32.mrf.mxu0 }
 0x3d6   : > { %6536 = vmatpush.bf16.msra.mxu2 %v11316_v4  ;;  %v11232_v4 = vor.u32 %v12604_v43, %v11231_v9  ;;  %6526 = vmatpush.bf16.msra.mxu0 %v10980_v48 }
 0x3d8   : > { %6510 = vmatpush.bf16.msrb.mxu1 %v10812_v14  ;;  %v11204_v14 = vor.u32 %v12597_v60, %v11203_v20 }
 0x3d9   : > { %6527 = vmatmul.bf16.vlgmr.msra.gmra.mxu0 %v16213_v63 }
 0x3da   : > { %6537 = vmatpush.bf16.msra.mxu2 %v11288_v33 }
 0x3db   : > { %v6222_v6 = vpop.f32.mrf.mxu2 }
 0x3dc   : > { %6511 = vmatpush.bf16.msrb.mxu1 %v10784_v46  ;;  %v6223_v38 = vadd.f32 %v6222_v6, %v6209_v37  ;;  %v6234_v11 = vpop.f32.mrf.mxu1  ;;  %v6250_v33 = vpop.f32.mrf.mxu3 }
 0x3dd   : > { %v6235_v29 = vadd.f32 %v6234_v11, %v6221_v49  ;;  %v6264_v53 = vpop.f32.mrf.mxu0 }
 0x3de   : > { %6538 = vmatpush.bf16.msra.mxu2 %v11260_v36 }
 0x3df   : > { %v6249_v51 = vadd.f32 %v6248_v32, %v6235_v29 }
 0x3e0   : > { %6512 = vmatpush.bf16.msrb.mxu1 %v10756_v19 }
 0x3e1   : > { %v17868_v30 = vadd.f32 %v6262_v7, %v6249_v51  ;;  %v4063_v51 = vperm.slane %v16841_v21, 4 }
 0x3e2   : > { %6539 = vmatpush.bf16.msra.mxu2 %v11232_v4 }
 0x3e3   : > { %6513 = vmatmul.bf16.vlgmr.msrb.gmra.mxu1 %v16014_v1 }
 0x3e4   : > { %v6236_v47 = vpop.f32.mrf.mxu1 }
 0x3e5   : > { %v6237_v13 = vadd.f32 %v6236_v47, %v6223_v38  ;;  %v6290_v45 = vpop.f32.mrf.mxu0  ;;  %v5887_v47 = vadd.f32 %v17043_v24, %v4059_v18 }
 0x3e6   : > { %6540 = vmatpush.bf16.msra.mxu2 %v11204_v14  ;;  %v6318_v27 = vpop.f32.mrf.mxu3 }
 0x3e7   : > { %v6251_v52 = vadd.f32 %v6250_v33, %v6237_v13  ;;  %v4064_v13 = vperm.slane %v16841_v21, 5 }
 0x3e8   : > { %v6276_v1 = vpop.f32.mrf.mxu2 }
 0x3e9   : > { %6541 = vmatmul.bf16.vlgmr.msra.gmra.mxu2 %v16215_v44  ;;  %v17870_v0 = vadd.f32 %v6264_v53, %v6251_v52  ;;  %v6277_v33 = vadd.f32 %v6276_v1, %v4063_v51  ;;  %v5901_v53 = vadd.f32 %v17030_v5, %v5887_v47  ;;  %v4065_v47 = vperm.slane %v16841_v21, 6 }
 0x3eb   : > { %19393 = vst [vmem:[#allocation11_spill] sm:$0xff] %v17870_v0  ;;  %v5915_v31 = vadd.f32 %v16974_v23, %v5901_v53 }
 0x3ed   : > { %v6292_v44 = vpop.f32.mrf.mxu0 }
 0x3ee   : > { %v17876_v57 = vpop.f32.mrf.mxu3 }
 0x3f0   : > { %v6278_v63 = vpop.f32.mrf.mxu2 }
 0x3f6   : > { %v17878_v49 = vpop.f32.mrf.mxu0 }
 0x3fc   : > { %v6304_v46 = vpop.f32.mrf.mxu1 }
 0x3fe   : > { %v17882_v19 = vpop.f32.mrf.mxu0 }
 0x3ff   : > { %19395 = vst [vmem:[#allocation10_spill] sm:$0xff] %v17882_v19 }
 0x404   : > { %v6306_v28 = vpop.f32.mrf.mxu1 }
 0x406   : > { %v6374_v9 = vpop.f32.mrf.mxu3 }
 0x407   : > { %v6375_v0 = vadd.f32 %v6374_v9, %v4064_v13 }
 0x408   : > { %v6332_v37 = vpop.f32.mrf.mxu2 }
 0x40c   : > { %v17872_v54 = vpop.f32.mrf.mxu1 }
 0x40e   : > { %v6376_v4 = vpop.f32.mrf.mxu3 }
 0x410   : > { %v17874_v10 = vpop.f32.mrf.mxu2 }
 0x414   : > { %v17880_v43 = vpop.f32.mrf.mxu1 }
 0x415   : > { %19394 = vst [vmem:[#allocation3_spill] sm:$0xff] %v17880_v43  ;;  %v19398_v43 = vperm.slane %v16841_v21, 2 }
 0x416   : > { %v6416_v60 = vpop.f32.mrf.mxu0 }
 0x417   : > { %v6083_v19 = vadd.f32 %v17548_v22, %v19398_v43 }
 0x419   : > { %v6097_v61 = vadd.f32 %v17622_v2, %v6083_v19 }
 0x41e   : > { %v6418_v32 = vpop.f32.mrf.mxu0 }
 0x420   : > { %v6388_v20 = vpop.f32.mrf.mxu1 }
 0x421   : > { %v6389_v18 = vadd.f32 %v6388_v20, %v6375_v0  ;;  %v6111_v0 = vadd.f32 %v17583_v50, %v6097_v61  ;;  %v6377_v20 = vadd.f32 %v6376_v4, %v4064_v13 }
 0x423   : > { %v6125_v2 = vadd.f32 %v17735_v58, %v6111_v0 }
 0x426   : > { %v6430_v6 = vpop.f32.mrf.mxu3 }
 0x428   : > { %v6402_v36 = vpop.f32.mrf.mxu2  ;;  %v6390_v14 = vpop.f32.mrf.mxu1 }
 0x429   : > { %v6403_v9 = vadd.f32 %v6402_v36, %v6389_v18 }
 0x42e   : > { %v17886_v11 = vpop.f32.mrf.mxu3 }
 0x42f   : > { %19396 = vst [vmem:[#allocation2_spill] sm:$0xff] %v17886_v11  ;;  %v6291_v11 = vadd.f32 %v6290_v45, %v6277_v33  ;;  %v6417_v33 = vadd.f32 %v6416_v60, %v6403_v9 }
 0x430   : > { %v6404_v48 = vpop.f32.mrf.mxu2 }
 0x431   : > { %v6305_v42 = vadd.f32 %v6304_v46, %v6291_v11 }
 0x433   : > { %v6319_v43 = vadd.f32 %v6318_v27, %v6305_v42  ;;  %v6581_v27 = vmul.f32 %v17163_v8, %v17163_v8 }
 0x435   : > { %v6333_v36 = vadd.f32 %v6332_v37, %v6319_v43  ;;  %v6139_v37 = vadd.f32 %v17753_v17, %v6125_v2 }
 0x436   : > { %v6472_v52 = vpop.f32.mrf.mxu0  ;;  %v19400_v61 = vld [vmem:[#allocation2_spill] sm:$0xff] }
 0x437   : > { %v6473_v45 = vadd.f32 %v6472_v52, %v4065_v47 }
 0x438   : > { %v17884_v38 = vpop.f32.mrf.mxu2 }
 0x43e   : > { %v6474_v23 = vpop.f32.mrf.mxu0 }
 0x440   : > { %v6444_v29 = vpop.f32.mrf.mxu1  ;;  %v17888_v7 = vpop.f32.mrf.mxu2 }
 0x441   : > { %19397 = vst [vmem:[#allocation5_spill] sm:$0xff] %v17888_v7  ;;  %v5999_v7 = vadd.f32 %v17320_v12, %v5985_v39  ;;  %v6279_v12 = vadd.f32 %v6278_v63, %v4063_v51  ;;  %v5929_v39 = vadd.f32 %v17045_v16, %v5915_v31  ;;  %v6391_v63 = vadd.f32 %v6390_v14, %v6377_v20 }
 0x442   : > { %v6431_v31 = vadd.f32 %v6430_v6, %v6417_v33  ;;  %v6475_v6 = vadd.f32 %v6474_v23, %v4065_v47  ;;  %v6153_v51 = vadd.f32 %v17804_v55, %v6139_v37 }
 0x443   : > { %v6013_v5 = vadd.f32 %v17299_v26, %v5999_v7  ;;  %v5943_v26 = vadd.f32 %v17182_v59, %v5929_v39  ;;  %v6293_v46 = vadd.f32 %v6292_v44, %v6279_v12  ;;  %v6405_v11 = vadd.f32 %v6404_v48, %v6391_v63 }
 0x444   : > { %v6582_v59 = vmul.f32 %v17391_v15, %v17391_v15  ;;  %v6347_v44 = vadd.f32 %v17878_v49, %v6333_v36  ;;  %v6583_v48 = vmul.f32 %v17704_v35, %v17704_v35 }
 0x445   : > { %v6027_v22 = vadd.f32 %v17380_v62, %v6013_v5  ;;  %v6307_v62 = vadd.f32 %v6306_v28, %v6293_v46  ;;  %v5957_v58 = vadd.f32 %v17180_v34, %v5943_v26  ;;  %v6561_v28 = vadd.f32 %v17391_v15, %v17163_v8  ;;  %v19399_v5 = vld [vmem:[#allocation7_spill] sm:$0xff] }
 0x446   : > { %v6500_v3 = vpop.f32.mrf.mxu3  ;;  %v6419_v34 = vadd.f32 %v6418_v32, %v6405_v11  ;;  %v6595_v13 = vadd.f32 %v6582_v59, %v6581_v27  ;;  %v19402_v46 = vld [vmem:[#allocation3_spill] sm:$0xff] }
 0x447   : > { %v6041_v16 = vadd.f32 %v17428_v41, %v6027_v22  ;;  %v6445_v41 = vadd.f32 %v6444_v29, %v6431_v31  ;;  %v6584_v29 = vmul.f32 %v17868_v30, %v17868_v30  ;;  %v6562_v53 = vadd.f32 %v6561_v28, %v17704_v35  ;;  %v19403_v11 = vld [vmem:[#allocation11_spill] sm:$0xff] }
 0x448   : > { %v17903_v24 = vpop.f32.mrf.mxu1  ;;  %v6433_v42 = vadd.f32 %v19400_v61, %v6419_v34  ;;  %v19404_v27 = vld [vmem:[#allocation5_spill] sm:$0xff] }
 0x449   : > { %v6055_v4 = vadd.f32 %v17533_v25, %v6041_v16  ;;  %v17929_v25 = vadd.f32 %v17872_v54, %v6347_v44  ;;  %v17940_v55 = vadd.f32 %v17884_v38, %v6445_v41  ;;  %v17943_v54 = vadd.f32 %v17096_v40, %v5957_v58  ;;  %v11436_v61 = vld [vmem:[%s19325_s8 + $0x4] ss:$8 sm:$0xf] }
 0x44a   : > { %v6447_v43 = vadd.f32 %v17903_v24, %v6433_v42  ;;  %v11437_v42 = vld [vmem:[%s19325_s8 + $0x4] ss:$8 sm:$0x70] }
 0x44b   : > { %v17933_v49 = vadd.f32 %v17408_v56, %v6055_v4  ;;  %v17946_v56 = vadd.f32 %v19399_v5, %v6153_v51  ;;  %v6585_v47 = vmul.f32 %v17929_v25, %v17929_v25  ;;  %v6586_v33 = vmul.f32 %v17940_v55, %v17940_v55 }
 0x44c   : > { %v6486_v1 = vpop.f32.mrf.mxu2  ;;  %v6588_v23 = vmul.f32 %v17943_v54, %v17943_v54  ;;  %v17979_v59 = vadd.f32 %v19404_v27, %v6447_v43 }
 0x44d   : > { %v6487_v7 = vadd.f32 %v6486_v1, %v6473_v45  ;;  %v6589_v38 = vmul.f32 %v17933_v49, %v17933_v49  ;;  %v19401_v45 = vld [vmem:[#allocation10_spill] sm:$0xff]  ;;  %v6570_v26 = vadd.f32 %v17933_v49, %v17943_v54 }
 0x44e   : > { %v6502_v21 = vpop.f32.mrf.mxu3 }
 0x44f   : > { %v6501_v60 = vadd.f32 %v6500_v3, %v6487_v7  ;;  %v6321_v3 = vadd.f32 %v17876_v57, %v6307_v62  ;;  %v6596_v57 = vadd.f32 %v6595_v13, %v6583_v48  ;;  %v6571_v16 = vadd.f32 %v6570_v26, %v17946_v56  ;;  %v12667_v26 = vld [vmem:[%s19320_s3 + $0x64] sm:$0xf0] }
 0x451   : > { %v6335_v18 = vadd.f32 %v17874_v10, %v6321_v3  ;;  %v6563_v10 = vadd.f32 %v6562_v53, %v17868_v30  ;;  %v6597_v22 = vadd.f32 %v6596_v57, %v6584_v29  ;;  %v6572_v28 = vadd.f32 %v6571_v16, %v19403_v11  ;;  %v19405_v16 = vld [vmem:[#allocation6_spill] sm:$0xff] }
 0x453   : > { %v6349_v0 = vadd.f32 %v19401_v45, %v6335_v18  ;;  %v6564_v20 = vadd.f32 %v6563_v10, %v17929_v25  ;;  %v6598_v63 = vadd.f32 %v6597_v22, %v6585_v47  ;;  %v11499_v10 = vld [vmem:[%s19320_s3 + $0x70] sm:$0xf]  ;;  %v12685_v22 = vld [vmem:[%s19320_s3 + $0xf4] sm:$0xf0] }
 0x454   : > { %v6488_v50 = vpop.f32.mrf.mxu2  ;;  %v11691_v45 = vld [vmem:[%s19320_s3 + $0x1f0] sm:$0xf] }
 0x455   : > { %v6489_v52 = vadd.f32 %v6488_v50, %v6475_v6  ;;  %v17968_v36 = vadd.f32 %v19402_v46, %v6349_v0  ;;  %v6565_v24 = vadd.f32 %v6564_v20, %v17940_v55  ;;  %v6591_v50 = vmul.f32 %v19403_v11, %v19403_v11  ;;  %v12717_v0 = vld [vmem:[%s19320_s3 + $0x1f4] sm:$0xf0] }
 0x456   : > { %v6528_v17 = vpop.f32.mrf.mxu0  ;;  %v6556_v32 = vpop.f32.mrf.mxu3  ;;  %v6599_v58 = vadd.f32 %v6598_v63, %v6586_v33  ;;  %v11692_v20 = vor.u32 %v12717_v0, %v11691_v45  ;;  %v11683_v63 = vld [vmem:[%s19320_s3 + $0x1e0] sm:$0xf]  ;;  %v11467_v45 = vld [vmem:[%s19320_s3 + $0x30] sm:$0xf]  ;;  %v12661_v0 = vld [vmem:[%s19320_s3 + $0x34] sm:$0xf0] }
 0x457   : > { %v6503_v40 = vadd.f32 %v6502_v21, %v6489_v52  ;;  %v6590_v21 = vmul.f32 %v17946_v56, %v17946_v56  ;;  %v6592_v48 = vmul.f32 %v17968_v36, %v17968_v36  ;;  %v6573_v3 = vadd.f32 %v6572_v28, %v17968_v36  ;;  %v12681_v28 = vld [vmem:[%s19320_s3 + $0xd4] sm:$0xf0] }
 0x458   : > { %7644 = vmatpush.bf16.msrb.mxu2 %v11692_v20  ;;  %v12677_v20 = vld [vmem:[%s19320_s3 + $0xb4] sm:$0xf0] }
 0x459   : > { %v6574_v52 = vadd.f32 %v6573_v3, %v17979_v59 }
 0x45e   : > { %v6530_v4 = vpop.f32.mrf.mxu0  ;;  %v6558_v34 = vpop.f32.mrf.mxu3 }
 0x460   : > { %v6514_v19 = vpop.f32.mrf.mxu1 }
 0x461   : > { %v6515_v14 = vadd.f32 %v6514_v19, %v6501_v60  ;;  %v6604_v19 = vadd.f32 %v6589_v38, %v6588_v23  ;;  %v12669_v38 = vld [vmem:[%s19320_s3 + $0x74] sm:$0xf0]  ;;  %v11491_v23 = vld [vmem:[%s19320_s3 + $0x60] sm:$0xf] }
 0x462   : > { %v11492_v46 = vor.u32 %v12667_v26, %v11491_v23  ;;  %v12709_v23 = vld [vmem:[%s19320_s3 + $0x1b4] sm:$0xf0] }
 0x463   : > { %v6529_v1 = vadd.f32 %v6528_v17, %v6515_v14  ;;  %v6605_v41 = vadd.f32 %v6604_v19, %v6590_v21  ;;  %v6593_v17 = vmul.f32 %v17979_v59, %v17979_v59  ;;  %v12715_v19 = vld [vmem:[%s19320_s3 + $0x1e4] sm:$0xf0] }
 0x465   : > { %v6606_v13 = vadd.f32 %v6605_v41, %v6591_v50  ;;  %v11684_v50 = vor.u32 %v12715_v19, %v11683_v63  ;;  %v11547_v41 = vld [vmem:[%s19320_s3 + $0xd0] sm:$0xf]  ;;  %v12659_v63 = vld [vmem:[%s19320_s3 + $0x24] sm:$0xf0]  ;;  %v11523_v19 = vld [vmem:[%s19320_s3 + $0xa0] sm:$0xf] }
 0x466   : > { %v11548_v3 = vor.u32 %v12681_v28, %v11547_v41 }
 0x467   : > { %v6607_v53 = vadd.f32 %v6606_v13, %v6592_v48  ;;  %7645 = vmatpush.bf16.msrb.mxu2 %v11684_v50  ;;  %v11675_v48 = vld [vmem:[%s19320_s3 + $0x1d0] sm:$0xf]  ;;  %v12675_v50 = vld [vmem:[%s19320_s3 + $0xa4] sm:$0xf0] }
 0x468   : > { %v6516_v9 = vpop.f32.mrf.mxu1 }
 0x469   : > { %v6517_v7 = vadd.f32 %v6516_v9, %v6503_v40  ;;  %v18002_v9 = vor.u32 %v11437_v42, %v11436_v61  ;;  %v11563_v40 = vld [vmem:[%s19320_s3 + $0xf0] sm:$0xf] }
 0x46a   : > { %v11564_v43 = vor.u32 %v12685_v22, %v11563_v40 }
 0x46b   : > { %v6531_v37 = vadd.f32 %v6530_v4, %v6517_v7  ;;  %v11555_v7 = vld [vmem:[%s19320_s3 + $0xe0] sm:$0xf] }
 0x46c   : > { %v6542_v12 = vpop.f32.mrf.mxu2  ;;  %7616 = vmatpush.bf16.msra.mxu3 %v11564_v43  ;;  %v11531_v43 = vld [vmem:[%s19320_s3 + $0xb0] sm:$0xf] }
 0x46d   : > { %v6543_v39 = vadd.f32 %v6542_v12, %v6529_v1  ;;  %v6608_v1 = vadd.f32 %v6607_v53, %v6593_v17  ;;  %v6690_v12 = vperm.slane %v18002_v9, 6  ;;  %v12663_v53 = vld [vmem:[%s19320_s3 + $0x44] sm:$0xf0] }
 0x46f   : > { %v17963_v2 = vadd.f32 %v6556_v32, %v6543_v39  ;;  %v11500_v39 = vor.u32 %v12669_v38, %v11499_v10  ;;  %v6701_v33 = vpack.c.bf16 %v6690_v12, %v6690_v12  ;;  %v12711_v12 = vld [vmem:[%s19320_s3 + $0x1c4] sm:$0xf0] }
 0x471   : > { %v6566_v62 = vsel %vm2557_vm0, %v17963_v2, 0.0  ;;  %v6587_v31 = vmul.f32 %v17963_v2, %v17963_v2  ;;  %7602 = vmatpush.bf16.msra.mxu1 %v11500_v39  ;;  %v6735_v4 = vunpack.c.l.b16 %v6701_v33  ;;  %v11659_v33 = vld [vmem:[%s19320_s3 + $0x1b0] sm:$0xf] }
 0x472   : > { %v6567_v60 = vadd.f32 %v6566_v62, %v6565_v24  ;;  %v12683_v24 = vld [vmem:[%s19320_s3 + $0xe4] sm:$0xf0] }
 0x473   : > { %v6600_v44 = vsel %vm2557_vm0, %v6587_v31, 0.0  ;;  %v11556_v31 = vor.u32 %v12683_v24, %v11555_v7  ;;  %v6742_v17 = vpack.c.b16 %v6735_v4, %v6735_v4  ;;  %v11468_v7 = vor.u32 %v12661_v0, %v11467_v45  ;;  %v11459_v24 = vld [vmem:[%s19320_s3 + $0x20] sm:$0xf]  ;;  %v12703_v45 = vld [vmem:[%s19320_s3 + $0x184] sm:$0xf0] }
 0x474   : > { %v6544_v6 = vpop.f32.mrf.mxu2  ;;  %6568 = vadd.xlane.f32.xlu2 %v6567_v60  ;;  %v6601_v14 = vadd.f32 %v6600_v44, %v6599_v58  ;;  %v12665_v44 = vld [vmem:[%s19320_s3 + $0x54] sm:$0xf0]  ;;  %v11460_v4 = vor.u32 %v12659_v63, %v11459_v24  ;;  %v11619_v0 = vld [vmem:[%s19320_s3 + $0x160] sm:$0xf] }
 0x475   : > { %v6545_v51 = vadd.f32 %v6544_v6, %v6531_v37  ;;  %7603 = vmatpush.bf16.msra.mxu1 %v11492_v46  ;;  %7617 = vmatpush.bf16.msra.mxu3 %v11556_v31  ;;  %v11483_v37 = vld [vmem:[%s19320_s3 + $0x50] sm:$0xf]  ;;  %v12713_v6 = vld [vmem:[%s19320_s3 + $0x1d4] sm:$0xf0]  ;;  %v6768_v40 = vpack.i.b16 %v6742_v17, %v6742_v17  ;;  %v11660_v46 = vor.u32 %v12709_v23, %v11659_v33 }
 0x476   : > { %6602 = vadd.xlane.f32.xlu0 %v6601_v14  ;;  %v11627_v17 = vld [vmem:[%s19320_s3 + $0x170] sm:$0xf]  ;;  %v12733_v63 = vld [vmem:[%s19320_s3 + $0x274] sm:$0xf0] }
 0x477   : > { %v17988_v29 = vadd.f32 %v6558_v34, %v6545_v51  ;;  %v11484_v51 = vor.u32 %v12665_v44, %v11483_v37  ;;  %v11676_v34 = vor.u32 %v12713_v6, %v11675_v48  ;;  %v11451_v37 = vld [vmem:[%s19320_s3 + $0x10] sm:$0xf]  ;;  %v12657_v44 = vld [vmem:[%s19320_s3 + $0x14] sm:$0xf0] }
 0x478   : > { %v11515_v6 = vld [vmem:[%s19320_s3 + $0x90] sm:$0xf] }
 0x479   : > { %v6575_v18 = vsel %vm2557_vm0, %v17988_v29, 0.0  ;;  %v6594_v57 = vmul.f32 %v17988_v29, %v17988_v29  ;;  %7604 = vmatpush.bf16.msra.mxu1 %v11484_v51  ;;  %7618 = vmatpush.bf16.msra.mxu3 %v11548_v3  ;;  %v11643_v3 = vld [vmem:[%s19320_s3 + $0x190] sm:$0xf] }
 0x47a   : > { %v6576_v32 = vadd.f32 %v6575_v18, %v6574_v52  ;;  %v11475_v52 = vld [vmem:[%s19320_s3 + $0x40] sm:$0xf]  ;;  %7646 = vmatpush.bf16.msrb.mxu2 %v11676_v34  ;;  %v12705_v34 = vld [vmem:[%s19320_s3 + $0x194] sm:$0xf0] }
 0x47b   : > { %v6609_v5 = vsel %vm2557_vm0, %v6594_v57, 0.0  ;;  %v11476_v57 = vor.u32 %v12663_v53, %v11475_v52  ;;  %v12701_v52 = vld [vmem:[%s19320_s3 + $0x174] sm:$0xf0]  ;;  %v18164_v53 = vld [vmem:[%s19320_s3] sm:$0xf] }
 0x47c   : > { %6577 = vadd.xlane.f32.xlu2 %v6576_v32  ;;  %v6610_v47 = vadd.f32 %v6609_v5, %v6608_v1  ;;  %v11539_v32 = vld [vmem:[%s19320_s3 + $0xc0] sm:$0xf]  ;;  %v12679_v1 = vld [vmem:[%s19320_s3 + $0xc4] sm:$0xf0] }
 0x47d   : > { %v11667_v5 = vld [vmem:[%s19320_s3 + $0x1c0] sm:$0xf]  ;;  %v11540_v42 = vor.u32 %v12679_v1, %v11539_v32  ;;  %7605 = vmatpush.bf16.msra.mxu1 %v11476_v57  ;;  %v6685_v57 = vperm.slane %v18002_v9, 1 }
 0x47e   : > { %6611 = vadd.xlane.f32.xlu1 %v6610_v47  ;;  %v11668_v38 = vor.u32 %v12711_v12, %v11667_v5  ;;  %v11628_v5 = vor.u32 %v12701_v52, %v11627_v17  ;;  %v11507_v12 = vld [vmem:[%s19320_s3 + $0x80] sm:$0xf] }
 0x47f   : > { %7619 = vmatpush.bf16.msra.mxu3 %v11540_v42  ;;  %v12655_v42 = vld [vmem:[%s19320_s3 + $0x4] sm:$0xf0] }
 0x480   : > { %7647 = vmatpush.bf16.msrb.mxu2 %v11668_v38  ;;  %7630 = vmatpush.bf16.msrb.mxu0 %v11628_v5  ;;  %v11811_v5 = vld [vmem:[%s19320_s3 + $0x2e0] sm:$0xf] }
 0x481   : > { %7606 = vmatpush.bf16.msra.mxu1 %v11468_v7  ;;  %v11755_v7 = vld [vmem:[%s19320_s3 + $0x270] sm:$0xf] }
 0x484   : > { %7648 = vmatpush.bf16.msrb.mxu2 %v11660_v46 }
 0x485   : > { %7607 = vmatpush.bf16.msra.mxu1 %v11460_v4 }
 0x4e7   : > { %v6569_v21 = vpop.xlane.xlu2 %6568 }
 0x4e8   : > { %v18042_v62 = vmul.f32 %v6569_v21, %v19405_v16  ;;  %v11532_v21 = vor.u32 %v12677_v20, %v11531_v43 }
 0x4e9   : > { %v6603_v27 = vpop.xlane.xlu0 %6602 }
 0x4ea   : > { %v6613_v60 = vmul.f32 %v6603_v27, %v19405_v16  ;;  %v6615_v58 = vmul.f32 %v18042_v62, %v18042_v62  ;;  %v11651_v27 = vld [vmem:[%s19320_s3 + $0x1a0] sm:$0xf]  ;;  %7620 = vmatpush.bf16.msra.mxu3 %v11532_v21  ;;  %v6643_v38 = vsub.f32 %v17163_v8, %v18042_v62  ;;  %v6645_v20 = vsub.f32 %v17704_v35, %v18042_v62 }
 0x4eb   : > { %v6646_v33 = vsub.f32 %v17868_v30, %v18042_v62  ;;  %v6647_v23 = vsub.f32 %v17929_v25, %v18042_v62  ;;  %v6648_v21 = vsub.f32 %v17940_v55, %v18042_v62  ;;  %v6649_v46 = vsub.f32 %v17963_v2, %v18042_v62  ;;  %v11595_v30 = vld [vmem:[%s19320_s3 + $0x130] sm:$0xf] }
 0x4ec   : > { %v6617_v14 = vsub.f32 %v6613_v60, %v6615_v58  ;;  %v11524_v60 = vor.u32 %v12675_v50, %v11523_v19  ;;  %v12707_v58 = vld [vmem:[%s19320_s3 + $0x1a4] sm:$0xf0]  ;;  %v11819_v19 = vld [vmem:[%s19320_s3 + $0x2f0] sm:$0xf]  ;;  %v6687_v2 = vperm.slane %v18002_v9, 3 }
 0x4ed   : > { %v11652_v48 = vor.u32 %v12707_v58, %v11651_v27  ;;  %v11444_v27 = vor.u32 %v12655_v42, %v18164_v53  ;;  %v11501_v58 = vld [vmem:[%s19320_s3 + $0x78] sm:$0xf0]  ;;  %v11747_v53 = vld [vmem:[%s19320_s3 + $0x260] sm:$0xf]  ;;  %v12747_v42 = vld [vmem:[%s19320_s3 + $0x2e4] sm:$0xf0] }
 0x4ee   : > { %v6619_v13 = vmax.f32 %v6617_v14, 0.0  ;;  %v12673_v14 = vld [vmem:[%s19320_s3 + $0x94] sm:$0xf0]  ;;  %7621 = vmatpush.bf16.msra.mxu3 %v11524_v60  ;;  %v12668_v60 = vld [vmem:[%s19320_s3 + $0x74] sm:$0xf] }
 0x4ef   : > { %v6578_v18 = vpop.xlane.xlu2 %6577  ;;  %v11516_v1 = vor.u32 %v12673_v14, %v11515_v6  ;;  %7649 = vmatpush.bf16.msrb.mxu2 %v11652_v48  ;;  %v11611_v14 = vld [vmem:[%s19320_s3 + $0x150] sm:$0xf] }
 0x4f0   : > { %v18080_v47 = vadd.f32 1e-05, %v6619_v13  ;;  %v18083_v61 = vmul.f32 %v6578_v18, %v19405_v16  ;;  %v11452_v13 = vor.u32 %v12657_v44, %v11451_v37  ;;  %v6684_v18 = vperm.slane %v18002_v9, 0 }
 0x4f1   : > { %v6612_v10 = vpop.xlane.xlu1 %6611 }
 0x4f2   : > { %12802 = vrsqrt.f32 %v18080_v47  ;;  %v6614_v39 = vmul.f32 %v6612_v10, %v19405_v16  ;;  %v6616_v22 = vmul.f32 %v18083_v61, %v18083_v61  ;;  %v18119_v16 = vperm.slane %v6768_v40, 0  ;;  %v12671_v10 = vld [vmem:[%s19320_s3 + $0x84] sm:$0xf0]  ;;  %7608 = vmatpush.bf16.msra.mxu1 %v11452_v13  ;;  %7622 = vmatpush.bf16.msra.mxu3 %v11516_v1 }
 0x4f3   : > { %v6644_v40 = vsub.f32 %v17391_v15, %v18042_v62  ;;  %vm6629_vm1 = vweird.f32 %v18080_v47  ;;  %v11508_v4 = vor.u32 %v12671_v10, %v11507_v12  ;;  %v6650_v44 = vsub.f32 %v17943_v54, %v18083_v61  ;;  %v12666_v12 = vld [vmem:[%s19320_s3 + $0x64] sm:$0xf]  ;;  %v12691_v54 = vld [vmem:[%s19320_s3 + $0x124] sm:$0xf0] }
 0x4f4   : > { %v6618_v26 = vsub.f32 %v6614_v39, %v6616_v22  ;;  %v11644_v39 = vor.u32 %v12705_v34, %v11643_v3  ;;  %v11635_v22 = vld [vmem:[%s19320_s3 + $0x180] sm:$0xf]  ;;  %v6651_v48 = vsub.f32 %v17933_v49, %v18083_v61  ;;  %v18237_v3 = vpack.c.bf16 %v6685_v57, %v6684_v18  ;;  %v12731_v18 = vld [vmem:[%s19320_s3 + $0x264] sm:$0xf0]  ;;  %v18409_v49 = vld [vmem:[%s19320_s3 + $0x234] sm:$0xf0] }
 0x4f5   : > { %v11636_v6 = vor.u32 %v12703_v45, %v11635_v22  ;;  %v11756_v13 = vor.u32 %v12733_v63, %v11755_v7  ;;  %v6652_v57 = vsub.f32 %v17946_v56, %v18083_v61  ;;  %v6654_v22 = vsub.f32 %v17968_v36, %v18083_v61  ;;  %v11493_v45 = vld [vmem:[%s19320_s3 + $0x68] sm:$0xf0] }
 0x4f6   : > { %v6620_v31 = vmax.f32 %v6618_v26, 0.0  ;;  %v12699_v26 = vld [vmem:[%s19320_s3 + $0x164] sm:$0xf0]  ;;  %7650 = vmatpush.bf16.msrb.mxu2 %v11644_v39  ;;  %7609 = vmatpush.bf16.msra.mxu1 %v11444_v27  ;;  %v6729_v7 = vunpack.c.l.b16 %v18237_v3  ;;  %v11748_v63 = vor.u32 %v12731_v18, %v11747_v53 }
 0x4f7   : > { %v11620_v24 = vor.u32 %v12699_v26, %v11619_v0  ;;  %7623 = vmatpush.bf16.msra.mxu3 %v11508_v4  ;;  %v11603_v0 = vld [vmem:[%s19320_s3 + $0x140] sm:$0xf]  ;;  %v6656_v26 = vsub.f32 %v17988_v29, %v18083_v61  ;;  %v11496_v4 = vor.u32 %v12666_v12, %v11493_v45  ;;  %v12743_v53 = vld [vmem:[%s19320_s3 + $0x2c4] sm:$0xf0]  ;;  %v12662_v12 = vld [vmem:[%s19320_s3 + $0x44] sm:$0xf] }
 0x4f8   : > { %v18136_v41 = vpop.eup %12802  ;;  %v18138_v28 = vadd.f32 1e-05, %v6620_v31  ;;  %v12749_v31 = vld [vmem:[%s19320_s3 + $0x2f4] sm:$0xf0]  ;;  %v18460_v29 = vld [vmem:[%s19320_s3 + $0x224] sm:$0xf0] }
 0x4f9   : > { %v6624_v51 = vmul.f32 %v18136_v41, %v18080_v47  ;;  %vm6630_vm15 = vweird.f32 %v18136_v41  ;;  %7631 = vmatpush.bf16.msrb.mxu0 %v11620_v24  ;;  %v11820_v52 = vor.u32 %v12749_v31, %v11819_v19  ;;  %v6653_v47 = vsub.f32 %v19403_v11, %v18083_v61  ;;  %v11739_v31 = vld [vmem:[%s19320_s3 + $0x250] sm:$0xf] }
 0x4fa   : > { %12804 = vrsqrt.f32 %v18138_v28  ;;  %vm6631_vm2 = vmor %vm6629_vm1, %vm6630_vm15  ;;  %vm6639_vm3 = vweird.f32 %v18138_v28  ;;  %7651 = vmatpush.bf16.msrb.mxu2 %v11636_v6  ;;  %7658 = vmatpush.bf16.msrb.mxu1 %v11756_v13  ;;  %v11812_v19 = vor.u32 %v12747_v42, %v11811_v5  ;;  %v11803_v6 = vld [vmem:[%s19320_s3 + $0x2d0] sm:$0xf]  ;;  %v18348_v13 = vld [vmem:[%s19320_s3 + $0x240] sm:$0xf] }
 0x4fb   : > { %v6625_v32 = vmul.f32 %v18136_v41, %v6624_v51  ;;  %v12697_v51 = vld [vmem:[%s19320_s3 + $0x154] sm:$0xf0]  ;;  %7672 = vmatpush.bf16.msrb.mxu3 %v11820_v52  ;;  %v18357_v52 = vld [vmem:[%s19320_s3 + $0x2c0] sm:$0xf] }
 0x4fc   : > { %v11612_v1 = vor.u32 %v12697_v51, %v11611_v14  ;;  %v12745_v14 = vld [vmem:[%s19320_s3 + $0x2d4] sm:$0xf0] }
 0x4fd   : > { %v6626_v43 = vmul.f32 0.5, %v6625_v32  ;;  %v11504_v32 = vor.u32 %v12668_v60, %v11501_v58  ;;  %v12729_v58 = vld [vmem:[%s19320_s3 + $0x254] sm:$0xf0]  ;;  %v11804_v62 = vor.u32 %v12745_v14, %v11803_v6  ;;  %v18467_v14 = vld [vmem:[%s19320_s3 + $0x2a0] sm:$0xf] }
 0x4fe   : > { %7632 = vmatpush.bf16.msrb.mxu0 %v11612_v1  ;;  %7659 = vmatpush.bf16.msrb.mxu1 %v11748_v63  ;;  %v18435_v63 = vld [vmem:[%s19320_s3 + $0x38] sm:$0xf0] }
 0x4ff   : > { %v6627_v50 = vsub.f32 1.5, %v6626_v43  ;;  %v12695_v43 = vld [vmem:[%s19320_s3 + $0x144] sm:$0xf0]  ;;  %7700 = vmatpush.bf16.msra.mxu2 %v11504_v32  ;;  %7673 = vmatpush.bf16.msrb.mxu3 %v11812_v19  ;;  %v6791_v19 = vunpack.c.l.bf16 %v18119_v16 }
 0x500   : > { %v18225_v37 = vpop.eup %12804  ;;  %v11604_v60 = vor.u32 %v12695_v43, %v11603_v0 }
 0x501   : > { %v6628_v34 = vmul.f32 %v18136_v41, %v6627_v50  ;;  %v6634_v17 = vmul.f32 %v18225_v37, %v18138_v28  ;;  %v6730_v50 = vunpack.c.h.b16 %v18237_v3  ;;  %vm6640_vm4 = vweird.f32 %v18225_v37  ;;  %v12727_v28 = vld [vmem:[%s19320_s3 + $0x244] sm:$0xf0] }
 0x502   : > { %vm18341_vm5 = vmor %vm6639_vm3, %vm6640_vm4  ;;  %7633 = vmatpush.bf16.msrb.mxu0 %v11604_v60  ;;  %v12689_v60 = vld [vmem:[%s19320_s3 + $0x114] sm:$0xf0] }
 0x503   : > { %v6632_v10 = vsel %vm6631_vm2, %v18136_v41, %v6628_v34  ;;  %v6635_v39 = vmul.f32 %v18225_v37, %v6634_v17  ;;  %v6655_v41 = vsub.f32 %v17979_v59, %v18083_v61  ;;  %v12664_v34 = vld [vmem:[%s19320_s3 + $0x54] sm:$0xf]  ;;  %v11485_v17 = vld [vmem:[%s19320_s3 + $0x58] sm:$0xf0]  ;;  %7701 = vmatpush.bf16.msra.mxu2 %v11496_v4  ;;  %v18362_v18 = vpack.c.b16 %v6730_v50, %v6730_v50  ;;  %v11579_v4 = vld [vmem:[%s19320_s3 + $0x110] sm:$0xf] }
 0x504   : > { %v6657_v27 = vmul.f32 %v6643_v38, %v6632_v10  ;;  %v6658_v8 = vmul.f32 %v6644_v40, %v6632_v10  ;;  %v6659_v38 = vmul.f32 %v6645_v20, %v6632_v10  ;;  %v6660_v51 = vmul.f32 %v6646_v33, %v6632_v10  ;;  %v12693_v40 = vld [vmem:[%s19320_s3 + $0x134] sm:$0xf0]  ;;  %7674 = vmatpush.bf16.msrb.mxu3 %v11804_v62 }
 0x505   : > { %v6636_v24 = vmul.f32 0.5, %v6635_v39  ;;  %v6661_v15 = vmul.f32 %v6647_v23, %v6632_v10  ;;  %v6662_v35 = vmul.f32 %v6648_v21, %v6632_v10  ;;  %v18328_v20 = vpack.c.b16 %v6729_v7, %v6729_v7  ;;  %v11587_v39 = vld [vmem:[%s19320_s3 + $0x120] sm:$0xf]  ;;  %v18425_v7 = vld [vmem:[%s19320_s3 + $0x2b4] sm:$0xf0] }
 0x506   : > { %v6686_v33 = vperm.slane %v18002_v9, 2  ;;  %v18334_v25 = vmul.f32 %v6649_v46, %v6632_v10  ;;  %v11740_v21 = vor.u32 %v12729_v58, %v11739_v31  ;;  %v11488_v46 = vor.u32 %v12664_v34, %v11485_v17  ;;  %v11477_v10 = vld [vmem:[%s19320_s3 + $0x48] sm:$0xf0]  ;;  %v18455_v58 = vld [vmem:[%s19320_s3 + $0x220] sm:$0xf] }
 0x507   : > { %v6637_v3 = vsub.f32 1.5, %v6636_v24  ;;  %v18364_v32 = vpack.c.bf16 %v6658_v8, %v6657_v27  ;;  %v18366_v1 = vpack.c.bf16 %v6660_v51, %v6659_v38  ;;  %v11596_v42 = vor.u32 %v12693_v40, %v11595_v30  ;;  %v18430_v24 = vld [vmem:[%s19320_s3 + $0x34] sm:$0xf]  ;;  %v18472_v8 = vld [vmem:[%s19320_s3 + $0x2a4] sm:$0xf0] }
 0x508   : > { %v18411_v56 = vpack.c.bf16 %v6662_v35, %v6661_v15  ;;  %v6674_v11 = vpack.c.bf16 %v18334_v25, %v18334_v25  ;;  %7660 = vmatpush.bf16.msrb.mxu1 %v11740_v21  ;;  %7702 = vmatpush.bf16.msra.mxu2 %v11488_v46  ;;  %v11480_v27 = vor.u32 %v12662_v12, %v11477_v10  ;;  %v18477_v38 = vld [vmem:[%s19320_s3 + $0x24] sm:$0xf]  ;;  %v18482_v51 = vld [vmem:[%s19320_s3 + $0x28] sm:$0xf0]  ;;  %v12687_v25 = vld [vmem:[%s19320_s3 + $0x104] sm:$0xf0] }
 0x509   : > { %v6638_v55 = vmul.f32 %v18225_v37, %v6637_v3  ;;  %7634 = vmatpush.bf16.msrb.mxu0 %v11596_v42  ;;  %v11588_v6 = vor.u32 %v12691_v54, %v11587_v39  ;;  %v18487_v3 = vld [vmem:[%s19320_s3 + $0x100] sm:$0xf]  ;;  %v6744_v34 = vpack.i.b16 %v18328_v20, %v18328_v20  ;;  %v6748_v17 = vpack.i.b16 %v18362_v18, %v18362_v18  ;;  %v18508_v20 = vld [vmem:[%s19320_s3 + $0x214] sm:$0xf0]  ;;  %v18519_v46 = vld [vmem:[%s19320_s3 + $0x290] sm:$0xf] }
 0x50a   : > { %v6771_v15 = vunpack.c.l.bf16 %v18364_v32  ;;  %v6772_v35 = vunpack.c.h.bf16 %v18364_v32  ;;  %v6773_v30 = vunpack.c.l.bf16 %v18366_v1  ;;  %v6774_v40 = vunpack.c.h.bf16 %v18366_v1  ;;  %v11438_v12 = vld [vmem:[%s19325_s8 + $0x5] ss:$8 sm:$0xf]  ;;  %v11827_v54 = vld [vmem:[%s19320_s3 + $0x300] sm:$0xf] }
 0x50b   : > { %v18371_v5 = vsel %vm18341_vm5, %v18225_v37, %v6638_v55  ;;  %v18503_v55 = vld [vmem:[%s19320_s3 + $0x210] sm:$0xf]  ;;  %v6775_v23 = vunpack.c.l.bf16 %v18411_v56  ;;  %v6776_v21 = vunpack.c.h.bf16 %v18411_v56  ;;  %v11472_v42 = vor.u32 %v18430_v24, %v18435_v63  ;;  %v11439_v10 = vld [vmem:[%s19325_s8 + $0x5] ss:$8 sm:$0x70] }
 0x50c   : > { %v6664_v45 = vmul.f32 %v6650_v44, %v18371_v5  ;;  %v6665_v37 = vmul.f32 %v6651_v48, %v18371_v5  ;;  %v6666_v0 = vmul.f32 %v6652_v57, %v18371_v5  ;;  %v6667_v43 = vmul.f32 %v6653_v47, %v18371_v5  ;;  %v18404_v44 = vld [vmem:[%s19320_s3 + $0x230] sm:$0xf]  ;;  %7703 = vmatpush.bf16.msra.mxu2 %v11480_v27  ;;  %v12706_v56 = vld [vmem:[%s19320_s3 + $0x1a4] sm:$0xf] }
 0x50d   : > { %v11732_v48 = vor.u32 %v12727_v28, %v18348_v13  ;;  %v11796_v57 = vor.u32 %v12743_v53, %v18357_v52  ;;  %v18420_v47 = vld [vmem:[%s19320_s3 + $0x2b0] sm:$0xf]  ;;  %v18442_v31 = vmul.f32 %v6656_v26, %v18371_v5  ;;  %v18512_v13 = vunpack.c.l.bf16 %v6674_v11  ;;  %v18524_v28 = vld [vmem:[%s19320_s3 + $0x294] sm:$0xf0]  ;;  %v18529_v52 = vld [vmem:[%s19320_s3 + $0x14] sm:$0xf]  ;;  %7635 = vmatpush.bf16.msrb.mxu0 %v11588_v6 }
 0x50e   : > { %v18444_v50 = vpack.c.bf16 %v6665_v37, %v6664_v45  ;;  %v18462_v26 = vpack.c.bf16 %v6667_v43, %v6666_v0  ;;  %v11724_v62 = vor.u32 %v18409_v49, %v18404_v44  ;;  %v11788_v32 = vor.u32 %v18425_v7, %v18420_v47  ;;  %v11453_v43 = vld [vmem:[%s19320_s3 + $0x18] sm:$0xf0]  ;;  %v12751_v44 = vld [vmem:[%s19320_s3 + $0x304] sm:$0xf0] }
 0x50f   : > { %7661 = vmatpush.bf16.msrb.mxu1 %v11732_v48  ;;  %v6678_v53 = vpack.c.bf16 %v18442_v31, %v18442_v31  ;;  %7675 = vmatpush.bf16.msrb.mxu3 %v11796_v57  ;;  %v11580_v37 = vor.u32 %v12689_v60, %v11579_v4  ;;  %v11716_v0 = vor.u32 %v18460_v29, %v18455_v58  ;;  %v6746_v24 = vperm.slane %v6744_v34, 0 }
 0x510   : > { %v6778_v18 = vunpack.c.l.bf16 %v18444_v50  ;;  %v6779_v39 = vunpack.c.h.bf16 %v18444_v50  ;;  %v6780_v45 = vunpack.c.l.bf16 %v18462_v26  ;;  %v11780_v49 = vor.u32 %v18472_v8, %v18467_v14  ;;  %7704 = vmatpush.bf16.msra.mxu2 %v11472_v42 }
 0x511   : > { %v11464_v11 = vor.u32 %v18477_v38, %v18482_v51  ;;  %v11572_v48 = vor.u32 %v12687_v25, %v18487_v3  ;;  %v11708_v57 = vor.u32 %v18508_v20, %v18503_v55  ;;  %v11772_v47 = vor.u32 %v18524_v28, %v18519_v46  ;;  %7636 = vmatpush.bf16.msrb.mxu0 %v11580_v37  ;;  %v12719_v37 = vld [vmem:[%s19320_s3 + $0x204] sm:$0xf0] }
 0x512   : > { %v18566_v7 = vor.u32 %v11439_v10, %v11438_v12  ;;  %v6750_v63 = vperm.slane %v6748_v17, 0  ;;  %v6781_v31 = vunpack.c.h.bf16 %v18462_v26  ;;  %v11456_v50 = vor.u32 %v18529_v52, %v11453_v43 }
 0x513   : > { %7662 = vmatpush.bf16.msrb.mxu1 %v11724_v62  ;;  %7676 = vmatpush.bf16.msrb.mxu3 %v11788_v32  ;;  %v11828_v27 = vor.u32 %v12751_v44, %v11827_v54  ;;  %v6699_v4 = vpack.c.bf16 %v6687_v2, %v6686_v33  ;;  %v6785_v29 = vunpack.c.l.bf16 %v6746_v24  ;;  %v18578_v55 = vunpack.c.l.bf16 %v6678_v53 }
 0x514   : > { %v6707_v60 = vperm.slane %v18566_v7, 0  ;;  %v6708_v58 = vperm.slane %v18566_v7, 1  ;;  %v6786_v6 = vunpack.c.l.bf16 %v6750_v63  ;;  %v6709_v14 = vperm.slane %v18566_v7, 2  ;;  %7705 = vmatpush.bf16.msra.mxu2 %v11464_v11  ;;  %v12735_v11 = vld [vmem:[%s19320_s3 + $0x284] sm:$0xf0] }
 0x515   : > { %v6710_v8 = vperm.slane %v18566_v7, 3  ;;  %v6731_v38 = vunpack.c.l.b16 %v6699_v4  ;;  %v6732_v51 = vunpack.c.h.b16 %v6699_v4  ;;  %v6792_v34 = vmul.f32 %v6785_v29, %v6771_v15  ;;  %7637 = vmatpush.bf16.msrb.mxu0 %v11572_v48 }
 0x516   : > { %v6721_v3 = vpack.c.bf16 %v6708_v58, %v6707_v60  ;;  %v6793_v17 = vmul.f32 %v6786_v6, %v6772_v35  ;;  %v6799_v25 = vmul.f32 %v6785_v29, %v6778_v18  ;;  %v6800_v33 = vmul.f32 %v6786_v6, %v6779_v39  ;;  %v11699_v39 = vld [vmem:[%s19320_s3 + $0x200] sm:$0xf] }
 0x517   : > { %7663 = vmatpush.bf16.msrb.mxu1 %v11716_v0  ;;  %7677 = vmatpush.bf16.msrb.mxu3 %v11780_v49  ;;  %v6722_v2 = vpack.c.bf16 %v6710_v8, %v6709_v14  ;;  %v6738_v20 = vpack.c.b16 %v6731_v38, %v6731_v38  ;;  %v6739_v52 = vpack.c.b16 %v6732_v51, %v6732_v51  ;;  %v11763_v0 = vld [vmem:[%s19320_s3 + $0x280] sm:$0xf]  ;;  %v6711_v16 = vperm.slane %v18566_v7, 4 }
 0x518   : > { %v6806_v62 = vpack.c.bf16 %v6793_v17, %v6792_v34  ;;  %v6818_v46 = vunpack.c.l.b16 %v6721_v3  ;;  %v6819_v28 = vunpack.c.h.b16 %v6721_v3  ;;  %v6810_v32 = vpack.c.bf16 %v6800_v33, %v6799_v25  ;;  %7706 = vmatpush.bf16.msra.mxu2 %v11456_v50 }
 0x519   : > { %7693 = vmatpush.bf16.msra.mxu0 %v11828_v27  ;;  %v6752_v42 = vpack.i.b16 %v6738_v20, %v6738_v20  ;;  %v6820_v12 = vunpack.c.l.b16 %v6722_v2  ;;  %v6821_v10 = vunpack.c.h.b16 %v6722_v2  ;;  %v6756_v49 = vpack.i.b16 %v6739_v52, %v6739_v52  ;;  %v12654_v27 = vld [vmem:[%s19320_s3 + $0x4] sm:$0xf] }
 0x51a   : > { %v6825_v15 = vpack.c.b16 %v6818_v46, %v6818_v46  ;;  %v6826_v35 = vpack.c.b16 %v6819_v28, %v6819_v28  ;;  %v6860_v53 = vunpack.c.l.bf16 %v6806_v62  ;;  %v6861_v18 = vunpack.c.h.bf16 %v6806_v62 }
 0x51b   : > { %7664 = vmatpush.bf16.msrb.mxu1 %v11708_v57  ;;  %7678 = vmatpush.bf16.msrb.mxu3 %v11772_v47  ;;  %v6867_v43 = vunpack.c.l.bf16 %v6810_v32  ;;  %v6868_v54 = vunpack.c.h.bf16 %v6810_v32  ;;  %v6754_v44 = vperm.slane %v6752_v42, 0  ;;  %v6827_v24 = vpack.c.b16 %v6820_v12, %v6820_v12  ;;  %v11445_v47 = vld [vmem:[%s19320_s3 + $0x8] sm:$0xf0] }
 0x51c   : > { %v6833_v48 = vpack.i.b16 %v6825_v15, %v6825_v15  ;;  %v6837_v57 = vpack.i.b16 %v6826_v35, %v6826_v35  ;;  %v6828_v63 = vpack.c.b16 %v6821_v10, %v6821_v10  ;;  %v6758_v50 = vperm.slane %v6756_v49, 0 }
 0x51d   : > { %v6787_v4 = vunpack.c.l.bf16 %v6754_v44  ;;  %v11700_v60 = vor.u32 %v12719_v37, %v11699_v39  ;;  %v11764_v58 = vor.u32 %v12735_v11, %v11763_v0  ;;  %v6841_v14 = vpack.i.b16 %v6827_v24, %v6827_v24 }
 0x51e   : > { %v6835_v29 = vperm.slane %v6833_v48, 0  ;;  %v6839_v6 = vperm.slane %v6837_v57, 0  ;;  %v6845_v8 = vpack.i.b16 %v6828_v63, %v6828_v63  ;;  %v6788_v38 = vunpack.c.l.bf16 %v6758_v50  ;;  %v18648_v48 = vld [vmem:[%s19320_s3 + $0xf8] sm:$0xf0] }
 0x51f   : > { %v6794_v51 = vmul.f32 %v6787_v4, %v6773_v30  ;;  %v6801_v3 = vmul.f32 %v6787_v4, %v6780_v45  ;;  %7665 = vmatpush.bf16.msrb.mxu1 %v11700_v60  ;;  %7679 = vmatpush.bf16.msrb.mxu3 %v11764_v58  ;;  %v11448_v34 = vor.u32 %v12654_v27, %v11445_v47  ;;  %v6843_v33 = vperm.slane %v6841_v14, 0  ;;  %v12700_v60 = vld [vmem:[%s19320_s3 + $0x174] sm:$0xf]  ;;  %v11629_v58 = vld [vmem:[%s19320_s3 + $0x178] sm:$0xf0] }
 0x520   : > { %v6874_v17 = vunpack.c.l.bf16 %v6835_v29  ;;  %v6875_v25 = vunpack.c.l.bf16 %v6839_v6  ;;  %v6847_v2 = vperm.slane %v6845_v8, 0  ;;  %v18605_v20 = vmul.f32 %v6791_v19, %v18512_v13 }
 0x521   : > { %v6668_v30 = vmul.f32 %v6654_v22, %v18371_v5  ;;  %v6795_v45 = vmul.f32 %v6788_v38, %v6774_v40  ;;  %v6802_v62 = vmul.f32 %v6788_v38, %v6781_v31  ;;  %7707 = vmatpush.bf16.msra.mxu2 %v11448_v34  ;;  %v6876_v13 = vunpack.c.l.bf16 %v6843_v33  ;;  %v12716_v38 = vld [vmem:[%s19320_s3 + $0x1f4] sm:$0xf] }
 0x522   : > { %v6881_v46 = vadd.f32 %v6874_v17, %v6860_v53  ;;  %v6882_v28 = vadd.f32 %v6875_v25, %v6861_v18  ;;  %v6888_v52 = vadd.f32 %v6874_v17, %v6867_v43  ;;  %v6889_v32 = vadd.f32 %v6875_v25, %v6868_v54 }
 0x523   : > { %v6807_v42 = vpack.c.bf16 %v6795_v45, %v6794_v51  ;;  %v6811_v12 = vpack.c.bf16 %v6802_v62, %v6801_v3  ;;  %v6877_v10 = vunpack.c.l.bf16 %v6847_v2  ;;  %v6669_v36 = vmul.f32 %v6655_v41, %v18371_v5  ;;  %v11693_v51 = vld [vmem:[%s19320_s3 + $0x1f8] sm:$0xf0]  ;;  %v18687_v2 = vld [vmem:[%s19320_s3 + $0x274] sm:$0xf] }
 0x524   : > { %v18622_v22 = vmul.f32 %v6791_v19, %v18578_v55  ;;  %v6895_v1 = vpack.c.bf16 %v6882_v28, %v6881_v46  ;;  %v6899_v26 = vpack.c.bf16 %v6889_v32, %v6888_v52  ;;  %v18643_v19 = vld [vmem:[%s19320_s3 + $0xf4] sm:$0xf]  ;;  %v6809_v57 = vpack.c.bf16 %v18605_v20, %v18605_v20  ;;  %v18697_v28 = vld [vmem:[%s19320_s3 + $0xe4] sm:$0xf]  ;;  %v18702_v52 = vld [vmem:[%s19320_s3 + $0xe8] sm:$0xf0] }
 0x525   : > { %v6862_v40 = vunpack.c.l.bf16 %v6807_v42  ;;  %v6863_v31 = vunpack.c.h.bf16 %v6807_v42  ;;  %v6869_v15 = vunpack.c.l.bf16 %v6811_v12  ;;  %v6870_v35 = vunpack.c.h.bf16 %v6811_v12  ;;  %v12698_v32 = vld [vmem:[%s19320_s3 + $0x164] sm:$0xf] }
 0x526   : > { %v6903_v53 = vunpack.c.l.bf16 %v6895_v1  ;;  %v6904_v18 = vunpack.c.h.bf16 %v6895_v1  ;;  %v6910_v39 = vunpack.c.l.bf16 %v6899_v26  ;;  %v6911_v37 = vunpack.c.h.bf16 %v6899_v26 }
 0x527   : > { %v6883_v0 = vadd.f32 %v6876_v13, %v6862_v40  ;;  %v6884_v43 = vadd.f32 %v6877_v10, %v6863_v31  ;;  %v6890_v54 = vadd.f32 %v6876_v13, %v6869_v15  ;;  %v6891_v59 = vadd.f32 %v6877_v10, %v6870_v35  ;;  %v11685_v35 = vld [vmem:[%s19320_s3 + $0x1e8] sm:$0xf0] }
 0x528   : > { %vm18624_vm6 = vcmp.gt.f32.partialorder %v6903_v53, 0.0  ;;  %vm18628_vm7 = vcmp.gt.f32.partialorder %v6904_v18, 0.0  ;;  %vm18632_vm8 = vcmp.gt.f32.partialorder %v6910_v39, 0.0  ;;  %vm18636_vm9 = vcmp.gt.f32.partialorder %v6911_v37, 0.0 }
 0x529   : > { %v6931_v55 = vmul.f32 0.20019531, %v6903_v53  ;;  %v6932_v44 = vmul.f32 0.20019531, %v6904_v18  ;;  %v6938_v49 = vmul.f32 0.20019531, %v6910_v39  ;;  %v6939_v11 = vmul.f32 0.20019531, %v6911_v37  ;;  %vm6953_vm10 = vmpackc.low %vm18628_vm7, %vm18624_vm6  ;;  %v18731_v53 = vld [vmem:[%s19320_s3 + $0x154] sm:$0xf] }
 0x52a   : > { %v18652_v24 = vpack.c.bf16 %v6669_v36, %v6668_v30  ;;  %v6896_v63 = vpack.c.bf16 %v6884_v43, %v6883_v0  ;;  %v18654_v27 = vpack.c.bf16 %v6891_v59, %v6890_v54  ;;  %v6813_v47 = vpack.c.bf16 %v18622_v22, %v18622_v22  ;;  %vm6957_vm11 = vmpackc.low %vm18636_vm9, %vm18632_vm8  ;;  %v18692_v30 = vld [vmem:[%s19320_s3 + $0x278] sm:$0xf0]  ;;  %v11621_v36 = vld [vmem:[%s19320_s3 + $0x168] sm:$0xf0] }
 0x52b   : > { %v6945_v50 = vpack.c.bf16 %v6932_v44, %v6931_v55  ;;  %v6949_v4 = vpack.c.bf16 %v6939_v11, %v6938_v49  ;;  %v6688_v29 = vperm.slane %v18002_v9, 4  ;;  %v11568_v8 = vor.u32 %v18643_v19, %v18648_v48  ;;  %v18744_v43 = vld [vmem:[%s19320_s3 + $0x158] sm:$0xf0]  ;;  %v12708_v19 = vld [vmem:[%s19320_s3 + $0x1b4] sm:$0xf] }
 0x52c   : > { %v6905_v6 = vunpack.c.l.bf16 %v6896_v63  ;;  %v6906_v14 = vunpack.c.h.bf16 %v6896_v63  ;;  %v6689_v3 = vperm.slane %v18002_v9, 5  ;;  %v6912_v25 = vunpack.c.l.bf16 %v18654_v27  ;;  %v11741_v39 = vld [vmem:[%s19320_s3 + $0x258] sm:$0xf0] }
 0x52d   : > { %v6961_v34 = vsel %vm6953_vm10, %v6895_v1, %v6945_v50  ;;  %v6965_v17 = vsel %vm6957_vm11, %v6899_v26, %v6949_v4  ;;  %v6913_v33 = vunpack.c.h.bf16 %v18654_v27  ;;  %v11632_v13 = vor.u32 %v12700_v60, %v11629_v58  ;;  %v12714_v1 = vld [vmem:[%s19320_s3 + $0x1e4] sm:$0xf]  ;;  %v12712_v50 = vld [vmem:[%s19320_s3 + $0x1d4] sm:$0xf]  ;;  %v11677_v4 = vld [vmem:[%s19320_s3 + $0x1d8] sm:$0xf0] }
 0x52e   : > { %v7082_v45 = vunpack.c.l.b16 %v6961_v34  ;;  %v7089_v62 = vunpack.c.l.b16 %v6965_v17  ;;  %v7083_v46 = vunpack.c.h.b16 %v6961_v34  ;;  %v7090_v9 = vunpack.c.h.b16 %v6965_v17  ;;  %v18775_v17 = vld [vmem:[%s19320_s3 + $0x264] sm:$0xf]  ;;  %v11661_v48 = vld [vmem:[%s19320_s3 + $0x1b8] sm:$0xf0] }
 0x52f   : > { %vm18707_vm12 = vcmp.gt.f32.partialorder %v6905_v6, 0.0  ;;  %vm18711_vm13 = vcmp.gt.f32.partialorder %v6906_v14, 0.0  ;;  %v11696_v10 = vor.u32 %v12716_v38, %v11693_v51  ;;  %v6933_v31 = vmul.f32 0.20019531, %v6905_v6 }
 0x530   : > { %v18721_v26 = vpack.c.b16 %v7089_v62, %v7082_v45  ;;  %v18723_v40 = vpack.c.b16 %v7090_v9, %v7083_v46  ;;  %v6934_v15 = vmul.f32 0.20019531, %v6906_v14  ;;  %vm18733_vm14 = vcmp.gt.f32.partialorder %v6912_v25, 0.0  ;;  %vm6954_vm1 = vmpackc.low %vm18711_vm13, %vm18707_vm12  ;;  %v18797_v9 = vld [vmem:[%s19320_s3 + $0x254] sm:$0xf] }
 0x531   : > { %vm18737_vm15 = vcmp.gt.f32.partialorder %v6913_v33, 0.0  ;;  %v6940_v37 = vmul.f32 0.20019531, %v6912_v25  ;;  %v6941_v0 = vmul.f32 0.20019531, %v6913_v33  ;;  %v11760_v59 = vor.u32 %v18687_v2, %v18692_v30  ;;  %v11749_v25 = vld [vmem:[%s19320_s3 + $0x268] sm:$0xf0] }
 0x532   : > { %7610 = vmatmul.bf16.vlgmr.msra.gmra.mxu1 %v18721_v26  ;;  %7624 = vmatmul.bf16.vlgmr.msra.gmra.mxu3 %v18723_v40  ;;  %v6946_v54 = vpack.c.bf16 %v6934_v15, %v6933_v31  ;;  %v11560_v61 = vor.u32 %v18697_v28, %v18702_v52  ;;  %v11624_v5 = vor.u32 %v12698_v32, %v11621_v36  ;;  %v6712_v44 = vperm.slane %v18566_v7, 5  ;;  %vm6958_vm2 = vmpackc.low %vm18737_vm15, %vm18733_vm14  ;;  %v12694_v32 = vld [vmem:[%s19320_s3 + $0x144] sm:$0xf] }
 0x533   : > { %v6950_v41 = vpack.c.bf16 %v6941_v0, %v6940_v37  ;;  %7728 = vmatpush.bf16.msra.mxu1 %v11632_v13  ;;  %7742 = vmatpush.bf16.msra.mxu3 %v11696_v10  ;;  %v11688_v55 = vor.u32 %v12714_v1, %v11685_v35  ;;  %v11616_v11 = vor.u32 %v18731_v53, %v18744_v43  ;;  %v6713_v58 = vperm.slane %v18566_v7, 6  ;;  %v18783_v7 = vld [vmem:[%s19320_s3 + $0xd4] sm:$0xf]  ;;  %v11605_v10 = vld [vmem:[%s19320_s3 + $0x148] sm:$0xf0] }
 0x534   : > { %v6962_v49 = vsel %vm6954_vm1, %v6896_v63, %v6946_v54  ;;  %v6700_v60 = vpack.c.bf16 %v6689_v3, %v6688_v29  ;;  %v6723_v51 = vpack.c.bf16 %v6712_v44, %v6711_v16  ;;  %v11680_v3 = vor.u32 %v12712_v50, %v11677_v4  ;;  %v12710_v36 = vld [vmem:[%s19320_s3 + $0x1c4] sm:$0xf]  ;;  %v11669_v1 = vld [vmem:[%s19320_s3 + $0x1c8] sm:$0xf0]  ;;  %v12692_v44 = vld [vmem:[%s19320_s3 + $0x134] sm:$0xf] }
 0x535   : > { %v6966_v6 = vsel %vm6958_vm2, %v18654_v27, %v6950_v41  ;;  %v7084_v14 = vunpack.c.l.b16 %v6962_v49  ;;  %v7085_v38 = vunpack.c.h.b16 %v6962_v49  ;;  %v18788_v27 = vld [vmem:[%s19320_s3 + $0xd8] sm:$0xf0]  ;;  %v6724_v45 = vpack.c.bf16 %v6713_v58, %v6713_v58  ;;  %v18823_v37 = vld [vmem:[%s19320_s3 + $0xc4] sm:$0xf]  ;;  %v18828_v0 = vld [vmem:[%s19320_s3 + $0xc8] sm:$0xf0] }
 0x536   : > { %v7091_v63 = vunpack.c.l.b16 %v6966_v6  ;;  %v7092_v34 = vunpack.c.h.b16 %v6966_v6  ;;  %v6733_v33 = vunpack.c.l.b16 %v6700_v60  ;;  %v6734_v29 = vunpack.c.h.b16 %v6700_v60  ;;  %v11597_v49 = vld [vmem:[%s19320_s3 + $0x138] sm:$0xf0]  ;;  %v18857_v58 = vld [vmem:[%s19320_s3 + $0x248] sm:$0xf0]  ;;  %v12690_v52 = vld [vmem:[%s19320_s3 + $0x124] sm:$0xf] }
 0x537   : > { %7729 = vmatpush.bf16.msra.mxu1 %v11624_v5  ;;  %7743 = vmatpush.bf16.msra.mxu3 %v11688_v55  ;;  %v6822_v2 = vunpack.c.l.b16 %v6723_v51  ;;  %v6823_v30 = vunpack.c.h.b16 %v6723_v51  ;;  %v11752_v13 = vor.u32 %v18775_v17, %v11749_v25  ;;  %v6824_v35 = vunpack.c.l.b16 %v6724_v45  ;;  %v18869_v17 = vld [vmem:[%s19320_s3 + $0xb4] sm:$0xf]  ;;  %v18874_v25 = vld [vmem:[%s19320_s3 + $0xb8] sm:$0xf0] }
 0x538   : > { %v18790_v62 = vpack.c.b16 %v7091_v63, %v7084_v14  ;;  %v18792_v46 = vpack.c.b16 %v7092_v34, %v7085_v38  ;;  %v6740_v42 = vpack.c.b16 %v6733_v33, %v6733_v33  ;;  %v6741_v12 = vpack.c.b16 %v6734_v29, %v6734_v29 }
 0x539   : > { %v6829_v31 = vpack.c.b16 %v6822_v2, %v6822_v2  ;;  %v6830_v15 = vpack.c.b16 %v6823_v30, %v6823_v30  ;;  %v6782_v53 = vunpack.c.l.bf16 %v18652_v24  ;;  %v11552_v18 = vor.u32 %v18783_v7, %v18788_v27  ;;  %v18885_v7 = vld [vmem:[%s19320_s3 + $0x234] sm:$0xf]  ;;  %v18890_v27 = vld [vmem:[%s19320_s3 + $0x238] sm:$0xf0] }
 0x53a   : > { %7638 = vmatmul.bf16.vlgmr.msrb.gmra.mxu0 %v18790_v62  ;;  %7652 = vmatmul.bf16.vlgmr.msrb.gmra.mxu2 %v18792_v46  ;;  %v6760_v43 = vpack.i.b16 %v6740_v42, %v6740_v42  ;;  %v6764_v54 = vpack.i.b16 %v6741_v12, %v6741_v12  ;;  %v6783_v16 = vunpack.c.h.bf16 %v18652_v24  ;;  %v6831_v55 = vpack.c.b16 %v6824_v35, %v6824_v35  ;;  %v18919_v12 = vld [vmem:[%s19320_s3 + $0xa4] sm:$0xf] }
 0x53b   : > { %7714 = vmatpush.bf16.msrb.mxu0 %v11568_v8  ;;  %7756 = vmatpush.bf16.msrb.mxu2 %v11760_v59  ;;  %v6849_v41 = vpack.i.b16 %v6829_v31, %v6829_v31  ;;  %v6853_v5 = vpack.i.b16 %v6830_v15, %v6830_v15  ;;  %v11608_v50 = vor.u32 %v12694_v32, %v11605_v10  ;;  %v6866_v14 = vunpack.c.l.bf16 %v6809_v57  ;;  %v18929_v31 = vld [vmem:[%s19320_s3 + $0x224] sm:$0xf]  ;;  %v18934_v15 = vld [vmem:[%s19320_s3 + $0x228] sm:$0xf0] }
 0x53c   : > { %7730 = vmatpush.bf16.msra.mxu1 %v11616_v11  ;;  %7744 = vmatpush.bf16.msra.mxu3 %v11680_v3  ;;  %v11672_v24 = vor.u32 %v12710_v36, %v11669_v1  ;;  %v6762_v4 = vperm.slane %v6760_v43, 0  ;;  %v6766_v60 = vperm.slane %v6764_v54, 0  ;;  %v11744_v8 = vor.u32 %v18797_v9, %v11741_v39  ;;  %v18852_v11 = vld [vmem:[%s19320_s3 + $0x244] sm:$0xf]  ;;  %v18924_v1 = vld [vmem:[%s19320_s3 + $0xa8] sm:$0xf0] }
 0x53d   : > { %v11544_v59 = vor.u32 %v18823_v37, %v18828_v0  ;;  %v6857_v6 = vpack.i.b16 %v6831_v55, %v6831_v55  ;;  %v18862_v63 = vperm.slane %v6849_v41, 0  ;;  %v18864_v34 = vperm.slane %v6853_v5, 0  ;;  %v12688_v43 = vld [vmem:[%s19320_s3 + $0x114] sm:$0xf]  ;;  %v11581_v54 = vld [vmem:[%s19320_s3 + $0x118] sm:$0xf0] }
 0x53e   : > { %v6789_v38 = vunpack.c.l.bf16 %v6762_v4  ;;  %v6790_v51 = vunpack.c.l.bf16 %v6766_v60  ;;  %v6873_v57 = vunpack.c.l.bf16 %v6813_v47  ;;  %v11600_v33 = vor.u32 %v12692_v44, %v11597_v49  ;;  %v12704_v44 = vld [vmem:[%s19320_s3 + $0x194] sm:$0xf]  ;;  %v11645_v49 = vld [vmem:[%s19320_s3 + $0x198] sm:$0xf0]  ;;  %v11781_v37 = vld [vmem:[%s19320_s3 + $0x2a8] sm:$0xf0] }
 0x53f   : > { %7715 = vmatpush.bf16.msrb.mxu0 %v11560_v61  ;;  %7757 = vmatpush.bf16.msrb.mxu2 %v11752_v13  ;;  %v6859_v20 = vperm.slane %v6857_v6, 0  ;;  %v11664_v29 = vor.u32 %v12708_v19, %v11661_v48  ;;  %v11736_v61 = vor.u32 %v18852_v11, %v18857_v58  ;;  %v11536_v30 = vor.u32 %v18869_v17, %v18874_v25  ;;  %v11573_v48 = vld [vmem:[%s19320_s3 + $0x108] sm:$0xf0]  ;;  %v11709_v25 = vld [vmem:[%s19320_s3 + $0x218] sm:$0xf0] }
 0x540   : > { %7731 = vmatpush.bf16.msra.mxu1 %v11608_v50  ;;  %7745 = vmatpush.bf16.msra.mxu3 %v11672_v24  ;;  %v6796_v28 = vmul.f32 %v6789_v38, %v6775_v23  ;;  %v6797_v22 = vmul.f32 %v6790_v51, %v6776_v21  ;;  %v6803_v47 = vmul.f32 %v6789_v38, %v6782_v53  ;;  %v11589_v23 = vld [vmem:[%s19320_s3 + $0x128] sm:$0xf0]  ;;  %v6878_v9 = vunpack.c.l.bf16 %v18862_v63  ;;  %v18953_v50 = vld [vmem:[%s19320_s3 + $0x104] sm:$0xf] }
 0x541   : > { %v6804_v3 = vmul.f32 %v6790_v51, %v6783_v16  ;;  %v6880_v2 = vunpack.c.l.bf16 %v6859_v20  ;;  %v11653_v21 = vld [vmem:[%s19320_s3 + $0x1a8] sm:$0xf0]  ;;  %v6879_v32 = vunpack.c.l.bf16 %v18864_v34  ;;  %v11728_v42 = vor.u32 %v18885_v7, %v18890_v27 }
 0x542   : > { %v6808_v45 = vpack.c.bf16 %v6797_v22, %v6796_v28  ;;  %v11656_v39 = vor.u32 %v12706_v56, %v11653_v21  ;;  %v11528_v60 = vor.u32 %v18919_v12, %v18924_v1  ;;  %v11720_v19 = vor.u32 %v18929_v31, %v18934_v15  ;;  %v11637_v11 = vld [vmem:[%s19320_s3 + $0x188] sm:$0xf0]  ;;  %v12670_v12 = vld [vmem:[%s19320_s3 + $0x84] sm:$0xf] }
 0x543   : > { %7716 = vmatpush.bf16.msrb.mxu0 %v11552_v18  ;;  %7758 = vmatpush.bf16.msrb.mxu2 %v11744_v8  ;;  %v6812_v13 = vpack.c.bf16 %v6804_v3, %v6803_v47  ;;  %v6887_v10 = vadd.f32 %v6880_v2, %v6866_v14  ;;  %v6894_v36 = vadd.f32 %v6880_v2, %v6873_v57  ;;  %v12702_v8 = vld [vmem:[%s19320_s3 + $0x184] sm:$0xf]  ;;  %v11509_v1 = vld [vmem:[%s19320_s3 + $0x88] sm:$0xf0] }
 0x544   : > { %v6864_v35 = vunpack.c.l.bf16 %v6808_v45  ;;  %v6865_v53 = vunpack.c.h.bf16 %v6808_v45  ;;  %7732 = vmatpush.bf16.msra.mxu1 %v11600_v33  ;;  %7746 = vmatpush.bf16.msra.mxu3 %v11664_v29  ;;  %v11592_v18 = vor.u32 %v12690_v52, %v11589_v23  ;;  %v11584_v63 = vor.u32 %v12688_v43, %v11581_v54  ;;  %v12718_v31 = vld [vmem:[%s19320_s3 + $0x204] sm:$0xf] }
 0x545   : > { %v6871_v16 = vunpack.c.l.bf16 %v6812_v13  ;;  %v6872_v41 = vunpack.c.h.bf16 %v6812_v13  ;;  %v6898_v5 = vpack.c.bf16 %v6887_v10, %v6887_v10  ;;  %v18942_v55 = vpack.c.bf16 %v6894_v36, %v6894_v36 }
 0x546   : > { %v6885_v24 = vadd.f32 %v6878_v9, %v6864_v35  ;;  %v6886_v4 = vadd.f32 %v6879_v32, %v6865_v53  ;;  %v11648_v34 = vor.u32 %v12704_v44, %v11645_v49  ;;  %v11576_v33 = vor.u32 %v18953_v50, %v11573_v48  ;;  %v11701_v53 = vld [vmem:[%s19320_s3 + $0x208] sm:$0xf0] }
 0x547   : > { %7717 = vmatpush.bf16.msrb.mxu0 %v11544_v59  ;;  %7759 = vmatpush.bf16.msrb.mxu2 %v11736_v61  ;;  %v6892_v58 = vadd.f32 %v6878_v9, %v6871_v16  ;;  %v6893_v6 = vadd.f32 %v6879_v32, %v6872_v41  ;;  %v6909_v14 = vunpack.c.l.bf16 %v6898_v5  ;;  %v6916_v38 = vunpack.c.l.bf16 %v18942_v55  ;;  %v12672_v59 = vld [vmem:[%s19320_s3 + $0x94] sm:$0xf]  ;;  %v11821_v16 = vld [vmem:[%s19320_s3 + $0x2f8] sm:$0xf0]  ;;  %v12750_v41 = vld [vmem:[%s19320_s3 + $0x304] sm:$0xf] }
 0x548   : > { %v6897_v51 = vpack.c.bf16 %v6886_v4, %v6885_v24  ;;  %7733 = vmatpush.bf16.msra.mxu1 %v11592_v18  ;;  %7747 = vmatpush.bf16.msra.mxu3 %v11656_v39  ;;  %v11640_v29 = vor.u32 %v12702_v8, %v11637_v11  ;;  %v12720_v61 = vld [vmem:[%s19320_s3 + $0x214] sm:$0xf]  ;;  %v11512_v4 = vor.u32 %v12670_v12, %v11509_v1 }
 0x549   : > { %v6901_v20 = vpack.c.bf16 %v6893_v6, %v6892_v58  ;;  %v6937_v57 = vmul.f32 0.20019531, %v6909_v14  ;;  %vm18973_vm3 = vcmp.gt.f32.partialorder %v6909_v14, 0.0  ;;  %v6944_v0 = vmul.f32 0.20019531, %v6916_v38  ;;  %v12748_v18 = vld [vmem:[%s19320_s3 + $0x2f4] sm:$0xf] }
 0x54a   : > { %v6907_v7 = vunpack.c.l.bf16 %v6897_v51  ;;  %v6908_v27 = vunpack.c.h.bf16 %v6897_v51  ;;  %7708 = vmatmul.bf16.vlgmr.msra.gmra.mxu2 %v18721_v26  ;;  %vm18981_vm4 = vcmp.gt.f32.partialorder %v6916_v38, 0.0  ;;  %v11517_v26 = vld [vmem:[%s19320_s3 + $0x98] sm:$0xf0]  ;;  %vm6956_vm9 = vmpackc.low %vm18973_vm3, %vm18973_vm3  ;;  %v11712_v36 = vor.u32 %v12720_v61, %v11709_v25  ;;  %v12746_v58 = vld [vmem:[%s19320_s3 + $0x2e4] sm:$0xf] }
 0x54b   : > { %v6914_v28 = vunpack.c.l.bf16 %v6901_v20  ;;  %v6915_v22 = vunpack.c.h.bf16 %v6901_v20  ;;  %v6948_v52 = vpack.c.bf16 %v6937_v57, %v6937_v57  ;;  %7718 = vmatpush.bf16.msrb.mxu0 %v11536_v30  ;;  %7760 = vmatpush.bf16.msrb.mxu2 %v11728_v42  ;;  %v6952_v32 = vpack.c.bf16 %v6944_v0, %v6944_v0  ;;  %vm6960_vm10 = vmpackc.low %vm18981_vm4, %vm18981_vm4  ;;  %v11813_v6 = vld [vmem:[%s19320_s3 + $0x2e8] sm:$0xf0]  ;;  %v12744_v38 = vld [vmem:[%s19320_s3 + $0x2d4] sm:$0xf] }
 0x54c   : > { %vm18994_vm5 = vcmp.gt.f32.partialorder %v6907_v7, 0.0  ;;  %vm18998_vm6 = vcmp.gt.f32.partialorder %v6908_v27, 0.0  ;;  %v6935_v23 = vmul.f32 0.20019531, %v6907_v7  ;;  %v6936_v17 = vmul.f32 0.20019531, %v6908_v27  ;;  %7734 = vmatpush.bf16.msra.mxu1 %v11584_v63  ;;  %7748 = vmatpush.bf16.msra.mxu3 %v11648_v34  ;;  %v12742_v34 = vld [vmem:[%s19320_s3 + $0x2c4] sm:$0xf] }
 0x54d   : > { %vm19005_vm7 = vcmp.gt.f32.partialorder %v6914_v28, 0.0  ;;  %vm19009_vm8 = vcmp.gt.f32.partialorder %v6915_v22, 0.0  ;;  %v6942_v21 = vmul.f32 0.20019531, %v6914_v28  ;;  %v6943_v45 = vmul.f32 0.20019531, %v6915_v22  ;;  %vm6955_vm11 = vmpackc.low %vm18998_vm6, %vm18994_vm5  ;;  %v12738_v27 = vld [vmem:[%s19320_s3 + $0x2a4] sm:$0xf] }
 0x54e   : > { %v6947_v9 = vpack.c.bf16 %v6936_v17, %v6935_v23  ;;  %v6964_v42 = vsel %vm6956_vm9, %v6898_v5, %v6948_v52  ;;  %v11520_v10 = vor.u32 %v12672_v59, %v11517_v26  ;;  %vm6959_vm12 = vmpackc.low %vm19009_vm8, %vm19005_vm7  ;;  %v6968_v35 = vsel %vm6960_vm10, %v18942_v55, %v6952_v32  ;;  %v11829_v5 = vld [vmem:[%s19320_s3 + $0x308] sm:$0xf0]  ;;  %v12736_v59 = vld [vmem:[%s19320_s3 + $0x294] sm:$0xf] }
 0x54f   : > { %v6951_v13 = vpack.c.bf16 %v6943_v45, %v6942_v21  ;;  %7719 = vmatpush.bf16.msrb.mxu0 %v11528_v60  ;;  %7761 = vmatpush.bf16.msrb.mxu2 %v11720_v19  ;;  %v7088_v43 = vunpack.c.l.b16 %v6964_v42  ;;  %v7095_v54 = vunpack.c.l.b16 %v6968_v35  ;;  %v11704_v60 = vor.u32 %v12718_v31, %v11701_v53  ;;  %v12734_v22 = vld [vmem:[%s19320_s3 + $0x284] sm:$0xf] }
 0x550   : > { %v6963_v15 = vsel %vm6955_vm11, %v6897_v51, %v6947_v9  ;;  %7735 = vmatpush.bf16.msra.mxu1 %v11576_v33  ;;  %7749 = vmatpush.bf16.msra.mxu3 %v11640_v29  ;;  %v11824_v8 = vor.u32 %v12748_v18, %v11821_v16  ;;  %v11832_v11 = vor.u32 %v12750_v41, %v11829_v5  ;;  %v11805_v51 = vld [vmem:[%s19320_s3 + $0x2d8] sm:$0xf0]  ;;  %v12740_v33 = vld [vmem:[%s19320_s3 + $0x2b4] sm:$0xf] }
 0x551   : > { %v6967_v39 = vsel %vm6959_vm12, %v6901_v20, %v6951_v13  ;;  %v7086_v55 = vunpack.c.l.b16 %v6963_v15  ;;  %v7087_v49 = vunpack.c.h.b16 %v6963_v15  ;;  %v7102_v24 = vpack.c.b16 %v7095_v54, %v7088_v43  ;;  %v11797_v20 = vld [vmem:[%s19320_s3 + $0x2c8] sm:$0xf0]  ;;  %v11789_v29 = vld [vmem:[%s19320_s3 + $0x2b8] sm:$0xf0] }
 0x552   : > { %v7093_v44 = vunpack.c.l.b16 %v6967_v39  ;;  %v7094_v50 = vunpack.c.h.b16 %v6967_v39  ;;  %v11816_v14 = vor.u32 %v12746_v58, %v11813_v6  ;;  %v11808_v63 = vor.u32 %v12744_v38, %v11805_v51  ;;  %v11440_v9 = vld [vmem:[%s19325_s8 + $0x6] ss:$8 sm:$0x3] }
 0x553   : > { %7720 = vmatpush.bf16.msrb.mxu0 %v11520_v10  ;;  %7762 = vmatpush.bf16.msrb.mxu2 %v11712_v36  ;;  %v11800_v57 = vor.u32 %v12742_v34, %v11797_v20  ;;  %v11792_v7 = vor.u32 %v12740_v33, %v11789_v29  ;;  %v11784_v0 = vor.u32 %v12738_v27, %v11781_v37  ;;  %v7070_v42 = vperm.slane %v11440_v9, 0 }
 0x554   : > { %v7100_v19 = vpack.c.b16 %v7093_v44, %v7086_v55  ;;  %v7101_v48 = vpack.c.b16 %v7094_v50, %v7087_v49  ;;  %11833 = vmatmul.msk.bf16.vlgmr.msra.gmra.mxu0 %vm2557_vm0, %v7102_v24  ;;  %v7071_v36 = vperm.slane %v11440_v9, 1 }
 0x556   : > { %7666 = vmatmul.bf16.vlgmr.msrb.gmra.mxu1 %v7100_v19  ;;  %7680 = vmatmul.bf16.vlgmr.msrb.gmra.mxu3 %v7101_v48 }
 0x557   : > { %7721 = vmatpush.bf16.msrb.mxu0 %v11512_v4  ;;  %7763 = vmatpush.bf16.msrb.mxu2 %v11704_v60 }
 0x558   : > { %7791 = vmatpush.bf16.msrb.mxu1 %v11832_v11 }
 0x55a   : > { %7764 = vmatmul.bf16.vlgmr.msrb.gmra.mxu2 %v7100_v19 }
 0x55b   : > { %7770 = vmatpush.bf16.msra.mxu0 %v11824_v8 }
 0x55f   : > { %7771 = vmatpush.bf16.msra.mxu0 %v11816_v14 }
 0x563   : > { %7772 = vmatpush.bf16.msra.mxu0 %v11808_v63 }
 0x564   : > { %7722 = vmatmul.bf16.vlgmr.msrb.gmra.mxu0 %v18723_v40  ;;  %v11773_v40 = vld [vmem:[%s19320_s3 + $0x298] sm:$0xf0] }
 0x565   : > { %v11776_v28 = vor.u32 %v12736_v59, %v11773_v40 }
 0x566   : > { %7736 = vmatmul.bf16.vlgmr.msra.gmra.mxu1 %v18790_v62  ;;  %7750 = vmatmul.bf16.vlgmr.msra.gmra.mxu3 %v18792_v46  ;;  %v11765_v62 = vld [vmem:[%s19320_s3 + $0x288] sm:$0xf0] }
 0x567   : > { %7773 = vmatpush.bf16.msra.mxu0 %v11800_v57  ;;  %v11768_v46 = vor.u32 %v12734_v22, %v11765_v62 }
 0x56b   : > { %7774 = vmatpush.bf16.msra.mxu0 %v11792_v7 }
 0x56f   : > { %7775 = vmatpush.bf16.msra.mxu0 %v11784_v0 }
 0x573   : > { %7776 = vmatpush.bf16.msra.mxu0 %v11776_v28 }
 0x576   : > { %11834 = vmatmul.msk.bf16.vlgmr.msrb.gmra.mxu1 %vm2557_vm0, %v7102_v24 }
 0x577   : > { %7777 = vmatpush.bf16.msra.mxu0 %v11768_v46 }
 0x57a   : > { %7778 = vmatmul.bf16.vlgmr.msra.gmra.mxu0 %v7101_v48 }
 0x5af   : > { %v7611_v52 = vpop.f32.mrf.mxu1 }
 0x5b0   : > { %v7612_v10 = vadd.f32 %v7611_v52, %v7070_v42 }
 0x5b5   : > { %v7625_v26 = vpop.f32.mrf.mxu3 }
 0x5b6   : > { %v7626_v31 = vadd.f32 %v7625_v26, %v7612_v10 }
 0x5b7   : > { %v7639_v47 = vpop.f32.mrf.mxu0  ;;  %v7613_v2 = vpop.f32.mrf.mxu1 }
 0x5b8   : > { %v7640_v53 = vadd.f32 %v7639_v47, %v7626_v31  ;;  %v7614_v43 = vadd.f32 %v7613_v2, %v7070_v42 }
 0x5bd   : > { %v7653_v61 = vpop.f32.mrf.mxu2  ;;  %v7627_v23 = vpop.f32.mrf.mxu3 }
 0x5be   : > { %v7654_v41 = vadd.f32 %v7653_v61, %v7640_v53  ;;  %v7628_v5 = vadd.f32 %v7627_v23, %v7614_v43  ;;  %v12839_v61 = vmov 256.0  }
 0x5bf   : > { %v7641_v3 = vpop.f32.mrf.mxu0  ;;  %12806 = vrcp.f32 %v12839_v61 }
 0x5c0   : > { %v7642_v4 = vadd.f32 %v7641_v3, %v7628_v5  ;;  %v12759_v5 = vld [vmem:[%s19321_s4 + $0x38] sm:$0xff] }
 0x5c1   : > { %8086 = vmatpush.bf16.msrb.mxu3 %v12759_v5 }
 0x5c5   : > { %v7655_v17 = vpop.f32.mrf.mxu2  ;;  %v12807_v3 = vpop.eup %12806 }
 0x5c6   : > { %v7656_v6 = vadd.f32 %v7655_v17, %v7642_v4  ;;  %v7805_v2 = vmul.f32 256.0, %v12807_v3  ;;  %vm7809_vm13 = vweird.f32 %v12807_v3  ;;  %v12758_v4 = vld [vmem:[%s19321_s4 + $0x30] sm:$0xff] }
 0x5c7   : > { %8087 = vmatpush.bf16.msrb.mxu3 %v12758_v4 }
 0x5c8   : > { %v7806_v23 = vsub.f32 1.0, %v7805_v2 }
 0x5ca   : > { %v7807_v17 = vmul.f32 %v12807_v3, %v7806_v23 }
 0x5cd   : > { %v7709_v32 = vpop.f32.mrf.mxu2 }
 0x5ce   : > { %v7710_v35 = vadd.f32 %v7709_v32, %v7071_v36 }
 0x5d1   : > { %v7695_v25 = vpop.f32.mrf.mxu0 }
 0x5d3   : > { %v7667_v30 = vpop.f32.mrf.mxu1 }
 0x5d4   : > { %v7668_v44 = vadd.f32 %v7667_v30, %v7654_v41 }
 0x5d5   : > { %v7711_v15 = vpop.f32.mrf.mxu2 }
 0x5d6   : > { %v7712_v49 = vadd.f32 %v7711_v15, %v7071_v36 }
 0x5d9   : > { %v7681_v56 = vpop.f32.mrf.mxu3  ;;  %v7697_v21 = vpop.f32.mrf.mxu0 }
 0x5da   : > { %v7682_v60 = vadd.f32 %v7681_v56, %v7668_v44 }
 0x5db   : > { %v7669_v45 = vpop.f32.mrf.mxu1 }
 0x5dc   : > { %v19102_v14 = vadd.f32 %v7695_v25, %v7682_v60  ;;  %v7670_v63 = vadd.f32 %v7669_v45, %v7656_v6  ;;  %v7808_v25 = vadd.f32 %v12807_v3, %v7807_v17  ;;  %v11835_v45 = vld [vmem:[%s19325_s8 + $0x7] ss:$8 sm:$0x3]  ;;  %v12766_v60 = vld [vmem:[%s19321_s4 + $0x70] sm:$0xff] }
 0x5dd   : > { %v7765_v24 = vpop.f32.mrf.mxu2  ;;  %v12757_v6 = vld [vmem:[%s19321_s4 + $0x28] sm:$0xff] }
 0x5de   : > { %v7813_v29 = vmul.f32 %v19102_v14, %v19102_v14  ;;  %v7810_v30 = vsel %vm7809_vm13, %v12807_v3, %v7808_v25  ;;  %8088 = vmatpush.bf16.msrb.mxu3 %v12757_v6 }
 0x5e1   : > { %v7683_v12 = vpop.f32.mrf.mxu3  ;;  %v7723_v13 = vpop.f32.mrf.mxu0 }
 0x5e2   : > { %v7724_v18 = vadd.f32 %v7723_v13, %v7710_v35  ;;  %v7684_v57 = vadd.f32 %v7683_v12, %v7670_v63  ;;  %v7866_v12 = vperm.slane %v11835_v45, 0  ;;  %v7867_v13 = vperm.slane %v11835_v45, 1 }
 0x5e3   : > { %v7737_v1 = vpop.f32.mrf.mxu1 }
 0x5e4   : > { %v7738_v55 = vadd.f32 %v7737_v1, %v7724_v18  ;;  %v19112_v40 = vadd.f32 %v7697_v21, %v7684_v57  ;;  %v7870_v31 = vpack.c.bf16 %v7867_v13, %v7866_v12 }
 0x5e5   : > { %v7767_v27 = vpop.f32.mrf.mxu2 }
 0x5e6   : > { %v7815_v47 = vmul.f32 %v19112_v40, %v19112_v40  ;;  %v7880_v43 = vunpack.c.l.b16 %v7870_v31 }
 0x5e9   : > { %v7751_v39 = vpop.f32.mrf.mxu3  ;;  %v7725_v16 = vpop.f32.mrf.mxu0 }
 0x5ea   : > { %v7752_v50 = vadd.f32 %v7751_v39, %v7738_v55  ;;  %v7726_v19 = vadd.f32 %v7725_v16, %v7712_v49  ;;  %v7881_v16 = vunpack.c.h.b16 %v7870_v31  ;;  %v12767_v55 = vld [vmem:[%s19321_s4 + $0x78] sm:$0xff]  ;;  %v7882_v49 = vpack.c.b16 %v7880_v43, %v7880_v43 }
 0x5eb   : > { %v7739_v54 = vpop.f32.mrf.mxu1  ;;  %8100 = vmatpush.bf16.msra.mxu1 %v12767_v55 }
 0x5ec   : > { %v7766_v48 = vadd.f32 %v7765_v24, %v7752_v50  ;;  %v7740_v38 = vadd.f32 %v7739_v54, %v7726_v19  ;;  %v7883_v19 = vpack.c.b16 %v7881_v16, %v7881_v16 }
 0x5ef   : > { %8101 = vmatpush.bf16.msra.mxu1 %v12766_v60 }
 0x5f1   : > { %v7753_v8 = vpop.f32.mrf.mxu3 }
 0x5f2   : > { %v7754_v34 = vadd.f32 %v7753_v8, %v7740_v38  ;;  %v7885_v8 = vpack.i.b16 %v7882_v49, %v7882_v49  ;;  %v12765_v38 = vld [vmem:[%s19321_s4 + $0x68] sm:$0xff] }
 0x5f3   : > { %v7793_v11 = vpop.f32.mrf.mxu1  ;;  %8102 = vmatpush.bf16.msra.mxu1 %v12765_v38 }
 0x5f4   : > { %v7768_v37 = vadd.f32 %v7767_v27, %v7754_v34  ;;  %v7889_v34 = vpack.i.b16 %v7883_v19, %v7883_v19  ;;  %v12752_v19 = vld [vmem:[%s19321_s4] sm:$0xff] }
 0x5f7   : > { %v7779_v58 = vpop.f32.mrf.mxu0 }
 0x5f8   : > { %v7780_v51 = vadd.f32 %v7779_v58, %v7766_v48 }
 0x5fa   : > { %v19104_v20 = vadd.f32 %v7793_v11, %v7780_v51  ;;  %v11836_v11 = vld [vmem:[%s19325_s8 + $0x38] ss:$8 sm:$0x3] }
 0x5fb   : > { %v7795_v22 = vpop.f32.mrf.mxu1  ;;  %v7874_v51 = vperm.slane %v11836_v11, 0  ;;  %v7875_v63 = vperm.slane %v11836_v11, 1 }
 0x5fc   : > { %v7798_v33 = vadd.f32 %v19104_v20, %v19102_v14  ;;  %v7814_v7 = vmul.f32 %v19104_v20, %v19104_v20 }
 0x5fe   : > { %7799 = vadd.xlane.f32.xlu2 %v7798_v33  ;;  %v7817_v0 = vadd.f32 %v7814_v7, %v7813_v29  ;;  %v7878_v33 = vpack.c.bf16 %v7875_v63, %v7874_v51  ;;  %v19157_v29 = vperm.slane %v7885_v8, 0 }
 0x5ff   : > { %v7781_v59 = vpop.f32.mrf.mxu0 }
 0x600   : > { %v7782_v28 = vadd.f32 %v7781_v59, %v7768_v37  ;;  %7818 = vadd.xlane.f32.xlu1 %v7817_v0  ;;  %v12756_v37 = vld [vmem:[%s19321_s4 + $0x20] sm:$0xff]  ;;  %v7905_v59 = vunpack.c.l.b16 %v7878_v33 }
 0x601   : > { %v12764_v0 = vld [vmem:[%s19321_s4 + $0x60] sm:$0xff]  ;;  %8089 = vmatpush.bf16.msrb.mxu3 %v12756_v37 }
 0x602   : > { %v19114_v62 = vadd.f32 %v7795_v22, %v7782_v28  ;;  %v7906_v28 = vunpack.c.h.b16 %v7878_v33  ;;  %v7907_v61 = vpack.c.b16 %v7905_v59, %v7905_v59  ;;  %8103 = vmatpush.bf16.msra.mxu1 %v12764_v0 }
 0x604   : > { %v7801_v46 = vadd.f32 %v19114_v62, %v19112_v40  ;;  %v7816_v52 = vmul.f32 %v19114_v62, %v19114_v62  ;;  %v7908_v3 = vpack.c.b16 %v7906_v28, %v7906_v28  ;;  %v7910_v25 = vpack.i.b16 %v7907_v61, %v7907_v61 }
 0x606   : > { %7802 = vadd.xlane.f32.xlu0 %v7801_v46  ;;  %v7820_v26 = vadd.f32 %v7816_v52, %v7815_v47  ;;  %v7891_v47 = vperm.slane %v7889_v34, 0 }
 0x608   : > { %7821 = vadd.xlane.f32.xlu2 %v7820_v26 }
 0x671   : > { %v7800_v56 = vpop.xlane.xlu2 %7799 }
 0x672   : > { %v19122_v21 = vmul.f32 %v7810_v30, %v7800_v56  ;;  %v7896_v56 = vunpack.c.l.bf16 %v19157_v29 }
 0x673   : > { %v7819_v9 = vpop.xlane.xlu1 %7818 }
 0x674   : > { %v7823_v32 = vmul.f32 %v7819_v9, %v7810_v30  ;;  %v7825_v42 = vmul.f32 %v19122_v21, %v19122_v21  ;;  %v7853_v22 = vsub.f32 %v19102_v14, %v19122_v21  ;;  %v7854_v46 = vsub.f32 %v19104_v20, %v19122_v21  ;;  %v12755_v14 = vld [vmem:[%s19321_s4 + $0x18] sm:$0xff] }
 0x675   : > { %v12763_v20 = vld [vmem:[%s19321_s4 + $0x58] sm:$0xff]  ;;  %v7897_v21 = vunpack.c.l.bf16 %v7891_v47  ;;  %8090 = vmatpush.bf16.msrb.mxu3 %v12755_v14 }
 0x676   : > { %v7827_v10 = vsub.f32 %v7823_v32, %v7825_v42  ;;  %v7912_v32 = vperm.slane %v7910_v25, 0  ;;  %8104 = vmatpush.bf16.msra.mxu1 %v12763_v20  ;;  %v7979_v14 = vld [vmem:[%s19325_s8 + $0x39] ss:$0 sm:$0xff] }
 0x678   : > { %v7829_v36 = vmax.f32 %v7827_v10, 0.0  ;;  %v7921_v16 = vunpack.c.l.bf16 %v7912_v32 }
 0x679   : > { %v7803_v1 = vpop.xlane.xlu0 %7802 }
 0x67a   : > { %v7831_v15 = vadd.f32 1e-05, %v7829_v36  ;;  %v19129_v35 = vmul.f32 %v7810_v30, %v7803_v1  ;;  %v12754_v36 = vld [vmem:[%s19321_s4 + $0x10] sm:$0xff] }
 0x67b   : > { %v7822_v53 = vpop.xlane.xlu2 %7821  ;;  %v12762_v1 = vld [vmem:[%s19321_s4 + $0x50] sm:$0xff]  ;;  %8091 = vmatpush.bf16.msrb.mxu3 %v12754_v36 }
 0x67c   : > { %12808 = vrsqrt.f32 %v7831_v15  ;;  %v7826_v18 = vmul.f32 %v19129_v35, %v19129_v35  ;;  %v7824_v39 = vmul.f32 %v7822_v53, %v7810_v30  ;;  %vm7839_vm15 = vweird.f32 %v7831_v15  ;;  %8105 = vmatpush.bf16.msra.mxu1 %v12762_v1 }
 0x67d   : > { %v7914_v30 = vpack.i.b16 %v7908_v3, %v7908_v3 }
 0x67e   : > { %v7828_v54 = vsub.f32 %v7824_v39, %v7826_v18  ;;  %v7855_v18 = vsub.f32 %v19112_v40, %v19129_v35  ;;  %v7856_v39 = vsub.f32 %v19114_v62, %v19129_v35  ;;  %v12761_v40 = vld [vmem:[%s19321_s4 + $0x48] sm:$0xff] }
 0x67f   : > { %v7916_v10 = vperm.slane %v7914_v30, 0 }
 0x680   : > { %v7830_v41 = vmax.f32 %v7828_v54, 0.0  ;;  %8106 = vmatpush.bf16.msra.mxu1 %v12761_v40 }
 0x682   : > { %v12809_v44 = vpop.eup %12808  ;;  %v19139_v24 = vadd.f32 1e-05, %v7830_v41  ;;  %v7922_v41 = vunpack.c.l.bf16 %v7916_v10 }
 0x683   : > { %v7834_v50 = vmul.f32 %v12809_v44, %v7831_v15  ;;  %vm7840_vm14 = vweird.f32 %v12809_v44 }
 0x684   : > { %12810 = vrsqrt.f32 %v19139_v24  ;;  %vm7841_vm1 = vmor %vm7839_vm15, %vm7840_vm14  ;;  %vm7849_vm3 = vweird.f32 %v19139_v24 }
 0x685   : > { %v7835_v48 = vmul.f32 %v12809_v44, %v7834_v50 }
 0x687   : > { %v7836_v58 = vmul.f32 0.5, %v7835_v48  ;;  %v12760_v48 = vld [vmem:[%s19321_s4 + $0x40] sm:$0xff] }
 0x688   : > { %8107 = vmatpush.bf16.msra.mxu1 %v12760_v48  ;;  %v12775_v48 = vld [vmem:[%s19322_s5 + $0x38] sm:$0xff] }
 0x689   : > { %v7837_v57 = vsub.f32 1.5, %v7836_v58  ;;  %8270 = vmatpush.bf16.msra.mxu2 %v12775_v48 }
 0x68a   : > { %v12811_v7 = vpop.eup %12810 }
 0x68b   : > { %v7838_v27 = vmul.f32 %v12809_v44, %v7837_v57  ;;  %v7844_v52 = vmul.f32 %v12811_v7, %v19139_v24  ;;  %vm7850_vm2 = vweird.f32 %v12811_v7 }
 0x68c   : > { %vm7851_vm4 = vmor %vm7849_vm3, %vm7850_vm2 }
 0x68d   : > { %v7842_v26 = vsel %vm7841_vm1, %v12809_v44, %v7838_v27  ;;  %v7845_v17 = vmul.f32 %v12811_v7, %v7844_v52  ;;  %v12753_v44 = vld [vmem:[%s19321_s4 + $0x8] sm:$0xff] }
 0x68e   : > { %v7857_v2 = vmul.f32 %v7853_v22, %v7842_v26  ;;  %v7858_v23 = vmul.f32 %v7854_v46, %v7842_v26  ;;  %8092 = vmatpush.bf16.msrb.mxu3 %v12753_v44 }
 0x68f   : > { %v7846_v9 = vmul.f32 0.5, %v7845_v17 }
 0x690   : > { %v7861_v45 = vpack.c.bf16 %v7858_v23, %v7857_v2 }
 0x691   : > { %v7847_v13 = vsub.f32 1.5, %v7846_v9 }
 0x692   : > { %v7892_v42 = vunpack.c.l.bf16 %v7861_v45  ;;  %v7893_v12 = vunpack.c.h.bf16 %v7861_v45  ;;  %8093 = vmatpush.bf16.msrb.mxu3 %v12752_v19 }
 0x693   : > { %v7848_v53 = vmul.f32 %v12811_v7, %v7847_v13  ;;  %v12840_v13 = vmov 128.0  }
 0x694   : > { %v7898_v31 = vmul.f32 %v7896_v56, %v7892_v42  ;;  %v7899_v15 = vmul.f32 %v7897_v21, %v7893_v12  ;;  %12812 = vrcp.f32 %v12840_v13  ;;  %v12768_v13 = vld [vmem:[%s19322_s5] sm:$0xff] }
 0x695   : > { %v7852_v54 = vsel %vm7851_vm4, %v12811_v7, %v7848_v53 }
 0x696   : > { %v7902_v43 = vpack.c.bf16 %v7899_v15, %v7898_v31  ;;  %v7859_v5 = vmul.f32 %v7855_v18, %v7852_v54  ;;  %v7860_v55 = vmul.f32 %v7856_v39, %v7852_v54 }
 0x698   : > { %v7917_v49 = vunpack.c.l.bf16 %v7902_v43  ;;  %v7918_v62 = vunpack.c.h.bf16 %v7902_v43  ;;  %v7862_v35 = vpack.c.bf16 %v7860_v55, %v7859_v5 }
 0x69a   : > { %v7923_v50 = vadd.f32 %v7921_v16, %v7917_v49  ;;  %v7924_v24 = vadd.f32 %v7922_v41, %v7918_v62  ;;  %v7894_v4 = vunpack.c.l.bf16 %v7862_v35  ;;  %v7895_v60 = vunpack.c.h.bf16 %v7862_v35  ;;  %v12813_v10 = vpop.eup %12812 }
 0x69b   : > { %v8119_v36 = vmul.f32 128.0, %v12813_v10  ;;  %vm8123_vm11 = vweird.f32 %v12813_v10 }
 0x69c   : > { %v7927_v8 = vpack.c.bf16 %v7924_v24, %v7923_v50  ;;  %v7900_v11 = vmul.f32 %v7896_v56, %v7894_v4  ;;  %v7901_v58 = vmul.f32 %v7897_v21, %v7895_v60 }
 0x69d   : > { %v8120_v1 = vsub.f32 1.0, %v8119_v36 }
 0x69e   : > { %v7903_v6 = vpack.c.bf16 %v7901_v58, %v7900_v11  ;;  %v7929_v38 = vunpack.c.l.bf16 %v7927_v8  ;;  %v7930_v51 = vunpack.c.h.bf16 %v7927_v8  ;;  %v12774_v11 = vld [vmem:[%s19322_s5 + $0x30] sm:$0xff] }
 0x69f   : > { %v8121_v31 = vmul.f32 %v12813_v10, %v8120_v1  ;;  %8271 = vmatpush.bf16.msra.mxu2 %v12774_v11  ;;  %v12841_v11 = vmov 64.0  }
 0x6a0   : > { %v7919_v63 = vunpack.c.l.bf16 %v7903_v6  ;;  %v7920_v34 = vunpack.c.h.bf16 %v7903_v6  ;;  %v7937_v29 = vmul.f32 0.20019531, %v7929_v38  ;;  %v7938_v7 = vmul.f32 0.20019531, %v7930_v51  ;;  %v8169_v6 = vld [vmem:[%s19325_s8 + $0x3a] ss:$0 sm:$0xff] }
 0x6a1   : > { %vm7933_vm5 = vcmp.gt.f32.partialorder %v7929_v38, 0.0  ;;  %vm7934_vm6 = vcmp.gt.f32.partialorder %v7930_v51, 0.0  ;;  %v8122_v15 = vadd.f32 %v12813_v10, %v8121_v31  ;;  %v12773_v51 = vld [vmem:[%s19322_s5 + $0x28] sm:$0xff] }
 0x6a2   : > { %v7925_v57 = vadd.f32 %v7921_v16, %v7919_v63  ;;  %v7926_v33 = vadd.f32 %v7922_v41, %v7920_v34  ;;  %v7941_v59 = vpack.c.bf16 %v7938_v7, %v7937_v29  ;;  %vm7943_vm9 = vmpackc.low %vm7934_vm6, %vm7933_vm5 }
 0x6a3   : > { %v8124_v53 = vsel %vm8123_vm11, %v12813_v10, %v8122_v15  ;;  %8272 = vmatpush.bf16.msra.mxu2 %v12773_v51 }
 0x6a4   : > { %v7928_v27 = vpack.c.bf16 %v7926_v33, %v7925_v57  ;;  %v7945_v47 = vsel %vm7943_vm9, %v7927_v8, %v7941_v59  ;;  %v8170_v33 = vpack.c.bf16 %v8169_v6, %v8169_v6  ;;  %v8171_v59 = vld [vmem:[%s19325_s8 + $0x3b] ss:$0 sm:$0xff] }
 0x6a5   : > { %v7982_v26 = vunpack.c.l.b16 %v7945_v47  ;;  %v7983_v3 = vunpack.c.h.b16 %v7945_v47  ;;  %v12771_v47 = vld [vmem:[%s19322_s5 + $0x18] sm:$0xff] }
 0x6a6   : > { %v7931_v37 = vunpack.c.l.bf16 %v7928_v27  ;;  %v7932_v0 = vunpack.c.h.bf16 %v7928_v27 }
 0x6a8   : > { %vm7935_vm7 = vcmp.gt.f32.partialorder %v7931_v37, 0.0  ;;  %vm7936_vm8 = vcmp.gt.f32.partialorder %v7932_v0, 0.0  ;;  %v7939_v28 = vmul.f32 0.20019531, %v7931_v37  ;;  %v7940_v22 = vmul.f32 0.20019531, %v7932_v0 }
 0x6a9   : > { %vm7944_vm10 = vmpackc.low %vm7936_vm8, %vm7935_vm7  ;;  %vm8284_vm7 = vcmask 523264  }
 0x6aa   : > { %v7942_v46 = vpack.c.bf16 %v7940_v22, %v7939_v28  ;;  %v8175_v28 = vunpack.c.l.bf16 %v8170_v33 }
 0x6ac   : > { %v7946_v52 = vsel %vm7944_vm10, %v7928_v27, %v7942_v46  ;;  %v12772_v27 = vld [vmem:[%s19322_s5 + $0x20] sm:$0xff] }
 0x6ad   : > { %v7984_v61 = vunpack.c.l.b16 %v7946_v52  ;;  %v7985_v2 = vunpack.c.h.b16 %v7946_v52  ;;  %8273 = vmatpush.bf16.msra.mxu2 %v12772_v27  ;;  %v8172_v52 = vpack.c.bf16 %v8171_v59, %v8171_v59 }
 0x6af   : > { %v7986_v23 = vpack.c.b16 %v7984_v61, %v7982_v26  ;;  %v7987_v17 = vpack.c.b16 %v7985_v2, %v7983_v3 }
 0x6b1   : > { %8094 = vmatmul.bf16.vlgmr.msrb.gmra.mxu3 %v7986_v23  ;;  %8108 = vmatmul.bf16.vlgmr.msra.gmra.mxu1 %v7987_v17  ;;  %v12770_v17 = vld [vmem:[%s19322_s5 + $0x10] sm:$0xff] }
 0x6b2   : > { %8274 = vmatpush.bf16.msra.mxu2 %v12771_v47 }
 0x6b6   : > { %8275 = vmatpush.bf16.msra.mxu2 %v12770_v17 }
 0x72e   : > { %v8109_v20 = vpop.f32.mrf.mxu1 }
 0x734   : > { %v8095_v25 = vpop.f32.mrf.mxu3 }
 0x735   : > { %v8096_v30 = vadd.f32 %v8095_v25, %v7979_v14 }
 0x736   : > { %v8111_v32 = vpop.f32.mrf.mxu1 }
 0x737   : > { %v8110_v56 = vadd.f32 %v8109_v20, %v8096_v30 }
 0x739   : > { %8114 = vadd.xlane.f32.xlu0 %v8110_v56  ;;  %v8127_v21 = vmul.f32 %v8110_v56, %v8110_v56 }
 0x73b   : > { %8129 = vadd.xlane.f32.xlu2 %v8127_v21 }
 0x73c   : > { %v8097_v45 = vpop.f32.mrf.mxu3 }
 0x73d   : > { %v8098_v9 = vadd.f32 %v8097_v45, %v7979_v14  ;;  %v8182_v14 = vunpack.c.l.bf16 %v8172_v52  ;;  %v12769_v45 = vld [vmem:[%s19322_s5 + $0x8] sm:$0xff] }
 0x73e   : > { %8276 = vmatpush.bf16.msra.mxu2 %v12769_v45 }
 0x73f   : > { %v19205_v42 = vadd.f32 %v8111_v32, %v8098_v9 }
 0x741   : > { %8116 = vadd.xlane.f32.xlu1 %v19205_v42  ;;  %v8128_v12 = vmul.f32 %v19205_v42, %v19205_v42 }
 0x742   : > { %8277 = vmatpush.bf16.msra.mxu2 %v12768_v13 }
 0x743   : > { %8131 = vadd.xlane.f32.xlu0 %v8128_v12 }
 0x7ac   : > { %v8115_v18 = vpop.xlane.xlu0 %8114 }
 0x7ad   : > { %v8125_v39 = vmul.f32 %v8124_v53, %v8115_v18 }
 0x7ae   : > { %v8130_v43 = vpop.xlane.xlu2 %8129 }
 0x7af   : > { %v8135_v54 = vmul.f32 %v8125_v39, %v8125_v39  ;;  %v8133_v16 = vmul.f32 %v8130_v43, %v8124_v53  ;;  %v8163_v57 = vsub.f32 %v8110_v56, %v8125_v39 }
 0x7b1   : > { %v8137_v41 = vsub.f32 %v8133_v16, %v8135_v54 }
 0x7b3   : > { %v8139_v5 = vmax.f32 %v8137_v41, 0.0 }
 0x7b4   : > { %v8117_v44 = vpop.xlane.xlu1 %8116 }
 0x7b5   : > { %v8141_v55 = vadd.f32 1e-05, %v8139_v5  ;;  %v8126_v40 = vmul.f32 %v8124_v53, %v8117_v44 }
 0x7b6   : > { %v8132_v49 = vpop.xlane.xlu0 %8131 }
 0x7b7   : > { %12814 = vrsqrt.f32 %v8141_v55  ;;  %v8134_v62 = vmul.f32 %v8132_v49, %v8124_v53  ;;  %v8136_v35 = vmul.f32 %v8126_v40, %v8126_v40  ;;  %vm8149_vm13 = vweird.f32 %v8141_v55 }
 0x7b8   : > { %v8164_v23 = vsub.f32 %v19205_v42, %v8126_v40  ;;  %v8215_v40 = vld [vmem:[%s19325_s8 + $0x3c] ss:$0 sm:$0xff] }
 0x7b9   : > { %v8138_v50 = vsub.f32 %v8134_v62, %v8136_v35 }
 0x7bb   : > { %v8140_v24 = vmax.f32 %v8138_v50, 0.0 }
 0x7bd   : > { %v12815_v4 = vpop.eup %12814  ;;  %v8142_v19 = vadd.f32 1e-05, %v8140_v24 }
 0x7be   : > { %v8144_v60 = vmul.f32 %v12815_v4, %v8141_v55  ;;  %vm8150_vm12 = vweird.f32 %v12815_v4 }
 0x7bf   : > { %12816 = vrsqrt.f32 %v8142_v19  ;;  %vm8151_vm14 = vmor %vm8149_vm13, %vm8150_vm12  ;;  %vm8159_vm1 = vweird.f32 %v8142_v19 }
 0x7c0   : > { %v8145_v8 = vmul.f32 %v12815_v4, %v8144_v60  ;;  %12818 = vrcp.f32 %v12841_v11 }
 0x7c2   : > { %v8146_v58 = vmul.f32 0.5, %v8145_v8 }
 0x7c4   : > { %v8147_v38 = vsub.f32 1.5, %v8146_v58 }
 0x7c5   : > { %v12817_v63 = vpop.eup %12816 }
 0x7c6   : > { %v8148_v34 = vmul.f32 %v12815_v4, %v8147_v38  ;;  %v8154_v29 = vmul.f32 %v12817_v63, %v8142_v19  ;;  %vm8160_vm15 = vweird.f32 %v12817_v63  ;;  %v12819_v58 = vpop.eup %12818 }
 0x7c7   : > { %vm8161_vm2 = vmor %vm8159_vm1, %vm8160_vm15  ;;  %v8292_v6 = vmul.f32 64.0, %v12819_v58  ;;  %vm8296_vm8 = vweird.f32 %v12819_v58 }
 0x7c8   : > { %v8152_v7 = vsel %vm8151_vm14, %v12815_v4, %v8148_v34  ;;  %v8155_v0 = vmul.f32 %v12817_v63, %v8154_v29 }
 0x7c9   : > { %v8165_v37 = vmul.f32 %v8163_v57, %v8152_v7  ;;  %v8293_v38 = vsub.f32 1.0, %v8292_v6 }
 0x7ca   : > { %v8156_v46 = vmul.f32 0.5, %v8155_v0 }
 0x7cb   : > { %v8167_v22 = vpack.c.bf16 %v8165_v37, %v8165_v37  ;;  %v8294_v51 = vmul.f32 %v12819_v58, %v8293_v38 }
 0x7cc   : > { %v8157_v61 = vsub.f32 1.5, %v8156_v46 }
 0x7cd   : > { %v8173_v26 = vunpack.c.l.bf16 %v8167_v22 }
 0x7ce   : > { %v8158_v2 = vmul.f32 %v12817_v63, %v8157_v61 }
 0x7cf   : > { %v8176_v3 = vmul.f32 %v8175_v28, %v8173_v26 }
 0x7d0   : > { %v8162_v25 = vsel %vm8161_vm2, %v12817_v63, %v8158_v2  ;;  %v8295_v63 = vadd.f32 %v12819_v58, %v8294_v51 }
 0x7d1   : > { %v8178_v20 = vpack.c.bf16 %v8176_v3, %v8176_v3  ;;  %v8166_v30 = vmul.f32 %v8164_v23, %v8162_v25 }
 0x7d2   : > { %v8297_v34 = vsel %vm8296_vm8, %v12819_v58, %v8295_v63 }
 0x7d3   : > { %v8180_v56 = vunpack.c.l.bf16 %v8178_v20  ;;  %v8168_v21 = vpack.c.bf16 %v8166_v30, %v8166_v30  ;;  %v8344_v20 = vld [vmem:[%s19325_s8 + $0x3d] ss:$0 sm:$0xff] }
 0x7d5   : > { %v8183_v9 = vadd.f32 %v8182_v14, %v8180_v56  ;;  %v8174_v32 = vunpack.c.l.bf16 %v8168_v21  ;;  %v12779_v21 = vld [vmem:[%s19323_s6 + $0x18] sm:$0xff] }
 0x7d6   : > { %8419 = vmatpush.bf16.msrb.mxu0 %v12779_v21 }
 0x7d7   : > { %v8185_v42 = vpack.c.bf16 %v8183_v9, %v8183_v9  ;;  %v8177_v12 = vmul.f32 %v8175_v28, %v8174_v32  ;;  %v8345_v9 = vpack.c.bf16 %v8344_v20, %v8344_v20 }
 0x7d9   : > { %v8179_v10 = vpack.c.bf16 %v8177_v12, %v8177_v12  ;;  %v8187_v36 = vunpack.c.l.bf16 %v8185_v42  ;;  %v12778_v12 = vld [vmem:[%s19323_s6 + $0x10] sm:$0xff] }
 0x7da   : > { %8420 = vmatpush.bf16.msrb.mxu0 %v12778_v12 }
 0x7db   : > { %v8181_v1 = vunpack.c.l.bf16 %v8179_v10  ;;  %v8191_v15 = vmul.f32 0.20019531, %v8187_v36  ;;  %vm8189_vm3 = vcmp.gt.f32.partialorder %v8187_v36, 0.0  ;;  %v8346_v36 = vld [vmem:[%s19325_s8 + $0x3e] ss:$0 sm:$0xff] }
 0x7dc   : > { %vm8195_vm5 = vmpackc.low %vm8189_vm3, %vm8189_vm3 }
 0x7dd   : > { %v8184_v31 = vadd.f32 %v8182_v14, %v8181_v1  ;;  %v8193_v39 = vpack.c.bf16 %v8191_v15, %v8191_v15  ;;  %v8350_v1 = vunpack.c.l.bf16 %v8345_v9 }
 0x7df   : > { %v8186_v53 = vpack.c.bf16 %v8184_v31, %v8184_v31  ;;  %v8197_v16 = vsel %vm8195_vm5, %v8185_v42, %v8193_v39 }
 0x7e0   : > { %v8218_v5 = vunpack.c.l.b16 %v8197_v16 }
 0x7e1   : > { %v8188_v18 = vunpack.c.l.bf16 %v8186_v53 }
 0x7e3   : > { %vm8190_vm4 = vcmp.gt.f32.partialorder %v8188_v18, 0.0  ;;  %v8192_v43 = vmul.f32 0.20019531, %v8188_v18  ;;  %v8347_v18 = vpack.c.bf16 %v8346_v36, %v8346_v36 }
 0x7e4   : > { %vm8196_vm6 = vmpackc.low %vm8190_vm4, %vm8190_vm4  ;;  %vm8429_vm4 = vcmask 261120  }
 0x7e5   : > { %v8194_v54 = vpack.c.bf16 %v8192_v43, %v8192_v43 }
 0x7e7   : > { %v8198_v41 = vsel %vm8196_vm6, %v8186_v53, %v8194_v54  ;;  %v12777_v53 = vld [vmem:[%s19323_s6 + $0x8] sm:$0xff] }
 0x7e8   : > { %v8219_v55 = vunpack.c.l.b16 %v8198_v41  ;;  %8421 = vmatpush.bf16.msrb.mxu0 %v12777_v53 }
 0x7ea   : > { %v8220_v44 = vpack.c.b16 %v8219_v55, %v8218_v5  ;;  %v12776_v5 = vld [vmem:[%s19323_s6] sm:$0xff]  ;;  %v8357_v55 = vunpack.c.l.bf16 %v8347_v18 }
 0x7ec   : > { %8278 = vmatmul.bf16.vlgmr.msra.gmra.mxu2 %v8220_v44  ;;  %8422 = vmatpush.bf16.msrb.mxu0 %v12776_v5  ;;  %v8489_v5 = vld [vmem:[%s19325_s8 + $0x70] ss:$0 sm:$0xff] }
 0x86f   : > { %v8279_v49 = vpop.f32.mrf.mxu2 }
 0x870   : > { %v8280_v62 = vadd.f32 %v8279_v49, %v8215_v40 }
 0x872   : > { %v8285_v35 = vsel %vm8284_vm7, %v8280_v62, 0.0  ;;  %v8300_v50 = vmul.f32 %v8280_v62, %v8280_v62 }
 0x873   : > { %8286 = vadd.xlane.f32.xlu1 %v8285_v35 }
 0x874   : > { %v8302_v24 = vsel %vm8284_vm7, %v8300_v50, 0.0 }
 0x875   : > { %8303 = vadd.xlane.f32.xlu0 %v8302_v24 }
 0x877   : > { %v8281_v4 = vpop.f32.mrf.mxu2 }
 0x878   : > { %v19246_v60 = vadd.f32 %v8281_v4, %v8215_v40 }
 0x87a   : > { %v8288_v19 = vsel %vm8284_vm7, %v19246_v60, 0.0  ;;  %v8301_v48 = vmul.f32 %v19246_v60, %v19246_v60 }
 0x87b   : > { %8289 = vadd.xlane.f32.xlu2 %v8288_v19 }
 0x87c   : > { %v8305_v8 = vsel %vm8284_vm7, %v8301_v48, 0.0 }
 0x87d   : > { %8306 = vadd.xlane.f32.xlu1 %v8305_v8 }
 0x8e6   : > { %v8287_v57 = vpop.xlane.xlu1 %8286 }
 0x8e7   : > { %v8298_v33 = vmul.f32 %v8297_v34, %v8287_v57 }
 0x8e8   : > { %v8304_v29 = vpop.xlane.xlu0 %8303 }
 0x8e9   : > { %v8310_v7 = vmul.f32 %v8298_v33, %v8298_v33  ;;  %v8308_v27 = vmul.f32 %v8304_v29, %v8297_v34  ;;  %v8338_v45 = vsub.f32 %v8280_v62, %v8298_v33 }
 0x8eb   : > { %v8312_v37 = vsub.f32 %v8308_v27, %v8310_v7 }
 0x8ed   : > { %v8314_v0 = vmax.f32 %v8312_v37, 0.0  ;;  %v8382_v37 = vld [vmem:[%s19325_s8 + $0x3f] ss:$0 sm:$0xff] }
 0x8ee   : > { %v8290_v59 = vpop.xlane.xlu2 %8289 }
 0x8ef   : > { %v8316_v28 = vadd.f32 1e-05, %v8314_v0  ;;  %v8299_v22 = vmul.f32 %v8297_v34, %v8290_v59 }
 0x8f0   : > { %v8307_v46 = vpop.xlane.xlu1 %8306 }
 0x8f1   : > { %12820 = vrsqrt.f32 %v8316_v28  ;;  %v8311_v47 = vmul.f32 %v8299_v22, %v8299_v22  ;;  %v8309_v52 = vmul.f32 %v8307_v46, %v8297_v34  ;;  %vm8324_vm10 = vweird.f32 %v8316_v28 }
 0x8f2   : > { %v8339_v41 = vsub.f32 %v19246_v60, %v8299_v22 }
 0x8f3   : > { %v8313_v26 = vsub.f32 %v8309_v52, %v8311_v47 }
 0x8f5   : > { %v8315_v61 = vmax.f32 %v8313_v26, 0.0 }
 0x8f7   : > { %v12821_v3 = vpop.eup %12820  ;;  %v8317_v23 = vadd.f32 1e-05, %v8315_v61 }
 0x8f8   : > { %v8319_v2 = vmul.f32 %v12821_v3, %v8316_v28  ;;  %vm8325_vm9 = vweird.f32 %v12821_v3 }
 0x8f9   : > { %12822 = vrsqrt.f32 %v8317_v23  ;;  %vm8326_vm11 = vmor %vm8324_vm10, %vm8325_vm9  ;;  %vm8334_vm13 = vweird.f32 %v8317_v23 }
 0x8fa   : > { %v8320_v17 = vmul.f32 %v12821_v3, %v8319_v2  ;;  %v12842_v2 = vmov 32.0  }
 0x8fb   : > { %12824 = vrcp.f32 %v12842_v2 }
 0x8fc   : > { %v8321_v14 = vmul.f32 0.5, %v8320_v17 }
 0x8fe   : > { %v8322_v25 = vsub.f32 1.5, %v8321_v14 }
 0x8ff   : > { %v12823_v30 = vpop.eup %12822 }
 0x900   : > { %v8323_v56 = vmul.f32 %v12821_v3, %v8322_v25  ;;  %v8329_v32 = vmul.f32 %v12823_v30, %v8317_v23  ;;  %vm8335_vm12 = vweird.f32 %v12823_v30 }
 0x901   : > { %vm8336_vm14 = vmor %vm8334_vm13, %vm8335_vm12  ;;  %v12825_v23 = vpop.eup %12824 }
 0x902   : > { %v8327_v42 = vsel %vm8326_vm11, %v12821_v3, %v8323_v56  ;;  %v8330_v10 = vmul.f32 %v12823_v30, %v8329_v32  ;;  %v8437_v17 = vmul.f32 32.0, %v12825_v23  ;;  %vm8441_vm5 = vweird.f32 %v12825_v23 }
 0x903   : > { %v8340_v13 = vmul.f32 %v8338_v45, %v8327_v42 }
 0x904   : > { %v8331_v15 = vmul.f32 0.5, %v8330_v10  ;;  %v8438_v14 = vsub.f32 1.0, %v8437_v17 }
 0x905   : > { %v8342_v31 = vpack.c.bf16 %v8340_v13, %v8340_v13 }
 0x906   : > { %v8332_v43 = vsub.f32 1.5, %v8331_v15  ;;  %v8439_v20 = vmul.f32 %v12825_v23, %v8438_v14 }
 0x907   : > { %v8348_v39 = vunpack.c.l.bf16 %v8342_v31 }
 0x908   : > { %v8333_v16 = vmul.f32 %v12823_v30, %v8332_v43  ;;  %v8440_v25 = vadd.f32 %v12825_v23, %v8439_v20 }
 0x909   : > { %v8351_v54 = vmul.f32 %v8350_v1, %v8348_v39 }
 0x90a   : > { %v8337_v40 = vsel %vm8336_vm14, %v12823_v30, %v8333_v16  ;;  %v8442_v30 = vsel %vm8441_vm5, %v12825_v23, %v8440_v25 }
 0x90b   : > { %v8353_v44 = vpack.c.bf16 %v8351_v54, %v8351_v54  ;;  %v8341_v49 = vmul.f32 %v8339_v41, %v8337_v40 }
 0x90d   : > { %v8355_v62 = vunpack.c.l.bf16 %v8353_v44  ;;  %v8343_v35 = vpack.c.bf16 %v8341_v49, %v8341_v49  ;;  %v12781_v49 = vld [vmem:[%s19324_s7 + $0x8] sm:$0xff] }
 0x90e   : > { %8550 = vmatpush.bf16.msra.mxu3 %v12781_v49 }
 0x90f   : > { %v8358_v50 = vadd.f32 %v8357_v55, %v8355_v62  ;;  %v8349_v24 = vunpack.c.l.bf16 %v8343_v35  ;;  %v8490_v35 = vpack.c.bf16 %v8489_v5, %v8489_v5 }
 0x911   : > { %v8360_v4 = vpack.c.bf16 %v8358_v50, %v8358_v50  ;;  %v8352_v19 = vmul.f32 %v8350_v1, %v8349_v24 }
 0x913   : > { %v8362_v48 = vunpack.c.l.bf16 %v8360_v4  ;;  %v8354_v8 = vpack.c.bf16 %v8352_v19, %v8352_v19 }
 0x915   : > { %v8356_v60 = vunpack.c.l.bf16 %v8354_v8  ;;  %v8366_v11 = vmul.f32 0.20019531, %v8362_v48  ;;  %vm8364_vm15 = vcmp.gt.f32.partialorder %v8362_v48, 0.0  ;;  %v8491_v8 = vld [vmem:[%s19325_s8 + $0x71] ss:$0 sm:$0xff] }
 0x916   : > { %vm8370_vm2 = vmpackc.low %vm8364_vm15, %vm8364_vm15 }
 0x917   : > { %v8359_v58 = vadd.f32 %v8357_v55, %v8356_v60  ;;  %v8368_v38 = vpack.c.bf16 %v8366_v11, %v8366_v11  ;;  %v8495_v60 = vunpack.c.l.bf16 %v8490_v35 }
 0x919   : > { %v8361_v6 = vpack.c.bf16 %v8359_v58, %v8359_v58  ;;  %v8372_v57 = vsel %vm8370_vm2, %v8360_v4, %v8368_v38  ;;  %v12780_v4 = vld [vmem:[%s19324_s7] sm:$0xff] }
 0x91a   : > { %v8385_v29 = vunpack.c.l.b16 %v8372_v57  ;;  %8551 = vmatpush.bf16.msra.mxu3 %v12780_v4 }
 0x91b   : > { %v8363_v51 = vunpack.c.l.bf16 %v8361_v6 }
 0x91d   : > { %v8367_v63 = vmul.f32 0.20019531, %v8363_v51  ;;  %vm8365_vm1 = vcmp.gt.f32.partialorder %v8363_v51, 0.0 }
 0x91e   : > { %vm8371_vm3 = vmpackc.low %vm8365_vm1, %vm8365_vm1 }
 0x91f   : > { %v8369_v34 = vpack.c.bf16 %v8367_v63, %v8367_v63 }
 0x921   : > { %v8373_v33 = vsel %vm8371_vm3, %v8361_v6, %v8369_v34  ;;  %v8492_v6 = vpack.c.bf16 %v8491_v8, %v8491_v8  ;;  %vm8576_vm3 = vcmask 7168  }
 0x922   : > { %v8386_v7 = vunpack.c.l.b16 %v8373_v33 }
 0x923   : > { %v8502_v33 = vunpack.c.l.bf16 %v8492_v6 }
 0x924   : > { %v8387_v27 = vpack.c.b16 %v8386_v7, %v8385_v29 }
 0x926   : > { %11949 = vmatmul.msk.bf16.vlgmr.msrb.gmra.mxu0 %vm8284_vm7, %v8387_v27 }
 0x9a3   : > { %v8424_v0 = vpop.f32.mrf.mxu0 }
 0x9a4   : > { %v8425_v59 = vadd.f32 %v8424_v0, %v8382_v37 }
 0x9a6   : > { %v8430_v28 = vsel %vm8429_vm4, %v8425_v59, 0.0  ;;  %v8445_v22 = vmul.f32 %v8425_v59, %v8425_v59 }
 0x9a7   : > { %8431 = vadd.xlane.f32.xlu2 %v8430_v28 }
 0x9a8   : > { %v8447_v46 = vsel %vm8429_vm4, %v8445_v22, 0.0 }
 0x9a9   : > { %8448 = vadd.xlane.f32.xlu1 %v8447_v46 }
 0x9ab   : > { %v8426_v47 = vpop.f32.mrf.mxu0 }
 0x9ac   : > { %v19278_v52 = vadd.f32 %v8426_v47, %v8382_v37 }
 0x9ae   : > { %v8433_v26 = vsel %vm8429_vm4, %v19278_v52, 0.0  ;;  %v8446_v61 = vmul.f32 %v19278_v52, %v19278_v52 }
 0x9af   : > { %8434 = vadd.xlane.f32.xlu0 %v8433_v26 }
 0x9b0   : > { %v8450_v3 = vsel %vm8429_vm4, %v8446_v61, 0.0 }
 0x9b1   : > { %8451 = vadd.xlane.f32.xlu2 %v8450_v3 }
 0xa1a   : > { %v8432_v56 = vpop.xlane.xlu2 %8431 }
 0xa1b   : > { %v8443_v21 = vmul.f32 %v8442_v30, %v8432_v56 }
 0xa1c   : > { %v8449_v45 = vpop.xlane.xlu1 %8448 }
 0xa1d   : > { %v8455_v9 = vmul.f32 %v8443_v21, %v8443_v21  ;;  %v8453_v32 = vmul.f32 %v8449_v45, %v8442_v30  ;;  %v8483_v62 = vsub.f32 %v8425_v59, %v8443_v21 }
 0xa1f   : > { %v8457_v42 = vsub.f32 %v8453_v32, %v8455_v9  ;;  %v8523_v9 = vld [vmem:[%s19325_s8 + $0x72] ss:$0 sm:$0xff] }
 0xa21   : > { %v8459_v12 = vmax.f32 %v8457_v42, 0.0 }
 0xa22   : > { %v8435_v13 = vpop.xlane.xlu0 %8434 }
 0xa23   : > { %v8461_v10 = vadd.f32 1e-05, %v8459_v12  ;;  %v8444_v36 = vmul.f32 %v8442_v30, %v8435_v13  ;;  %v8564_v13 = vld [vmem:[%s19325_s8 + $0x73] ss:$0 sm:$0xff] }
 0xa24   : > { %v8452_v1 = vpop.xlane.xlu2 %8451 }
 0xa25   : > { %12826 = vrsqrt.f32 %v8461_v10  ;;  %v8456_v31 = vmul.f32 %v8444_v36, %v8444_v36  ;;  %v8454_v15 = vmul.f32 %v8452_v1, %v8442_v30  ;;  %vm8469_vm7 = vweird.f32 %v8461_v10 }
 0xa26   : > { %v8484_v57 = vsub.f32 %v19278_v52, %v8444_v36 }
 0xa27   : > { %v8458_v53 = vsub.f32 %v8454_v15, %v8456_v31 }
 0xa29   : > { %v8460_v18 = vmax.f32 %v8458_v53, 0.0 }
 0xa2b   : > { %v12827_v39 = vpop.eup %12826  ;;  %v8462_v54 = vadd.f32 1e-05, %v8460_v18 }
 0xa2c   : > { %v8464_v43 = vmul.f32 %v12827_v39, %v8461_v10  ;;  %vm8470_vm6 = vweird.f32 %v12827_v39 }
 0xa2d   : > { %12828 = vrsqrt.f32 %v8462_v54  ;;  %vm8471_vm8 = vmor %vm8469_vm7, %vm8470_vm6  ;;  %vm8479_vm10 = vweird.f32 %v8462_v54 }
 0xa2e   : > { %v8465_v16 = vmul.f32 %v12827_v39, %v8464_v43 }
 0xa30   : > { %v8466_v41 = vmul.f32 0.5, %v8465_v16 }
 0xa32   : > { %v8467_v55 = vsub.f32 1.5, %v8466_v41 }
 0xa33   : > { %v12829_v44 = vpop.eup %12828 }
 0xa34   : > { %v8468_v40 = vmul.f32 %v12827_v39, %v8467_v55  ;;  %v8474_v50 = vmul.f32 %v12829_v44, %v8462_v54  ;;  %vm8480_vm9 = vweird.f32 %v12829_v44  ;;  %v8573_v54 = vld [vmem:[%s19325_s8 + $0x74] ss:$0 sm:$0xff] }
 0xa35   : > { %vm8481_vm11 = vmor %vm8479_vm10, %vm8480_vm9 }
 0xa36   : > { %v8472_v24 = vsel %vm8471_vm8, %v12827_v39, %v8468_v40  ;;  %v8475_v48 = vmul.f32 %v12829_v44, %v8474_v50 }
 0xa37   : > { %v8485_v19 = vmul.f32 %v8483_v62, %v8472_v24 }
 0xa38   : > { %v8476_v58 = vmul.f32 0.5, %v8475_v48 }
 0xa39   : > { %v8487_v11 = vpack.c.bf16 %v8485_v19, %v8485_v19 }
 0xa3a   : > { %v8477_v51 = vsub.f32 1.5, %v8476_v58 }
 0xa3b   : > { %v8493_v38 = vunpack.c.l.bf16 %v8487_v11 }
 0xa3c   : > { %v8478_v34 = vmul.f32 %v12829_v44, %v8477_v51 }
 0xa3d   : > { %v8496_v63 = vmul.f32 %v8495_v60, %v8493_v38 }
 0xa3e   : > { %v8482_v7 = vsel %vm8481_vm11, %v12829_v44, %v8478_v34 }
 0xa3f   : > { %v8498_v29 = vpack.c.bf16 %v8496_v63, %v8496_v63  ;;  %v8486_v27 = vmul.f32 %v8484_v57, %v8482_v7 }
 0xa41   : > { %v8500_v37 = vunpack.c.l.bf16 %v8498_v29  ;;  %v8488_v0 = vpack.c.bf16 %v8486_v27, %v8486_v27 }
 0xa43   : > { %v8503_v59 = vadd.f32 %v8502_v33, %v8500_v37  ;;  %v8494_v28 = vunpack.c.l.bf16 %v8488_v0 }
 0xa45   : > { %v8505_v22 = vpack.c.bf16 %v8503_v59, %v8503_v59  ;;  %v8497_v46 = vmul.f32 %v8495_v60, %v8494_v28 }
 0xa47   : > { %v8507_v47 = vunpack.c.l.bf16 %v8505_v22  ;;  %v8499_v26 = vpack.c.bf16 %v8497_v46, %v8497_v46 }
 0xa49   : > { %v8501_v61 = vunpack.c.l.bf16 %v8499_v26  ;;  %v8511_v3 = vmul.f32 0.20019531, %v8507_v47  ;;  %vm8509_vm12 = vcmp.gt.f32.partialorder %v8507_v47, 0.0 }
 0xa4a   : > { %vm8515_vm14 = vmpackc.low %vm8509_vm12, %vm8509_vm12 }
 0xa4b   : > { %v8504_v2 = vadd.f32 %v8502_v33, %v8501_v61  ;;  %v8513_v17 = vpack.c.bf16 %v8511_v3, %v8511_v3 }
 0xa4d   : > { %v8506_v23 = vpack.c.bf16 %v8504_v2, %v8504_v2  ;;  %v8517_v25 = vsel %vm8515_vm14, %v8505_v22, %v8513_v17 }
 0xa4e   : > { %v8526_v56 = vunpack.c.l.b16 %v8517_v25 }
 0xa4f   : > { %v8508_v14 = vunpack.c.l.bf16 %v8506_v23 }
 0xa51   : > { %v8512_v52 = vmul.f32 0.20019531, %v8508_v14  ;;  %vm8510_vm13 = vcmp.gt.f32.partialorder %v8508_v14, 0.0 }
 0xa52   : > { %vm8516_vm15 = vmpackc.low %vm8510_vm13, %vm8510_vm13 }
 0xa53   : > { %v8514_v20 = vpack.c.bf16 %v8512_v52, %v8512_v52 }
 0xa55   : > { %v8518_v30 = vsel %vm8516_vm15, %v8506_v23, %v8514_v20 }
 0xa56   : > { %v8527_v21 = vunpack.c.l.b16 %v8518_v30 }
 0xa58   : > { %v8528_v45 = vpack.c.b16 %v8527_v21, %v8526_v56 }
 0xa5a   : > { %11958 = vmatmul.msk.bf16.vlgmr.msra.gmra.mxu3 %vm8429_vm4, %v8528_v45 }
 0xadd   : > { %v8553_v32 = vpop.f32.mrf.mxu3 }
 0xade   : > { %v8554_v42 = vadd.f32 %v8553_v32, %v8523_v9 }
 0xae0   : > { %vm8558_vm1 = vcmp.gt.f32.partialorder %v8554_v42, 0.0  ;;  %v8560_v12 = vmul.f32 0.2, %v8554_v42 }
 0xae2   : > { %v8562_v10 = vsel %vm8558_vm1, %v8554_v42, %v8560_v12 }
 0xae3   : > { %v8565_v36 = vmul.f32 %v8564_v13, %v8562_v10 }
 0xae5   : > { %v8555_v1 = vpop.f32.mrf.mxu3  ;;  %v8567_v31 = vsel %vm2557_vm0, %v8565_v36, 0.0 }
 0xae6   : > { %v8556_v15 = vadd.f32 %v8555_v1, %v8523_v9  ;;  %8568 = vadd.xlane.f32.xlu0 %v8567_v31 }
 0xae8   : > { %vm8559_vm2 = vcmp.gt.f32.partialorder %v8556_v15, 0.0  ;;  %v8561_v53 = vmul.f32 0.2, %v8556_v15 }
 0xaea   : > { %v8563_v18 = vsel %vm8559_vm2, %v8556_v15, %v8561_v53 }
 0xaeb   : > { %v8566_v39 = vmul.f32 %v8564_v13, %v8563_v18 }
 0xaed   : > { %v8570_v43 = vsel %vm2557_vm0, %v8566_v39, 0.0 }
 0xaee   : > { %8571 = vadd.xlane.f32.xlu1 %v8570_v43 }
 0xb59   : > { %v8569_v16 = vpop.xlane.xlu0 %8568 }
 0xb5a   : > { %v8574_v41 = vadd.f32 %v8573_v54, %v8569_v16 }
 0xb5c   : > { %8577 = vst.msk [vmem:[%s337_s26] sm:$0xff] %vm8576_vm3, %v8574_v41 }
 0xb61   : > { %v8572_v5 = vpop.xlane.xlu1 %8571 }
 0xb62   : > { %v8575_v55 = vadd.f32 %v8573_v54, %v8572_v5 }
 0xb64   : > { %8578 = vst.msk [vmem:[%s337_s26 + $0x8] sm:$0xff] %vm8576_vm3, %v8575_v55 }
 0xb65 PF: > { %s19_s30 = sadd.s32 1, %s12836_s30  }
 0xb66   : > { %p16_p4 = scmp.ge.s32.totalorder %s19_s30, 4  }
 0xb68   :  { %18 = sbr.rel (!%p16_p4) target bundleno = 1 (0x1), region = 94 }

</bundles_post_ra>
